<compile_context>
chip_gen: v7x
topology: tpu7x:2x2x1
jax: 0.10.0
libtpu: 0.0.40
codegen_flags: <defaults>
</compile_context>

<pallas_src>
import dataclasses
import functools

import jax
import jax.numpy as jnp
from jax.experimental import pallas as pl
from jax.experimental.pallas import tpu as pltpu


# ----------------------------------------------------------------------------- #
# Common pallas_call plumbing
# ----------------------------------------------------------------------------- #
_COMPILER_PARAMS = pltpu.CompilerParams(
    dimension_semantics=("parallel",),
    vmem_limit_bytes=32 * 1024 * 1024,
)


def _const_spec(shape):
    """Weight/bias BlockSpec: whole array, constant block index -> DMA'd once,
    stays VMEM-resident across grid steps."""
    zeros = (0,) * len(shape)
    return pl.BlockSpec(shape, lambda i, _z=zeros: _z)


def _row_tile(n, target):
    """Largest multiple-of-8 divisor of n that is <= target (else full n)."""
    cands = [d for d in range(8, n + 1, 8) if n % d == 0 and d <= target]
    return max(cands) if cands else n


def _choose_node_tile(n_nodes, t, target_rows=512):
    # aim for ~512 token-rows per tile (well-pipelined, far from VMEM limits)
    return _row_tile(n_nodes, max(8, target_rows // max(t, 1)))


# ----------------------------------------------------------------------------- #
# Pallas kernels
# ----------------------------------------------------------------------------- #
def _bf16(x):
    return x.astype(jnp.bfloat16)


def _embed_micro_combine_kernel(tokemb_ref, idemb_ref, w_tok_ref, w_id_ref, b_ref,
                                comb_w_ref, comb_b_ref, tok_out_ref, comb_out_ref):
    # tok = relu(tok_emb @ Wt + id_emb @ Wi + b); comb = relu(mean_T(tok) @ Wc + bc)
    tn, t, d_tok = tokemb_ref.shape
    d_id = idemb_ref.shape[-1]
    e = w_tok_ref.shape[1]
    x_tok = _bf16(tokemb_ref[...].reshape(tn * t, d_tok))
    x_id = _bf16(idemb_ref[...].reshape(tn * t, d_id))
    acc = jnp.dot(x_tok, _bf16(w_tok_ref[...]), preferred_element_type=jnp.float32)
    acc = acc + jnp.dot(x_id, _bf16(w_id_ref[...]), preferred_element_type=jnp.float32)
    tok = jnp.maximum(acc + b_ref[...], 0.0).reshape(tn, t, e)
    tok_out_ref[...] = tok
    # TODO(synk): no token-padding mask over T (real module uses flattened ragged exprs).
    mean = jnp.mean(tok, axis=1)                                            # [tn, E]
    comb = jnp.dot(_bf16(mean), _bf16(comb_w_ref[...]),
                   preferred_element_type=jnp.float32)
    comb_out_ref[...] = jnp.maximum(comb + comb_b_ref[...], 0.0)


def _micro_combine_kernel(tok_ref, wt_ref, wm_ref, b_ref, comb_w_ref, comb_b_ref,
                          tok_out_ref, comb_out_ref):
    # new_tok = relu(tok @ Wt + mean_T(tok) @ Wm + b)   (context broadcast in VMEM)
    # comb    = relu(mean_T(new_tok) @ Wc + bc)
    tn, t, e = tok_ref.shape
    tok = tok_ref[...]
    old_mean = jnp.mean(tok, axis=1)                                        # [tn, E]
    ctx = jnp.dot(_bf16(old_mean), _bf16(wm_ref[...]),
                  preferred_element_type=jnp.float32)                       # [tn, E]
    acc = jnp.dot(_bf16(tok.reshape(tn * t, e)), _bf16(wt_ref[...]),
                  preferred_element_type=jnp.float32).reshape(tn, t, e)
    new_tok = jnp.maximum(acc + ctx[:, None, :] + b_ref[...], 0.0)
    tok_out_ref[...] = new_tok
    new_mean = jnp.mean(new_tok, axis=1)
    comb = jnp.dot(_bf16(new_mean), _bf16(comb_w_ref[...]),
                   preferred_element_type=jnp.float32)
    comb_out_ref[...] = jnp.maximum(comb + comb_b_ref[...], 0.0)


def _micro_kernel(tok_ref, wt_ref, wm_ref, b_ref, tok_out_ref):
    # after-macro micro re-encoder (no combiner output)
    tn, t, e = tok_ref.shape
    tok = tok_ref[...]
    old_mean = jnp.mean(tok, axis=1)
    ctx = jnp.dot(_bf16(old_mean), _bf16(wm_ref[...]),
                  preferred_element_type=jnp.float32)
    acc = jnp.dot(_bf16(tok.reshape(tn * t, e)), _bf16(wt_ref[...]),
                  preferred_element_type=jnp.float32).reshape(tn, t, e)
    tok_out_ref[...] = jnp.maximum(acc + ctx[:, None, :] + b_ref[...], 0.0)


def _mixer_kernel(tok_ref, macro_ref, wt_ref, wc_ref, b_ref, tok_out_ref):
    # tok = relu(tok @ Wt + macro_node @ Wc + b) — macro broadcast per node in VMEM
    tn, t, e = tok_ref.shape
    ctx = jnp.dot(_bf16(macro_ref[...]), _bf16(wc_ref[...]),
                  preferred_element_type=jnp.float32)                       # [tn, E]
    acc = jnp.dot(_bf16(tok_ref[...].reshape(tn * t, e)), _bf16(wt_ref[...]),
                  preferred_element_type=jnp.float32).reshape(tn, t, e)
    tok_out_ref[...] = jnp.maximum(acc + ctx[:, None, :] + b_ref[...], 0.0)


def _macro_kernel(comb_tile_ref, adj_ref, comb_full_ref, prev_ref,
                  wa_ref, wb_ref, wc_ref, b_ref, o_ref):
    # cfg = relu(comb @ Wa + (A_norm @ comb) @ Wb + prev_cfg @ Wc + b)
    # adjacency rows are tiled over the grid; comb_full stays VMEM-resident.
    # TODO(synk): for very large CFGs, tile the adjacency K axis with a VMEM
    # f32 accumulator instead of loading comb_full whole.
    neigh = jnp.dot(_bf16(adj_ref[...]), _bf16(comb_full_ref[...]),
                    preferred_element_type=jnp.float32)                     # [tn, C]
    acc = jnp.dot(_bf16(comb_tile_ref[...]), _bf16(wa_ref[...]),
                  preferred_element_type=jnp.float32)
    acc = acc + jnp.dot(_bf16(neigh), _bf16(wb_ref[...]),
                        preferred_element_type=jnp.float32)
    acc = acc + jnp.dot(_bf16(prev_ref[...]), _bf16(wc_ref[...]),
                        preferred_element_type=jnp.float32)
    o_ref[...] = jnp.maximum(acc + b_ref[...], 0.0)


def _dual_linear_relu_kernel(x1_ref, w1_ref, x2_ref, w2_ref, b_ref, o_ref):
    acc = jnp.dot(_bf16(x1_ref[...]), _bf16(w1_ref[...]),
                  preferred_element_type=jnp.float32)
    acc = acc + jnp.dot(_bf16(x2_ref[...]), _bf16(w2_ref[...]),
                        preferred_element_type=jnp.float32)
    o_ref[...] = jnp.maximum(acc + b_ref[...], 0.0)


# ----------------------------------------------------------------------------- #
# pallas_call wrappers (node-/row-tiled grids)
# ----------------------------------------------------------------------------- #
def embed_and_combine(tok_emb, id_emb, w_tok, w_id, b, comb_w, comb_b, node_tile):
    n_nodes, t, d_tok = tok_emb.shape
    d_id = id_emb.shape[-1]
    e = w_tok.shape[1]
    c = comb_w.shape[1]
    grid = (n_nodes // node_tile,)
    return pl.pallas_call(
        _embed_micro_combine_kernel,
        grid=grid,
        in_specs=[
            pl.BlockSpec((node_tile, t, d_tok), lambda i: (i, 0, 0)),
            pl.BlockSpec((node_tile, t, d_id), lambda i: (i, 0, 0)),
            _const_spec(w_tok.shape), _const_spec(w_id.shape), _const_spec(b.shape),
            _const_spec(comb_w.shape), _const_spec(comb_b.shape),
        ],
        out_specs=(pl.BlockSpec((node_tile, t, e), lambda i: (i, 0, 0)),
                   pl.BlockSpec((node_tile, c), lambda i: (i, 0))),
        out_shape=(jax.ShapeDtypeStruct((n_nodes, t, e), jnp.float32),
                   jax.ShapeDtypeStruct((n_nodes, c), jnp.float32)),
        compiler_params=_COMPILER_PARAMS,
    )(tok_emb, id_emb, w_tok, w_id, b, comb_w, comb_b)


def micro_and_combine(tok3d, wt, wm, b, comb_w, comb_b, node_tile):
    n_nodes, t, e = tok3d.shape
    c = comb_w.shape[1]
    grid = (n_nodes // node_tile,)
    return pl.pallas_call(
        _micro_combine_kernel,
        grid=grid,
        in_specs=[
            pl.BlockSpec((node_tile, t, e), lambda i: (i, 0, 0)),
            _const_spec(wt.shape), _const_spec(wm.shape), _const_spec(b.shape),
            _const_spec(comb_w.shape), _const_spec(comb_b.shape),
        ],
        out_specs=(pl.BlockSpec((node_tile, t, e), lambda i: (i, 0, 0)),
                   pl.BlockSpec((node_tile, c), lambda i: (i, 0))),
        out_shape=(jax.ShapeDtypeStruct((n_nodes, t, e), jnp.float32),
                   jax.ShapeDtypeStruct((n_nodes, c), jnp.float32)),
        compiler_params=_COMPILER_PARAMS,
    )(tok3d, wt, wm, b, comb_w, comb_b)


def micro_only(tok3d, wt, wm, b, node_tile):
    n_nodes, t, e = tok3d.shape
    grid = (n_nodes // node_tile,)
    return pl.pallas_call(
        _micro_kernel,
        grid=grid,
        in_specs=[
            pl.BlockSpec((node_tile, t, e), lambda i: (i, 0, 0)),
            _const_spec(wt.shape), _const_spec(wm.shape), _const_spec(b.shape),
        ],
        out_specs=pl.BlockSpec((node_tile, t, e), lambda i: (i, 0, 0)),
        out_shape=jax.ShapeDtypeStruct((n_nodes, t, e), jnp.float32),
        compiler_params=_COMPILER_PARAMS,
    )(tok3d, wt, wm, b)


def mixer(tok3d, macro, wt, wc, b, node_tile):
    n_nodes, t, e = tok3d.shape
    m = macro.shape[1]
    grid = (n_nodes // node_tile,)
    return pl.pallas_call(
        _mixer_kernel,
        grid=grid,
        in_specs=[
            pl.BlockSpec((node_tile, t, e), lambda i: (i, 0, 0)),
            pl.BlockSpec((node_tile, m), lambda i: (i, 0)),
            _const_spec(wt.shape), _const_spec(wc.shape), _const_spec(b.shape),
        ],
        out_specs=pl.BlockSpec((node_tile, t, e), lambda i: (i, 0, 0)),
        out_shape=jax.ShapeDtypeStruct((n_nodes, t, e), jnp.float32),
        compiler_params=_COMPILER_PARAMS,
    )(tok3d, macro, wt, wc, b)


def macro_update(comb_masked, adj, prev, wa, wb, wc, b, node_tile):
    n_nodes, c = comb_masked.shape
    m = wa.shape[1]
    grid = (n_nodes // node_tile,)
    return pl.pallas_call(
        _macro_kernel,
        grid=grid,
        in_specs=[
            pl.BlockSpec((node_tile, c), lambda i: (i, 0)),        # combined (row tile)
            pl.BlockSpec((node_tile, n_nodes), lambda i: (i, 0)),  # adjacency rows
            pl.BlockSpec((n_nodes, c), lambda i: (0, 0)),          # combined (full, resident)
            pl.BlockSpec((node_tile, m), lambda i: (i, 0)),        # previous macro
            _const_spec(wa.shape), _const_spec(wb.shape),
            _const_spec(wc.shape), _const_spec(b.shape),
        ],
        out_specs=pl.BlockSpec((node_tile, m), lambda i: (i, 0)),
        out_shape=jax.ShapeDtypeStruct((n_nodes, m), jnp.float32),
        compiler_params=_COMPILER_PARAMS,
    )(comb_masked, adj, comb_masked, prev, wa, wb, wc, b)


def dual_linear_relu(x1, w1, x2, w2, b):
    n = x1.shape[0]
    row_tile = _row_tile(n, 512)
    grid = (n // row_tile,)
    return pl.pallas_call(
        _dual_linear_relu_kernel,
        grid=grid,
        in_specs=[
            pl.BlockSpec((row_tile, x1.shape[1]), lambda i: (i, 0)),
            _const_spec(w1.shape),
            pl.BlockSpec((row_tile, x2.shape[1]), lambda i: (i, 0)),
            _const_spec(w2.shape),
            _const_spec(b.shape),
        ],
        out_specs=pl.BlockSpec((row_tile, w1.shape[1]), lambda i: (i, 0)),
        out_shape=jax.ShapeDtypeStruct((n, w1.shape[1]), jnp.float32),
        compiler_params=_COMPILER_PARAMS,
    )(x1, w1, x2, w2, b)


# ----------------------------------------------------------------------------- #
# Output container (registered as a pytree so it can cross the jit boundary)
# ----------------------------------------------------------------------------- #
@jax.tree_util.register_pytree_node_class
@dataclasses.dataclass
class HierarchicMicroMacroMethodCodeEncodings:
    identifiers_encodings: jax.Array
    unflattenable_final_micro_encodings: jax.Array  # [N_nodes, T, E] token encodings
    macro_encodings: jax.Array                      # [N_nodes, M] cfg-node encodings
    symbols_encodings: jax.Array                    # [N_symbols, S]

    def tree_flatten(self):
        return ((self.identifiers_encodings,
                 self.unflattenable_final_micro_encodings,
                 self.macro_encodings,
                 self.symbols_encodings), None)

    @classmethod
    def tree_unflatten(cls, aux, children):
        del aux
        return cls(*children)


# ----------------------------------------------------------------------------- #
# Parameter init (deterministic, synthetic)
# ----------------------------------------------------------------------------- #
def init_params(key, *, vocab_size, d_id, d_tok, e_dim, c_dim, m_dim, s_dim, nr_layers):
    def w(key, shape):
        fan_in = shape[0]
        return (jax.random.normal(key, shape, jnp.float32) / jnp.sqrt(fan_in)).astype(jnp.float32)

    keys = iter(jax.random.split(key, 64))
    p = {}
    p["tok_emb_table"] = jax.random.normal(next(keys), (vocab_size, d_tok), jnp.float32) * 0.1
    # embedder: split [tok ; id] -> E projection into its two K halves (no wrapper concat)
    p["emb_w_tok"] = w(next(keys), (d_tok, e_dim))
    p["emb_w_id"] = w(next(keys), (d_id, e_dim))
    p["emb_b"] = jnp.zeros((1, e_dim), jnp.float32)
    p["emb_comb_w"] = w(next(keys), (e_dim, c_dim))
    p["emb_comb_b"] = jnp.zeros((1, c_dim), jnp.float32)

    for l in range(nr_layers):
        p[f"micro_wt_{l}"] = w(next(keys), (e_dim, e_dim))
        p[f"micro_wm_{l}"] = w(next(keys), (e_dim, e_dim))
        p[f"micro_b_{l}"] = jnp.zeros((1, e_dim), jnp.float32)
        p[f"comb_w_{l}"] = w(next(keys), (e_dim, c_dim))
        p[f"comb_b_{l}"] = jnp.zeros((1, c_dim), jnp.float32)
        p[f"macro_wa_{l}"] = w(next(keys), (c_dim, m_dim))
        p[f"macro_wb_{l}"] = w(next(keys), (c_dim, m_dim))
        p[f"macro_wc_{l}"] = w(next(keys), (m_dim, m_dim))
        p[f"macro_b_{l}"] = jnp.zeros((1, m_dim), jnp.float32)
        p[f"mix_wt_{l}"] = w(next(keys), (e_dim, e_dim))
        p[f"mix_wc_{l}"] = w(next(keys), (m_dim, e_dim))
        p[f"mix_b_{l}"] = jnp.zeros((1, e_dim), jnp.float32)

    # after-macro micro encoder
    p["am_wt"] = w(next(keys), (e_dim, e_dim))
    p["am_wm"] = w(next(keys), (e_dim, e_dim))
    p["am_b"] = jnp.zeros((1, e_dim), jnp.float32)
    # symbols encoder: identifier branch + symbol-occurrences branch
    p["sym_wi"] = w(next(keys), (d_id, s_dim))
    p["sym_wo"] = w(next(keys), (e_dim, s_dim))
    p["sym_b"] = jnp.zeros((1, s_dim), jnp.float32)
    return p


# ----------------------------------------------------------------------------- #
# Forward pass
# ----------------------------------------------------------------------------- #
@functools.partial(jax.jit, static_argnames=("nr_layers",))
def hierarchic_micro_macro_forward(
    params,
    encoded_identifiers,        # [N_id, D_id]
    token_ids,                  # [N_nodes, T] int32
    token_to_identifier,        # [N_nodes, T] int32
    cfg_adjacency_norm,         # [N_nodes, N_nodes] f32, row-normalized
    cfg_nodes_has_expression,   # [N_nodes] f32 mask
    symbol_to_identifier,       # [N_sym] int32
    token_symbol_idx,           # [N_nodes, T] int32 (-1 if not a symbol occurrence)
    nr_layers=2,
):
    n_nodes, t = token_ids.shape
    n_sym = symbol_to_identifier.shape[0]
    e_dim = params["emb_w_tok"].shape[1]
    m_dim = params["macro_wa_0"].shape[1]
    node_tile = _choose_node_tile(n_nodes, t)

    # ---------- code_expression_embedder (gathers stay in JAX glue) ----------
    tok_emb = jnp.take(params["tok_emb_table"], token_ids, axis=0)           # [N, T, Dtok]
    id_emb = jnp.take(encoded_identifiers, token_to_identifier, axis=0)      # [N, T, Did]
    tok3d, combined = embed_and_combine(
        tok_emb, id_emb, params["emb_w_tok"], params["emb_w_id"], params["emb_b"],
        params["emb_comb_w"], params["emb_comb_b"], node_tile)

    macro = jnp.zeros((n_nodes, m_dim), jnp.float32)
    mask = cfg_nodes_has_expression[:, None]

    # ---------- [micro+combine -> macro -> mixer] x nr_layers ----------
    for l in range(nr_layers):
        tok3d, combined = micro_and_combine(
            tok3d, params[f"micro_wt_{l}"], params[f"micro_wm_{l}"], params[f"micro_b_{l}"],
            params[f"comb_w_{l}"], params[f"comb_b_{l}"], node_tile)

        combined_masked = combined * mask
        macro = macro_update(
            combined_masked, cfg_adjacency_norm, macro,
            params[f"macro_wa_{l}"], params[f"macro_wb_{l}"],
            params[f"macro_wc_{l}"], params[f"macro_b_{l}"], node_tile)

        tok3d = mixer(tok3d, macro, params[f"mix_wt_{l}"], params[f"mix_wc_{l}"],
                      params[f"mix_b_{l}"], node_tile)

    # ---------- code_expression_encoder_after_macro ----------
    tok3d = micro_only(tok3d, params["am_wt"], params["am_wm"], params["am_b"], node_tile)

    # ---------- symbol_occurrences_extractor (scatter-mean, JAX glue) ----------
    tok_flat = tok3d.reshape(n_nodes * t, e_dim)
    flat_sym_idx = token_symbol_idx.reshape(-1)
    valid = (flat_sym_idx >= 0).astype(jnp.float32)
    safe_idx = jnp.where(flat_sym_idx >= 0, flat_sym_idx, 0)
    occ_sum = jnp.zeros((n_sym, e_dim), jnp.float32).at[safe_idx].add(tok_flat * valid[:, None])
    occ_cnt = jnp.zeros((n_sym,), jnp.float32).at[safe_idx].add(valid)
    occ_mean = occ_sum / jnp.maximum(occ_cnt, 1.0)[:, None]                  # [N_sym, E]

    # ---------- symbols_encoder ----------
    sym_id_emb = jnp.take(encoded_identifiers, symbol_to_identifier, axis=0) # [N_sym, Did]
    symbols_enc = dual_linear_relu(sym_id_emb, params["sym_wi"],
                                   occ_mean, params["sym_wo"], params["sym_b"])

    # TODO(synk): FlattenedTensor unflattening bookkeeping is represented simply as
    # the dense [N_nodes, T, E] token-encoding tensor here.
    return HierarchicMicroMacroMethodCodeEncodings(
        identifiers_encodings=encoded_identifiers,
        unflattenable_final_micro_encodings=tok3d,
        macro_encodings=macro,
        symbols_encodings=symbols_enc,
    )


# ----------------------------------------------------------------------------- #
# Demo / smoke test
# ----------------------------------------------------------------------------- #
if __name__ == "__main__":
    # Feature dims are multiples of 128 (lane-dense outputs); D_ID + D_TOK = 128.
    N_ID, D_ID = 16, 64          # identifiers
    V, D_TOK = 64, 64            # token vocab / token-kind embedding
    N_NODES, T = 64, 16          # cfg nodes x tokens-per-expression
    E_DIM, C_DIM = 128, 128      # token enc dim / combined expression dim
    M_DIM = 128                  # cfg-node (macro) encoding dim
    N_SYM, S_DIM = 16, 128       # symbols
    NR_LAYERS = 2

    key = jax.random.PRNGKey(0)
    k_param, k_id, k_tok, k_t2i, k_sym = jax.random.split(key, 5)

    params = init_params(k_param, vocab_size=V, d_id=D_ID, d_tok=D_TOK,
                         e_dim=E_DIM, c_dim=C_DIM, m_dim=M_DIM, s_dim=S_DIM,
                         nr_layers=NR_LAYERS)

    encoded_identifiers = jax.random.normal(k_id, (N_ID, D_ID), jnp.float32)
    token_ids = jax.random.randint(k_tok, (N_NODES, T), 0, V, jnp.int32)
    token_to_identifier = jax.random.randint(k_t2i, (N_NODES, T), 0, N_ID, jnp.int32)

    # simple chain CFG, row-normalized adjacency (incl. self loops)
    adj = jnp.eye(N_NODES, dtype=jnp.float32)
    adj = adj + jnp.eye(N_NODES, k=1, dtype=jnp.float32) + jnp.eye(N_NODES, k=-1, dtype=jnp.float32)
    cfg_adjacency_norm = adj / jnp.sum(adj, axis=1, keepdims=True)

    cfg_nodes_has_expression = jnp.ones((N_NODES,), jnp.float32).at[0].set(0.0)
    symbol_to_identifier = jnp.arange(N_SYM, dtype=jnp.int32) % N_ID
    token_symbol_idx = jax.random.randint(k_sym, (N_NODES, T), -1, N_SYM, jnp.int32)

    out = hierarchic_micro_macro_forward(
        params, encoded_identifiers, token_ids, token_to_identifier,
        cfg_adjacency_norm, cfg_nodes_has_expression,
        symbol_to_identifier, token_symbol_idx, nr_layers=NR_LAYERS)

    jax.block_until_ready(out.identifiers_encodings)
    jax.block_until_ready(out.unflattenable_final_micro_encodings)
    jax.block_until_ready(out.macro_encodings)
    jax.block_until_ready(out.symbols_encodings)

    assert out.identifiers_encodings.shape == (N_ID, D_ID)
    assert out.unflattenable_final_micro_encodings.shape == (N_NODES, T, E_DIM)
    assert out.macro_encodings.shape == (N_NODES, M_DIM)
    assert out.symbols_encodings.shape == (N_SYM, S_DIM)
    assert bool(jnp.all(jnp.isfinite(out.symbols_encodings)))
    print("KERNEL_OK")
</pallas_src>

<mosaic_0001>
module attributes {stable_mosaic.version = 11 : i64} {
  func.func private @main(%arg0: i32) attributes {dimension_semantics = [#tpu.dimension_semantics<core_parallel>], iteration_bounds = array<i64: 2>, tpu.core_type = #tpu.core_type<sc_scalar_subcore>, window_params = []} {
    return
  }
}

module attributes {stable_mosaic.version = 11 : i64} {
  func.func private @main(%arg0: i32) attributes {dimension_semantics = [#tpu.dimension_semantics<core_parallel>], iteration_bounds = array<i64: 2>, tpu.core_type = #tpu.core_type<sc_scalar_subcore>, window_params = []} {
    return
  }
}

module attributes {stable_mosaic.version = 11 : i64} {
  func.func @_micro_combine_kernel(%arg0: i32, %arg1: memref<32x16x128xf32, #tpu.memory_space<vmem>>, %arg2: memref<128x128xf32, #tpu.memory_space<vmem>>, %arg3: memref<128x128xf32, #tpu.memory_space<vmem>>, %arg4: memref<1x128xf32, #tpu.memory_space<vmem>>, %arg5: memref<128x128xf32, #tpu.memory_space<vmem>>, %arg6: memref<1x128xf32, #tpu.memory_space<vmem>>, %arg7: memref<32x16x128xf32, #tpu.memory_space<vmem>>, %arg8: memref<32x128xf32, #tpu.memory_space<vmem>>) attributes {dimension_semantics = [#tpu.dimension_semantics<parallel>], iteration_bounds = array<i64: 2>, scalar_prefetch = 0 : i64, scratch_operands = 0 : i64, tpu.core_type = #tpu.core_type<tc>, window_params = [{transform_indices = @transform_0, window_bounds = array<i64: 32, 16, 128>}, {pipeline_mode = #tpu.pipeline_mode<synchronous>, transform_indices = @transform_1, window_bounds = array<i64: 128, 128>}, {pipeline_mode = #tpu.pipeline_mode<synchronous>, transform_indices = @transform_2, window_bounds = array<i64: 128, 128>}, {pipeline_mode = #tpu.pipeline_mode<synchronous>, transform_indices = @transform_3, window_bounds = array<i64: 1, 128>}, {pipeline_mode = #tpu.pipeline_mode<synchronous>, transform_indices = @transform_4, window_bounds = array<i64: 128, 128>}, {pipeline_mode = #tpu.pipeline_mode<synchronous>, transform_indices = @transform_5, window_bounds = array<i64: 1, 128>}, {transform_indices = @transform_6, window_bounds = array<i64: 32, 16, 128>}, {transform_indices = @transform_7, window_bounds = array<i64: 32, 128>}]} {
    %c0 = arith.constant 0 : index
    %c0_0 = arith.constant 0 : index
    %c0_1 = arith.constant 0 : index
    %0 = vector.load %arg1[%c0, %c0_0, %c0_1] : memref<32x16x128xf32, #tpu.memory_space<vmem>>, vector<32x16x128xf32>
    %cst = arith.constant dense<0.000000e+00> : vector<32x128xf32>
    %1 = vector.multi_reduction <add>, %0, %cst [1] : vector<32x16x128xf32> to vector<32x128xf32>
    %cst_2 = arith.constant 1.600000e+01 : f32
    %2 = vector.broadcast %cst_2 : f32 to vector<32x128xf32>
    %3 = arith.divf %1, %2 : vector<32x128xf32>
    %4 = arith.truncf %3 : vector<32x128xf32> to vector<32x128xbf16>
    %c0_3 = arith.constant 0 : index
    %c0_4 = arith.constant 0 : index
    %5 = vector.load %arg3[%c0_3, %c0_4] : memref<128x128xf32, #tpu.memory_space<vmem>>, vector<128x128xf32>
    %6 = arith.truncf %5 : vector<128x128xf32> to vector<128x128xbf16>
    %cst_5 = arith.constant dense<0.000000e+00> : vector<32x128xf32>
    %7 = tpu.matmul %4, %6, %cst_5 {dimension_numbers = #tpu.dot_dimension_numbers<[1], [0], [0], [1], [0, 0, 1, 1], [], []>} : vector<32x128xbf16>, vector<128x128xbf16>, vector<32x128xf32> -> vector<32x128xf32>
    %8 = vector.shape_cast %0 : vector<32x16x128xf32> to vector<512x128xf32>
    %9 = arith.truncf %8 : vector<512x128xf32> to vector<512x128xbf16>
    %c0_6 = arith.constant 0 : index
    %c0_7 = arith.constant 0 : index
    %10 = vector.load %arg2[%c0_6, %c0_7] : memref<128x128xf32, #tpu.memory_space<vmem>>, vector<128x128xf32>
    %11 = arith.truncf %10 : vector<128x128xf32> to vector<128x128xbf16>
    %cst_8 = arith.constant dense<0.000000e+00> : vector<512x128xf32>
    %12 = tpu.matmul %9, %11, %cst_8 {dimension_numbers = #tpu.dot_dimension_numbers<[1], [0], [0], [1], [0, 0, 1, 1], [], []>} : vector<512x128xbf16>, vector<128x128xbf16>, vector<512x128xf32> -> vector<512x128xf32>
    %13 = vector.shape_cast %12 : vector<512x128xf32> to vector<32x16x128xf32>
    %14 = vector.shape_cast %7 : vector<32x128xf32> to vector<32x1x128xf32>
    %15 = vector.broadcast %14 : vector<32x1x128xf32> to vector<32x16x128xf32>
    %16 = arith.addf %13, %15 : vector<32x16x128xf32>
    %c0_9 = arith.constant 0 : index
    %c0_10 = arith.constant 0 : index
    %17 = vector.load %arg4[%c0_9, %c0_10] : memref<1x128xf32, #tpu.memory_space<vmem>>, vector<1x128xf32>
    %18 = vector.shape_cast %17 : vector<1x128xf32> to vector<1x1x128xf32>
    %19 = vector.broadcast %18 : vector<1x1x128xf32> to vector<32x16x128xf32>
    %20 = arith.addf %16, %19 : vector<32x16x128xf32>
    %cst_11 = arith.constant 0.000000e+00 : f32
    %21 = vector.broadcast %cst_11 : f32 to vector<32x16x128xf32>
    %22 = arith.maximumf %20, %21 : vector<32x16x128xf32>
    %c0_12 = arith.constant 0 : index
    %c0_13 = arith.constant 0 : index
    %c0_14 = arith.constant 0 : index
    %23 = vector.load %arg7[%c0_12, %c0_13, %c0_14] : memref<32x16x128xf32, #tpu.memory_space<vmem>>, vector<32x16x128xf32>
    tpu.vector_store %arg7[%c0_12, %c0_13, %c0_14], %22 {strides = array<i32>} : memref<32x16x128xf32, #tpu.memory_space<vmem>>, vector<32x16x128xf32>,
    %cst_15 = arith.constant dense<0.000000e+00> : vector<32x128xf32>
    %24 = vector.multi_reduction <add>, %22, %cst_15 [1] : vector<32x16x128xf32> to vector<32x128xf32>
    %cst_16 = arith.constant 1.600000e+01 : f32
    %25 = vector.broadcast %cst_16 : f32 to vector<32x128xf32>
    %26 = arith.divf %24, %25 : vector<32x128xf32>
    %27 = arith.truncf %26 : vector<32x128xf32> to vector<32x128xbf16>
    %c0_17 = arith.constant 0 : index
    %c0_18 = arith.constant 0 : index
    %28 = vector.load %arg5[%c0_17, %c0_18] : memref<128x128xf32, #tpu.memory_space<vmem>>, vector<128x128xf32>
    %29 = arith.truncf %28 : vector<128x128xf32> to vector<128x128xbf16>
    %cst_19 = arith.constant dense<0.000000e+00> : vector<32x128xf32>
    %30 = tpu.matmul %27, %29, %cst_19 {dimension_numbers = #tpu.dot_dimension_numbers<[1], [0], [0], [1], [0, 0, 1, 1], [], []>} : vector<32x128xbf16>, vector<128x128xbf16>, vector<32x128xf32> -> vector<32x128xf32>
    %c0_20 = arith.constant 0 : index
    %c0_21 = arith.constant 0 : index
    %31 = vector.load %arg6[%c0_20, %c0_21] : memref<1x128xf32, #tpu.memory_space<vmem>>, vector<1x128xf32>
    %32 = vector.broadcast %31 : vector<1x128xf32> to vector<32x128xf32>
    %33 = arith.addf %30, %32 : vector<32x128xf32>
    %cst_22 = arith.constant 0.000000e+00 : f32
    %34 = vector.broadcast %cst_22 : f32 to vector<32x128xf32>
    %35 = arith.maximumf %33, %34 : vector<32x128xf32>
    %c0_23 = arith.constant 0 : index
    %c0_24 = arith.constant 0 : index
    %36 = vector.load %arg8[%c0_23, %c0_24] : memref<32x128xf32, #tpu.memory_space<vmem>>, vector<32x128xf32>
    tpu.vector_store %arg8[%c0_23, %c0_24], %35 {strides = array<i32>} : memref<32x128xf32, #tpu.memory_space<vmem>>, vector<32x128xf32>,
    return
  }
  func.func @transform_0(%arg0: i32) -> (i32, i32, i32) {
    %c0_i32 = arith.constant 0 : i32
    %c0_i32_0 = arith.constant 0 : i32
    %c0_i32_1 = arith.constant 0 : i32
    return %arg0, %c0_i32, %c0_i32_0 : i32, i32, i32
  }
  func.func @transform_1(%arg0: i32) -> (i32, i32) {
    %c0_i32 = arith.constant 0 : i32
    %c0_i32_0 = arith.constant 0 : i32
    %c0_i32_1 = arith.constant 0 : i32
    return %c0_i32, %c0_i32_0 : i32, i32
  }
  func.func @transform_2(%arg0: i32) -> (i32, i32) {
    %c0_i32 = arith.constant 0 : i32
    %c0_i32_0 = arith.constant 0 : i32
    %c0_i32_1 = arith.constant 0 : i32
    return %c0_i32, %c0_i32_0 : i32, i32
  }
  func.func @transform_3(%arg0: i32) -> (i32, i32) {
    %c0_i32 = arith.constant 0 : i32
    %c0_i32_0 = arith.constant 0 : i32
    %c0_i32_1 = arith.constant 0 : i32
    return %c0_i32, %c0_i32_0 : i32, i32
  }
  func.func @transform_4(%arg0: i32) -> (i32, i32) {
    %c0_i32 = arith.constant 0 : i32
    %c0_i32_0 = arith.constant 0 : i32
    %c0_i32_1 = arith.constant 0 : i32
    return %c0_i32, %c0_i32_0 : i32, i32
  }
  func.func @transform_5(%arg0: i32) -> (i32, i32) {
    %c0_i32 = arith.constant 0 : i32
    %c0_i32_0 = arith.constant 0 : i32
    %c0_i32_1 = arith.constant 0 : i32
    return %c0_i32, %c0_i32_0 : i32, i32
  }
  func.func @transform_6(%arg0: i32) -> (i32, i32, i32) {
    %c0_i32 = arith.constant 0 : i32
    %c0_i32_0 = arith.constant 0 : i32
    %c0_i32_1 = arith.constant 0 : i32
    return %arg0, %c0_i32, %c0_i32_0 : i32, i32, i32
  }
  func.func @transform_7(%arg0: i32) -> (i32, i32) {
    %c0_i32 = arith.constant 0 : i32
    %c0_i32_0 = arith.constant 0 : i32
    return %arg0, %c0_i32 : i32, i32
  }
}

module attributes {stable_mosaic.version = 11 : i64} {
  func.func @_embed_micro_combine_kernel(%arg0: i32, %arg1: memref<32x16x64xf32, #tpu.memory_space<vmem>>, %arg2: memref<32x16x64xf32, #tpu.memory_space<vmem>>, %arg3: memref<64x128xf32, #tpu.memory_space<vmem>>, %arg4: memref<64x128xf32, #tpu.memory_space<vmem>>, %arg5: memref<1x128xf32, #tpu.memory_space<vmem>>, %arg6: memref<128x128xf32, #tpu.memory_space<vmem>>, %arg7: memref<1x128xf32, #tpu.memory_space<vmem>>, %arg8: memref<32x16x128xf32, #tpu.memory_space<vmem>>, %arg9: memref<32x128xf32, #tpu.memory_space<vmem>>) attributes {dimension_semantics = [#tpu.dimension_semantics<parallel>], iteration_bounds = array<i64: 2>, scalar_prefetch = 0 : i64, scratch_operands = 0 : i64, tpu.core_type = #tpu.core_type<tc>, window_params = [{transform_indices = @transform_0, window_bounds = array<i64: 32, 16, 64>}, {transform_indices = @transform_1, window_bounds = array<i64: 32, 16, 64>}, {pipeline_mode = #tpu.pipeline_mode<synchronous>, transform_indices = @transform_2, window_bounds = array<i64: 64, 128>}, {pipeline_mode = #tpu.pipeline_mode<synchronous>, transform_indices = @transform_3, window_bounds = array<i64: 64, 128>}, {pipeline_mode = #tpu.pipeline_mode<synchronous>, transform_indices = @transform_4, window_bounds = array<i64: 1, 128>}, {pipeline_mode = #tpu.pipeline_mode<synchronous>, transform_indices = @transform_5, window_bounds = array<i64: 128, 128>}, {pipeline_mode = #tpu.pipeline_mode<synchronous>, transform_indices = @transform_6, window_bounds = array<i64: 1, 128>}, {transform_indices = @transform_7, window_bounds = array<i64: 32, 16, 128>}, {transform_indices = @transform_8, window_bounds = array<i64: 32, 128>}]} {
    %c0 = arith.constant 0 : index
    %c0_0 = arith.constant 0 : index
    %c0_1 = arith.constant 0 : index
    %0 = vector.load %arg1[%c0, %c0_0, %c0_1] : memref<32x16x64xf32, #tpu.memory_space<vmem>>, vector<32x16x64xf32>
    %1 = vector.shape_cast %0 : vector<32x16x64xf32> to vector<512x64xf32>
    %2 = arith.truncf %1 : vector<512x64xf32> to vector<512x64xbf16>
    %c0_2 = arith.constant 0 : index
    %c0_3 = arith.constant 0 : index
    %c0_4 = arith.constant 0 : index
    %3 = vector.load %arg2[%c0_2, %c0_3, %c0_4] : memref<32x16x64xf32, #tpu.memory_space<vmem>>, vector<32x16x64xf32>
    %4 = vector.shape_cast %3 : vector<32x16x64xf32> to vector<512x64xf32>
    %5 = arith.truncf %4 : vector<512x64xf32> to vector<512x64xbf16>
    %c0_5 = arith.constant 0 : index
    %c0_6 = arith.constant 0 : index
    %6 = vector.load %arg3[%c0_5, %c0_6] : memref<64x128xf32, #tpu.memory_space<vmem>>, vector<64x128xf32>
    %7 = arith.truncf %6 : vector<64x128xf32> to vector<64x128xbf16>
    %cst = arith.constant dense<0.000000e+00> : vector<512x128xf32>
    %8 = tpu.matmul %2, %7, %cst {dimension_numbers = #tpu.dot_dimension_numbers<[1], [0], [0], [1], [0, 0, 1, 1], [], []>} : vector<512x64xbf16>, vector<64x128xbf16>, vector<512x128xf32> -> vector<512x128xf32>
    %c0_7 = arith.constant 0 : index
    %c0_8 = arith.constant 0 : index
    %9 = vector.load %arg4[%c0_7, %c0_8] : memref<64x128xf32, #tpu.memory_space<vmem>>, vector<64x128xf32>
    %10 = arith.truncf %9 : vector<64x128xf32> to vector<64x128xbf16>
    %cst_9 = arith.constant dense<0.000000e+00> : vector<512x128xf32>
    %11 = tpu.matmul %5, %10, %cst_9 {dimension_numbers = #tpu.dot_dimension_numbers<[1], [0], [0], [1], [0, 0, 1, 1], [], []>} : vector<512x64xbf16>, vector<64x128xbf16>, vector<512x128xf32> -> vector<512x128xf32>
    %12 = arith.addf %8, %11 : vector<512x128xf32>
    %c0_10 = arith.constant 0 : index
    %c0_11 = arith.constant 0 : index
    %13 = vector.load %arg5[%c0_10, %c0_11] : memref<1x128xf32, #tpu.memory_space<vmem>>, vector<1x128xf32>
    %14 = vector.broadcast %13 : vector<1x128xf32> to vector<512x128xf32>
    %15 = arith.addf %12, %14 : vector<512x128xf32>
    %cst_12 = arith.constant 0.000000e+00 : f32
    %16 = vector.broadcast %cst_12 : f32 to vector<512x128xf32>
    %17 = arith.maximumf %15, %16 : vector<512x128xf32>
    %18 = vector.shape_cast %17 : vector<512x128xf32> to vector<32x16x128xf32>
    %c0_13 = arith.constant 0 : index
    %c0_14 = arith.constant 0 : index
    %c0_15 = arith.constant 0 : index
    %19 = vector.load %arg8[%c0_13, %c0_14, %c0_15] : memref<32x16x128xf32, #tpu.memory_space<vmem>>, vector<32x16x128xf32>
    tpu.vector_store %arg8[%c0_13, %c0_14, %c0_15], %18 {strides = array<i32>} : memref<32x16x128xf32, #tpu.memory_space<vmem>>, vector<32x16x128xf32>,
    %cst_16 = arith.constant dense<0.000000e+00> : vector<32x128xf32>
    %20 = vector.multi_reduction <add>, %18, %cst_16 [1] : vector<32x16x128xf32> to vector<32x128xf32>
    %cst_17 = arith.constant 1.600000e+01 : f32
    %21 = vector.broadcast %cst_17 : f32 to vector<32x128xf32>
    %22 = arith.divf %20, %21 : vector<32x128xf32>
    %23 = arith.truncf %22 : vector<32x128xf32> to vector<32x128xbf16>
    %c0_18 = arith.constant 0 : index
    %c0_19 = arith.constant 0 : index
    %24 = vector.load %arg6[%c0_18, %c0_19] : memref<128x128xf32, #tpu.memory_space<vmem>>, vector<128x128xf32>
    %25 = arith.truncf %24 : vector<128x128xf32> to vector<128x128xbf16>
    %cst_20 = arith.constant dense<0.000000e+00> : vector<32x128xf32>
    %26 = tpu.matmul %23, %25, %cst_20 {dimension_numbers = #tpu.dot_dimension_numbers<[1], [0], [0], [1], [0, 0, 1, 1], [], []>} : vector<32x128xbf16>, vector<128x128xbf16>, vector<32x128xf32> -> vector<32x128xf32>
    %c0_21 = arith.constant 0 : index
    %c0_22 = arith.constant 0 : index
    %27 = vector.load %arg7[%c0_21, %c0_22] : memref<1x128xf32, #tpu.memory_space<vmem>>, vector<1x128xf32>
    %28 = vector.broadcast %27 : vector<1x128xf32> to vector<32x128xf32>
    %29 = arith.addf %26, %28 : vector<32x128xf32>
    %cst_23 = arith.constant 0.000000e+00 : f32
    %30 = vector.broadcast %cst_23 : f32 to vector<32x128xf32>
    %31 = arith.maximumf %29, %30 : vector<32x128xf32>
    %c0_24 = arith.constant 0 : index
    %c0_25 = arith.constant 0 : index
    %32 = vector.load %arg9[%c0_24, %c0_25] : memref<32x128xf32, #tpu.memory_space<vmem>>, vector<32x128xf32>
    tpu.vector_store %arg9[%c0_24, %c0_25], %31 {strides = array<i32>} : memref<32x128xf32, #tpu.memory_space<vmem>>, vector<32x128xf32>,
    return
  }
  func.func @transform_0(%arg0: i32) -> (i32, i32, i32) {
    %c0_i32 = arith.constant 0 : i32
    %c0_i32_0 = arith.constant 0 : i32
    %c0_i32_1 = arith.constant 0 : i32
    return %arg0, %c0_i32, %c0_i32_0 : i32, i32, i32
  }
  func.func @transform_1(%arg0: i32) -> (i32, i32, i32) {
    %c0_i32 = arith.constant 0 : i32
    %c0_i32_0 = arith.constant 0 : i32
    %c0_i32_1 = arith.constant 0 : i32
    return %arg0, %c0_i32, %c0_i32_0 : i32, i32, i32
  }
  func.func @transform_2(%arg0: i32) -> (i32, i32) {
    %c0_i32 = arith.constant 0 : i32
    %c0_i32_0 = arith.constant 0 : i32
    %c0_i32_1 = arith.constant 0 : i32
    return %c0_i32, %c0_i32_0 : i32, i32
  }
  func.func @transform_3(%arg0: i32) -> (i32, i32) {
    %c0_i32 = arith.constant 0 : i32
    %c0_i32_0 = arith.constant 0 : i32
    %c0_i32_1 = arith.constant 0 : i32
    return %c0_i32, %c0_i32_0 : i32, i32
  }
  func.func @transform_4(%arg0: i32) -> (i32, i32) {
    %c0_i32 = arith.constant 0 : i32
    %c0_i32_0 = arith.constant 0 : i32
    %c0_i32_1 = arith.constant 0 : i32
    return %c0_i32, %c0_i32_0 : i32, i32
  }
  func.func @transform_5(%arg0: i32) -> (i32, i32) {
    %c0_i32 = arith.constant 0 : i32
    %c0_i32_0 = arith.constant 0 : i32
    %c0_i32_1 = arith.constant 0 : i32
    return %c0_i32, %c0_i32_0 : i32, i32
  }
  func.func @transform_6(%arg0: i32) -> (i32, i32) {
    %c0_i32 = arith.constant 0 : i32
    %c0_i32_0 = arith.constant 0 : i32
    %c0_i32_1 = arith.constant 0 : i32
    return %c0_i32, %c0_i32_0 : i32, i32
  }
  func.func @transform_7(%arg0: i32) -> (i32, i32, i32) {
    %c0_i32 = arith.constant 0 : i32
    %c0_i32_0 = arith.constant 0 : i32
    %c0_i32_1 = arith.constant 0 : i32
    return %arg0, %c0_i32, %c0_i32_0 : i32, i32, i32
  }
  func.func @transform_8(%arg0: i32) -> (i32, i32) {
    %c0_i32 = arith.constant 0 : i32
    %c0_i32_0 = arith.constant 0 : i32
    return %arg0, %c0_i32 : i32, i32
  }
}

module attributes {stable_mosaic.version = 11 : i64} {
  func.func @_macro_kernel(%arg0: i32, %arg1: memref<32x128xf32, #tpu.memory_space<vmem>>, %arg2: memref<32x64xf32, #tpu.memory_space<vmem>>, %arg3: memref<64x128xf32, #tpu.memory_space<vmem>>, %arg4: memref<32x128xf32, #tpu.memory_space<vmem>>, %arg5: memref<128x128xf32, #tpu.memory_space<vmem>>, %arg6: memref<128x128xf32, #tpu.memory_space<vmem>>, %arg7: memref<128x128xf32, #tpu.memory_space<vmem>>, %arg8: memref<1x128xf32, #tpu.memory_space<vmem>>, %arg9: memref<32x128xf32, #tpu.memory_space<vmem>>) attributes {dimension_semantics = [#tpu.dimension_semantics<parallel>], iteration_bounds = array<i64: 2>, scalar_prefetch = 0 : i64, scratch_operands = 0 : i64, tpu.core_type = #tpu.core_type<tc>, window_params = [{transform_indices = @transform_0, window_bounds = array<i64: 32, 128>}, {transform_indices = @transform_1, window_bounds = array<i64: 32, 64>}, {pipeline_mode = #tpu.pipeline_mode<synchronous>, transform_indices = @transform_2, window_bounds = array<i64: 64, 128>}, {transform_indices = @transform_3, window_bounds = array<i64: 32, 128>}, {pipeline_mode = #tpu.pipeline_mode<synchronous>, transform_indices = @transform_4, window_bounds = array<i64: 128, 128>}, {pipeline_mode = #tpu.pipeline_mode<synchronous>, transform_indices = @transform_5, window_bounds = array<i64: 128, 128>}, {pipeline_mode = #tpu.pipeline_mode<synchronous>, transform_indices = @transform_6, window_bounds = array<i64: 128, 128>}, {pipeline_mode = #tpu.pipeline_mode<synchronous>, transform_indices = @transform_7, window_bounds = array<i64: 1, 128>}, {transform_indices = @transform_8, window_bounds = array<i64: 32, 128>}]} {
    %c0 = arith.constant 0 : index
    %c0_0 = arith.constant 0 : index
    %0 = vector.load %arg2[%c0, %c0_0] : memref<32x64xf32, #tpu.memory_space<vmem>>, vector<32x64xf32>
    %1 = arith.truncf %0 : vector<32x64xf32> to vector<32x64xbf16>
    %c0_1 = arith.constant 0 : index
    %c0_2 = arith.constant 0 : index
    %2 = vector.load %arg3[%c0_1, %c0_2] : memref<64x128xf32, #tpu.memory_space<vmem>>, vector<64x128xf32>
    %3 = arith.truncf %2 : vector<64x128xf32> to vector<64x128xbf16>
    %cst = arith.constant dense<0.000000e+00> : vector<32x128xf32>
    %4 = tpu.matmul %1, %3, %cst {dimension_numbers = #tpu.dot_dimension_numbers<[1], [0], [0], [1], [0, 0, 1, 1], [], []>} : vector<32x64xbf16>, vector<64x128xbf16>, vector<32x128xf32> -> vector<32x128xf32>
    %c0_3 = arith.constant 0 : index
    %c0_4 = arith.constant 0 : index
    %5 = vector.load %arg1[%c0_3, %c0_4] : memref<32x128xf32, #tpu.memory_space<vmem>>, vector<32x128xf32>
    %6 = arith.truncf %5 : vector<32x128xf32> to vector<32x128xbf16>
    %c0_5 = arith.constant 0 : index
    %c0_6 = arith.constant 0 : index
    %7 = vector.load %arg5[%c0_5, %c0_6] : memref<128x128xf32, #tpu.memory_space<vmem>>, vector<128x128xf32>
    %8 = arith.truncf %7 : vector<128x128xf32> to vector<128x128xbf16>
    %cst_7 = arith.constant dense<0.000000e+00> : vector<32x128xf32>
    %9 = tpu.matmul %6, %8, %cst_7 {dimension_numbers = #tpu.dot_dimension_numbers<[1], [0], [0], [1], [0, 0, 1, 1], [], []>} : vector<32x128xbf16>, vector<128x128xbf16>, vector<32x128xf32> -> vector<32x128xf32>
    %10 = arith.truncf %4 : vector<32x128xf32> to vector<32x128xbf16>
    %c0_8 = arith.constant 0 : index
    %c0_9 = arith.constant 0 : index
    %11 = vector.load %arg6[%c0_8, %c0_9] : memref<128x128xf32, #tpu.memory_space<vmem>>, vector<128x128xf32>
    %12 = arith.truncf %11 : vector<128x128xf32> to vector<128x128xbf16>
    %cst_10 = arith.constant dense<0.000000e+00> : vector<32x128xf32>
    %13 = tpu.matmul %10, %12, %cst_10 {dimension_numbers = #tpu.dot_dimension_numbers<[1], [0], [0], [1], [0, 0, 1, 1], [], []>} : vector<32x128xbf16>, vector<128x128xbf16>, vector<32x128xf32> -> vector<32x128xf32>
    %14 = arith.addf %9, %13 : vector<32x128xf32>
    %c0_11 = arith.constant 0 : index
    %c0_12 = arith.constant 0 : index
    %15 = vector.load %arg4[%c0_11, %c0_12] : memref<32x128xf32, #tpu.memory_space<vmem>>, vector<32x128xf32>
    %16 = arith.truncf %15 : vector<32x128xf32> to vector<32x128xbf16>
    %c0_13 = arith.constant 0 : index
    %c0_14 = arith.constant 0 : index
    %17 = vector.load %arg7[%c0_13, %c0_14] : memref<128x128xf32, #tpu.memory_space<vmem>>, vector<128x128xf32>
    %18 = arith.truncf %17 : vector<128x128xf32> to vector<128x128xbf16>
    %cst_15 = arith.constant dense<0.000000e+00> : vector<32x128xf32>
    %19 = tpu.matmul %16, %18, %cst_15 {dimension_numbers = #tpu.dot_dimension_numbers<[1], [0], [0], [1], [0, 0, 1, 1], [], []>} : vector<32x128xbf16>, vector<128x128xbf16>, vector<32x128xf32> -> vector<32x128xf32>
    %20 = arith.addf %14, %19 : vector<32x128xf32>
    %c0_16 = arith.constant 0 : index
    %c0_17 = arith.constant 0 : index
    %21 = vector.load %arg8[%c0_16, %c0_17] : memref<1x128xf32, #tpu.memory_space<vmem>>, vector<1x128xf32>
    %22 = vector.broadcast %21 : vector<1x128xf32> to vector<32x128xf32>
    %23 = arith.addf %20, %22 : vector<32x128xf32>
    %cst_18 = arith.constant 0.000000e+00 : f32
    %24 = vector.broadcast %cst_18 : f32 to vector<32x128xf32>
    %25 = arith.maximumf %23, %24 : vector<32x128xf32>
    %c0_19 = arith.constant 0 : index
    %c0_20 = arith.constant 0 : index
    %26 = vector.load %arg9[%c0_19, %c0_20] : memref<32x128xf32, #tpu.memory_space<vmem>>, vector<32x128xf32>
    tpu.vector_store %arg9[%c0_19, %c0_20], %25 {strides = array<i32>} : memref<32x128xf32, #tpu.memory_space<vmem>>, vector<32x128xf32>,
    return
  }
  func.func @transform_0(%arg0: i32) -> (i32, i32) {
    %c0_i32 = arith.constant 0 : i32
    %c0_i32_0 = arith.constant 0 : i32
    return %arg0, %c0_i32 : i32, i32
  }
  func.func @transform_1(%arg0: i32) -> (i32, i32) {
    %c0_i32 = arith.constant 0 : i32
    %c0_i32_0 = arith.constant 0 : i32
    return %arg0, %c0_i32 : i32, i32
  }
  func.func @transform_2(%arg0: i32) -> (i32, i32) {
    %c0_i32 = arith.constant 0 : i32
    %c0_i32_0 = arith.constant 0 : i32
    %c0_i32_1 = arith.constant 0 : i32
    return %c0_i32, %c0_i32_0 : i32, i32
  }
  func.func @transform_3(%arg0: i32) -> (i32, i32) {
    %c0_i32 = arith.constant 0 : i32
    %c0_i32_0 = arith.constant 0 : i32
    return %arg0, %c0_i32 : i32, i32
  }
  func.func @transform_4(%arg0: i32) -> (i32, i32) {
    %c0_i32 = arith.constant 0 : i32
    %c0_i32_0 = arith.constant 0 : i32
    %c0_i32_1 = arith.constant 0 : i32
    return %c0_i32, %c0_i32_0 : i32, i32
  }
  func.func @transform_5(%arg0: i32) -> (i32, i32) {
    %c0_i32 = arith.constant 0 : i32
    %c0_i32_0 = arith.constant 0 : i32
    %c0_i32_1 = arith.constant 0 : i32
    return %c0_i32, %c0_i32_0 : i32, i32
  }
  func.func @transform_6(%arg0: i32) -> (i32, i32) {
    %c0_i32 = arith.constant 0 : i32
    %c0_i32_0 = arith.constant 0 : i32
    %c0_i32_1 = arith.constant 0 : i32
    return %c0_i32, %c0_i32_0 : i32, i32
  }
  func.func @transform_7(%arg0: i32) -> (i32, i32) {
    %c0_i32 = arith.constant 0 : i32
    %c0_i32_0 = arith.constant 0 : i32
    %c0_i32_1 = arith.constant 0 : i32
    return %c0_i32, %c0_i32_0 : i32, i32
  }
  func.func @transform_8(%arg0: i32) -> (i32, i32) {
    %c0_i32 = arith.constant 0 : i32
    %c0_i32_0 = arith.constant 0 : i32
    return %arg0, %c0_i32 : i32, i32
  }
}

module attributes {stable_mosaic.version = 11 : i64} {
  func.func @_mixer_kernel(%arg0: i32, %arg1: memref<32x16x128xf32, #tpu.memory_space<vmem>>, %arg2: memref<32x128xf32, #tpu.memory_space<vmem>>, %arg3: memref<128x128xf32, #tpu.memory_space<vmem>>, %arg4: memref<128x128xf32, #tpu.memory_space<vmem>>, %arg5: memref<1x128xf32, #tpu.memory_space<vmem>>, %arg6: memref<32x16x128xf32, #tpu.memory_space<vmem>>) attributes {dimension_semantics = [#tpu.dimension_semantics<parallel>], iteration_bounds = array<i64: 2>, scalar_prefetch = 0 : i64, scratch_operands = 0 : i64, tpu.core_type = #tpu.core_type<tc>, window_params = [{transform_indices = @transform_0, window_bounds = array<i64: 32, 16, 128>}, {transform_indices = @transform_1, window_bounds = array<i64: 32, 128>}, {pipeline_mode = #tpu.pipeline_mode<synchronous>, transform_indices = @transform_2, window_bounds = array<i64: 128, 128>}, {pipeline_mode = #tpu.pipeline_mode<synchronous>, transform_indices = @transform_3, window_bounds = array<i64: 128, 128>}, {pipeline_mode = #tpu.pipeline_mode<synchronous>, transform_indices = @transform_4, window_bounds = array<i64: 1, 128>}, {transform_indices = @transform_5, window_bounds = array<i64: 32, 16, 128>}]} {
    %c0 = arith.constant 0 : index
    %c0_0 = arith.constant 0 : index
    %0 = vector.load %arg2[%c0, %c0_0] : memref<32x128xf32, #tpu.memory_space<vmem>>, vector<32x128xf32>
    %1 = arith.truncf %0 : vector<32x128xf32> to vector<32x128xbf16>
    %c0_1 = arith.constant 0 : index
    %c0_2 = arith.constant 0 : index
    %2 = vector.load %arg4[%c0_1, %c0_2] : memref<128x128xf32, #tpu.memory_space<vmem>>, vector<128x128xf32>
    %3 = arith.truncf %2 : vector<128x128xf32> to vector<128x128xbf16>
    %cst = arith.constant dense<0.000000e+00> : vector<32x128xf32>
    %4 = tpu.matmul %1, %3, %cst {dimension_numbers = #tpu.dot_dimension_numbers<[1], [0], [0], [1], [0, 0, 1, 1], [], []>} : vector<32x128xbf16>, vector<128x128xbf16>, vector<32x128xf32> -> vector<32x128xf32>
    %c0_3 = arith.constant 0 : index
    %c0_4 = arith.constant 0 : index
    %c0_5 = arith.constant 0 : index
    %5 = vector.load %arg1[%c0_3, %c0_4, %c0_5] : memref<32x16x128xf32, #tpu.memory_space<vmem>>, vector<32x16x128xf32>
    %6 = vector.shape_cast %5 : vector<32x16x128xf32> to vector<512x128xf32>
    %7 = arith.truncf %6 : vector<512x128xf32> to vector<512x128xbf16>
    %c0_6 = arith.constant 0 : index
    %c0_7 = arith.constant 0 : index
    %8 = vector.load %arg3[%c0_6, %c0_7] : memref<128x128xf32, #tpu.memory_space<vmem>>, vector<128x128xf32>
    %9 = arith.truncf %8 : vector<128x128xf32> to vector<128x128xbf16>
    %cst_8 = arith.constant dense<0.000000e+00> : vector<512x128xf32>
    %10 = tpu.matmul %7, %9, %cst_8 {dimension_numbers = #tpu.dot_dimension_numbers<[1], [0], [0], [1], [0, 0, 1, 1], [], []>} : vector<512x128xbf16>, vector<128x128xbf16>, vector<512x128xf32> -> vector<512x128xf32>
    %11 = vector.shape_cast %10 : vector<512x128xf32> to vector<32x16x128xf32>
    %12 = vector.shape_cast %4 : vector<32x128xf32> to vector<32x1x128xf32>
    %13 = vector.broadcast %12 : vector<32x1x128xf32> to vector<32x16x128xf32>
    %14 = arith.addf %11, %13 : vector<32x16x128xf32>
    %c0_9 = arith.constant 0 : index
    %c0_10 = arith.constant 0 : index
    %15 = vector.load %arg5[%c0_9, %c0_10] : memref<1x128xf32, #tpu.memory_space<vmem>>, vector<1x128xf32>
    %16 = vector.shape_cast %15 : vector<1x128xf32> to vector<1x1x128xf32>
    %17 = vector.broadcast %16 : vector<1x1x128xf32> to vector<32x16x128xf32>
    %18 = arith.addf %14, %17 : vector<32x16x128xf32>
    %cst_11 = arith.constant 0.000000e+00 : f32
    %19 = vector.broadcast %cst_11 : f32 to vector<32x16x128xf32>
    %20 = arith.maximumf %18, %19 : vector<32x16x128xf32>
    %c0_12 = arith.constant 0 : index
    %c0_13 = arith.constant 0 : index
    %c0_14 = arith.constant 0 : index
    %21 = vector.load %arg6[%c0_12, %c0_13, %c0_14] : memref<32x16x128xf32, #tpu.memory_space<vmem>>, vector<32x16x128xf32>
    tpu.vector_store %arg6[%c0_12, %c0_13, %c0_14], %20 {strides = array<i32>} : memref<32x16x128xf32, #tpu.memory_space<vmem>>, vector<32x16x128xf32>,
    return
  }
  func.func @transform_0(%arg0: i32) -> (i32, i32, i32) {
    %c0_i32 = arith.constant 0 : i32
    %c0_i32_0 = arith.constant 0 : i32
    %c0_i32_1 = arith.constant 0 : i32
    return %arg0, %c0_i32, %c0_i32_0 : i32, i32, i32
  }
  func.func @transform_1(%arg0: i32) -> (i32, i32) {
    %c0_i32 = arith.constant 0 : i32
    %c0_i32_0 = arith.constant 0 : i32
    return %arg0, %c0_i32 : i32, i32
  }
  func.func @transform_2(%arg0: i32) -> (i32, i32) {
    %c0_i32 = arith.constant 0 : i32
    %c0_i32_0 = arith.constant 0 : i32
    %c0_i32_1 = arith.constant 0 : i32
    return %c0_i32, %c0_i32_0 : i32, i32
  }
  func.func @transform_3(%arg0: i32) -> (i32, i32) {
    %c0_i32 = arith.constant 0 : i32
    %c0_i32_0 = arith.constant 0 : i32
    %c0_i32_1 = arith.constant 0 : i32
    return %c0_i32, %c0_i32_0 : i32, i32
  }
  func.func @transform_4(%arg0: i32) -> (i32, i32) {
    %c0_i32 = arith.constant 0 : i32
    %c0_i32_0 = arith.constant 0 : i32
    %c0_i32_1 = arith.constant 0 : i32
    return %c0_i32, %c0_i32_0 : i32, i32
  }
  func.func @transform_5(%arg0: i32) -> (i32, i32, i32) {
    %c0_i32 = arith.constant 0 : i32
    %c0_i32_0 = arith.constant 0 : i32
    %c0_i32_1 = arith.constant 0 : i32
    return %arg0, %c0_i32, %c0_i32_0 : i32, i32, i32
  }
}

module attributes {stable_mosaic.version = 11 : i64} {
  func.func @_micro_kernel(%arg0: i32, %arg1: memref<32x16x128xf32, #tpu.memory_space<vmem>>, %arg2: memref<128x128xf32, #tpu.memory_space<vmem>>, %arg3: memref<128x128xf32, #tpu.memory_space<vmem>>, %arg4: memref<1x128xf32, #tpu.memory_space<vmem>>, %arg5: memref<32x16x128xf32, #tpu.memory_space<vmem>>) attributes {dimension_semantics = [#tpu.dimension_semantics<parallel>], iteration_bounds = array<i64: 2>, scalar_prefetch = 0 : i64, scratch_operands = 0 : i64, tpu.core_type = #tpu.core_type<tc>, window_params = [{transform_indices = @transform_0, window_bounds = array<i64: 32, 16, 128>}, {pipeline_mode = #tpu.pipeline_mode<synchronous>, transform_indices = @transform_1, window_bounds = array<i64: 128, 128>}, {pipeline_mode = #tpu.pipeline_mode<synchronous>, transform_indices = @transform_2, window_bounds = array<i64: 128, 128>}, {pipeline_mode = #tpu.pipeline_mode<synchronous>, transform_indices = @transform_3, window_bounds = array<i64: 1, 128>}, {transform_indices = @transform_4, window_bounds = array<i64: 32, 16, 128>}]} {
    %c0 = arith.constant 0 : index
    %c0_0 = arith.constant 0 : index
    %c0_1 = arith.constant 0 : index
    %0 = vector.load %arg1[%c0, %c0_0, %c0_1] : memref<32x16x128xf32, #tpu.memory_space<vmem>>, vector<32x16x128xf32>
    %cst = arith.constant dense<0.000000e+00> : vector<32x128xf32>
    %1 = vector.multi_reduction <add>, %0, %cst [1] : vector<32x16x128xf32> to vector<32x128xf32>
    %cst_2 = arith.constant 1.600000e+01 : f32
    %2 = vector.broadcast %cst_2 : f32 to vector<32x128xf32>
    %3 = arith.divf %1, %2 : vector<32x128xf32>
    %4 = arith.truncf %3 : vector<32x128xf32> to vector<32x128xbf16>
    %c0_3 = arith.constant 0 : index
    %c0_4 = arith.constant 0 : index
    %5 = vector.load %arg3[%c0_3, %c0_4] : memref<128x128xf32, #tpu.memory_space<vmem>>, vector<128x128xf32>
    %6 = arith.truncf %5 : vector<128x128xf32> to vector<128x128xbf16>
    %cst_5 = arith.constant dense<0.000000e+00> : vector<32x128xf32>
    %7 = tpu.matmul %4, %6, %cst_5 {dimension_numbers = #tpu.dot_dimension_numbers<[1], [0], [0], [1], [0, 0, 1, 1], [], []>} : vector<32x128xbf16>, vector<128x128xbf16>, vector<32x128xf32> -> vector<32x128xf32>
    %8 = vector.shape_cast %0 : vector<32x16x128xf32> to vector<512x128xf32>
    %9 = arith.truncf %8 : vector<512x128xf32> to vector<512x128xbf16>
    %c0_6 = arith.constant 0 : index
    %c0_7 = arith.constant 0 : index
    %10 = vector.load %arg2[%c0_6, %c0_7] : memref<128x128xf32, #tpu.memory_space<vmem>>, vector<128x128xf32>
    %11 = arith.truncf %10 : vector<128x128xf32> to vector<128x128xbf16>
    %cst_8 = arith.constant dense<0.000000e+00> : vector<512x128xf32>
    %12 = tpu.matmul %9, %11, %cst_8 {dimension_numbers = #tpu.dot_dimension_numbers<[1], [0], [0], [1], [0, 0, 1, 1], [], []>} : vector<512x128xbf16>, vector<128x128xbf16>, vector<512x128xf32> -> vector<512x128xf32>
    %13 = vector.shape_cast %12 : vector<512x128xf32> to vector<32x16x128xf32>
    %14 = vector.shape_cast %7 : vector<32x128xf32> to vector<32x1x128xf32>
    %15 = vector.broadcast %14 : vector<32x1x128xf32> to vector<32x16x128xf32>
    %16 = arith.addf %13, %15 : vector<32x16x128xf32>
    %c0_9 = arith.constant 0 : index
    %c0_10 = arith.constant 0 : index
    %17 = vector.load %arg4[%c0_9, %c0_10] : memref<1x128xf32, #tpu.memory_space<vmem>>, vector<1x128xf32>
    %18 = vector.shape_cast %17 : vector<1x128xf32> to vector<1x1x128xf32>
    %19 = vector.broadcast %18 : vector<1x1x128xf32> to vector<32x16x128xf32>
    %20 = arith.addf %16, %19 : vector<32x16x128xf32>
    %cst_11 = arith.constant 0.000000e+00 : f32
    %21 = vector.broadcast %cst_11 : f32 to vector<32x16x128xf32>
    %22 = arith.maximumf %20, %21 : vector<32x16x128xf32>
    %c0_12 = arith.constant 0 : index
    %c0_13 = arith.constant 0 : index
    %c0_14 = arith.constant 0 : index
    %23 = vector.load %arg5[%c0_12, %c0_13, %c0_14] : memref<32x16x128xf32, #tpu.memory_space<vmem>>, vector<32x16x128xf32>
    tpu.vector_store %arg5[%c0_12, %c0_13, %c0_14], %22 {strides = array<i32>} : memref<32x16x128xf32, #tpu.memory_space<vmem>>, vector<32x16x128xf32>,
    return
  }
  func.func @transform_0(%arg0: i32) -> (i32, i32, i32) {
    %c0_i32 = arith.constant 0 : i32
    %c0_i32_0 = arith.constant 0 : i32
    %c0_i32_1 = arith.constant 0 : i32
    return %arg0, %c0_i32, %c0_i32_0 : i32, i32, i32
  }
  func.func @transform_1(%arg0: i32) -> (i32, i32) {
    %c0_i32 = arith.constant 0 : i32
    %c0_i32_0 = arith.constant 0 : i32
    %c0_i32_1 = arith.constant 0 : i32
    return %c0_i32, %c0_i32_0 : i32, i32
  }
  func.func @transform_2(%arg0: i32) -> (i32, i32) {
    %c0_i32 = arith.constant 0 : i32
    %c0_i32_0 = arith.constant 0 : i32
    %c0_i32_1 = arith.constant 0 : i32
    return %c0_i32, %c0_i32_0 : i32, i32
  }
  func.func @transform_3(%arg0: i32) -> (i32, i32) {
    %c0_i32 = arith.constant 0 : i32
    %c0_i32_0 = arith.constant 0 : i32
    %c0_i32_1 = arith.constant 0 : i32
    return %c0_i32, %c0_i32_0 : i32, i32
  }
  func.func @transform_4(%arg0: i32) -> (i32, i32, i32) {
    %c0_i32 = arith.constant 0 : i32
    %c0_i32_0 = arith.constant 0 : i32
    %c0_i32_1 = arith.constant 0 : i32
    return %arg0, %c0_i32, %c0_i32_0 : i32, i32, i32
  }
}

module attributes {stable_mosaic.version = 11 : i64} {
  func.func @_dual_linear_relu_kernel(%arg0: i32, %arg1: memref<16x64xf32, #tpu.memory_space<vmem>>, %arg2: memref<64x128xf32, #tpu.memory_space<vmem>>, %arg3: memref<16x128xf32, #tpu.memory_space<vmem>>, %arg4: memref<128x128xf32, #tpu.memory_space<vmem>>, %arg5: memref<1x128xf32, #tpu.memory_space<vmem>>, %arg6: memref<16x128xf32, #tpu.memory_space<vmem>>) attributes {dimension_semantics = [#tpu.dimension_semantics<parallel>], iteration_bounds = array<i64: 1>, scalar_prefetch = 0 : i64, scratch_operands = 0 : i64, tpu.core_type = #tpu.core_type<tc>, window_params = [{transform_indices = @transform_0, window_bounds = array<i64: 16, 64>}, {pipeline_mode = #tpu.pipeline_mode<synchronous>, transform_indices = @transform_1, window_bounds = array<i64: 64, 128>}, {transform_indices = @transform_2, window_bounds = array<i64: 16, 128>}, {pipeline_mode = #tpu.pipeline_mode<synchronous>, transform_indices = @transform_3, window_bounds = array<i64: 128, 128>}, {pipeline_mode = #tpu.pipeline_mode<synchronous>, transform_indices = @transform_4, window_bounds = array<i64: 1, 128>}, {transform_indices = @transform_5, window_bounds = array<i64: 16, 128>}]} {
    %c0 = arith.constant 0 : index
    %c0_0 = arith.constant 0 : index
    %0 = vector.load %arg1[%c0, %c0_0] : memref<16x64xf32, #tpu.memory_space<vmem>>, vector<16x64xf32>
    %1 = arith.truncf %0 : vector<16x64xf32> to vector<16x64xbf16>
    %c0_1 = arith.constant 0 : index
    %c0_2 = arith.constant 0 : index
    %2 = vector.load %arg2[%c0_1, %c0_2] : memref<64x128xf32, #tpu.memory_space<vmem>>, vector<64x128xf32>
    %3 = arith.truncf %2 : vector<64x128xf32> to vector<64x128xbf16>
    %cst = arith.constant dense<0.000000e+00> : vector<16x128xf32>
    %4 = tpu.matmul %1, %3, %cst {dimension_numbers = #tpu.dot_dimension_numbers<[1], [0], [0], [1], [0, 0, 1, 1], [], []>} : vector<16x64xbf16>, vector<64x128xbf16>, vector<16x128xf32> -> vector<16x128xf32>
    %c0_3 = arith.constant 0 : index
    %c0_4 = arith.constant 0 : index
    %5 = vector.load %arg3[%c0_3, %c0_4] : memref<16x128xf32, #tpu.memory_space<vmem>>, vector<16x128xf32>
    %6 = arith.truncf %5 : vector<16x128xf32> to vector<16x128xbf16>
    %c0_5 = arith.constant 0 : index
    %c0_6 = arith.constant 0 : index
    %7 = vector.load %arg4[%c0_5, %c0_6] : memref<128x128xf32, #tpu.memory_space<vmem>>, vector<128x128xf32>
    %8 = arith.truncf %7 : vector<128x128xf32> to vector<128x128xbf16>
    %cst_7 = arith.constant dense<0.000000e+00> : vector<16x128xf32>
    %9 = tpu.matmul %6, %8, %cst_7 {dimension_numbers = #tpu.dot_dimension_numbers<[1], [0], [0], [1], [0, 0, 1, 1], [], []>} : vector<16x128xbf16>, vector<128x128xbf16>, vector<16x128xf32> -> vector<16x128xf32>
    %10 = arith.addf %4, %9 : vector<16x128xf32>
    %c0_8 = arith.constant 0 : index
    %c0_9 = arith.constant 0 : index
    %11 = vector.load %arg5[%c0_8, %c0_9] : memref<1x128xf32, #tpu.memory_space<vmem>>, vector<1x128xf32>
    %12 = vector.broadcast %11 : vector<1x128xf32> to vector<16x128xf32>
    %13 = arith.addf %10, %12 : vector<16x128xf32>
    %cst_10 = arith.constant 0.000000e+00 : f32
    %14 = vector.broadcast %cst_10 : f32 to vector<16x128xf32>
    %15 = arith.maximumf %13, %14 : vector<16x128xf32>
    %c0_11 = arith.constant 0 : index
    %c0_12 = arith.constant 0 : index
    %16 = vector.load %arg6[%c0_11, %c0_12] : memref<16x128xf32, #tpu.memory_space<vmem>>, vector<16x128xf32>
    tpu.vector_store %arg6[%c0_11, %c0_12], %15 {strides = array<i32>} : memref<16x128xf32, #tpu.memory_space<vmem>>, vector<16x128xf32>,
    return
  }
  func.func @transform_0(%arg0: i32) -> (i32, i32) {
    %c0_i32 = arith.constant 0 : i32
    %c0_i32_0 = arith.constant 0 : i32
    return %arg0, %c0_i32 : i32, i32
  }
  func.func @transform_1(%arg0: i32) -> (i32, i32) {
    %c0_i32 = arith.constant 0 : i32
    %c0_i32_0 = arith.constant 0 : i32
    %c0_i32_1 = arith.constant 0 : i32
    return %c0_i32, %c0_i32_0 : i32, i32
  }
  func.func @transform_2(%arg0: i32) -> (i32, i32) {
    %c0_i32 = arith.constant 0 : i32
    %c0_i32_0 = arith.constant 0 : i32
    return %arg0, %c0_i32 : i32, i32
  }
  func.func @transform_3(%arg0: i32) -> (i32, i32) {
    %c0_i32 = arith.constant 0 : i32
    %c0_i32_0 = arith.constant 0 : i32
    %c0_i32_1 = arith.constant 0 : i32
    return %c0_i32, %c0_i32_0 : i32, i32
  }
  func.func @transform_4(%arg0: i32) -> (i32, i32) {
    %c0_i32 = arith.constant 0 : i32
    %c0_i32_0 = arith.constant 0 : i32
    %c0_i32_1 = arith.constant 0 : i32
    return %c0_i32, %c0_i32_0 : i32, i32
  }
  func.func @transform_5(%arg0: i32) -> (i32, i32) {
    %c0_i32 = arith.constant 0 : i32
    %c0_i32_0 = arith.constant 0 : i32
    return %arg0, %c0_i32 : i32, i32
  }
}

</mosaic_0001>

<bundles_post_ra>
// kernel: hierarchic_micro_macro_forward.10
= control target key start
LH: loop header
LB: loop body
LE: loop exit
PB: predicated region body
PF: predicated region fallthrough
CT: control target
= control target key end

     0   :  { %s2637_s24 = smov 0   ;;  %s3842_s0 = inlined_call_operand.vmem [shape: f32[64,16,128], index: 0, kind: input, shape index: {}]   ;;  %s3843_s1 = inlined_call_operand.vmem [shape: f32[128,128], index: 1, kind: input, shape index: {}]   ;;  %s3844_s2 = inlined_call_operand.vmem [shape: f32[128,128], index: 2, kind: input, shape index: {}]   ;;  %s3845_s3 = inlined_call_operand.vmem [shape: f32[1,128], index: 3, kind: input, shape index: {}]   ;;  %s3846_s4 = inlined_call_operand.vmem [shape: f32[128,128], index: 4, kind: input, shape index: {}]   ;;  %s3847_s5 = inlined_call_operand.vmem [shape: f32[1,128], index: 5, kind: input, shape index: {}]   ;;  %s3848_s6 = inlined_call_operand.vmem [shape: f32[64,16,128], index: 6, kind: output, shape index: {0}]   ;;  %s3849_s7 = inlined_call_operand.vmem [shape: f32[64,128], index: 7, kind: output, shape index: {1}]  }
   0x1 LB: > { %s2363_s25 = sadd.s32 4294967295, %s2594_s24   ;;  %p2367_p0 = scmp.ge.s32.totalorder %s2594_s24, 1  ;;  %s2594_s24 = sphi %s2637_s24, %s18_s24  }
   0x2   : > { %p242_p1 = scmp.lt.s32.totalorder %s2594_s24, 3 }
   0x4   : > { %p243_p2 = pnand %p2367_p0, %p242_p1 }
   0x6   : > { %246 = sbr.rel (%p243_p2) target bundleno = 722 (0x2d2), region = 44 }
   0xd   : > { %v863_v0 = vld [vmem:[%s3843_s1] sm:$0xff]  ;;  %v864_v1 = vld [vmem:[%s3843_s1 + $0x8] sm:$0xff]  ;;  %s2368_s9 = sshll.u32 %s2363_s25, 5  ;;  %v865_v5 = vld [vmem:[%s3843_s1 + $0x10] sm:$0xff]  ;;  %vm743_vm0 = vcmask 1041409   ;;  %vm745_vm1 = vcmask 1042434  }
   0xe   : > { %v655_v2 = vld [vmem:[%s3844_s2] sm:$0xff]  ;;  %v2656_v3 = vpack.c.bf16 %v864_v1, %v863_v0  ;;  %v656_v4 = vld [vmem:[%s3844_s2 + $0x8] sm:$0xff]  ;;  %v866_v6 = vld [vmem:[%s3843_s1 + $0x18] sm:$0xff]  ;;  %p282_p3 = scmp.lt.s32.totalorder %s2368_s9, 63  ;;  %vm747_vm2 = vcmask 1043459   ;;  %vm749_vm3 = vcmask 1044484  }
   0xf   : > { %v671_v7 = vpack.c.bf16 %v656_v4, %v655_v2  ;;  %v2667_v8 = vpack.c.bf16 %v866_v6, %v865_v5  ;;  %v657_v9 = vld [vmem:[%s3844_s2 + $0x10] sm:$0xff]  ;;  %v658_v10 = vld [vmem:[%s3844_s2 + $0x18] sm:$0xff]  ;;  %v867_v11 = vld [vmem:[%s3843_s1 + $0x20] sm:$0xff]  ;;  %vm751_vm4 = vcmask 1045509   ;;  %vm753_vm5 = vcmask 1046534   ;;  %s2374_s10 = sshll.u32 %s2363_s25, 2 }
  0x10   : > { %2562 = vmatprep.subr.bf16.mxu1 %v2656_v3  ;;  %v672_v12 = vpack.c.bf16 %v658_v10, %v657_v9  ;;  %v868_v13 = vld [vmem:[%s3843_s1 + $0x28] sm:$0xff]  ;;  %v659_v14 = vld [vmem:[%s3844_s2 + $0x20] sm:$0xff]  ;;  %s4022_s9 = smov (!%p282_p3, %s2368_s9), 63  ;;  %v869_v16 = vld [vmem:[%s3843_s1 + $0x30] sm:$0xff]  ;;  %vm755_vm6 = vcmask 1047559   ;;  %p296_p4 = scmp.lt.s32.totalorder %s2374_s10, 7 }
  0x11   : > { %3905 = vst [vmem:[#allocation2_spill] sm:$0xff] %v2667_v8  ;;  %v660_v15 = vld [vmem:[%s3844_s2 + $0x28] sm:$0xff]  ;;  %2570 = vmatpush3.bf16.msra.mxu1 %v2656_v3  ;;  %2442 = vmatprep.subr.bf16.mxu0 %v671_v7  ;;  %v870_v17 = vld [vmem:[%s3843_s1 + $0x38] sm:$0xff]  ;;  %v2698_v18 = vpack.c.bf16 %v868_v13, %v867_v11  ;;  %v661_v19 = vld [vmem:[%s3844_s2 + $0x30] sm:$0xff]  ;;  %s2380_s20 = sshll.u32 %s4022_s9, 4 }
  0x12   : > { %2443 = vmatpush3.bf16.msra.mxu0 %v671_v7  ;;  %2563 = vmatprep.subr.bf16.mxu1 %v2667_v8  ;;  %v662_v20 = vld [vmem:[%s3844_s2 + $0x38] sm:$0xff]  ;;  %v871_v21 = vld [vmem:[%s3843_s1 + $0x40] sm:$0xff]  ;;  %v872_v22 = vld [vmem:[%s3843_s1 + $0x48] sm:$0xff]  ;;  %v673_v23 = vpack.c.bf16 %v660_v15, %v659_v14  ;;  %s2736_s15 = scalar_lea.vmem %s3842_s0, %s2380_s20  ;;  %v2749_v33 = vpack.c.bf16 %v870_v17, %v869_v16  ;;  %s3321_s17 = scalar_lea.vmem %s3848_s6, %s2380_s20 }
  0x13   : > { %3906 = vst [vmem:[#allocation3_spill] sm:$0xff] %v2698_v18  ;;  %2444 = vmatprep.subr.bf16.mxu0 %v672_v12  ;;  %v663_v24 = vld [vmem:[%s3844_s2 + $0x40] sm:$0xff]  ;;  %v664_v25 = vld [vmem:[%s3844_s2 + $0x48] sm:$0xff]  ;;  %v873_v26 = vld [vmem:[%s3843_s1 + $0x50] sm:$0xff]  ;;  %v674_v37 = vpack.c.bf16 %v662_v20, %v661_v19  ;;  %v2760_v38 = vpack.c.bf16 %v872_v22, %v871_v21  ;;  %s4024_s10 = smov (!%p296_p4, %s2374_s10), 7 }
  0x14   : > { %v874_v27 = vld [vmem:[%s3843_s1 + $0x58] sm:$0xff]  ;;  %v665_v28 = vld [vmem:[%s3844_s2 + $0x50] sm:$0xff]  ;;  %v875_v30 = vld [vmem:[%s3843_s1 + $0x60] sm:$0xff]  ;;  %3907 = vst [vmem:[#allocation4_spill] sm:$0xff] %v2749_v33  ;;  %v2762_v39 = vpack.c.bf16 %v664_v25, %v663_v24  ;;  %s2375_s13 = sshll.u32 %s4024_s10, 3 }
  0x15   : > { %v666_v29 = vld [vmem:[%s3844_s2 + $0x58] sm:$0xff]  ;;  %2571 = vmatpush3.bf16.msra.mxu1 %v2667_v8  ;;  %v876_v31 = vld [vmem:[%s3843_s1 + $0x68] sm:$0xff]  ;;  %v667_v32 = vld [vmem:[%s3844_s2 + $0x60] sm:$0xff]  ;;  %3908 = vst [vmem:[#allocation5_spill] sm:$0xff] %v2760_v38  ;;  %v2764_v40 = vpack.c.bf16 %v874_v27, %v873_v26  ;;  %s299_s16 = scalar_lea.vmem %s3849_s7, %s2375_s13 }
  0x16   : > { %2445 = vmatpush3.bf16.msra.mxu0 %v672_v12  ;;  %2564 = vmatprep.subr.bf16.mxu1 %v2698_v18  ;;  %v668_v34 = vld [vmem:[%s3844_s2 + $0x68] sm:$0xff]  ;;  %v877_v35 = vld [vmem:[%s3843_s1 + $0x70] sm:$0xff]  ;;  %v878_v36 = vld [vmem:[%s3843_s1 + $0x78] sm:$0xff]  ;;  %v2773_v44 = vpack.c.bf16 %v666_v29, %v665_v28  ;;  %v2775_v45 = vpack.c.bf16 %v876_v31, %v875_v30 }
  0x17   : > { %2446 = vmatprep.subr.bf16.mxu0 %v673_v23  ;;  %3909 = vst [vmem:[#allocation6_spill] sm:$0xff] %v2764_v40  ;;  %v669_v41 = vld [vmem:[%s3844_s2 + $0x70] sm:$0xff]  ;;  %v670_v42 = vld [vmem:[%s3844_s2 + $0x78] sm:$0xff]  ;;  %v322_v43 = vld [vmem:[%s2736_s15 + $0xa0] sm:$0xff]  ;;  %v2777_v46 = vpack.c.bf16 %v668_v34, %v667_v32  ;;  %v2779_v47 = vpack.c.bf16 %v878_v36, %v877_v35 }
  0x18   : > { %3910 = vst [vmem:[#allocation7_spill] sm:$0xff] %v2775_v45  ;;  %v323_v48 = vld [vmem:[%s2736_s15 + $0xa8] sm:$0xff]  ;;  %v2783_v49 = vld [vmem:[%s2736_s15 + $0xb0] sm:$0xff]  ;;  %v2786_v50 = vld [vmem:[%s2736_s15 + $0xb8] sm:$0xff]  ;;  %v2789_v51 = vpack.c.bf16 %v670_v42, %v669_v41 }
  0x19   : > { %3911 = vst [vmem:[#allocation8_spill] sm:$0xff] %v2779_v47  ;;  %2572 = vmatpush3.bf16.msra.mxu1 %v2698_v18  ;;  %v436_v52 = vadd.f32 %v323_v48, %v322_v43  ;;  %v841_v53 = vpack.c.bf16 %v323_v48, %v322_v43  ;;  %v443_v54 = vadd.f32 %v2786_v50, %v2783_v49  ;;  %v2794_v55 = vld [vmem:[%s2736_s15] sm:$0xff]  ;;  %v2797_v56 = vld [vmem:[%s2736_s15 + $0x8] sm:$0xff]  ;;  %v2800_v57 = vld [vmem:[%s2736_s15 + $0x10] sm:$0xff] }
  0x1a   : > { %3912 = vst [vmem:[#allocation9_spill] sm:$0xff] %v2800_v57  ;;  %2447 = vmatpush3.bf16.msra.mxu0 %v673_v23  ;;  %2565 = vmatprep.subr.bf16.mxu1 %v2749_v33  ;;  %v2806_v59 = vld [vmem:[%s2736_s15 + $0x18] sm:$0xff]  ;;  %v2809_v60 = vld [vmem:[%s2736_s15 + $0x20] sm:$0xff]  ;;  %v2812_v61 = vld [vmem:[%s2736_s15 + $0x28] sm:$0xff]  ;;  %v366_v62 = vadd.f32 %v2797_v56, %v2794_v55 }
  0x1b   : > { %3913 = vst [vmem:[#allocation10_spill] sm:$0xff] %v2806_v59  ;;  %3914 = vst [vmem:[#allocation11_spill] sm:$0xff] %v2809_v60  ;;  %2448 = vmatprep.subr.bf16.mxu0 %v674_v37  ;;  %v437_v0 = vrot.slane %v436_v52, 4  ;;  %2498 = vmatprep.mubr.bf16.mxu1 %v841_v53  ;;  %v444_v1 = vrot.slane %v443_v54, 4  ;;  %v2819_v2 = vld [vmem:[%s2736_s15 + $0x30] sm:$0xff]  ;;  %v2822_v4 = vld [vmem:[%s2736_s15 + $0x38] sm:$0xff]  ;;  %v373_v6 = vadd.f32 %v2806_v59, %v2800_v57 }
  0x1c   : > { %3915 = vst [vmem:[#allocation12_spill] sm:$0xff] %v2812_v61  ;;  %3916 = vst [vmem:[#allocation13_spill] sm:$0xff] %v2819_v2  ;;  %v2825_v5 = vld [vmem:[%s2736_s15 + $0x40] sm:$0xff]  ;;  %v380_v7 = vadd.f32 %v2812_v61, %v2809_v60  ;;  %v2832_v9 = vld [vmem:[%s2736_s15 + $0x48] sm:$0xff]  ;;  %v367_v12 = vrot.slane %v366_v62, 4  ;;  %v387_v13 = vadd.f32 %v2822_v4, %v2819_v2 }
  0x1d   : > { %3917 = vst [vmem:[#allocation14_spill] sm:$0xff] %v2822_v4  ;;  %3918 = vst [vmem:[#allocation15_spill] sm:$0xff] %v2825_v5  ;;  %v2835_v10 = vld [vmem:[%s2736_s15 + $0x50] sm:$0xff]  ;;  %v2838_v11 = vld [vmem:[%s2736_s15 + $0x58] sm:$0xff]  ;;  %2573 = vmatpush3.bf16.msra.mxu1 %v2749_v33  ;;  %v438_v16 = vadd.f32 %v437_v0, %v436_v52  ;;  %v445_v17 = vadd.f32 %v444_v1, %v443_v54  ;;  %v374_v19 = vrot.slane %v373_v6, 4 }
  0x1e   : > { %3919 = vst [vmem:[#allocation16_spill] sm:$0xff] %v2832_v9  ;;  %3920 = vst [vmem:[#allocation17_spill] sm:$0xff] %v2835_v10  ;;  %v381_v20 = vrot.slane %v380_v7, 4  ;;  %2449 = vmatpush3.bf16.msra.mxu0 %v674_v37  ;;  %2566 = vmatprep.subr.bf16.mxu1 %v2760_v38  ;;  %v368_v21 = vadd.f32 %v367_v12, %v366_v62  ;;  %v388_v22 = vrot.slane %v387_v13, 4 }
  0x1f   : > { %3921 = vst [vmem:[#allocation18_spill] sm:$0xff] %v2838_v11  ;;  %v394_v23 = vadd.f32 %v2832_v9, %v2825_v5  ;;  %v401_v24 = vadd.f32 %v2838_v11, %v2835_v10  ;;  %2450 = vmatprep.subr.bf16.mxu0 %v2762_v39  ;;  %v439_v25 = vrot.slane %v438_v16, 2  ;;  %v446_v26 = vrot.slane %v445_v17, 2 }
  0x20   : > { %v375_v27 = vadd.f32 %v374_v19, %v373_v6  ;;  %v382_v28 = vadd.f32 %v381_v20, %v380_v7  ;;  %v369_v29 = vrot.slane %v368_v21, 2  ;;  %v389_v30 = vadd.f32 %v388_v22, %v387_v13  ;;  %v2859_v13 = vld [vmem:[%s2736_s15 + $0x60] sm:$0xff] }
  0x21   : > { %v395_v31 = vrot.slane %v394_v23, 4  ;;  %v402_v32 = vrot.slane %v401_v24, 4  ;;  %2574 = vmatpush3.bf16.msra.mxu1 %v2760_v38  ;;  %v440_v34 = vadd.f32 %v439_v25, %v438_v16  ;;  %v447_v35 = vadd.f32 %v446_v26, %v445_v17  ;;  %3922 = vst [vmem:[#allocation19_spill] sm:$0xff] %v2859_v13  ;;  %v2862_v16 = vld [vmem:[%s2736_s15 + $0x68] sm:$0xff]  ;;  %v2865_v17 = vld [vmem:[%s2736_s15 + $0x70] sm:$0xff]  ;;  %v2873_v22 = vld [vmem:[%s2736_s15 + $0x80] sm:$0xff] }
  0x22   : > { %v376_v36 = vrot.slane %v375_v27, 2  ;;  %v383_v37 = vrot.slane %v382_v28, 2  ;;  %2451 = vmatpush3.bf16.msra.mxu0 %v2762_v39  ;;  %2567 = vmatprep.subr.bf16.mxu1 %v2764_v40  ;;  %v370_v41 = vadd.f32 %v369_v29, %v368_v21  ;;  %v390_v42 = vrot.slane %v389_v30, 2  ;;  %3923 = vst [vmem:[#allocation20_spill] sm:$0xff] %v2862_v16  ;;  %3924 = vst [vmem:[#allocation21_spill] sm:$0xff] %v2865_v17  ;;  %v2870_v21 = vld [vmem:[%s2736_s15 + $0x78] sm:$0xff] }
  0x23   : > { %v396_v43 = vadd.f32 %v395_v31, %v394_v23  ;;  %v403_v48 = vadd.f32 %v402_v32, %v401_v24  ;;  %2452 = vmatprep.subr.bf16.mxu0 %v2773_v44  ;;  %v441_v52 = vrot.slane %v440_v34, 1  ;;  %v448_v53 = vrot.slane %v447_v35, 1  ;;  %3925 = vst [vmem:[#allocation22_spill] sm:$0xff] %v2870_v21  ;;  %3926 = vst [vmem:[#allocation23_spill] sm:$0xff] %v2873_v22  ;;  %v2876_v23 = vld [vmem:[%s2736_s15 + $0x88] sm:$0xff]  ;;  %v2882_v29 = vld [vmem:[%s2736_s15 + $0x90] sm:$0xff] }
  0x24   : > { %v377_v54 = vadd.f32 %v376_v36, %v375_v27  ;;  %v384_v62 = vadd.f32 %v383_v37, %v382_v28  ;;  %v371_v0 = vrot.slane %v370_v41, 1  ;;  %v391_v39 = vadd.f32 %v390_v42, %v389_v30  ;;  %3927 = vst [vmem:[#allocation24_spill] sm:$0xff] %v2876_v23  ;;  %3928 = vst [vmem:[#allocation25_spill] sm:$0xff] %v2882_v29  ;;  %v2885_v30 = vld [vmem:[%s2736_s15 + $0x98] sm:$0xff] }
  0x25   : > { %v397_v1 = vrot.slane %v396_v43, 2  ;;  %v404_v6 = vrot.slane %v403_v48, 2  ;;  %2575 = vmatpush3.bf16.msra.mxu1 %v2764_v40  ;;  %v442_v7 = vadd.f32 %v441_v52, %v440_v34  ;;  %v449_v12 = vadd.f32 %v448_v53, %v447_v35  ;;  %3929 = vst [vmem:[#allocation26_spill] sm:$0xff] %v2885_v30  ;;  %v2892_v34 = vld [vmem:[%s2736_s15 + $0xc0] sm:$0xff]  ;;  %v2895_v35 = vld [vmem:[%s2736_s15 + $0xc8] sm:$0xff]  ;;  %v2903_v52 = vld [vmem:[%s2736_s15 + $0xd0] sm:$0xff] }
  0x26   : > { %v378_v19 = vrot.slane %v377_v54, 1  ;;  %v385_v20 = vrot.slane %v384_v62, 1  ;;  %2453 = vmatpush3.bf16.msra.mxu0 %v2773_v44  ;;  %2568 = vmatprep.subr.bf16.mxu1 %v2775_v45  ;;  %v2878_v24 = vadd.f32 %v371_v0, %v370_v41  ;;  %v392_v25 = vrot.slane %v391_v39, 1  ;;  %v2906_v53 = vld [vmem:[%s2736_s15 + $0xd8] sm:$0xff] }
  0x27   : > { %v398_v26 = vadd.f32 %v397_v1, %v396_v43  ;;  %v405_v27 = vadd.f32 %v404_v6, %v403_v48  ;;  %2454 = vmatprep.subr.bf16.mxu0 %v2777_v46  ;;  %v601_v28 = vmul.f32 0.0625, %v442_v7  ;;  %v602_v44 = vmul.f32 0.0625, %v449_v12  ;;  %v2921_v1 = vld [vmem:[%s2736_s15 + $0xf0] sm:$0xff]  ;;  %v2924_v6 = vld [vmem:[%s2736_s15 + $0xf8] sm:$0xff] }
  0x28   : > { %v2887_v31 = vadd.f32 %v378_v19, %v377_v54  ;;  %v2889_v32 = vadd.f32 %v385_v20, %v384_v62  ;;  %v2897_v36 = vadd.f32 %v392_v25, %v391_v39  ;;  %v408_v42 = vadd.f32 %v2862_v16, %v2859_v13  ;;  %v2909_v54 = vld [vmem:[%s2736_s15 + $0xe0] sm:$0xff]  ;;  %v2918_v39 = vld [vmem:[%s2736_s15 + $0xe8] sm:$0xff] }
  0x29   : > { %v399_v37 = vrot.slane %v398_v26, 1  ;;  %v406_v41 = vrot.slane %v405_v27, 1  ;;  %2576 = vmatpush3.bf16.msra.mxu1 %v2775_v45  ;;  %v633_v43 = vpack.c.bf16 %v601_v28, %v601_v28  ;;  %v634_v48 = vpack.c.bf16 %v602_v44, %v602_v44 }
  0x2a   : > { %v415_v62 = vadd.f32 %v2870_v21, %v2865_v17  ;;  %v422_v0 = vadd.f32 %v2876_v23, %v2873_v22  ;;  %2455 = vmatpush3.bf16.msra.mxu0 %v2777_v46  ;;  %2569 = vmatprep.subr.bf16.mxu1 %v2779_v47  ;;  %v409_v19 = vrot.slane %v408_v42, 4  ;;  %v429_v20 = vadd.f32 %v2885_v30, %v2882_v29 }
  0x2b   : > { %v2926_v7 = vadd.f32 %v399_v37, %v398_v26  ;;  %v2928_v12 = vadd.f32 %v406_v41, %v405_v27  ;;  %2456 = vmatprep.subr.bf16.mxu0 %v2789_v51  ;;  %v2933_v25 = vunpack.c.l.b16 %v633_v43  ;;  %v2935_v46 = vunpack.c.l.b16 %v634_v48 }
  0x2c   : > { %v416_v28 = vrot.slane %v415_v62, 4  ;;  %v423_v44 = vrot.slane %v422_v0, 4  ;;  %v410_v15 = vadd.f32 %v409_v19, %v408_v42  ;;  %v430_v14 = vrot.slane %v429_v20, 4 }
  0x2d   : > { %v450_v26 = vadd.f32 %v2895_v35, %v2892_v34  ;;  %v457_v27 = vadd.f32 %v2906_v53, %v2903_v52  ;;  %2577 = vmatpush3.bf16.msra.mxu1 %v2779_v47  ;;  %v464_v43 = vadd.f32 %v2918_v39, %v2909_v54  ;;  %v471_v48 = vadd.f32 %v2924_v6, %v2921_v1  ;;  %v3085_v47 = vld [vmem:[%s2736_s15 + $0x1d8] sm:$0xff] }
  0x2e   : > { %v417_v37 = vadd.f32 %v416_v28, %v415_v62  ;;  %v424_v41 = vadd.f32 %v423_v44, %v422_v0  ;;  %2457 = vmatpush3.bf16.msra.mxu0 %v2789_v51  ;;  %v411_v42 = vrot.slane %v410_v15, 2  ;;  %v431_v19 = vadd.f32 %v430_v14, %v429_v20 }
  0x2f   : > { %v451_v63 = vrot.slane %v450_v26, 4  ;;  %v458_v58 = vrot.slane %v457_v27, 4  ;;  %v465_v23 = vrot.slane %v464_v43, 4  ;;  %v472_v22 = vrot.slane %v471_v48, 4  ;;  %2462 = vmatprep.subr.bf16.mxu0 %v2656_v3 }
  0x30   : > { %v418_v30 = vrot.slane %v417_v37, 2  ;;  %v425_v29 = vrot.slane %v424_v41, 2  ;;  %v3930_v62 = vpack.c.bf16 %v2786_v50, %v2783_v49  ;;  %v412_v0 = vadd.f32 %v411_v42, %v410_v15 }
  0x31   : > { %v432_v28 = vrot.slane %v431_v19, 2  ;;  %v452_v44 = vadd.f32 %v451_v63, %v450_v26  ;;  %v459_v21 = vadd.f32 %v458_v58, %v457_v27  ;;  %v466_v16 = vadd.f32 %v465_v23, %v464_v43 }
  0x32   : > { %2499 = vmatmul.mubr.bf16.vlgmr.msra.gmra.mrb[0].mxu1 %v3930_v62  ;;  %v419_v17 = vadd.f32 %v418_v30, %v417_v37  ;;  %v426_v51 = vadd.f32 %v425_v29, %v424_v41  ;;  %v473_v14 = vadd.f32 %v472_v22, %v471_v48  ;;  %v413_v20 = vrot.slane %v412_v0, 1 }
  0x33   : > { %v433_v13 = vadd.f32 %v432_v28, %v431_v19  ;;  %v453_v11 = vrot.slane %v452_v44, 2  ;;  %v460_v10 = vrot.slane %v459_v21, 2  ;;  %v467_v4 = vrot.slane %v466_v16, 2 }
  0x34   : > { %v420_v9 = vrot.slane %v419_v17, 1  ;;  %v427_v5 = vrot.slane %v426_v51, 1  ;;  %v474_v2 = vrot.slane %v473_v14, 2  ;;  %v414_v60 = vadd.f32 %v413_v20, %v412_v0 }
  0x35   : > { %v434_v61 = vrot.slane %v433_v13, 1  ;;  %v454_v49 = vadd.f32 %v453_v11, %v452_v44  ;;  %v461_v50 = vadd.f32 %v460_v10, %v459_v21  ;;  %v468_v63 = vadd.f32 %v467_v4, %v466_v16 }
  0x36   : > { %v421_v15 = vadd.f32 %v420_v9, %v419_v17  ;;  %v428_v42 = vadd.f32 %v427_v5, %v426_v51  ;;  %v475_v58 = vadd.f32 %v474_v2, %v473_v14  ;;  %v591_v22 = vmul.f32 0.0625, %v2878_v24 }
  0x37   : > { %v435_v30 = vadd.f32 %v434_v61, %v433_v13  ;;  %v455_v29 = vrot.slane %v454_v49, 1  ;;  %v462_v23 = vrot.slane %v461_v50, 1  ;;  %v469_v26 = vrot.slane %v468_v63, 1 }
  0x38   : > { %v476_v27 = vrot.slane %v475_v58, 1  ;;  %v592_v37 = vmul.f32 0.0625, %v2887_v31  ;;  %v593_v41 = vmul.f32 0.0625, %v2889_v32  ;;  %v594_v10 = vmul.f32 0.0625, %v2897_v36 }
  0x39   : > { %v456_v43 = vadd.f32 %v455_v29, %v454_v49  ;;  %v463_v48 = vadd.f32 %v462_v23, %v461_v50  ;;  %v595_v5 = vmul.f32 0.0625, %v2926_v7  ;;  %v470_v2 = vadd.f32 %v469_v26, %v468_v63  ;;  %v2958_v63 = vld [vmem:[%s2736_s15 + $0x100] sm:$0xff]  ;;  %v2964_v26 = vld [vmem:[%s2736_s15 + $0x110] sm:$0xff] }
  0x3a   : > { %v477_v61 = vadd.f32 %v476_v27, %v475_v58  ;;  %v596_v4 = vmul.f32 0.0625, %v2928_v12  ;;  %v597_v9 = vmul.f32 0.0625, %v414_v60  ;;  %v598_v11 = vmul.f32 0.0625, %v421_v15  ;;  %v2961_v58 = vld [vmem:[%s2736_s15 + $0x108] sm:$0xff]  ;;  %3931 = vst [vmem:[#allocation27_spill] sm:$0xff] %v2964_v26  ;;  %v2967_v27 = vld [vmem:[%s2736_s15 + $0x118] sm:$0xff] }
  0x3b   : > { %v599_v13 = vmul.f32 0.0625, %v428_v42  ;;  %v600_v16 = vmul.f32 0.0625, %v435_v30  ;;  %v603_v17 = vmul.f32 0.0625, %v456_v43  ;;  %v604_v21 = vmul.f32 0.0625, %v463_v48  ;;  %3932 = vst [vmem:[#allocation28_spill] sm:$0xff] %v2967_v27 }
  0x3c   : > { %v605_v24 = vmul.f32 0.0625, %v470_v2  ;;  %v606_v31 = vmul.f32 0.0625, %v477_v61  ;;  %v623_v32 = vpack.c.bf16 %v591_v22, %v591_v22  ;;  %v624_v36 = vpack.c.bf16 %v592_v37, %v592_v37  ;;  %v2970_v37 = vld [vmem:[%s2736_s15 + $0x120] sm:$0xff]  ;;  %v2976_v2 = vld [vmem:[%s2736_s15 + $0x130] sm:$0xff]  ;;  %v2979_v61 = vld [vmem:[%s2736_s15 + $0x138] sm:$0xff] }
  0x3d   : > { %v625_v19 = vpack.c.bf16 %v593_v41, %v593_v41  ;;  %v626_v7 = vpack.c.bf16 %v594_v10, %v594_v10  ;;  %v627_v62 = vpack.c.bf16 %v595_v5, %v595_v5  ;;  %v628_v12 = vpack.c.bf16 %v596_v4, %v596_v4  ;;  %3933 = vst [vmem:[#allocation29_spill] sm:$0xff] %v2970_v37  ;;  %v2973_v5 = vld [vmem:[%s2736_s15 + $0x128] sm:$0xff] }
  0x3e   : > { %v629_v60 = vpack.c.bf16 %v597_v9, %v597_v9  ;;  %v630_v0 = vpack.c.bf16 %v598_v11, %v598_v11  ;;  %v631_v28 = vpack.c.bf16 %v599_v13, %v599_v13  ;;  %v632_v44 = vpack.c.bf16 %v600_v16, %v600_v16  ;;  %3934 = vst [vmem:[#allocation30_spill] sm:$0xff] %v2973_v5 }
  0x3f   : > { %v635_v51 = vpack.c.bf16 %v603_v17, %v603_v17  ;;  %v636_v14 = vpack.c.bf16 %v604_v21, %v604_v21  ;;  %v637_v20 = vpack.c.bf16 %v605_v24, %v605_v24  ;;  %v638_v49 = vpack.c.bf16 %v606_v31, %v606_v31  ;;  %3935 = vst [vmem:[#allocation31_spill] sm:$0xff] %v2976_v2 }
  0x40   : > { %v711_v50 = vunpack.c.l.b16 %v623_v32  ;;  %v712_v15 = vunpack.c.l.b16 %v624_v36  ;;  %v713_v42 = vunpack.c.l.b16 %v625_v19  ;;  %v714_v30 = vunpack.c.l.b16 %v626_v7  ;;  %3936 = vst [vmem:[#allocation32_spill] sm:$0xff] %v2979_v61 }
  0x41   : > { %v715_v29 = vunpack.c.l.b16 %v627_v62  ;;  %v716_v23 = vunpack.c.l.b16 %v628_v12  ;;  %v717_v22 = vunpack.c.l.b16 %v629_v60  ;;  %v718_v41 = vunpack.c.l.b16 %v630_v0 }
  0x42   : > { %v719_v43 = vunpack.c.l.b16 %v631_v28  ;;  %v720_v48 = vunpack.c.l.b16 %v632_v44  ;;  %v723_v10 = vunpack.c.l.b16 %v635_v51  ;;  %v724_v4 = vunpack.c.l.b16 %v636_v14  ;;  %v3001_v28 = vld [vmem:[%s2736_s15 + $0x140] sm:$0xff]  ;;  %v3004_v44 = vld [vmem:[%s2736_s15 + $0x148] sm:$0xff] }
  0x43   : > { %v725_v9 = vunpack.c.l.b16 %v637_v20  ;;  %v726_v11 = vunpack.c.l.b16 %v638_v49  ;;  %v744_v13 = vsel %vm743_vm0, %v712_v15, %v711_v50  ;;  %v478_v21 = vadd.f32 %v2961_v58, %v2958_v63  ;;  %3937 = vst [vmem:[#allocation33_spill] sm:$0xff] %v3001_v28  ;;  %3938 = vst [vmem:[#allocation34_spill] sm:$0xff] %v3004_v44  ;;  %v3009_v49 = vld [vmem:[%s2736_s15 + $0x150] sm:$0xff]  ;;  %v3012_v50 = vld [vmem:[%s2736_s15 + $0x158] sm:$0xff] }
  0x44   : > { %v746_v16 = vsel %vm745_vm1, %v713_v42, %v744_v13  ;;  %v757_v17 = vsel %vm743_vm0, %v720_v48, %v719_v43  ;;  %v485_v24 = vadd.f32 %v2967_v27, %v2964_v26  ;;  %v492_v36 = vadd.f32 %v2973_v5, %v2970_v37  ;;  %3939 = vst [vmem:[#allocation35_spill] sm:$0xff] %v3009_v49  ;;  %v3020_v43 = vld [vmem:[%s2736_s15 + $0x168] sm:$0xff]  ;;  %v3024_v13 = vld [vmem:[%s2736_s15 + $0x170] sm:$0xff] }
  0x45   : > { %v748_v31 = vsel %vm747_vm2, %v714_v30, %v746_v16  ;;  %v758_v32 = vsel %vm745_vm1, %v2933_v25, %v757_v17  ;;  %v499_v19 = vadd.f32 %v2979_v61, %v2976_v2  ;;  %v479_v12 = vrot.slane %v478_v21, 4  ;;  %3940 = vst [vmem:[#allocation36_spill] sm:$0xff] %v3012_v50  ;;  %3942 = vst [vmem:[#allocation38_spill] sm:$0xff] %v3020_v43 }
  0x46   : > { %v750_v7 = vsel %vm749_vm3, %v715_v29, %v748_v31  ;;  %v759_v62 = vsel %vm747_vm2, %v2935_v46, %v758_v32  ;;  %v486_v60 = vrot.slane %v485_v24, 4  ;;  %v493_v51 = vrot.slane %v492_v36, 4  ;;  %3943 = vst [vmem:[#allocation39_spill] sm:$0xff] %v3024_v13 }
  0x47   : > { %v752_v0 = vsel %vm751_vm4, %v716_v23, %v750_v7  ;;  %v760_v25 = vsel %vm749_vm3, %v723_v10, %v759_v62  ;;  %v500_v14 = vrot.slane %v499_v19, 4  ;;  %v480_v15 = vadd.f32 %v479_v12, %v478_v21  ;;  %v3017_v23 = vld [vmem:[%s2736_s15 + $0x160] sm:$0xff] }
  0x48   : > { %v754_v20 = vsel %vm753_vm5, %v717_v22, %v752_v0  ;;  %v761_v46 = vsel %vm751_vm4, %v724_v4, %v760_v25  ;;  %v487_v42 = vadd.f32 %v486_v60, %v485_v24  ;;  %3941 = vst [vmem:[#allocation37_spill] sm:$0xff] %v3017_v23  ;;  %v494_v48 = vadd.f32 %v493_v51, %v492_v36  ;;  %v3027_v4 = vld [vmem:[%s2736_s15 + $0x178] sm:$0xff]  ;;  %v3038_v0 = vld [vmem:[%s2736_s15 + $0x180] sm:$0xff]  ;;  %v3041_v25 = vld [vmem:[%s2736_s15 + $0x188] sm:$0xff] }
  0x49   : > { %v756_v30 = vsel %vm755_vm6, %v718_v41, %v754_v20  ;;  %v762_v29 = vsel %vm753_vm5, %v725_v9, %v761_v46  ;;  %v501_v10 = vadd.f32 %v500_v14, %v499_v19  ;;  %3944 = vst [vmem:[#allocation40_spill] sm:$0xff] %v3027_v4  ;;  %v481_v16 = vrot.slane %v480_v15, 2  ;;  %3945 = vst [vmem:[#allocation41_spill] sm:$0xff] %v3038_v0 }
  0x4a   : > { %v763_v22 = vsel %vm755_vm6, %v726_v11, %v762_v29  ;;  %v488_v17 = vrot.slane %v487_v42, 2  ;;  %v506_v41 = vadd.f32 %v3004_v44, %v3001_v28  ;;  %v495_v21 = vrot.slane %v494_v48, 2  ;;  %3946 = vst [vmem:[#allocation42_spill] sm:$0xff] %v3041_v25 }
  0x4b   : > { %v778_v9 = vpack.c.b16 %v763_v22, %v756_v30  ;;  %v502_v24 = vrot.slane %v501_v10, 2  ;;  %v513_v31 = vadd.f32 %v3012_v50, %v3009_v49  ;;  %v482_v32 = vadd.f32 %v481_v16, %v480_v15  ;;  %v3044_v15 = vld [vmem:[%s2736_s15 + $0x190] sm:$0xff]  ;;  %v3050_v30 = vld [vmem:[%s2736_s15 + $0x1a0] sm:$0xff]  ;;  %v3053_v22 = vld [vmem:[%s2736_s15 + $0x1a8] sm:$0xff] }
  0x4c   : > { %v489_v11 = vadd.f32 %v488_v17, %v487_v42  ;;  %v507_v36 = vrot.slane %v506_v41, 4  ;;  %v520_v19 = vadd.f32 %v3020_v43, %v3017_v23  ;;  %v496_v7 = vadd.f32 %v495_v21, %v494_v48  ;;  %v3047_v42 = vld [vmem:[%s2736_s15 + $0x198] sm:$0xff]  ;;  %v3056_v16 = vld [vmem:[%s2736_s15 + $0x1b0] sm:$0xff]  ;;  %v3088_v50 = vld [vmem:[%s2736_s15 + $0x1e0] sm:$0xff] }
  0x4d   : > { %2458 = vmatprep.mubr.bf16.mxu0 %v778_v9  ;;  %v503_v62 = vadd.f32 %v502_v24, %v501_v10  ;;  %v514_v12 = vrot.slane %v513_v31, 4  ;;  %v527_v60 = vadd.f32 %v3027_v4, %v3024_v13  ;;  %v483_v51 = vrot.slane %v482_v32, 1  ;;  %v3059_v17 = vld [vmem:[%s2736_s15 + $0x1b8] sm:$0xff]  ;;  %v3091_v49 = vld [vmem:[%s2736_s15 + $0x1e8] sm:$0xff] }
  0x4e   : > { %v490_v14 = vrot.slane %v489_v11, 1  ;;  %v508_v20 = vadd.f32 %v507_v36, %v506_v41  ;;  %v521_v46 = vrot.slane %v520_v19, 4  ;;  %v497_v29 = vrot.slane %v496_v7, 1  ;;  %3947 = vst [vmem:[#allocation43_spill] sm:$0xff] %v3091_v49 }
  0x4f   : > { %v515_v48 = vadd.f32 %v514_v12, %v513_v31  ;;  %v528_v10 = vrot.slane %v527_v60, 4  ;;  %v3061_v9 = vadd.f32 %v483_v51, %v482_v32  ;;  %v504_v21 = vrot.slane %v503_v62, 1 }
  0x50   : > { %v509_v41 = vrot.slane %v508_v20, 2  ;;  %v522_v24 = vadd.f32 %v521_v46, %v520_v19  ;;  %v3063_v36 = vadd.f32 %v490_v14, %v489_v11  ;;  %v3065_v57 = vadd.f32 %v497_v29, %v496_v7  ;;  %v3076_v29 = vld [vmem:[%s2736_s15 + $0x1c0] sm:$0xff] }
  0x51   : > { %v516_v59 = vrot.slane %v515_v48, 2  ;;  %v529_v31 = vadd.f32 %v528_v10, %v527_v60  ;;  %v534_v13 = vadd.f32 %v3041_v25, %v3038_v0  ;;  %v541_v32 = vadd.f32 %v3047_v42, %v3044_v15  ;;  %v3079_v10 = vld [vmem:[%s2736_s15 + $0x1c8] sm:$0xff]  ;;  %v3082_v0 = vld [vmem:[%s2736_s15 + $0x1d0] sm:$0xff] }
  0x52   : > { %v510_v12 = vadd.f32 %v509_v41, %v508_v20  ;;  %v523_v4 = vrot.slane %v522_v24, 2  ;;  %v548_v11 = vadd.f32 %v3053_v22, %v3050_v30  ;;  %v555_v7 = vadd.f32 %v3059_v17, %v3056_v16 }
  0x53   : > { %v517_v51 = vadd.f32 %v516_v59, %v515_v48  ;;  %v530_v19 = vrot.slane %v529_v31, 2  ;;  %v535_v20 = vrot.slane %v534_v13, 4  ;;  %v542_v46 = vrot.slane %v541_v32, 4 }
  0x54   : > { %v511_v14 = vrot.slane %v510_v12, 1  ;;  %v524_v60 = vadd.f32 %v523_v4, %v522_v24  ;;  %v549_v48 = vrot.slane %v548_v11, 4  ;;  %v556_v25 = vrot.slane %v555_v7, 4 }
  0x55   : > { %v518_v41 = vrot.slane %v517_v51, 1  ;;  %v531_v59 = vadd.f32 %v530_v19, %v529_v31  ;;  %v505_v43 = vadd.f32 %v504_v21, %v503_v62  ;;  %v536_v4 = vadd.f32 %v535_v20, %v534_v13  ;;  %v3094_v31 = vld [vmem:[%s2736_s15 + $0x1f0] sm:$0xff]  ;;  %v3097_v19 = vld [vmem:[%s2736_s15 + $0x1f8] sm:$0xff] }
  0x56   : > { %v525_v23 = vrot.slane %v524_v60, 1  ;;  %v543_v24 = vadd.f32 %v542_v46, %v541_v32  ;;  %v512_v45 = vadd.f32 %v511_v14, %v510_v12  ;;  %v550_v44 = vadd.f32 %v549_v48, %v548_v11  ;;  %3948 = vst [vmem:[#allocation44_spill] sm:$0xff] %v3094_v31  ;;  %3949 = vst [vmem:[#allocation45_spill] sm:$0xff] %v3097_v19 }
  0x57   : > { %v519_v40 = vadd.f32 %v518_v41, %v517_v51  ;;  %v557_v28 = vadd.f32 %v556_v25, %v555_v7  ;;  %v532_v61 = vrot.slane %v531_v59, 1  ;;  %v537_v2 = vrot.slane %v536_v4, 2 }
  0x58   : > { %v544_v38 = vrot.slane %v543_v24, 2  ;;  %v562_v62 = vadd.f32 %v3079_v10, %v3076_v29  ;;  %v526_v13 = vadd.f32 %v525_v23, %v524_v60  ;;  %v551_v21 = vrot.slane %v550_v44, 2 }
  0x59   : > { %v558_v32 = vrot.slane %v557_v28, 2  ;;  %v569_v20 = vadd.f32 %v3085_v47, %v3082_v0  ;;  %v538_v12 = vadd.f32 %v537_v2, %v536_v4  ;;  %v576_v25 = vadd.f32 %v3091_v49, %v3088_v50 }
  0x5a   : > { %v545_v51 = vadd.f32 %v544_v38, %v543_v24  ;;  %v563_v11 = vrot.slane %v562_v62, 4  ;;  %v552_v7 = vadd.f32 %v551_v21, %v550_v44  ;;  %v583_v41 = vadd.f32 %v3097_v19, %v3094_v31 }
  0x5b   : > { %v559_v14 = vadd.f32 %v558_v32, %v557_v28  ;;  %v570_v46 = vrot.slane %v569_v20, 4  ;;  %v539_v48 = vrot.slane %v538_v12, 1  ;;  %v577_v60 = vrot.slane %v576_v25, 4 }
  0x5c   : > { %v546_v33 = vrot.slane %v545_v51, 1  ;;  %v564_v23 = vadd.f32 %v563_v11, %v562_v62  ;;  %v553_v5 = vrot.slane %v552_v7, 1  ;;  %v584_v26 = vrot.slane %v583_v41, 4 }
  0x5d   : > { %v560_v37 = vrot.slane %v559_v14, 1  ;;  %v571_v27 = vadd.f32 %v570_v46, %v569_v20  ;;  %v533_v2 = vadd.f32 %v532_v61, %v531_v59  ;;  %v540_v38 = vadd.f32 %v539_v48, %v538_v12 }
  0x5e   : > { %v565_v4 = vrot.slane %v564_v23, 2  ;;  %v578_v24 = vadd.f32 %v577_v60, %v576_v25  ;;  %v547_v18 = vadd.f32 %v546_v33, %v545_v51  ;;  %v554_v8 = vadd.f32 %v553_v5, %v552_v7 }
  0x5f   : > { %v572_v44 = vrot.slane %v571_v27, 2  ;;  %v585_v28 = vadd.f32 %v584_v26, %v583_v41  ;;  %v561_v21 = vadd.f32 %v560_v37, %v559_v14  ;;  %v607_v19 = vmul.f32 0.0625, %v3061_v9 }
  0x60   : > { %v566_v32 = vadd.f32 %v565_v4, %v564_v23  ;;  %v579_v49 = vrot.slane %v578_v24, 2  ;;  %v608_v11 = vmul.f32 0.0625, %v3063_v36  ;;  %v609_v20 = vmul.f32 0.0625, %v3065_v57 }
  0x61   : > { %v573_v31 = vadd.f32 %v572_v44, %v571_v27  ;;  %v586_v62 = vrot.slane %v585_v28, 2  ;;  %v610_v59 = vmul.f32 0.0625, %v505_v43  ;;  %v611_v12 = vmul.f32 0.0625, %v512_v45 }
  0x62   : > { %v567_v46 = vrot.slane %v566_v32, 1  ;;  %v580_v61 = vadd.f32 %v579_v49, %v578_v24  ;;  %v612_v5 = vmul.f32 0.0625, %v519_v40  ;;  %v613_v51 = vmul.f32 0.0625, %v526_v13 }
  0x63   : > { %v574_v25 = vrot.slane %v573_v31, 1  ;;  %v587_v33 = vadd.f32 %v586_v62, %v585_v28  ;;  %v614_v7 = vmul.f32 0.0625, %v533_v2  ;;  %v615_v14 = vmul.f32 0.0625, %v540_v38 }
  0x64   : > { %v568_v26 = vadd.f32 %v567_v46, %v566_v32  ;;  %v581_v37 = vrot.slane %v580_v61, 1  ;;  %v616_v27 = vmul.f32 0.0625, %v547_v18  ;;  %v617_v48 = vmul.f32 0.0625, %v554_v8 }
  0x65   : > { %v575_v41 = vadd.f32 %v574_v25, %v573_v31  ;;  %v588_v9 = vrot.slane %v587_v33, 1  ;;  %v618_v36 = vmul.f32 0.0625, %v561_v21  ;;  %v639_v57 = vpack.c.bf16 %v607_v19, %v607_v19 }
  0x66   : > { %v582_v23 = vadd.f32 %v581_v37, %v580_v61  ;;  %v619_v60 = vmul.f32 0.0625, %v568_v26  ;;  %v640_v43 = vpack.c.bf16 %v608_v11, %v608_v11  ;;  %v641_v45 = vpack.c.bf16 %v609_v20, %v609_v20 }
  0x67   : > { %v589_v4 = vadd.f32 %v588_v9, %v587_v33  ;;  %v620_v49 = vmul.f32 0.0625, %v575_v41  ;;  %v642_v44 = vpack.c.bf16 %v610_v59, %v610_v59  ;;  %v643_v40 = vpack.c.bf16 %v611_v12, %v611_v12 }
  0x68   : > { %v621_v24 = vmul.f32 0.0625, %v582_v23  ;;  %v644_v13 = vpack.c.bf16 %v612_v5, %v612_v5  ;;  %v645_v32 = vpack.c.bf16 %v613_v51, %v613_v51  ;;  %v647_v2 = vpack.c.bf16 %v615_v14, %v615_v14 }
  0x69   : > { %v622_v28 = vmul.f32 0.0625, %v589_v4  ;;  %v648_v38 = vpack.c.bf16 %v616_v27, %v616_v27  ;;  %v646_v31 = vpack.c.bf16 %v614_v7, %v614_v7  ;;  %v649_v62 = vpack.c.bf16 %v617_v48, %v617_v48 }
  0x6a   : > { %v650_v18 = vpack.c.bf16 %v618_v36, %v618_v36  ;;  %v651_v8 = vpack.c.bf16 %v619_v60, %v619_v60  ;;  %v652_v46 = vpack.c.bf16 %v620_v49, %v620_v49  ;;  %v653_v21 = vpack.c.bf16 %v621_v24, %v621_v24 }
  0x6b   : > { %v727_v61 = vunpack.c.l.b16 %v639_v57  ;;  %v728_v19 = vunpack.c.l.b16 %v640_v43  ;;  %v654_v25 = vpack.c.bf16 %v622_v28, %v622_v28  ;;  %v729_v33 = vunpack.c.l.b16 %v641_v45 }
  0x6c   : > { %v730_v11 = vunpack.c.l.b16 %v642_v44  ;;  %v731_v20 = vunpack.c.l.b16 %v643_v40  ;;  %v732_v26 = vunpack.c.l.b16 %v644_v13  ;;  %v733_v59 = vunpack.c.l.b16 %v645_v32 }
  0x6d   : > { %v735_v12 = vunpack.c.l.b16 %v647_v2  ;;  %v736_v5 = vunpack.c.l.b16 %v648_v38  ;;  %v734_v37 = vunpack.c.l.b16 %v646_v31  ;;  %v737_v51 = vunpack.c.l.b16 %v649_v62  ;;  %v3963_v62 = vld [vmem:[#allocation32_spill] sm:$0xff] }
  0x6e   : > { %v738_v14 = vunpack.c.l.b16 %v650_v18  ;;  %v739_v41 = vunpack.c.l.b16 %v651_v8  ;;  %v740_v7 = vunpack.c.l.b16 %v652_v46  ;;  %v741_v9 = vunpack.c.l.b16 %v653_v21  ;;  %v3964_v8 = vld [vmem:[#allocation33_spill] sm:$0xff]  ;;  %v3965_v46 = vld [vmem:[#allocation34_spill] sm:$0xff] }
  0x6f   : > { %v764_v27 = vsel %vm743_vm0, %v728_v19, %v727_v61  ;;  %v771_v48 = vsel %vm743_vm0, %v736_v5, %v735_v12  ;;  %v843_v60 = vpack.c.bf16 %v2895_v35, %v2892_v34  ;;  %v844_v57 = vpack.c.bf16 %v2906_v53, %v2903_v52  ;;  %v3966_v61 = vld [vmem:[#allocation6_spill] sm:$0xff]  ;;  %v3967_v19 = vld [vmem:[#allocation7_spill] sm:$0xff]  ;;  %v3972_v12 = vld [vmem:[#allocation8_spill] sm:$0xff] }
  0x70   : > { %v765_v23 = vsel %vm745_vm1, %v729_v33, %v764_v27  ;;  %v772_v36 = vsel %vm745_vm1, %v737_v51, %v771_v48  ;;  %v742_v4 = vunpack.c.l.b16 %v654_v25  ;;  %v845_v45 = vpack.c.bf16 %v2918_v39, %v2909_v54  ;;  %v3968_v25 = vld [vmem:[#allocation35_spill] sm:$0xff]  ;;  %v3969_v33 = vld [vmem:[#allocation36_spill] sm:$0xff]  ;;  %v3979_v27 = vld [vmem:[#allocation42_spill] sm:$0xff] }
  0x71   : > { %v766_v49 = vsel %vm747_vm2, %v730_v11, %v765_v23  ;;  %v773_v43 = vsel %vm747_vm2, %v738_v14, %v772_v36  ;;  %2502 = vmatprep.mubr.bf16.mxu1 %v843_v60  ;;  %v846_v39 = vpack.c.bf16 %v2924_v6, %v2921_v1  ;;  %v856_v28 = vpack.c.bf16 %v3047_v42, %v3044_v15  ;;  %v3952_v15 = vld [vmem:[#allocation2_spill] sm:$0xff]  ;;  %v3953_v42 = vld [vmem:[#allocation44_spill] sm:$0xff]  ;;  %v3973_v5 = vld [vmem:[#allocation39_spill] sm:$0xff] }
  0x72   : > { %v767_v24 = vsel %vm749_vm3, %v731_v20, %v766_v49  ;;  %v774_v44 = vsel %vm749_vm3, %v739_v41, %v773_v43  ;;  %2503 = vmatmul.mubr.bf16.gmra.mrb[4].mxu1 %v844_v57  ;;  %v847_v32 = vpack.c.bf16 %v2961_v58, %v2958_v63  ;;  %v857_v2 = vpack.c.bf16 %v3053_v22, %v3050_v30  ;;  %v3951_v63 = vld [vmem:[#allocation43_spill] sm:$0xff]  ;;  %v3954_v30 = vld [vmem:[#allocation45_spill] sm:$0xff]  ;;  %v3975_v14 = vld [vmem:[#allocation10_spill] sm:$0xff] }
  0x73   : > { %v768_v40 = vsel %vm751_vm4, %v732_v26, %v767_v24  ;;  %v775_v34 = vsel %vm751_vm4, %v740_v7, %v774_v44  ;;  %2506 = vmatprep.mubr.bf16.mxu1 %v845_v45  ;;  %v858_v38 = vpack.c.bf16 %v3059_v17, %v3056_v16  ;;  %v3950_v31 = vpack.c.bf16 %v2797_v56, %v2794_v55  ;;  %v3956_v55 = vld [vmem:[#allocation27_spill] sm:$0xff]  ;;  %v3957_v56 = vld [vmem:[#allocation28_spill] sm:$0xff]  ;;  %v3958_v17 = vld [vmem:[#allocation29_spill] sm:$0xff] }
  0x74   : > { %v769_v35 = vsel %vm753_vm5, %v733_v59, %v768_v40  ;;  %v776_v52 = vsel %vm753_vm5, %v741_v9, %v775_v34  ;;  %v859_v1 = vpack.c.bf16 %v3079_v10, %v3076_v29  ;;  %v860_v6 = vpack.c.bf16 %v3085_v47, %v3082_v0  ;;  %v3959_v29 = vld [vmem:[#allocation30_spill] sm:$0xff]  ;;  %v3961_v0 = vld [vmem:[#allocation5_spill] sm:$0xff]  ;;  %v3962_v10 = vld [vmem:[#allocation31_spill] sm:$0xff] }
  0x75   : > { %v770_v53 = vsel %vm755_vm6, %v734_v37, %v769_v35  ;;  %v777_v13 = vsel %vm755_vm6, %v742_v4, %v776_v52  ;;  %v861_v58 = vpack.c.bf16 %v3951_v63, %v3088_v50  ;;  %v862_v22 = vpack.c.bf16 %v3954_v30, %v3953_v42  ;;  %v3960_v50 = vld [vmem:[#allocation4_spill] sm:$0xff]  ;;  %v3970_v20 = vld [vmem:[#allocation37_spill] sm:$0xff]  ;;  %v3971_v26 = vld [vmem:[#allocation38_spill] sm:$0xff] }
  0x76   : > { %v779_v54 = vpack.c.b16 %v777_v13, %v770_v53  ;;  %v848_v16 = vpack.c.bf16 %v3957_v56, %v3956_v55  ;;  %v849_v47 = vpack.c.bf16 %v3959_v29, %v3958_v17  ;;  %v850_v18 = vpack.c.bf16 %v3963_v62, %v3962_v10  ;;  %v3974_v37 = vld [vmem:[#allocation40_spill] sm:$0xff]  ;;  %v3976_v41 = vld [vmem:[#allocation9_spill] sm:$0xff]  ;;  %v3981_v36 = vld [vmem:[#allocation11_spill] sm:$0xff] }
  0x77   : > { %v851_v21 = vpack.c.bf16 %v3965_v46, %v3964_v8  ;;  %v852_v11 = vpack.c.bf16 %v3969_v33, %v3968_v25  ;;  %v853_v59 = vpack.c.bf16 %v3971_v26, %v3970_v20  ;;  %v854_v51 = vpack.c.bf16 %v3974_v37, %v3973_v5  ;;  %v3978_v9 = vld [vmem:[#allocation41_spill] sm:$0xff]  ;;  %v3980_v23 = vld [vmem:[#allocation12_spill] sm:$0xff]  ;;  %v3984_v4 = vld [vmem:[#allocation14_spill] sm:$0xff] }
  0x78   : > { %2459 = vmatmul.mubr.bf16.vlgmr.msra.gmra.mrb[0].mxu0 %v779_v54  ;;  %v3977_v7 = vpack.c.bf16 %v3975_v14, %v3976_v41  ;;  %v855_v48 = vpack.c.bf16 %v3979_v27, %v3978_v9  ;;  %v3982_v60 = vpack.c.bf16 %v3980_v23, %v3981_v36  ;;  %v3983_v57 = vld [vmem:[#allocation13_spill] sm:$0xff]  ;;  %v3985_v43 = vld [vmem:[#allocation15_spill] sm:$0xff]  ;;  %v3986_v45 = vld [vmem:[#allocation16_spill] sm:$0xff]  ;;  %v1184_v56 = vlaneseq }
  0x79   : > { %2463 = vmatpush3.bf16.msra.mxu0 %v2656_v3  ;;  %2478 = vmatprep.mubr.bf16.mxu0 %v3950_v31  ;;  %v3955_v3 = vld [vmem:[#allocation3_spill] sm:$0xff]  ;;  %v834_v49 = vpack.c.bf16 %v3984_v4, %v3983_v57  ;;  %v835_v24 = vpack.c.bf16 %v3986_v45, %v3985_v43  ;;  %v3987_v44 = vld [vmem:[#allocation17_spill] sm:$0xff]  ;;  %v3988_v40 = vld [vmem:[#allocation18_spill] sm:$0xff] }
  0x7a   : > { %2464 = vmatprep.subr.bf16.mxu0 %v3952_v15  ;;  %2507 = vmatmul.mubr.bf16.gmra.mrb[8].mxu1 %v846_v39  ;;  %v836_v34 = vpack.c.bf16 %v3988_v40, %v3987_v44  ;;  %v3989_v35 = vld [vmem:[#allocation19_spill] sm:$0xff]  ;;  %v3990_v52 = vld [vmem:[#allocation20_spill] sm:$0xff]  ;;  %v3991_v13 = vld [vmem:[#allocation21_spill] sm:$0xff]  ;;  %v1185_v17 = vshrl.u32 %v1184_v56, 7 }
  0x7b   : > { %2510 = vmatprep.mubr.bf16.mxu1 %v847_v32  ;;  %v837_v53 = vpack.c.bf16 %v3990_v52, %v3989_v35  ;;  %v3992_v54 = vld [vmem:[#allocation22_spill] sm:$0xff]  ;;  %v3993_v32 = vld [vmem:[#allocation23_spill] sm:$0xff]  ;;  %v3994_v31 = vld [vmem:[#allocation24_spill] sm:$0xff] }
  0x7c   : > { %v838_v39 = vpack.c.bf16 %v3992_v54, %v3991_v13  ;;  %v839_v63 = vpack.c.bf16 %v3994_v31, %v3993_v32  ;;  %v3221_v33 = vsub.s32 0, %v1185_v17 }
  0x7d   : > { %2465 = vmatpush3.bf16.msra.mxu0 %v3952_v15  ;;  %v3996_v15 = vld [vmem:[#allocation26_spill] sm:$0xff] }
  0x7e   : > { %2466 = vmatprep.subr.bf16.mxu0 %v3955_v3 }
  0x81   : > { %2467 = vmatpush3.bf16.msra.mxu0 %v3955_v3 }
  0x82   : > { %2468 = vmatprep.subr.bf16.mxu0 %v3960_v50  ;;  %2511 = vmatmul.mubr.bf16.gmra.mrb[12].mxu1 %v848_v16 }
  0x83   : > { %2514 = vmatprep.mubr.bf16.mxu1 %v849_v47 }
  0x85   : > { %2469 = vmatpush3.bf16.msra.mxu0 %v3960_v50 }
  0x86   : > { %2470 = vmatprep.subr.bf16.mxu0 %v3961_v0 }
  0x89   : > { %2471 = vmatpush3.bf16.msra.mxu0 %v3961_v0 }
  0x8a   : > { %2472 = vmatprep.subr.bf16.mxu0 %v3966_v61  ;;  %2515 = vmatmul.mubr.bf16.gmra.mrb[16].mxu1 %v850_v18 }
  0x8b   : > { %2518 = vmatprep.mubr.bf16.mxu1 %v851_v21 }
  0x8d   : > { %2473 = vmatpush3.bf16.msra.mxu0 %v3966_v61 }
  0x8e   : > { %2474 = vmatprep.subr.bf16.mxu0 %v3967_v19 }
  0x91   : > { %2475 = vmatpush3.bf16.msra.mxu0 %v3967_v19 }
  0x92   : > { %2476 = vmatprep.subr.bf16.mxu0 %v3972_v12  ;;  %2519 = vmatmul.mubr.bf16.gmra.mrb[20].mxu1 %v852_v11 }
  0x93   : > { %2522 = vmatprep.mubr.bf16.mxu1 %v853_v59 }
  0x95   : > { %2477 = vmatpush3.bf16.msra.mxu0 %v3972_v12 }
  0x98   : > { %2479 = vmatmul.mubr.bf16.vlgmr.msra.gmra.mrb[4].mxu0 %v3977_v7 }
  0x99   : > { %2482 = vmatprep.mubr.bf16.mxu0 %v3982_v60 }
  0x9a   : > { %2523 = vmatmul.mubr.bf16.gmra.mrb[24].mxu1 %v854_v51 }
  0x9b   : > { %2526 = vmatprep.mubr.bf16.mxu1 %v855_v48 }
  0xa0   : > { %2483 = vmatmul.mubr.bf16.gmra.mrb[8].mxu0 %v834_v49 }
  0xa1   : > { %2486 = vmatprep.mubr.bf16.mxu0 %v835_v24 }
  0xa2   : > { %2527 = vmatmul.mubr.bf16.gmra.mrb[28].mxu1 %v856_v28  ;;  %v3995_v28 = vld [vmem:[#allocation25_spill] sm:$0xff] }
  0xa3   : > { %2530 = vmatprep.mubr.bf16.mxu1 %v857_v2  ;;  %v840_v42 = vpack.c.bf16 %v3996_v15, %v3995_v28 }
  0xa8   : > { %2487 = vmatmul.mubr.bf16.gmra.mrb[12].mxu0 %v836_v34 }
  0xa9   : > { %2490 = vmatprep.mubr.bf16.mxu0 %v837_v53 }
  0xaa   : > { %2531 = vmatmul.mubr.bf16.gmra.mrb[32].mxu1 %v858_v38 }
  0xab   : > { %2534 = vmatprep.mubr.bf16.mxu1 %v859_v1  ;;  %v2596_v1 = vmov 1966171168  }
  0xac   : > { %v1182_v55 = vunpack.c.l.s4 %v2596_v1 }
  0xae   : > { %v1183_v16 = vunpack.c.0.s8 %v1182_v55 }
  0xb0   : > { %2491 = vmatmul.mubr.bf16.gmra.mrb[16].mxu0 %v838_v39 }
  0xb1   : > { %2494 = vmatprep.mubr.bf16.mxu0 %v839_v63 }
  0xb2   : > { %2535 = vmatmul.mubr.bf16.gmra.mrb[36].mxu1 %v860_v6 }
  0xb3   : > { %2538 = vmatprep.mubr.bf16.mxu1 %v861_v58 }
  0xb8   : > { %2495 = vmatmul.mubr.bf16.gmra.mrb[20].mxu0 %v840_v42  ;;  %v3290_v42 = vld [vmem:[%s3845_s3] ss:$0 sm:$0xff] }
  0xba   : > { %2539 = vmatmul.mubr.bf16.gmra.mrb[40].mxu1 %v862_v22  ;;  %v3214_v22 = vsub.s32 %v1183_v16, %v1185_v17 }
 0x105   : > { %v3202_v2 = vpop.f32.mrb[0].mxu1 }
 0x106   : > { %v3204_v30 = vpop.f32.mrb[1].mxu1 }
 0x107   : > { %v3206_v38 = vpop.f32.mrb[2].mxu1 }
 0x108   : > { %v3208_v3 = vpop.f32.mrb[3].mxu1 }
 0x145   : > { %v3210_v6 = vpop.f32.mrb[4].mxu1 }
 0x146   : > { %v1017_v29 = vpop.f32.mrb[5].mxu1 }
 0x147   : > { %v3212_v47 = vpop.f32.mrb[6].mxu1 }
 0x148   : > { %v1020_v58 = vpop.f32.mrb[7].mxu1 }
 0x14b   : > { %v2460_v50 = vpop.f32.mrb[0].mxu0 }
 0x14c   : > { %v1278_v0 = vcombine.high %v2460_v50, %v2460_v50  ;;  %v1285_v10 = vrot.slane %v2460_v50, %v3214_v22  ;;  %v816_v62 = vpop.f32.mrb[1].mxu0 }
 0x14d   : > { %v1180_v18 = vcombine.high %v816_v62, %v816_v62  ;;  %v1187_v8 = vrot.slane %v816_v62, %v3214_v22  ;;  %v2461_v46 = vpop.f32.mrb[2].mxu0  ;;  %v3223_v11 = vpop.f32.mrb[8].mxu1 }
 0x14e   : > { %v3219_v21 = vrot.slane %v1278_v0, %v3214_v22  ;;  %v1293_v61 = vcombine.high %v1285_v10, %v1285_v10  ;;  %v1327_v19 = vcombine.high %v2461_v46, %v2461_v46  ;;  %v819_v25 = vpop.f32.mrb[3].mxu0  ;;  %v1301_v20 = vrot.slane %v1285_v10, %v3214_v22  ;;  %v1033_v5 = vpop.f32.mrb[9].mxu1 }
 0x14f   : > { %v3227_v26 = vrot.slane %v1180_v18, %v3214_v22  ;;  %v1195_v59 = vcombine.high %v1187_v8, %v1187_v8  ;;  %v3230_v12 = vrot.slane %v2461_v46, %v3214_v22  ;;  %v3233_v37 = vrot.slane %v1187_v8, %v3214_v22  ;;  %v3241_v7 = vpop.f32.mrb[10].mxu1 }
 0x150   : > { %v3236_v51 = vrot.slane %v1327_v19, %v3214_v22  ;;  %v1229_v14 = vcombine.high %v819_v25, %v819_v25  ;;  %v3239_v41 = vrot.slane %v819_v25, %v3214_v22  ;;  %v1294_v9 = vcombine.high %v3219_v21, %v3219_v21  ;;  %v1036_v23 = vpop.f32.mrb[11].mxu1 }
 0x151   : > { %v1315_v36 = vrot.slane %v1293_v61, %v3214_v22  ;;  %v3254_v57 = vrot.slane %v3230_v12, %v3214_v22  ;;  %v1323_v44 = vcombine.high %v1301_v20, %v1301_v20  ;;  %v3270_v52 = vrot.slane %v1195_v59, %v3214_v22 }
 0x152   : > { %v1243_v4 = vrot.slane %v1229_v14, %v3214_v22  ;;  %v3259_v49 = vrot.slane %v3239_v41, %v3214_v22  ;;  %v3273_v53 = vrot.slane %v1301_v20, %v3221_v33  ;;  %v3282_v39 = vrot.slane %v1294_v9, %v3214_v22 }
 0x153   : > { %v3264_v45 = vrot.slane %v1315_v36, %v3221_v33  ;;  %v1325_v24 = vcombine.high %v1315_v36, %v1315_v36  ;;  %v3279_v54 = vrot.slane %v1323_v44, %v3221_v33  ;;  %v3295_v56 = vrot.slane %v3270_v52, %v3221_v33 }
 0x154   : > { %v1245_v40 = vcombine.high %v1243_v4, %v1243_v4  ;;  %v1274_v34 = vcombine.high %v3259_v49, %v3259_v49  ;;  %v1259_v35 = vrot.slane %v1243_v4, %v3214_v22  ;;  %v3299_v16 = vrot.slane %v3233_v37, %v3221_v33 }
 0x155   : > { %v3276_v13 = vrot.slane %v1325_v24, %v3221_v33  ;;  %v2512_v15 = vpop.f32.mrb[12].mxu1  ;;  %v3303_v17 = vrot.slane %v3282_v39, %v3221_v33 }
 0x156   : > { %v1419_v32 = vrot.slane %v1274_v34, %v3221_v33  ;;  %v1273_v31 = vrot.slane %v1245_v40, %v3214_v22  ;;  %v1427_v63 = vrot.slane %v1259_v35, %v3221_v33  ;;  %v1275_v28 = vcombine.high %v1259_v35, %v1259_v35  ;;  %v1049_v55 = vpop.f32.mrb[13].mxu1 }
 0x157   : > { %v1570_v1 = vadd.f32 %v2512_v15, %v3264_v45  ;;  %v2513_v18 = vpop.f32.mrb[14].mxu1 }
 0x158   : > { %v1556_v50 = vadd.f32 %v1419_v32, %v3204_v30  ;;  %v1557_v0 = vadd.f32 %v1419_v32, %v3208_v3  ;;  %v1431_v10 = vrot.slane %v1273_v31, %v3221_v33  ;;  %v1560_v62 = vadd.f32 %v1427_v63, %v1017_v29  ;;  %v1052_v25 = vpop.f32.mrb[15].mxu1 }
 0x159   : > { %v1561_v8 = vadd.f32 %v1427_v63, %v1020_v58  ;;  %v1277_v46 = vcombine.high %v1273_v31, %v1273_v31  ;;  %v1435_v61 = vrot.slane %v1275_v28, %v3221_v33  ;;  %v3310_v19 = vadd.f32 %v3290_v42, %v1570_v1 }
 0x15a   : > { %v1627_v20 = vadd.f32 %v3290_v42, %v1556_v50  ;;  %v1628_v59 = vadd.f32 %v3290_v42, %v1557_v0  ;;  %v1562_v30 = vadd.f32 %v3210_v6, %v1431_v10  ;;  %v1631_v3 = vadd.f32 %v3290_v42, %v1560_v62 }
 0x15b   : > { %v1563_v29 = vadd.f32 %v3212_v47, %v1431_v10  ;;  %v1632_v58 = vadd.f32 %v3290_v42, %v1561_v8  ;;  %v1439_v14 = vrot.slane %v1277_v46, %v3221_v33  ;;  %v1564_v9 = vadd.f32 %v1435_v61, %v1033_v5 }
 0x15c   : > { %v1691_v36 = vmax.f32 %v1627_v20, 0.0  ;;  %v1692_v6 = vmax.f32 %v1628_v59, 0.0  ;;  %v1633_v4 = vadd.f32 %v3290_v42, %v1562_v30  ;;  %v1695_v24 = vmax.f32 %v1631_v3, 0.0 }
 0x15d   : > { %v1634_v44 = vadd.f32 %v3290_v42, %v1563_v29  ;;  %v1696_v40 = vmax.f32 %v1632_v58, 0.0  ;;  %v1566_v34 = vadd.f32 %v3223_v11, %v1439_v14  ;;  %v1635_v35 = vadd.f32 %v3290_v42, %v1564_v9  ;;  %v2516_v63 = vpop.f32.mrb[16].mxu1 }
 0x15e   : > { %1755 = vst [vmem:[%s3321_s17 + $0xa0] sm:$0xff] %v1691_v36  ;;  %1756 = vst [vmem:[%s3321_s17 + $0xa8] sm:$0xff] %v1692_v6  ;;  %v1869_v47 = vadd.f32 %v1692_v6, %v1691_v36  ;;  %v1697_v32 = vmax.f32 %v1633_v4, 0.0  ;;  %v1567_v5 = vadd.f32 %v3241_v7, %v1439_v14  ;;  %v1565_v31 = vadd.f32 %v1435_v61, %v1036_v23  ;;  %v3336_v50 = vpop.f32.mrb[17].mxu1 }
 0x15f   : > { %1759 = vst [vmem:[%s3321_s17 + $0xc0] sm:$0xff] %v1695_v24  ;;  %v1698_v28 = vmax.f32 %v1634_v44, 0.0  ;;  %1760 = vst [vmem:[%s3321_s17 + $0xc8] sm:$0xff] %v1696_v40  ;;  %v1883_v15 = vadd.f32 %v1696_v40, %v1695_v24  ;;  %v1637_v1 = vadd.f32 %v3290_v42, %v1566_v34  ;;  %v1699_v11 = vmax.f32 %v1635_v35, 0.0  ;;  %v3342_v23 = vpop.f32.mrb[18].mxu1 }
 0x160   : > { %v1870_v0 = vrot.slane %v1869_v47, 4  ;;  %1761 = vst [vmem:[%s3321_s17 + $0xd0] sm:$0xff] %v1697_v32  ;;  %v1638_v10 = vadd.f32 %v3290_v42, %v1567_v5  ;;  %v1636_v62 = vadd.f32 %v3290_v42, %v1565_v31  ;;  %v1705_v7 = vmax.f32 %v3310_v19, 0.0  ;;  %v3347_v59 = vpop.f32.mrb[19].mxu1 }
 0x161   : > { %1762 = vst [vmem:[%s3321_s17 + $0xd8] sm:$0xff] %v1698_v28  ;;  %v1890_v8 = vadd.f32 %v1698_v28, %v1697_v32  ;;  %v1884_v46 = vrot.slane %v1883_v15, 4  ;;  %v1701_v61 = vmax.f32 %v1637_v1, 0.0  ;;  %1763 = vst [vmem:[%s3321_s17 + $0xe0] sm:$0xff] %v1699_v11  ;;  %v1568_v20 = vadd.f32 %v3273_v53, %v1049_v55 }
 0x162   : > { %v1871_v30 = vadd.f32 %v1870_v0, %v1869_v47  ;;  %v1702_v3 = vmax.f32 %v1638_v10, 0.0  ;;  %v1700_v29 = vmax.f32 %v1636_v62, 0.0  ;;  %1769 = vst [vmem:[%s3321_s17 + $0x110] sm:$0xff] %v1705_v7  ;;  %v1571_v19 = vadd.f32 %v2513_v18, %v3264_v45 }
 0x163   : > { %v1891_v58 = vrot.slane %v1890_v8, 4  ;;  %v1885_v14 = vadd.f32 %v1884_v46, %v1883_v15  ;;  %1765 = vst [vmem:[%s3321_s17 + $0xf0] sm:$0xff] %v1701_v61  ;;  %v1639_v9 = vadd.f32 %v3290_v42, %v1568_v20  ;;  %v1569_v36 = vadd.f32 %v3273_v53, %v1052_v25 }
 0x164   : > { %v1872_v6 = vrot.slane %v1871_v30, 2  ;;  %1766 = vst [vmem:[%s3321_s17 + $0xf8] sm:$0xff] %v1702_v3  ;;  %v1904_v4 = vadd.f32 %v1702_v3, %v1701_v61  ;;  %1764 = vst [vmem:[%s3321_s17 + $0xe8] sm:$0xff] %v1700_v29  ;;  %v1897_v55 = vadd.f32 %v1700_v29, %v1699_v11  ;;  %v1642_v24 = vadd.f32 %v3290_v42, %v1571_v19 }
 0x165   : > { %v1892_v44 = vadd.f32 %v1891_v58, %v1890_v8  ;;  %v1886_v40 = vrot.slane %v1885_v14, 2  ;;  %v1703_v34 = vmax.f32 %v1639_v9, 0.0  ;;  %v1640_v45 = vadd.f32 %v3290_v42, %v1569_v36  ;;  %v3358_v53 = vpop.f32.mrb[20].mxu1 }
 0x166   : > { %v1873_v18 = vadd.f32 %v1872_v6, %v1871_v30  ;;  %v1905_v35 = vrot.slane %v1904_v4, 4  ;;  %v1898_v47 = vrot.slane %v1897_v55, 4  ;;  %v1706_v32 = vmax.f32 %v1642_v24, 0.0  ;;  %v3362_v15 = vpop.f32.mrb[21].mxu1 }
 0x167   : > { %v1893_v25 = vrot.slane %v1892_v44, 2  ;;  %v1887_v5 = vadd.f32 %v1886_v40, %v1885_v14  ;;  %1767 = vst [vmem:[%s3321_s17 + $0x100] sm:$0xff] %v1703_v34  ;;  %v1704_v31 = vmax.f32 %v1640_v45, 0.0  ;;  %v1574_v28 = vadd.f32 %v2516_v63, %v3276_v13  ;;  %v3365_v62 = vpop.f32.mrb[22].mxu1 }
 0x168   : > { %v1874_v1 = vrot.slane %v1873_v18, 1  ;;  %v1906_v11 = vadd.f32 %v1905_v35, %v1904_v4  ;;  %v1899_v0 = vadd.f32 %v1898_v47, %v1897_v55  ;;  %1770 = vst [vmem:[%s3321_s17 + $0x118] sm:$0xff] %v1706_v32  ;;  %v1918_v10 = vadd.f32 %v1706_v32, %v1705_v7  ;;  %v3371_v30 = vpop.f32.mrb[23].mxu1 }
 0x169   : > { %v1894_v8 = vadd.f32 %v1893_v25, %v1892_v44  ;;  %v1888_v46 = vrot.slane %v1887_v5, 1  ;;  %1768 = vst [vmem:[%s3321_s17 + $0x108] sm:$0xff] %v1704_v31  ;;  %v1911_v61 = vadd.f32 %v1704_v31, %v1703_v34  ;;  %v3369_v20 = vadd.f32 %v3290_v42, %v1574_v28 }
 0x16a   : > { %v1875_v3 = vadd.f32 %v1874_v1, %v1873_v18  ;;  %v1907_v63 = vrot.slane %v1906_v11, 2  ;;  %v1900_v29 = vrot.slane %v1899_v0, 2  ;;  %v1919_v19 = vrot.slane %v1918_v10, 4 }
 0x16b   : > { %v1895_v58 = vrot.slane %v1894_v8, 1  ;;  %v1889_v14 = vadd.f32 %v1888_v46, %v1887_v5  ;;  %v1912_v9 = vrot.slane %v1911_v61, 4  ;;  %v1709_v7 = vmax.f32 %v3369_v20, 0.0  ;;  %v2480_v36 = vpop.f32.mrb[4].mxu0 }
 0x16c   : > { %v3374_v6 = vadd.f32 %v1907_v63, %v1906_v11  ;;  %v1901_v4 = vadd.f32 %v1900_v29, %v1899_v0  ;;  %v1920_v55 = vadd.f32 %v1919_v19, %v1918_v10  ;;  %v921_v24 = vpop.f32.mrb[5].mxu0  ;;  %v3378_v44 = vrot.slane %v3219_v21, %v3214_v22 }
 0x16d   : > { %v1896_v40 = vadd.f32 %v1895_v58, %v1894_v8  ;;  %v2035_v34 = vmul.f32 0.0625, %v1889_v14  ;;  %v1913_v45 = vadd.f32 %v1912_v9, %v1911_v61  ;;  %1773 = vst [vmem:[%s3321_s17 + $0x130] sm:$0xff] %v1709_v7  ;;  %v1572_v18 = vadd.f32 %v3279_v54, %v3336_v50  ;;  %v2481_v35 = vpop.f32.mrb[6].mxu0  ;;  %v3386_v28 = vpop.f32.mrb[24].mxu1 }
 0x16e   : > { %3997 = vst [vmem:[#allocation43_spill] sm:$0xff] %v3374_v6  ;;  %v3383_v47 = vmul.f32 0.0625, %v1875_v3  ;;  %v1902_v32 = vrot.slane %v1901_v4, 1  ;;  %v1921_v25 = vrot.slane %v1920_v55, 2  ;;  %v1538_v5 = vadd.f32 %v2480_v36, %v3295_v56  ;;  %v924_v31 = vpop.f32.mrb[7].mxu0  ;;  %v3389_v10 = vpop.f32.mrb[25].mxu1 }
 0x16f   : > { %v2036_v1 = vmul.f32 0.0625, %v1896_v40  ;;  %v2067_v21 = vpack.c.bf16 %v2035_v34, %v2035_v34  ;;  %v1914_v11 = vrot.slane %v1913_v45, 2  ;;  %v1643_v0 = vadd.f32 %v3290_v42, %v1572_v18  ;;  %v3394_v20 = vpop.f32.mrb[26].mxu1 }
 0x170   : > { %3998 = vst [vmem:[#allocation2_spill] sm:$0xff] %v3383_v47  ;;  %v1903_v8 = vadd.f32 %v1902_v32, %v1901_v4  ;;  %v1922_v50 = vadd.f32 %v1921_v25, %v1920_v55  ;;  %v1609_v46 = vadd.f32 %v3290_v42, %v1538_v5  ;;  %v1575_v61 = vadd.f32 %v3342_v23, %v3276_v13  ;;  %v3397_v58 = vpop.f32.mrb[27].mxu1 }
 0x171   : > { %v2068_v3 = vpack.c.bf16 %v2036_v1, %v2036_v1  ;;  %v1915_v29 = vadd.f32 %v1914_v11, %v1913_v45  ;;  %v1707_v19 = vmax.f32 %v1643_v0, 0.0  ;;  %v3399_v14 = vunpack.c.l.b16 %v2067_v21 }
 0x172   : > { %v1923_v9 = vrot.slane %v1922_v50, 1  ;;  %v1673_v36 = vmax.f32 %v1609_v46, 0.0  ;;  %v1646_v4 = vadd.f32 %v3290_v42, %v1575_v61  ;;  %v3402_v55 = vmul.f32 0.0625, %v1903_v8 }
 0x173   : > { %3999 = vst [vmem:[#allocation44_spill] sm:$0xff] %v3399_v14  ;;  %v1916_v40 = vrot.slane %v1915_v29, 1  ;;  %1771 = vst [vmem:[%s3321_s17 + $0x120] sm:$0xff] %v1707_v19  ;;  %v1536_v13 = vadd.f32 %v3299_v16, %v921_v24  ;;  %v1573_v23 = vadd.f32 %v3279_v54, %v3347_v59  ;;  %v3408_v34 = vpop.f32.mrb[8].mxu0  ;;  %v3410_v45 = vunpack.c.l.b16 %v2068_v3 }
 0x174   : > { %4000 = vst [vmem:[#allocation45_spill] sm:$0xff] %v3402_v55  ;;  %v1924_v18 = vadd.f32 %v1923_v9, %v1922_v50  ;;  %1737 = vst [vmem:[%s3321_s17 + $0x10] sm:$0xff] %v1673_v36  ;;  %v1710_v32 = vmax.f32 %v1646_v4, 0.0  ;;  %v1539_v25 = vadd.f32 %v2481_v35, %v3295_v56  ;;  %v3414_v5 = vpop.f32.mrb[9].mxu0  ;;  %v1537_v24 = vadd.f32 %v3299_v16, %v924_v31 }
 0x175   : > { %4001 = vst [vmem:[#allocation3_spill] sm:$0xff] %v3410_v45  ;;  %v1917_v1 = vadd.f32 %v1916_v40, %v1915_v29  ;;  %v1607_v21 = vadd.f32 %v3290_v42, %v1536_v13  ;;  %v1644_v11 = vadd.f32 %v3290_v42, %v1573_v23  ;;  %v3419_v0 = vpop.f32.mrb[10].mxu0  ;;  %v1578_v56 = vadd.f32 %v3358_v53, %v3303_v17  ;;  %v3427_v50 = vpop.f32.mrb[28].mxu1 }
 0x176   : > { %v2040_v54 = vmul.f32 0.0625, %v1924_v18  ;;  %1774 = vst [vmem:[%s3321_s17 + $0x138] sm:$0xff] %v1710_v32  ;;  %v1932_v59 = vadd.f32 %v1710_v32, %v1709_v7  ;;  %v1610_v8 = vadd.f32 %v3290_v42, %v1539_v25  ;;  %v3425_v35 = vpop.f32.mrb[11].mxu0  ;;  %v1608_v16 = vadd.f32 %v3290_v42, %v1537_v24  ;;  %v3430_v31 = vpop.f32.mrb[29].mxu1 }
 0x177   : > { %v2039_v46 = vmul.f32 0.0625, %v1917_v1  ;;  %v1671_v61 = vmax.f32 %v1607_v21, 0.0  ;;  %v1708_v3 = vmax.f32 %v1644_v11, 0.0  ;;  %v1649_v4 = vadd.f32 %v3290_v42, %v1578_v56  ;;  %v3433_v40 = vpop.f32.mrb[30].mxu1 }
 0x178   : > { %v2072_v7 = vpack.c.bf16 %v2040_v54, %v2040_v54  ;;  %v1933_v29 = vrot.slane %v1932_v59, 4  ;;  %v1674_v9 = vmax.f32 %v1610_v8, 0.0  ;;  %v1672_v23 = vmax.f32 %v1608_v16, 0.0  ;;  %v3439_v32 = vpop.f32.mrb[31].mxu1 }
 0x179   : > { %v2071_v53 = vpack.c.bf16 %v2039_v46, %v2039_v46  ;;  %1735 = vst [vmem:[%s3321_s17] sm:$0xff] %v1671_v61  ;;  %1772 = vst [vmem:[%s3321_s17 + $0x128] sm:$0xff] %v1708_v3  ;;  %v1925_v13 = vadd.f32 %v1708_v3, %v1707_v19  ;;  %v1459_v18 = vrot.slane %v3378_v44, %v3221_v33  ;;  %v1713_v11 = vmax.f32 %v1649_v4, 0.0 }
 0x17a   : > { %v2167_v25 = vunpack.c.l.b16 %v2072_v7  ;;  %v1934_v1 = vadd.f32 %v1933_v29, %v1932_v59  ;;  %1738 = vst [vmem:[%s3321_s17 + $0x18] sm:$0xff] %v1674_v9  ;;  %v1806_v21 = vadd.f32 %v1674_v9, %v1673_v36  ;;  %1736 = vst [vmem:[%s3321_s17 + $0x8] sm:$0xff] %v1672_v23  ;;  %v1799_v8 = vadd.f32 %v1672_v23, %v1671_v61 }
 0x17b   : > { %v2166_v24 = vunpack.c.l.b16 %v2071_v53  ;;  %v1926_v54 = vrot.slane %v1925_v13, 4  ;;  %v1576_v56 = vadd.f32 %v1459_v18, %v3362_v15  ;;  %v3444_v46 = vpop.f32.mrb[12].mxu0  ;;  %1777 = vst [vmem:[%s3321_s17 + $0x150] sm:$0xff] %v1713_v11  ;;  %v1227_v16 = vcombine.high %v3270_v52, %v3270_v52 }
 0x17c   : > { %v1935_v19 = vrot.slane %v1934_v1, 2  ;;  %v1807_v3 = vrot.slane %v1806_v21, 4  ;;  %v1579_v59 = vadd.f32 %v3365_v62, %v3303_v17  ;;  %v3451_v7 = vpop.f32.mrb[13].mxu0  ;;  %v1800_v61 = vrot.slane %v1799_v8, 4 }
 0x17d   : > { %v3454_v36 = vsel %vm743_vm0, %v2167_v25, %v2166_v24  ;;  %v1927_v29 = vadd.f32 %v1926_v54, %v1925_v13  ;;  %v1647_v15 = vadd.f32 %v3290_v42, %v1576_v56  ;;  %v3457_v9 = vpop.f32.mrb[14].mxu0  ;;  %v1391_v23 = vrot.slane %v1227_v16, %v3221_v33  ;;  %v3463_v17 = vpop.f32.mrb[32].mxu1 }
 0x17e   : > { %v1936_v4 = vadd.f32 %v1935_v19, %v1934_v1  ;;  %v1808_v53 = vadd.f32 %v1807_v3, %v1806_v21  ;;  %v1650_v52 = vadd.f32 %v3290_v42, %v1579_v59  ;;  %v3461_v63 = vpop.f32.mrb[15].mxu0  ;;  %v1801_v25 = vadd.f32 %v1800_v61, %v1799_v8  ;;  %v3467_v54 = vpop.f32.mrb[33].mxu1 }
 0x17f   : > { %v1928_v62 = vrot.slane %v1927_v29, 2  ;;  %v1711_v24 = vmax.f32 %v1647_v15, 0.0  ;;  %v1225_v13 = vcombine.high %v3233_v37, %v3233_v37  ;;  %v1542_v56 = vadd.f32 %v3408_v34, %v1391_v23  ;;  %v3470_v3 = vpop.f32.mrb[34].mxu1 }
 0x180   : > { %v1937_v1 = vrot.slane %v1936_v4, 1  ;;  %v1809_v21 = vrot.slane %v1808_v53, 2  ;;  %v1714_v19 = vmax.f32 %v1650_v52, 0.0  ;;  %v1802_v59 = vrot.slane %v1801_v25, 2  ;;  %v3475_v61 = vpop.f32.mrb[35].mxu1 }
 0x181   : > { %v1929_v16 = vadd.f32 %v1928_v62, %v1927_v29  ;;  %1775 = vst [vmem:[%s3321_s17 + $0x140] sm:$0xff] %v1711_v24  ;;  %v1387_v60 = vrot.slane %v1225_v13, %v3221_v33  ;;  %v1577_v8 = vadd.f32 %v1459_v18, %v3371_v30  ;;  %v1613_v43 = vadd.f32 %v3290_v42, %v1542_v56 }
 0x182   : > { %v1938_v37 = vadd.f32 %v1937_v1, %v1936_v4  ;;  %v1810_v15 = vadd.f32 %v1809_v21, %v1808_v53  ;;  %1778 = vst [vmem:[%s3321_s17 + $0x158] sm:$0xff] %v1714_v19  ;;  %v1946_v48 = vadd.f32 %v1714_v19, %v1713_v11  ;;  %v1803_v34 = vadd.f32 %v1802_v59, %v1801_v25 }
 0x183   : > { %v1930_v27 = vrot.slane %v1929_v16, 1  ;;  %v1540_v52 = vadd.f32 %v1387_v60, %v3414_v5  ;;  %v1648_v29 = vadd.f32 %v3290_v42, %v1577_v8  ;;  %v3481_v62 = vpop.f32.mrb[16].mxu0  ;;  %v1677_v30 = vmax.f32 %v1613_v43, 0.0 }
 0x184   : > { %v2042_v13 = vmul.f32 0.0625, %v1938_v37  ;;  %v1811_v45 = vrot.slane %v1810_v15, 1  ;;  %v1947_v18 = vrot.slane %v1946_v48, 4  ;;  %v3483_v14 = vpop.f32.mrb[17].mxu0  ;;  %v1804_v53 = vrot.slane %v1803_v34, 1 }
 0x185   : > { %v1931_v4 = vadd.f32 %v1930_v27, %v1929_v16  ;;  %v1611_v11 = vadd.f32 %v3290_v42, %v1540_v52  ;;  %v1712_v1 = vmax.f32 %v1648_v29, 0.0  ;;  %v3486_v25 = vpop.f32.mrb[18].mxu0  ;;  %1741 = vst [vmem:[%s3321_s17 + $0x30] sm:$0xff] %v1677_v30  ;;  %v1543_v19 = vadd.f32 %v3419_v0, %v1391_v23  ;;  %v3492_v43 = vpop.f32.mrb[36].mxu1 }
 0x186   : > { %v2074_v21 = vpack.c.bf16 %v2042_v13, %v2042_v13  ;;  %v1812_v5 = vadd.f32 %v1811_v45, %v1810_v15  ;;  %v1948_v56 = vadd.f32 %v1947_v18, %v1946_v48  ;;  %v3490_v59 = vpop.f32.mrb[19].mxu0  ;;  %v1805_v37 = vadd.f32 %v1804_v53, %v1803_v34  ;;  %v3495_v52 = vpop.f32.mrb[37].mxu1 }
 0x187   : > { %v2041_v8 = vmul.f32 0.0625, %v1931_v4  ;;  %v1675_v27 = vmax.f32 %v1611_v11, 0.0  ;;  %1776 = vst [vmem:[%s3321_s17 + $0x148] sm:$0xff] %v1712_v1  ;;  %v1939_v16 = vadd.f32 %v1712_v1, %v1711_v24  ;;  %v1614_v45 = vadd.f32 %v3290_v42, %v1543_v19  ;;  %v3498_v48 = vpop.f32.mrb[38].mxu1 }
 0x188   : > { %v2169_v29 = vunpack.c.l.b16 %v2074_v21  ;;  %v2024_v47 = vmul.f32 0.0625, %v1812_v5  ;;  %v1949_v13 = vrot.slane %v1948_v56, 2  ;;  %4002 = vst [vmem:[#allocation27_spill] sm:$0xff] %v3498_v48  ;;  %v2023_v23 = vmul.f32 0.0625, %v1805_v37  ;;  %v3502_v34 = vpop.f32.mrb[39].mxu1 }
 0x189   : > { %v2073_v0 = vpack.c.bf16 %v2041_v8, %v2041_v8  ;;  %1739 = vst [vmem:[%s3321_s17 + $0x20] sm:$0xff] %v1675_v27  ;;  %v1940_v15 = vrot.slane %v1939_v16, 4  ;;  %v1541_v18 = vadd.f32 %v1387_v60, %v3425_v35  ;;  %v1678_v53 = vmax.f32 %v1614_v45, 0.0 }
 0x18a   : > { %v2056_v4 = vpack.c.bf16 %v2024_v47, %v2024_v47  ;;  %v1950_v24 = vadd.f32 %v1949_v13, %v1948_v56  ;;  %v1326_v11 = vcombine.high %v3282_v39, %v3282_v39  ;;  %v2055_v21 = vpack.c.bf16 %v2023_v23, %v2023_v23 }
 0x18b   : > { %v2168_v1 = vunpack.c.l.b16 %v2073_v0  ;;  %v1941_v5 = vadd.f32 %v1940_v15, %v1939_v16  ;;  %v1612_v19 = vadd.f32 %v3290_v42, %v1541_v18  ;;  %v3507_v8 = vpop.f32.mrb[20].mxu0  ;;  %1742 = vst [vmem:[%s3321_s17 + $0x38] sm:$0xff] %v1678_v53  ;;  %v1820_v48 = vadd.f32 %v1678_v53, %v1677_v30 }
 0x18c   : > { %v2151_v37 = vunpack.c.l.b16 %v2056_v4  ;;  %v1951_v6 = vrot.slane %v1950_v24, 1  ;;  %v1471_v60 = vrot.slane %v1326_v11, %v3221_v33  ;;  %v3511_v47 = vpop.f32.mrb[21].mxu0  ;;  %v2150_v39 = vunpack.c.l.b16 %v2055_v21 }
 0x18d   : > { %v2197_v35 = vsel %vm745_vm1, %v2168_v1, %v3454_v36  ;;  %v1942_v56 = vrot.slane %v1941_v5, 2  ;;  %v1676_v13 = vmax.f32 %v1612_v19, 0.0  ;;  %v3515_v16 = vpop.f32.mrb[22].mxu0  ;;  %v1821_v23 = vrot.slane %v1820_v48, 4  ;;  %v3521_v18 = vpop.f32.mrb[40].mxu1 }
 0x18e   : > { %v1952_v45 = vadd.f32 %v1951_v6, %v1950_v24  ;;  %v2198_v0 = vsel %vm747_vm2, %v2169_v29, %v2197_v35  ;;  %v1582_v15 = vadd.f32 %v3386_v28, %v1471_v60  ;;  %v3519_v30 = vpop.f32.mrb[23].mxu0  ;;  %v3524_v4 = vsel %vm743_vm0, %v2151_v37, %v2150_v39  ;;  %v3529_v1 = vpop.f32.mrb[41].mxu1 }
 0x18f   : > { %4003 = vst [vmem:[#allocation28_spill] sm:$0xff] %v3524_v4  ;;  %v1943_v53 = vadd.f32 %v1942_v56, %v1941_v5  ;;  %1740 = vst [vmem:[%s3321_s17 + $0x28] sm:$0xff] %v1676_v13  ;;  %v1813_v36 = vadd.f32 %v1676_v13, %v1675_v27  ;;  %v1324_v11 = vcombine.high %v3378_v44, %v3378_v44  ;;  %v3540_v19 = vpop.f32.mrb[42].mxu1 }
 0x190   : > { %v3531_v6 = vmul.f32 0.0625, %v1952_v45  ;;  %v1822_v29 = vadd.f32 %v1821_v23, %v1820_v48  ;;  %v1653_v28 = vadd.f32 %v3290_v42, %v1582_v15  ;;  %v4004_v24 = vcombine.high %v3227_v26, %v3227_v26  ;;  %4005 = vst [vmem:[#allocation29_spill] sm:$0xff] %v3540_v19  ;;  %v3544_v35 = vpop.f32.mrb[43].mxu1 }
 0x191   : > { %v1944_v27 = vrot.slane %v1943_v53, 1  ;;  %v1814_v5 = vrot.slane %v1813_v36, 4  ;;  %v1467_v44 = vrot.slane %v1324_v11, %v3221_v33  ;;  %v1583_v37 = vadd.f32 %v3394_v20, %v1471_v60  ;;  %4006 = vst [vmem:[#allocation30_spill] sm:$0xff] %v3544_v35 }
 0x192   : > { %v3538_v21 = vrot.slane %v4004_v24, %v3214_v22  ;;  %v1823_v39 = vrot.slane %v1822_v29, 2  ;;  %v1717_v56 = vmax.f32 %v1653_v28, 0.0  ;;  %v2076_v11 = vpack.c.bf16 %v3531_v6, %v3531_v6 }
 0x193   : > { %v1945_v45 = vadd.f32 %v1944_v27, %v1943_v53  ;;  %v1815_v23 = vadd.f32 %v1814_v5, %v1813_v36  ;;  %v1580_v15 = vadd.f32 %v1467_v44, %v3389_v10  ;;  %v1654_v24 = vadd.f32 %v3290_v42, %v1583_v37 }
 0x194   : > { %v1399_v13 = vrot.slane %v3538_v21, %v3221_v33  ;;  %v1824_v20 = vadd.f32 %v1823_v39, %v1822_v29  ;;  %1781 = vst [vmem:[%s3321_s17 + $0x170] sm:$0xff] %v1717_v56  ;;  %v3558_v28 = vrot.slane %v3227_v26, %v3214_v22  ;;  %v1581_v29 = vadd.f32 %v1467_v44, %v3397_v58 }
 0x195   : > { %v2043_v48 = vmul.f32 0.0625, %v1945_v45  ;;  %v1816_v4 = vrot.slane %v1815_v23, 2  ;;  %v1651_v53 = vadd.f32 %v3290_v42, %v1580_v15  ;;  %v1718_v36 = vmax.f32 %v1654_v24, 0.0 }
 0x196   : > { %v1546_v60 = vadd.f32 %v3444_v46, %v1399_v13  ;;  %v1825_v10 = vrot.slane %v1824_v20, 1  ;;  %v1395_v6 = vrot.slane %v3558_v28, %v3221_v33  ;;  %v1652_v24 = vadd.f32 %v3290_v42, %v1581_v29 }
 0x197   : > { %v2075_v46 = vpack.c.bf16 %v2043_v48, %v2043_v48  ;;  %v1817_v5 = vadd.f32 %v1816_v4, %v1815_v23  ;;  %v1715_v37 = vmax.f32 %v1651_v53, 0.0  ;;  %1782 = vst [vmem:[%s3321_s17 + $0x178] sm:$0xff] %v1718_v36  ;;  %v1960_v26 = vadd.f32 %v1718_v36, %v1717_v56 }
 0x198   : > { %v1617_v27 = vadd.f32 %v3290_v42, %v1546_v60  ;;  %v1826_v39 = vadd.f32 %v1825_v10, %v1824_v20  ;;  %v1544_v15 = vadd.f32 %v1395_v6, %v3451_v7  ;;  %v1547_v19 = vadd.f32 %v3457_v9, %v1399_v13 }
 0x199   : > { %v2170_v55 = vunpack.c.l.b16 %v2075_v46  ;;  %v1818_v60 = vrot.slane %v1817_v5, 1  ;;  %1779 = vst [vmem:[%s3321_s17 + $0x160] sm:$0xff] %v1715_v37  ;;  %v1961_v35 = vrot.slane %v1960_v26, 4  ;;  %v1716_v44 = vmax.f32 %v1652_v24, 0.0 }
 0x19a   : > { %v1681_v45 = vmax.f32 %v1617_v27, 0.0  ;;  %v2026_v58 = vmul.f32 0.0625, %v1826_v39  ;;  %v1615_v4 = vadd.f32 %v3290_v42, %v1544_v15  ;;  %v1545_v48 = vadd.f32 %v1395_v6, %v3461_v63 }
 0x19b   : > { %v3574_v56 = vsel %vm749_vm3, %v2170_v55, %v2198_v0  ;;  %v1819_v7 = vadd.f32 %v1818_v60, %v1817_v5  ;;  %v1962_v23 = vadd.f32 %v1961_v35, %v1960_v26  ;;  %v1618_v20 = vadd.f32 %v3290_v42, %v1547_v19  ;;  %1780 = vst [vmem:[%s3321_s17 + $0x168] sm:$0xff] %v1716_v44 }
 0x19c   : > { %1745 = vst [vmem:[%s3321_s17 + $0x50] sm:$0xff] %v1681_v45  ;;  %v2058_v53 = vpack.c.bf16 %v2026_v58, %v2026_v58  ;;  %v1679_v36 = vmax.f32 %v1615_v4, 0.0  ;;  %v1953_v9 = vadd.f32 %v1716_v44, %v1715_v37  ;;  %v1616_v13 = vadd.f32 %v3290_v42, %v1545_v48 }
 0x19d   : > { %v2025_v10 = vmul.f32 0.0625, %v1819_v7  ;;  %v1963_v27 = vrot.slane %v1962_v23, 2  ;;  %v1682_v29 = vmax.f32 %v1618_v20, 0.0  ;;  %v4007_v63 = vcombine.high %v3230_v12, %v3230_v12 }
 0x19e   : > { %v3585_v0 = vunpack.c.l.b16 %v2076_v11  ;;  %1743 = vst [vmem:[%s3321_s17 + $0x40] sm:$0xff] %v1679_v36  ;;  %v1954_v19 = vrot.slane %v1953_v9, 4  ;;  %v1680_v35 = vmax.f32 %v1616_v13, 0.0  ;;  %v1475_v6 = vrot.slane %v3254_v57, %v3221_v33 }
 0x19f   : > { %v3583_v55 = vrot.slane %v4007_v63, %v3214_v22  ;;  %v3590_v46 = vunpack.c.l.b16 %v2058_v53  ;;  %v1964_v5 = vadd.f32 %v1963_v27, %v1962_v23  ;;  %1746 = vst [vmem:[%s3321_s17 + $0x58] sm:$0xff] %v1682_v29  ;;  %v1834_v37 = vadd.f32 %v1682_v29, %v1681_v45 }
 0x1a0   : > { %v1955_v39 = vadd.f32 %v1954_v19, %v1953_v9  ;;  %1744 = vst [vmem:[%s3321_s17 + $0x48] sm:$0xff] %v1680_v35  ;;  %v1827_v12 = vadd.f32 %v1680_v35, %v1679_v36  ;;  %v1584_v11 = vadd.f32 %v1475_v6, %v3430_v31  ;;  %v1228_v15 = vcombine.high %v3538_v21, %v3538_v21 }
 0x1a1   : > { %v1479_v26 = vrot.slane %v3583_v55, %v3221_v33  ;;  %v2057_v24 = vpack.c.bf16 %v2025_v10, %v2025_v10  ;;  %v1965_v60 = vrot.slane %v1964_v5, 1  ;;  %v1835_v58 = vrot.slane %v1834_v37, 4 }
 0x1a2   : > { %v1956_v44 = vrot.slane %v1955_v39, 2  ;;  %v1828_v48 = vrot.slane %v1827_v12, 4  ;;  %v1655_v45 = vadd.f32 %v3290_v42, %v1584_v11  ;;  %v1407_v7 = vrot.slane %v1228_v15, %v3221_v33 }
 0x1a3   : > { %v1586_v4 = vadd.f32 %v3427_v50, %v1479_v26  ;;  %v1966_v23 = vadd.f32 %v1965_v60, %v1964_v5  ;;  %v1836_v20 = vadd.f32 %v1835_v58, %v1834_v37  ;;  %v1587_v31 = vadd.f32 %v3433_v40, %v1479_v26 }
 0x1a4   : > { %v1957_v21 = vadd.f32 %v1956_v44, %v1955_v39  ;;  %v1829_v36 = vadd.f32 %v1828_v48, %v1827_v12  ;;  %v1719_v9 = vmax.f32 %v1655_v45, 0.0  ;;  %v1550_v13 = vadd.f32 %v3481_v62, %v1407_v7 }
 0x1a5   : > { %v1657_v53 = vadd.f32 %v3290_v42, %v1586_v4  ;;  %v2046_v50 = vmul.f32 0.0625, %v1966_v23  ;;  %v1837_v10 = vrot.slane %v1836_v20, 2  ;;  %v1658_v29 = vadd.f32 %v3290_v42, %v1587_v31 }
 0x1a6   : > { %v1958_v63 = vrot.slane %v1957_v21, 1  ;;  %v1830_v19 = vrot.slane %v1829_v36, 2  ;;  %1783 = vst [vmem:[%s3321_s17 + $0x180] sm:$0xff] %v1719_v9  ;;  %v1621_v35 = vadd.f32 %v3290_v42, %v1550_v13  ;;  %v1226_v40 = vcombine.high %v3558_v28, %v3558_v28 }
 0x1a7   : > { %v1721_v27 = vmax.f32 %v1657_v53, 0.0  ;;  %v3610_v5 = vunpack.c.l.b16 %v2057_v24  ;;  %v1838_v37 = vadd.f32 %v1837_v10, %v1836_v20  ;;  %v1722_v62 = vmax.f32 %v1658_v29, 0.0 }
 0x1a8   : > { %v1585_v26 = vadd.f32 %v1475_v6, %v3439_v32  ;;  %v1959_v39 = vadd.f32 %v1958_v63, %v1957_v21  ;;  %v1831_v12 = vadd.f32 %v1830_v19, %v1829_v36  ;;  %v1685_v11 = vmax.f32 %v1621_v35, 0.0 }
 0x1a9   : > { %1785 = vst [vmem:[%s3321_s17 + $0x190] sm:$0xff] %v1721_v27  ;;  %v1403_v15 = vrot.slane %v1226_v40, %v3221_v33  ;;  %v2078_v60 = vpack.c.bf16 %v2046_v50, %v2046_v50  ;;  %v1839_v58 = vrot.slane %v1838_v37, 1  ;;  %1786 = vst [vmem:[%s3321_s17 + $0x198] sm:$0xff] %v1722_v62  ;;  %v1974_v4 = vadd.f32 %v1722_v62, %v1721_v27 }
 0x1aa   : > { %v1656_v44 = vadd.f32 %v3290_v42, %v1585_v26  ;;  %v2045_v28 = vmul.f32 0.0625, %v1959_v39  ;;  %v1832_v24 = vrot.slane %v1831_v12, 1  ;;  %1749 = vst [vmem:[%s3321_s17 + $0x70] sm:$0xff] %v1685_v11  ;;  %v1551_v45 = vadd.f32 %v3486_v25, %v1407_v7 }
 0x1ab   : > { %v1548_v48 = vadd.f32 %v1403_v15, %v3483_v14  ;;  %v1840_v32 = vadd.f32 %v1839_v58, %v1838_v37  ;;  %v1975_v6 = vrot.slane %v1974_v4, 4  ;;  %v1549_v20 = vadd.f32 %v1403_v15, %v3490_v59 }
 0x1ac   : > { %v1720_v23 = vmax.f32 %v1656_v44, 0.0  ;;  %v2077_v53 = vpack.c.bf16 %v2045_v28, %v2045_v28  ;;  %v1833_v31 = vadd.f32 %v1832_v24, %v1831_v12  ;;  %v1622_v36 = vadd.f32 %v3290_v42, %v1551_v45 }
 0x1ad   : > { %v1619_v21 = vadd.f32 %v3290_v42, %v1548_v48  ;;  %v2028_v13 = vmul.f32 0.0625, %v1840_v32  ;;  %v1976_v50 = vadd.f32 %v1975_v6, %v1974_v4  ;;  %v1620_v14 = vadd.f32 %v3290_v42, %v1549_v20 }
 0x1ae   : > { %1784 = vst [vmem:[%s3321_s17 + $0x188] sm:$0xff] %v1720_v23  ;;  %v1967_v10 = vadd.f32 %v1720_v23, %v1719_v9  ;;  %v3625_v25 = vunpack.c.l.b16 %v2078_v60  ;;  %v2027_v7 = vmul.f32 0.0625, %v1833_v31  ;;  %v1686_v59 = vmax.f32 %v1622_v36, 0.0 }
 0x1af   : > { %v1683_v27 = vmax.f32 %v1619_v21, 0.0  ;;  %v2060_v29 = vpack.c.bf16 %v2028_v13, %v2028_v13  ;;  %v1977_v63 = vrot.slane %v1976_v50, 2  ;;  %v1684_v35 = vmax.f32 %v1620_v14, 0.0 }
 0x1b0   : > { %v1968_v19 = vrot.slane %v1967_v10, 4  ;;  %v3627_v40 = vunpack.c.l.b16 %v2077_v53  ;;  %1750 = vst [vmem:[%s3321_s17 + $0x78] sm:$0xff] %v1686_v59  ;;  %v1848_v37 = vadd.f32 %v1686_v59, %v1685_v11  ;;  %v1374_v9 = vcombine.high %v3583_v55, %v3583_v55 }
 0x1b1   : > { %1747 = vst [vmem:[%s3321_s17 + $0x60] sm:$0xff] %v1683_v27  ;;  %v1372_v62 = vcombine.high %v3254_v57, %v3254_v57  ;;  %v2059_v26 = vpack.c.bf16 %v2027_v7, %v2027_v7  ;;  %v1978_v39 = vadd.f32 %v1977_v63, %v1976_v50  ;;  %1748 = vst [vmem:[%s3321_s17 + $0x68] sm:$0xff] %v1684_v35  ;;  %v3636_v60 = vunpack.c.l.b16 %v2060_v29 }
 0x1b2   : > { %v1969_v12 = vadd.f32 %v1968_v19, %v1967_v10  ;;  %v1841_v15 = vadd.f32 %v1684_v35, %v1683_v27  ;;  %v1849_v58 = vrot.slane %v1848_v37, 4  ;;  %v1487_v4 = vrot.slane %v1374_v9, %v3221_v33 }
 0x1b3   : > { %v1483_v44 = vrot.slane %v1372_v62, %v3221_v33  ;;  %v1979_v28 = vrot.slane %v1978_v39, 1  ;;  %v4008_v55 = vcombine.high %v3239_v41, %v3239_v41  ;;  %v3651_v14 = vunpack.c.l.b16 %v2059_v26 }
 0x1b4   : > { %v1970_v11 = vrot.slane %v1969_v12, 2  ;;  %v1842_v24 = vrot.slane %v1841_v15, 4  ;;  %v1850_v48 = vadd.f32 %v1849_v58, %v1848_v37  ;;  %v1590_v45 = vadd.f32 %v3463_v17, %v1487_v4 }
 0x1b5   : > { %v1266_v57 = vrot.slane %v4008_v55, %v3214_v22  ;;  %v1588_v32 = vadd.f32 %v1483_v44, %v3467_v54  ;;  %v1591_v6 = vadd.f32 %v3470_v3, %v1487_v4  ;;  %v1980_v23 = vadd.f32 %v1979_v28, %v1978_v39 }
 0x1b6   : > { %v1971_v20 = vadd.f32 %v1970_v11, %v1969_v12  ;;  %v1843_v53 = vadd.f32 %v1842_v24, %v1841_v15  ;;  %v1851_v21 = vrot.slane %v1850_v48, 2  ;;  %v1661_v36 = vadd.f32 %v3290_v42, %v1590_v45 }
 0x1b7   : > { %v1276_v31 = vcombine.high %v1266_v57, %v1266_v57  ;;  %v1659_v13 = vadd.f32 %v3290_v42, %v1588_v32  ;;  %v1415_v41 = vrot.slane %v1266_v57, %v3221_v33  ;;  %v2048_v50 = vmul.f32 0.0625, %v1980_v23 }
 0x1b8   : > { %v1972_v10 = vrot.slane %v1971_v20, 1  ;;  %v1844_v17 = vrot.slane %v1843_v53, 2  ;;  %v1725_v3 = vmax.f32 %v1661_v36, 0.0  ;;  %v3655_v35 = vadd.f32 %v1851_v21, %v1850_v48  ;;  %v2088_v36 = vld [vmem:[%s3846_s4 + $0x8] sm:$0xff] }
 0x1b9   : > { %v1423_v54 = vrot.slane %v1276_v31, %v3221_v33  ;;  %v1723_v7 = vmax.f32 %v1659_v13, 0.0  ;;  %v1554_v27 = vadd.f32 %v3507_v8, %v1415_v41  ;;  %v2080_v59 = vpack.c.bf16 %v2048_v50, %v2048_v50 }
 0x1ba   : > { %v1973_v29 = vadd.f32 %v1972_v10, %v1971_v20  ;;  %v1845_v63 = vadd.f32 %v1844_v17, %v1843_v53  ;;  %1789 = vst [vmem:[%s3321_s17 + $0x1b0] sm:$0xff] %v1725_v3  ;;  %v1662_v62 = vadd.f32 %v3290_v42, %v1591_v6  ;;  %v1411_v4 = vrot.slane %v3259_v49, %v3221_v33  ;;  %v3676_v49 = vld [vmem:[%s3845_s3] ss:$0 sm:$0xff] }
 0x1bb   : > { %v1558_v19 = vadd.f32 %v3202_v2, %v1423_v54  ;;  %1787 = vst [vmem:[%s3321_s17 + $0x1a0] sm:$0xff] %v1723_v7  ;;  %v1559_v37 = vadd.f32 %v3206_v38, %v1423_v54  ;;  %v1625_v9 = vadd.f32 %v3290_v42, %v1554_v27  ;;  %v2175_v26 = vunpack.c.l.b16 %v2080_v59 }
 0x1bc   : > { %v2047_v39 = vmul.f32 0.0625, %v1973_v29  ;;  %v1846_v8 = vrot.slane %v1845_v63, 1  ;;  %v1726_v58 = vmax.f32 %v1662_v62, 0.0  ;;  %v1589_v24 = vadd.f32 %v1483_v44, %v3475_v61  ;;  %v2089_v29 = vld [vmem:[%s3846_s4 + $0x10] sm:$0xff] }
 0x1bd   : > { %v1629_v12 = vadd.f32 %v3290_v42, %v1558_v19  ;;  %v1630_v15 = vadd.f32 %v3290_v42, %v1559_v37  ;;  %v1689_v2 = vmax.f32 %v1625_v9, 0.0  ;;  %v1552_v48 = vadd.f32 %v1411_v4, %v3511_v47 }
 0x1be   : > { %v2079_v38 = vpack.c.bf16 %v2047_v39, %v2047_v39  ;;  %v1847_v28 = vadd.f32 %v1846_v8, %v1845_v63  ;;  %1790 = vst [vmem:[%s3321_s17 + $0x1b8] sm:$0xff] %v1726_v58  ;;  %v1988_v57 = vadd.f32 %v1726_v58, %v1725_v3  ;;  %v1555_v42 = vadd.f32 %v3515_v16, %v1415_v41  ;;  %v2090_v63 = vld [vmem:[%s3846_s4 + $0x18] sm:$0xff] }
 0x1bf   : > { %v1693_v11 = vmax.f32 %v1629_v12, 0.0  ;;  %v1694_v55 = vmax.f32 %v1630_v15, 0.0  ;;  %1753 = vst [vmem:[%s3321_s17 + $0x90] sm:$0xff] %v1689_v2  ;;  %v1853_v32 = vrot.slane %v3655_v35, 1  ;;  %v1660_v6 = vadd.f32 %v3676_v49, %v1589_v24 }
 0x1c0   : > { %v2174_v45 = vunpack.c.l.b16 %v2079_v38  ;;  %v1553_v61 = vadd.f32 %v1411_v4, %v3519_v30  ;;  %v1989_v23 = vrot.slane %v1988_v57, 4  ;;  %v1623_v47 = vadd.f32 %v3676_v49, %v1552_v48  ;;  %v2087_v30 = vld [vmem:[%s3846_s4] sm:$0xff] }
 0x1c1   : > { %1757 = vst [vmem:[%s3321_s17 + $0xb0] sm:$0xff] %v1693_v11  ;;  %1758 = vst [vmem:[%s3321_s17 + $0xb8] sm:$0xff] %v1694_v55  ;;  %v1876_v44 = vadd.f32 %v1694_v55, %v1693_v11  ;;  %v1626_v16 = vadd.f32 %v3676_v49, %v1555_v42  ;;  %v3686_v53 = vmul.f32 0.0625, %v1847_v28  ;;  %v1724_v31 = vmax.f32 %v1660_v6, 0.0  ;;  %v4010_v55 = vld [vmem:[#allocation27_spill] sm:$0xff] }
 0x1c2   : > { %v3684_v20 = vsel %vm743_vm0, %v2175_v26, %v2174_v45  ;;  %v1624_v21 = vadd.f32 %v3676_v49, %v1553_v61  ;;  %v1990_v41 = vadd.f32 %v1989_v23, %v1988_v57  ;;  %v1687_v50 = vmax.f32 %v1623_v47, 0.0 }
 0x1c3   : > { %v1877_v13 = vrot.slane %v1876_v44, 4  ;;  %v1690_v10 = vmax.f32 %v1626_v16, 0.0  ;;  %1788 = vst [vmem:[%s3321_s17 + $0x1a8] sm:$0xff] %v1724_v31  ;;  %v1981_v17 = vadd.f32 %v1724_v31, %v1723_v7  ;;  %v4009_v3 = vcombine.high %v3236_v51, %v3236_v51 }
 0x1c4   : > { %v1688_v54 = vmax.f32 %v1624_v21, 0.0  ;;  %v1357_v59 = vrot.slane %v3236_v51, %v3214_v22  ;;  %v1991_v37 = vrot.slane %v1990_v41, 2  ;;  %1751 = vst [vmem:[%s3321_s17 + $0x80] sm:$0xff] %v1687_v50  ;;  %v2103_v9 = vpack.c.bf16 %v2088_v36, %v2087_v30 }
 0x1c5   : > { %v1371_v27 = vrot.slane %v4009_v3, %v3214_v22  ;;  %v1878_v19 = vadd.f32 %v1877_v13, %v1876_v44  ;;  %1754 = vst [vmem:[%s3321_s17 + $0x98] sm:$0xff] %v1690_v10  ;;  %v1862_v7 = vadd.f32 %v1690_v10, %v1689_v2  ;;  %v1982_v62 = vrot.slane %v1981_v17, 4 }
 0x1c6   : > { %1752 = vst [vmem:[%s3321_s17 + $0x88] sm:$0xff] %v1688_v54  ;;  %v1855_v26 = vadd.f32 %v1688_v54, %v1687_v50  ;;  %v1491_v22 = vrot.slane %v1357_v59, %v3221_v33  ;;  %v1992_v8 = vadd.f32 %v1991_v37, %v1990_v41  ;;  %2542 = vmatprep.subr.bf16.mxu0 %v2103_v9 }
 0x1c7   : > { %v1495_v39 = vrot.slane %v1371_v27, %v3221_v33  ;;  %v1879_v51 = vrot.slane %v1878_v19, 2  ;;  %v1863_v12 = vrot.slane %v1862_v7, 4  ;;  %v2104_v15 = vpack.c.bf16 %v2090_v63, %v2089_v29  ;;  %2543 = vmatpush3.bf16.msra.mxu0 %v2103_v9 }
 0x1c8   : > { %v1983_v58 = vadd.f32 %v1982_v62, %v1981_v17  ;;  %v1856_v4 = vrot.slane %v1855_v26, 4  ;;  %v1592_v28 = vadd.f32 %v1491_v22, %v3495_v52  ;;  %v1993_v11 = vrot.slane %v1992_v8, 1 }
 0x1c9   : > { %v1594_v38 = vadd.f32 %v3492_v43, %v1495_v39  ;;  %v3715_v2 = vadd.f32 %v1879_v51, %v1878_v19  ;;  %v1864_v24 = vadd.f32 %v1863_v12, %v1862_v7  ;;  %v1595_v57 = vadd.f32 %v4010_v55, %v1495_v39  ;;  %2544 = vmatprep.subr.bf16.mxu0 %v2104_v15 }
 0x1ca   : > { %v1984_v48 = vrot.slane %v1983_v58, 2  ;;  %v1857_v42 = vadd.f32 %v1856_v4, %v1855_v26  ;;  %v1663_v6 = vadd.f32 %v3676_v49, %v1592_v28  ;;  %v1994_v43 = vadd.f32 %v1993_v11, %v1992_v8 }
 0x1cb   : > { %v1665_v45 = vadd.f32 %v3676_v49, %v1594_v38  ;;  %v1881_v61 = vrot.slane %v3715_v2, 1  ;;  %v1865_v52 = vrot.slane %v1864_v24, 2  ;;  %v1666_v44 = vadd.f32 %v3676_v49, %v1595_v57  ;;  %2545 = vmatpush3.bf16.msra.mxu0 %v2104_v15 }
 0x1cc   : > { %v1985_v23 = vadd.f32 %v1984_v48, %v1983_v58  ;;  %v1858_v47 = vrot.slane %v1857_v42, 2  ;;  %v1727_v31 = vmax.f32 %v1663_v6, 0.0  ;;  %v2050_v21 = vmul.f32 0.0625, %v1994_v43  ;;  %v4011_v58 = vld [vmem:[#allocation29_spill] sm:$0xff]  ;;  %v2092_v48 = vld [vmem:[%s3846_s4 + $0x28] sm:$0xff] }
 0x1cd   : > { %v1729_v16 = vmax.f32 %v1665_v45, 0.0  ;;  %v1866_v30 = vadd.f32 %v1865_v52, %v1864_v24  ;;  %v1730_v36 = vmax.f32 %v1666_v44, 0.0  ;;  %v1593_v13 = vadd.f32 %v1491_v22, %v3502_v34 }
 0x1ce   : > { %v1986_v41 = vrot.slane %v1985_v23, 1  ;;  %v1859_v50 = vadd.f32 %v1858_v47, %v1857_v42  ;;  %1791 = vst [vmem:[%s3321_s17 + $0x1c0] sm:$0xff] %v1727_v31  ;;  %v1375_v10 = vcombine.high %v1371_v27, %v1371_v27  ;;  %v1373_v17 = vcombine.high %v1357_v59, %v1357_v59 }
 0x1cf   : > { %1793 = vst [vmem:[%s3321_s17 + $0x1d0] sm:$0xff] %v1729_v16  ;;  %v2082_v54 = vpack.c.bf16 %v2050_v21, %v2050_v21  ;;  %v1867_v3 = vrot.slane %v1866_v30, 1  ;;  %1794 = vst [vmem:[%s3321_s17 + $0x1d8] sm:$0xff] %v1730_v36  ;;  %v2002_v29 = vadd.f32 %v1730_v36, %v1729_v16  ;;  %v1664_v63 = vadd.f32 %v3676_v49, %v1593_v13  ;;  %v2093_v16 = vld [vmem:[%s3846_s4 + $0x30] sm:$0xff]  ;;  %v4012_v36 = vld [vmem:[#allocation30_spill] sm:$0xff] }
 0x1d0   : > { %v1987_v19 = vadd.f32 %v1986_v41, %v1985_v23  ;;  %v1860_v37 = vrot.slane %v1859_v50, 1  ;;  %v1503_v7 = vrot.slane %v1375_v10, %v3221_v33  ;;  %v1499_v9 = vrot.slane %v1373_v17, %v3221_v33  ;;  %v2096_v10 = vld [vmem:[%s3846_s4 + $0x48] sm:$0xff] }
 0x1d1   : > { %v2177_v34 = vunpack.c.l.b16 %v2082_v54  ;;  %v1868_v62 = vadd.f32 %v1867_v3, %v1866_v30  ;;  %v2003_v26 = vrot.slane %v2002_v29, 4  ;;  %v1728_v39 = vmax.f32 %v1664_v63, 0.0  ;;  %v2098_v63 = vld [vmem:[%s3846_s4 + $0x58] sm:$0xff] }
 0x1d2   : > { %v2049_v22 = vmul.f32 0.0625, %v1987_v19  ;;  %v1861_v27 = vadd.f32 %v1860_v37, %v1859_v50  ;;  %v1598_v59 = vadd.f32 %v3521_v18, %v1503_v7  ;;  %v1596_v51 = vadd.f32 %v1499_v9, %v3529_v1  ;;  %v2091_v1 = vld [vmem:[%s3846_s4 + $0x20] sm:$0xff] }
 0x1d3   : > { %v2032_v8 = vmul.f32 0.0625, %v1868_v62  ;;  %v2004_v12 = vadd.f32 %v2003_v26, %v2002_v29  ;;  %1792 = vst [vmem:[%s3321_s17 + $0x1c8] sm:$0xff] %v1728_v39  ;;  %v1995_v15 = vadd.f32 %v1728_v39, %v1727_v31  ;;  %v1599_v4 = vadd.f32 %v4011_v58, %v1503_v7  ;;  %v2094_v31 = vld [vmem:[%s3846_s4 + $0x38] sm:$0xff]  ;;  %v2095_v50 = vld [vmem:[%s3846_s4 + $0x40] sm:$0xff]  ;;  %v2097_v29 = vld [vmem:[%s3846_s4 + $0x50] sm:$0xff] }
 0x1d4   : > { %v2081_v38 = vpack.c.bf16 %v2049_v22, %v2049_v22  ;;  %v2031_v28 = vmul.f32 0.0625, %v1861_v27  ;;  %v1669_v33 = vadd.f32 %v3676_v49, %v1598_v59  ;;  %v1667_v11 = vadd.f32 %v3676_v49, %v1596_v51  ;;  %v4013_v58 = vld [vmem:[#allocation43_spill] sm:$0xff] }
 0x1d5   : > { %v2064_v24 = vpack.c.bf16 %v2032_v8, %v2032_v8  ;;  %v2005_v55 = vrot.slane %v2004_v12, 2  ;;  %v1996_v57 = vrot.slane %v1995_v15, 4  ;;  %v1670_v18 = vadd.f32 %v3676_v49, %v1599_v4 }
 0x1d6   : > { %v2176_v42 = vunpack.c.l.b16 %v2081_v38  ;;  %v2063_v45 = vpack.c.bf16 %v2031_v28, %v2031_v28  ;;  %v1733_v6 = vmax.f32 %v1669_v33, 0.0  ;;  %v1731_v43 = vmax.f32 %v1667_v11, 0.0 }
 0x1d7   : > { %v2159_v52 = vunpack.c.l.b16 %v2064_v24  ;;  %v2006_v44 = vadd.f32 %v2005_v55, %v2004_v12  ;;  %v1997_v23 = vadd.f32 %v1996_v57, %v1995_v15  ;;  %v1734_v47 = vmax.f32 %v1670_v18, 0.0  ;;  %v2099_v12 = vld [vmem:[%s3846_s4 + $0x60] sm:$0xff]  ;;  %v2100_v15 = vld [vmem:[%s3846_s4 + $0x68] sm:$0xff] }
 0x1d8   : > { %v2204_v21 = vsel %vm745_vm1, %v2176_v42, %v3684_v20  ;;  %v2158_v30 = vunpack.c.l.b16 %v2063_v45  ;;  %1797 = vst [vmem:[%s3321_s17 + $0x1f0] sm:$0xff] %v1733_v6  ;;  %1795 = vst [vmem:[%s3321_s17 + $0x1e0] sm:$0xff] %v1731_v43  ;;  %v1597_v13 = vadd.f32 %v1499_v9, %v4012_v36  ;;  %v2105_v41 = vpack.c.bf16 %v2092_v48, %v2091_v1 }
 0x1d9   : > { %v2007_v17 = vrot.slane %v2006_v44, 1  ;;  %v1998_v54 = vrot.slane %v1997_v23, 2  ;;  %v3760_v3 = vsel %vm747_vm2, %v2177_v34, %v2204_v21  ;;  %1798 = vst [vmem:[%s3321_s17 + $0x1f8] sm:$0xff] %v1734_v47  ;;  %v2016_v20 = vadd.f32 %v1734_v47, %v1733_v6 }
 0x1da   : > { %v2061_v19 = vpack.c.bf16 %v3686_v53, %v3686_v53  ;;  %v2189_v37 = vsel %vm743_vm0, %v2159_v52, %v2158_v30  ;;  %v1668_v7 = vadd.f32 %v3676_v49, %v1597_v13  ;;  %2546 = vmatprep.subr.bf16.mxu0 %v2105_v41  ;;  %v2106_v9 = vpack.c.bf16 %v2094_v31, %v2093_v16  ;;  %v4016_v30 = vld [vmem:[#allocation45_spill] sm:$0xff] }
 0x1db   : > { %v2008_v34 = vadd.f32 %v2007_v17, %v2006_v44  ;;  %v1999_v62 = vadd.f32 %v1998_v54, %v1997_v23  ;;  %v2017_v26 = vrot.slane %v2016_v20, 4  ;;  %2547 = vmatpush3.bf16.msra.mxu0 %v2105_v41  ;;  %v2107_v39 = vpack.c.bf16 %v2096_v10, %v2095_v50  ;;  %v4018_v10 = vld [vmem:[#allocation28_spill] sm:$0xff] }
 0x1dc   : > { %v1732_v22 = vmax.f32 %v1668_v7, 0.0  ;;  %2548 = vmatprep.subr.bf16.mxu0 %v2106_v9  ;;  %v2108_v27 = vpack.c.bf16 %v2098_v63, %v2097_v29  ;;  %v1854_v59 = vadd.f32 %v1853_v32, %v3655_v35  ;;  %v1882_v53 = vadd.f32 %v1881_v61, %v3715_v2  ;;  %v4015_v2 = vld [vmem:[#allocation2_spill] sm:$0xff]  ;;  %v2102_v29 = vld [vmem:[%s3846_s4 + $0x78] sm:$0xff] }
 0x1dd   : > { %v2052_v49 = vmul.f32 0.0625, %v2008_v34  ;;  %v2000_v51 = vrot.slane %v1999_v62, 1  ;;  %v2018_v8 = vadd.f32 %v2017_v26, %v2016_v20  ;;  %v4014_v4 = vrot.slane %v4013_v58, 1  ;;  %v2101_v20 = vld [vmem:[%s3846_s4 + $0x70] sm:$0xff] }
 0x1de   : > { %1796 = vst [vmem:[%s3321_s17 + $0x1e8] sm:$0xff] %v1732_v22  ;;  %v2009_v35 = vadd.f32 %v1732_v22, %v1731_v43  ;;  %v2030_v32 = vmul.f32 0.0625, %v1854_v59  ;;  %v2034_v28 = vmul.f32 0.0625, %v1882_v53  ;;  %v2065_v61 = vpack.c.bf16 %v4015_v2, %v4015_v2  ;;  %v4020_v22 = vld [vmem:[#allocation3_spill] sm:$0xff] }
 0x1df   : > { %v1910_v38 = vadd.f32 %v4014_v4, %v4013_v58  ;;  %v2084_v33 = vpack.c.bf16 %v2052_v49, %v2052_v49  ;;  %v2001_v11 = vadd.f32 %v2000_v51, %v1999_v62  ;;  %v2019_v24 = vrot.slane %v2018_v8, 2  ;;  %2549 = vmatpush3.bf16.msra.mxu0 %v2106_v9 }
 0x1e0   : > { %v2010_v57 = vrot.slane %v2009_v35, 4  ;;  %2550 = vmatprep.subr.bf16.mxu0 %v2107_v39  ;;  %v2109_v18 = vpack.c.bf16 %v2100_v15, %v2099_v12  ;;  %v2062_v1 = vpack.c.bf16 %v2030_v32, %v2030_v32  ;;  %v2066_v48 = vpack.c.bf16 %v2034_v28, %v2034_v28 }
 0x1e1   : > { %v2038_v55 = vmul.f32 0.0625, %v1910_v38  ;;  %v2051_v42 = vmul.f32 0.0625, %v2001_v11  ;;  %v2020_v45 = vadd.f32 %v2019_v24, %v2018_v8  ;;  %v2156_v52 = vunpack.c.l.b16 %v2061_v19 }
 0x1e2   : > { %v2179_v43 = vunpack.c.l.b16 %v2084_v33  ;;  %v2011_v44 = vadd.f32 %v2010_v57, %v2009_v35  ;;  %v2157_v23 = vunpack.c.l.b16 %v2062_v1  ;;  %v2160_v47 = vunpack.c.l.b16 %v2065_v61 }
 0x1e3   : > { %v2070_v6 = vpack.c.bf16 %v2038_v55, %v2038_v55  ;;  %v2083_v16 = vpack.c.bf16 %v2051_v42, %v2051_v42  ;;  %v2021_v31 = vrot.slane %v2020_v45, 1  ;;  %2551 = vmatpush3.bf16.msra.mxu0 %v2107_v39  ;;  %v2161_v21 = vunpack.c.l.b16 %v2066_v48 }
 0x1e4   : > { %v4017_v36 = vpack.c.bf16 %v4016_v30, %v4016_v30  ;;  %v2012_v41 = vrot.slane %v2011_v44, 2  ;;  %2552 = vmatprep.subr.bf16.mxu0 %v2108_v27  ;;  %v2183_v17 = vsel %vm745_vm1, %v3610_v5, %v4018_v10  ;;  %v2190_v54 = vsel %vm745_vm1, %v2160_v47, %v2189_v37  ;;  %v4019_v37 = vld [vmem:[#allocation44_spill] sm:$0xff] }
 0x1e5   : > { %v2165_v50 = vunpack.c.l.b16 %v2070_v6  ;;  %v2178_v63 = vunpack.c.l.b16 %v2083_v16  ;;  %v2022_v19 = vadd.f32 %v2021_v31, %v2020_v45  ;;  %v2184_v7 = vsel %vm747_vm2, %v3590_v46, %v2183_v17 }
 0x1e6   : > { %v2164_v13 = vunpack.c.l.b16 %v4017_v36  ;;  %v2191_v9 = vsel %vm747_vm2, %v2161_v21, %v2190_v54  ;;  %v2013_v34 = vadd.f32 %v2012_v41, %v2011_v44  ;;  %v2185_v5 = vsel %vm749_vm3, %v3651_v14, %v2184_v7 }
 0x1e7   : > { %v2192_v62 = vsel %vm749_vm3, %v4019_v37, %v2191_v9  ;;  %v2200_v26 = vsel %vm751_vm4, %v3585_v0, %v3574_v56  ;;  %v2206_v39 = vsel %vm749_vm3, %v2178_v63, %v3760_v3  ;;  %2553 = vmatpush3.bf16.msra.mxu0 %v2108_v27  ;;  %v2186_v46 = vsel %vm751_vm4, %v3636_v60, %v2185_v5 }
 0x1e8   : > { %v2193_v59 = vsel %vm751_vm4, %v4020_v22, %v2192_v62  ;;  %v2110_v53 = vpack.c.bf16 %v2102_v29, %v2101_v20  ;;  %v2014_v49 = vrot.slane %v2013_v34, 1  ;;  %2554 = vmatprep.subr.bf16.mxu0 %v2109_v18  ;;  %v2187_v14 = vsel %vm753_vm5, %v2156_v52, %v2186_v46 }
 0x1e9   : > { %v2194_v51 = vsel %vm753_vm5, %v2164_v13, %v2193_v59  ;;  %v2201_v56 = vsel %vm753_vm5, %v3627_v40, %v2200_v26  ;;  %v2054_v0 = vmul.f32 0.0625, %v2022_v19  ;;  %v2188_v3 = vsel %vm755_vm6, %v2157_v23, %v2187_v14 }
 0x1ea   : > { %v2195_v27 = vsel %vm755_vm6, %v2165_v50, %v2194_v51  ;;  %v2202_v60 = vsel %vm755_vm6, %v3625_v25, %v2201_v56  ;;  %v2015_v8 = vadd.f32 %v2014_v49, %v2013_v34  ;;  %v2207_v15 = vsel %vm751_vm4, %v2179_v43, %v2206_v39  ;;  %v2377_v25 = vld [vmem:[%s3847_s5] ss:$0 sm:$0xff] }
 0x1eb   : > { %v2210_v12 = vpack.c.b16 %v2195_v27, %v2188_v3  ;;  %2555 = vmatpush3.bf16.msra.mxu0 %v2109_v18  ;;  %v2086_v4 = vpack.c.bf16 %v2054_v0, %v2054_v0 }
 0x1ec   : > { %v2053_v58 = vmul.f32 0.0625, %v2015_v8  ;;  %2556 = vmatprep.subr.bf16.mxu0 %v2110_v53 }
 0x1ed   : > { %2558 = vmatprep.mubr.bf16.mxu0 %v2210_v12  ;;  %v2181_v35 = vunpack.c.l.b16 %v2086_v4 }
 0x1ee   : > { %v2085_v38 = vpack.c.bf16 %v2053_v58, %v2053_v58 }
 0x1ef   : > { %2557 = vmatpush3.bf16.msra.mxu0 %v2110_v53 }
 0x1f0   : > { %v2180_v40 = vunpack.c.l.b16 %v2085_v38 }
 0x1f2   : > { %v2208_v32 = vsel %vm753_vm5, %v2180_v40, %v2207_v15 }
 0x1f3   : > { %v2209_v28 = vsel %vm755_vm6, %v2181_v35, %v2208_v32 }
 0x1f4   : > { %v2211_v2 = vpack.c.b16 %v2209_v28, %v2202_v60 }
 0x1f6   : > { %2559 = vmatmul.mubr.bf16.vlgmr.msra.gmra.mrb[24].mxu0 %v2211_v2 }
 0x2c9   : > { %v2560_v61 = vpop.f32.mrb[24].mxu0 }
 0x2ca   : > { %v2248_v33 = vpop.f32.mrb[25].mxu0  ;;  %v2257_v55 = vadd.f32 %v2560_v61, %v2377_v25 }
 0x2cb   : > { %v2249_v11 = vadd.f32 %v2377_v25, %v2248_v33  ;;  %v2561_v24 = vpop.f32.mrb[26].mxu0 }
 0x2cc   : > { %v2251_v57 = vpop.f32.mrb[27].mxu0  ;;  %v2260_v1 = vadd.f32 %v2561_v24, %v2377_v25  ;;  %v2265_v45 = vmax.f32 %v2257_v55, 0.0 }
 0x2cd   : > { %v2263_v18 = vmax.f32 %v2249_v11, 0.0  ;;  %v2252_v48 = vadd.f32 %v2377_v25, %v2251_v57 }
 0x2ce   : > { %v2266_v6 = vmax.f32 %v2260_v1, 0.0  ;;  %2269 = vst [vmem:[%s299_s16 + $0x10] sm:$0xff] %v2265_v45 }
 0x2cf   : > { %2267 = vst [vmem:[%s299_s16] sm:$0xff] %v2263_v18  ;;  %v2264_v42 = vmax.f32 %v2252_v48, 0.0 }
 0x2d0   : > { %2270 = vst [vmem:[%s299_s16 + $0x18] sm:$0xff] %v2266_v6 }
 0x2d1   : > { %2268 = vst [vmem:[%s299_s16 + $0x8] sm:$0xff] %v2264_v42 }
 0x2d2 PF: > { %s18_s24 = sadd.s32 1, %s2594_s24  }
 0x2d3   : > { %p15_p5 = scmp.ge.s32.totalorder %s18_s24, 4  }
 0x2d5   :  { %17 = sbr.rel (!%p15_p5) target bundleno = 1 (0x1), region = 86 }

// kernel: hierarchic_micro_macro_forward.11
= control target key start
LH: loop header
LB: loop body
LE: loop exit
PB: predicated region body
PF: predicated region fallthrough
CT: control target
= control target key end

     0   :  { %s959_s27 = smov 0   ;;  %s1173_s0 = inlined_call_operand.vmem [shape: f32[64,128], index: 0, kind: input, shape index: {}, may-alias: {0,2}]   ;;  %s1174_s1 = inlined_call_operand.vmem [shape: f32[64,64], index: 1, kind: input, shape index: {}]   ;;  %s1175_s2 = inlined_call_operand.vmem [shape: f32[64,128], index: 2, kind: input, shape index: {}, may-alias: {0,2}]   ;;  %s1176_s3 = inlined_call_operand.vmem [shape: f32[64,128], index: 3, kind: input, shape index: {}]   ;;  %s1177_s4 = inlined_call_operand.vmem [shape: f32[128,128], index: 4, kind: input, shape index: {}]   ;;  %s1178_s5 = inlined_call_operand.vmem [shape: f32[128,128], index: 5, kind: input, shape index: {}]   ;;  %s1179_s6 = inlined_call_operand.vmem [shape: f32[128,128], index: 6, kind: input, shape index: {}]   ;;  %s1180_s7 = inlined_call_operand.vmem [shape: f32[1,128], index: 7, kind: input, shape index: {}]   ;;  %s1181_s8 = inlined_call_operand.vmem [shape: f32[64,128], index: 8, kind: output, shape index: {}]  }
   0x1 LB: > { %s764_s28 = sadd.s32 4294967295, %s912_s27   ;;  %p768_p0 = scmp.ge.s32.totalorder %s912_s27, 1  ;;  %s912_s27 = sphi %s959_s27, %s18_s27  }
   0x2   : > { %p285_p1 = scmp.lt.s32.totalorder %s912_s27, 3 }
   0x4   : > { %p286_p2 = pnand %p768_p0, %p285_p1 }
   0x5   : > { %v360_v0 = vld [vmem:[%s1175_s2] sm:$0xff] (!%p286_p2)  ;;  %v361_v1 = vld [vmem:[%s1175_s2 + $0x8] sm:$0xff] (!%p286_p2)  ;;  %v362_v2 = vld [vmem:[%s1175_s2 + $0x10] sm:$0xff] (!%p286_p2)  ;;  %s769_s13 = sshll.u32 (!%p286_p2), %s764_s28, 2  ;;  %vm372_vm0 = vcmask (!%p286_p2), 523264  }
   0x6   : > { %289 = sbr.rel (%p286_p2) target bundleno = 464 (0x1d0), region = 52  ;;  %v368_v3 = vpack.c.bf16 (!%p286_p2), %v361_v1, %v360_v0  ;;  %v363_v4 = vld [vmem:[%s1175_s2 + $0x18] sm:$0xff] (!%p286_p2)  ;;  %p330_p3 = scmp.lt.s32.totalorder (!%p286_p2), %s769_s13, 7  ;;  %v364_v6 = vld [vmem:[%s1175_s2 + $0x20] sm:$0xff] (!%p286_p2)  ;;  %v365_v7 = vld [vmem:[%s1175_s2 + $0x28] sm:$0xff] (!%p286_p2) }
   0x7   : > { %v369_v5 = vpack.c.bf16 (!%p286_p2), %v363_v4, %v362_v2  ;;  %v434_v8 = vld [vmem:[%s1177_s4] sm:$0xff] (!%p286_p2)  ;;  %v435_v9 = vld [vmem:[%s1177_s4 + $0x8] sm:$0xff] (!%p286_p2)  ;;  %v436_v10 = vld [vmem:[%s1177_s4 + $0x10] sm:$0xff] (!%p286_p2)  ;;  %v370_v14 = vpack.c.bf16 (!%p286_p2), %v365_v7, %v364_v6 }
   0x8   : > { %818 = vmatprep.subr.bf16.mxu0 (!%p286_p2), %v368_v3  ;;  %v437_v11 = vld [vmem:[%s1177_s4 + $0x18] sm:$0xff] (!%p286_p2)  ;;  %v450_v12 = vpack.c.bf16 (!%p286_p2), %v435_v9, %v434_v8  ;;  %v438_v15 = vld [vmem:[%s1177_s4 + $0x20] sm:$0xff] (!%p286_p2)  ;;  %v439_v16 = vld [vmem:[%s1177_s4 + $0x28] sm:$0xff] (!%p286_p2) }
   0x9   : > { %819 = vmatpush3.bf16.msra.mxu0 (!%p286_p2), %v368_v3  ;;  %v451_v13 = vpack.c.bf16 (!%p286_p2), %v437_v11, %v436_v10  ;;  %v366_v17 = vld [vmem:[%s1175_s2 + $0x30] sm:$0xff] (!%p286_p2)  ;;  %v367_v18 = vld [vmem:[%s1175_s2 + $0x38] sm:$0xff] (!%p286_p2)  ;;  %v452_v22 = vpack.c.bf16 (!%p286_p2), %v439_v16, %v438_v15  ;;  %v442_v32 = vld [vmem:[%s1177_s4 + $0x40] sm:$0xff] (!%p286_p2) }
   0xa   : > { %820 = vmatprep.subr.bf16.mxu0 (!%p286_p2), %v369_v5  ;;  %850 = vmatprep.subr.bf16.mxu1 (!%p286_p2), %v450_v12  ;;  %v440_v23 = vld [vmem:[%s1177_s4 + $0x30] sm:$0xff] (!%p286_p2)  ;;  %v371_v24 = vpack.c.bf16 (!%p286_p2), %v367_v18, %v366_v17  ;;  %v441_v25 = vld [vmem:[%s1177_s4 + $0x38] sm:$0xff] (!%p286_p2)  ;;  %v443_v33 = vld [vmem:[%s1177_s4 + $0x48] sm:$0xff] (!%p286_p2) }
   0xb   : > { %851 = vmatpush3.bf16.msra.mxu1 (!%p286_p2), %v450_v12  ;;  %v453_v31 = vpack.c.bf16 (!%p286_p2), %v441_v25, %v440_v23  ;;  %v454_v35 = vpack.c.bf16 (!%p286_p2), %v443_v33, %v442_v32  ;;  %v444_v36 = vld [vmem:[%s1177_s4 + $0x50] sm:$0xff] (!%p286_p2)  ;;  %v445_v37 = vld [vmem:[%s1177_s4 + $0x58] sm:$0xff] (!%p286_p2)  ;;  %v460_v38 = vld [vmem:[%s1178_s5] sm:$0xff] (!%p286_p2) }
   0xc   : > { %852 = vmatprep.subr.bf16.mxu1 (!%p286_p2), %v451_v13  ;;  %v461_v39 = vld [vmem:[%s1178_s5 + $0x8] sm:$0xff] (!%p286_p2)  ;;  %v462_v41 = vld [vmem:[%s1178_s5 + $0x10] sm:$0xff] (!%p286_p2)  ;;  %v463_v42 = vld [vmem:[%s1178_s5 + $0x18] sm:$0xff] (!%p286_p2)  ;;  %v455_v46 = vpack.c.bf16 (!%p286_p2), %v445_v37, %v444_v36 }
   0xd   : > { %s1183_s13 = smov (!%p330_p3, %s769_s13), 7  ;;  %821 = vmatpush3.bf16.msra.mxu0 %v369_v5  ;;  %v476_v40 = vpack.c.bf16 %v461_v39, %v460_v38  ;;  %v477_v43 = vpack.c.bf16 %v463_v42, %v462_v41  ;;  %v464_v44 = vld [vmem:[%s1178_s5 + $0x20] sm:$0xff]  ;;  %v465_v45 = vld [vmem:[%s1178_s5 + $0x28] sm:$0xff]  ;;  %v466_v50 = vld [vmem:[%s1178_s5 + $0x30] sm:$0xff] }
   0xe   : > { %s997_s29 = sshll.u32 %s1183_s13, 3  ;;  %822 = vmatprep.subr.bf16.mxu0 %v370_v14  ;;  %v446_v47 = vld [vmem:[%s1177_s4 + $0x60] sm:$0xff]  ;;  %v447_v48 = vld [vmem:[%s1177_s4 + $0x68] sm:$0xff]  ;;  %v478_v49 = vpack.c.bf16 %v465_v45, %v464_v44  ;;  %v467_v51 = vld [vmem:[%s1178_s5 + $0x38] sm:$0xff] }
   0xf   : > { %s339_s18 = scalar_lea.vmem %s1174_s1, %s997_s29  ;;  %s1019_s21 = scalar_lea.vmem %s1173_s0, %s997_s29  ;;  %853 = vmatpush3.bf16.msra.mxu1 %v451_v13  ;;  %v456_v52 = vpack.c.bf16 %v447_v48, %v446_v47  ;;  %v448_v53 = vld [vmem:[%s1177_s4 + $0x70] sm:$0xff]  ;;  %v449_v54 = vld [vmem:[%s1177_s4 + $0x78] sm:$0xff]  ;;  %v479_v55 = vpack.c.bf16 %v467_v51, %v466_v50  ;;  %v468_v56 = vld [vmem:[%s1178_s5 + $0x40] sm:$0xff] }
  0x10   : > { %v354_v19 = vld [vmem:[%s339_s18] sm:$0xff]  ;;  %v355_v20 = vld [vmem:[%s339_s18 + $0x8] sm:$0xff]  ;;  %v356_v29 = vld [vmem:[%s339_s18 + $0x10] sm:$0xff]  ;;  %854 = vmatprep.subr.bf16.mxu1 %v452_v22  ;;  %v457_v58 = vpack.c.bf16 %v449_v54, %v448_v53  ;;  %s1095_s10 = scalar_lea.vmem %s1176_s3, %s997_s29  ;;  %s351_s13 = scalar_lea.vmem %s1181_s8, %s997_s29 }
  0x11   : > { %v358_v21 = vpack.c.bf16 %v355_v20, %v354_v19  ;;  %v428_v26 = vld [vmem:[%s1019_s21] sm:$0xff]  ;;  %v429_v27 = vld [vmem:[%s1019_s21 + $0x8] sm:$0xff]  ;;  %823 = vmatpush3.bf16.msra.mxu0 %v370_v14  ;;  %v357_v30 = vld [vmem:[%s339_s18 + $0x18] sm:$0xff] }
  0x12   : > { %v432_v28 = vpack.c.bf16 %v429_v27, %v428_v26  ;;  %824 = vmatprep.subr.bf16.mxu0 %v371_v24  ;;  %v359_v34 = vpack.c.bf16 %v357_v30, %v356_v29  ;;  %v469_v57 = vld [vmem:[%s1178_s5 + $0x48] sm:$0xff]  ;;  %v588_v59 = vld [vmem:[%s1179_s6] sm:$0xff]  ;;  %v430_v61 = vld [vmem:[%s1019_s21 + $0x10] sm:$0xff] }
  0x13   : > { %826 = vmatprep.mubr.msk.bf16.mxu0 %vm372_vm0, %v358_v21  ;;  %855 = vmatpush3.bf16.msra.mxu1 %v452_v22  ;;  %v589_v60 = vld [vmem:[%s1179_s6 + $0x8] sm:$0xff]  ;;  %v480_v62 = vpack.c.bf16 %v469_v57, %v468_v56  ;;  %v431_v63 = vld [vmem:[%s1019_s21 + $0x18] sm:$0xff]  ;;  %v470_v0 = vld [vmem:[%s1178_s5 + $0x50] sm:$0xff] }
  0x14   : > { %866 = vmatprep.mubr.bf16.mxu1 %v432_v28  ;;  %856 = vmatprep.subr.bf16.mxu1 %v453_v31  ;;  %v471_v1 = vld [vmem:[%s1178_s5 + $0x58] sm:$0xff]  ;;  %v604_v2 = vpack.c.bf16 %v589_v60, %v588_v59  ;;  %v582_v3 = vld [vmem:[%s1095_s10] sm:$0xff]  ;;  %v583_v4 = vld [vmem:[%s1095_s10 + $0x8] sm:$0xff]  ;;  %v433_v7 = vpack.c.bf16 %v431_v63, %v430_v61 }
  0x15   : > { %825 = vmatpush3.bf16.msra.mxu0 %v371_v24  ;;  %v590_v5 = vld [vmem:[%s1179_s6 + $0x10] sm:$0xff]  ;;  %v591_v6 = vld [vmem:[%s1179_s6 + $0x18] sm:$0xff]  ;;  %v481_v8 = vpack.c.bf16 %v471_v1, %v470_v0  ;;  %v586_v9 = vpack.c.bf16 %v583_v4, %v582_v3  ;;  %v472_v10 = vld [vmem:[%s1178_s5 + $0x60] sm:$0xff] }
  0x16   : > { %830 = vmatprep.subr.bf16.mxu0 %v476_v40  ;;  %v473_v11 = vld [vmem:[%s1178_s5 + $0x68] sm:$0xff]  ;;  %v605_v12 = vpack.c.bf16 %v591_v6, %v590_v5  ;;  %v592_v13 = vld [vmem:[%s1179_s6 + $0x20] sm:$0xff]  ;;  %v594_v17 = vld [vmem:[%s1179_s6 + $0x30] sm:$0xff] }
  0x17   : > { %857 = vmatpush3.bf16.msra.mxu1 %v453_v31  ;;  %v593_v14 = vld [vmem:[%s1179_s6 + $0x28] sm:$0xff]  ;;  %v482_v15 = vpack.c.bf16 %v473_v11, %v472_v10  ;;  %v595_v18 = vld [vmem:[%s1179_s6 + $0x38] sm:$0xff]  ;;  %v596_v20 = vld [vmem:[%s1179_s6 + $0x40] sm:$0xff] }
  0x18   : > { %827 = vmatmul.mubr.msk.bf16.vlgmr.msra.gmra.mrb[0].mxu0 %vm372_vm0, %v359_v34  ;;  %858 = vmatprep.subr.bf16.mxu1 %v454_v35  ;;  %v606_v16 = vpack.c.bf16 %v593_v14, %v592_v13  ;;  %v607_v19 = vpack.c.bf16 %v595_v18, %v594_v17  ;;  %v597_v21 = vld [vmem:[%s1179_s6 + $0x48] sm:$0xff]  ;;  %v598_v23 = vld [vmem:[%s1179_s6 + $0x50] sm:$0xff]  ;;  %v599_v24 = vld [vmem:[%s1179_s6 + $0x58] sm:$0xff] }
  0x19   : > { %831 = vmatpush3.bf16.msra.mxu0 %v476_v40  ;;  %v608_v22 = vpack.c.bf16 %v597_v21, %v596_v20  ;;  %v609_v25 = vpack.c.bf16 %v599_v24, %v598_v23  ;;  %v600_v26 = vld [vmem:[%s1179_s6 + $0x60] sm:$0xff]  ;;  %v601_v27 = vld [vmem:[%s1179_s6 + $0x68] sm:$0xff]  ;;  %v602_v29 = vld [vmem:[%s1179_s6 + $0x70] sm:$0xff] }
  0x1a   : > { %832 = vmatprep.subr.bf16.mxu0 %v477_v43  ;;  %v610_v28 = vpack.c.bf16 %v601_v27, %v600_v26  ;;  %v603_v30 = vld [vmem:[%s1179_s6 + $0x78] sm:$0xff]  ;;  %v584_v32 = vld [vmem:[%s1095_s10 + $0x10] sm:$0xff]  ;;  %v779_v50 = vld [vmem:[%s1180_s7] ss:$0 sm:$0xff] }
  0x1b   : > { %859 = vmatpush3.bf16.msra.mxu1 %v454_v35  ;;  %v611_v31 = vpack.c.bf16 %v603_v30, %v602_v29  ;;  %v585_v33 = vld [vmem:[%s1095_s10 + $0x18] sm:$0xff]  ;;  %v474_v35 = vld [vmem:[%s1178_s5 + $0x70] sm:$0xff] }
  0x1c   : > { %860 = vmatprep.subr.bf16.mxu1 %v455_v46  ;;  %v587_v34 = vpack.c.bf16 %v585_v33, %v584_v32  ;;  %v475_v36 = vld [vmem:[%s1178_s5 + $0x78] sm:$0xff] }
  0x1d   : > { %833 = vmatpush3.bf16.msra.mxu0 %v477_v43  ;;  %v483_v37 = vpack.c.bf16 %v475_v36, %v474_v35 }
  0x1e   : > { %834 = vmatprep.subr.bf16.mxu0 %v478_v49 }
  0x1f   : > { %861 = vmatpush3.bf16.msra.mxu1 %v455_v46 }
  0x20   : > { %862 = vmatprep.subr.bf16.mxu1 %v456_v52 }
  0x21   : > { %835 = vmatpush3.bf16.msra.mxu0 %v478_v49 }
  0x22   : > { %836 = vmatprep.subr.bf16.mxu0 %v479_v55 }
  0x23   : > { %863 = vmatpush3.bf16.msra.mxu1 %v456_v52 }
  0x24   : > { %864 = vmatprep.subr.bf16.mxu1 %v457_v58 }
  0x25   : > { %837 = vmatpush3.bf16.msra.mxu0 %v479_v55 }
  0x26   : > { %838 = vmatprep.subr.bf16.mxu0 %v480_v62 }
  0x27   : > { %865 = vmatpush3.bf16.msra.mxu1 %v457_v58 }
  0x28   : > { %870 = vmatprep.subr.bf16.mxu1 %v604_v2 }
  0x29   : > { %839 = vmatpush3.bf16.msra.mxu0 %v480_v62 }
  0x2a   : > { %867 = vmatmul.mubr.bf16.vlgmr.msra.gmra.mrb[0].mxu1 %v433_v7  ;;  %840 = vmatprep.subr.bf16.mxu0 %v481_v8 }
  0x2b   : > { %871 = vmatpush3.bf16.msra.mxu1 %v604_v2  ;;  %886 = vmatprep.mubr.bf16.mxu1 %v586_v9 }
  0x2c   : > { %872 = vmatprep.subr.bf16.mxu1 %v605_v12 }
  0x2d   : > { %841 = vmatpush3.bf16.msra.mxu0 %v481_v8 }
  0x2e   : > { %842 = vmatprep.subr.bf16.mxu0 %v482_v15 }
  0x2f   : > { %873 = vmatpush3.bf16.msra.mxu1 %v605_v12 }
  0x30   : > { %874 = vmatprep.subr.bf16.mxu1 %v606_v16 }
  0x31   : > { %843 = vmatpush3.bf16.msra.mxu0 %v482_v15 }
  0x32   : > { %844 = vmatprep.subr.bf16.mxu0 %v483_v37 }
  0x33   : > { %875 = vmatpush3.bf16.msra.mxu1 %v606_v16 }
  0x34   : > { %876 = vmatprep.subr.bf16.mxu1 %v607_v19 }
  0x35   : > { %845 = vmatpush3.bf16.msra.mxu0 %v483_v37 }
  0x37   : > { %877 = vmatpush3.bf16.msra.mxu1 %v607_v19 }
  0x38   : > { %878 = vmatprep.subr.bf16.mxu1 %v608_v22 }
  0x3b   : > { %879 = vmatpush3.bf16.msra.mxu1 %v608_v22 }
  0x3c   : > { %880 = vmatprep.subr.bf16.mxu1 %v609_v25 }
  0x3f   : > { %881 = vmatpush3.bf16.msra.mxu1 %v609_v25 }
  0x40   : > { %882 = vmatprep.subr.bf16.mxu1 %v610_v28 }
  0x43   : > { %883 = vmatpush3.bf16.msra.mxu1 %v610_v28 }
  0x44   : > { %884 = vmatprep.subr.bf16.mxu1 %v611_v31 }
  0x47   : > { %885 = vmatpush3.bf16.msra.mxu1 %v611_v31 }
  0x4a   : > { %887 = vmatmul.mubr.bf16.vlgmr.msra.gmra.mrb[0].mxu1 %v587_v34 }
  0xeb   : > { %v828_v38 = vpop.f32.mrb[0].mxu0 }
  0xec   : > { %v413_v39 = vpop.f32.mrb[1].mxu0 }
  0xed   : > { %v829_v40 = vpop.f32.mrb[2].mxu0 }
  0xee   : > { %v459_v41 = vpack.c.bf16 %v829_v40, %v828_v38  ;;  %v416_v42 = vpop.f32.mrb[3].mxu0 }
  0xef   : > { %v458_v43 = vpack.c.bf16 %v416_v42, %v413_v39 }
  0xf1   : > { %846 = vmatprep.mubr.bf16.mxu0 %v458_v43 }
  0xf2   : > { %847 = vmatmul.mubr.bf16.vlgmr.msra.gmra.mrb[4].mxu0 %v459_v41 }
 0x11d   : > { %v888_v44 = vpop.f32.mrb[0].mxu1 }
 0x11e   : > { %v646_v45 = vpop.f32.mrb[1].mxu1 }
 0x11f   : > { %v889_v46 = vpop.f32.mrb[2].mxu1 }
 0x120   : > { %v649_v47 = vpop.f32.mrb[3].mxu1 }
 0x1c5   : > { %v848_v48 = vpop.f32.mrb[4].mxu0 }
 0x1c6   : > { %v890_v49 = vadd.f32 %v888_v44, %v848_v48  ;;  %v518_v51 = vpop.f32.mrb[5].mxu0 }
 0x1c7   : > { %v891_v52 = vadd.f32 %v646_v45, %v518_v51  ;;  %v849_v53 = vpop.f32.mrb[6].mxu0 }
 0x1c8   : > { %v892_v54 = vadd.f32 %v889_v46, %v849_v53  ;;  %v521_v55 = vpop.f32.mrb[7].mxu0  ;;  %v674_v58 = vadd.f32 %v890_v49, %v779_v50 }
 0x1c9   : > { %v672_v56 = vadd.f32 %v891_v52, %v779_v50  ;;  %v893_v57 = vadd.f32 %v649_v47, %v521_v55 }
 0x1ca   : > { %v675_v60 = vadd.f32 %v892_v54, %v779_v50  ;;  %v678_v63 = vmax.f32 %v674_v58, 0.0 }
 0x1cb   : > { %v676_v59 = vmax.f32 %v672_v56, 0.0  ;;  %v673_v61 = vadd.f32 %v893_v57, %v779_v50 }
 0x1cc   : > { %v679_v0 = vmax.f32 %v675_v60, 0.0  ;;  %682 = vst [vmem:[%s351_s13 + $0x10] sm:$0xff] %v678_v63 }
 0x1cd   : > { %680 = vst [vmem:[%s351_s13] sm:$0xff] %v676_v59  ;;  %v677_v62 = vmax.f32 %v673_v61, 0.0 }
 0x1ce   : > { %683 = vst [vmem:[%s351_s13 + $0x18] sm:$0xff] %v679_v0 }
 0x1cf   : > { %681 = vst [vmem:[%s351_s13 + $0x8] sm:$0xff] %v677_v62 }
 0x1d0 PF: > { %s18_s27 = sadd.s32 1, %s912_s27  }
 0x1d1   : > { %p15_p4 = scmp.ge.s32.totalorder %s18_s27, 4  }
 0x1d3   :  { %17 = sbr.rel (!%p15_p4) target bundleno = 1 (0x1), region = 88 }

// kernel: hierarchic_micro_macro_forward.9
= control target key start
LH: loop header
LB: loop body
LE: loop exit
PB: predicated region body
PF: predicated region fallthrough
CT: control target
= control target key end

     0   :  { %14 = vsyncpa [#allocation3], 0  ;;  %s3354_s0 = inlined_call_operand.vmem [shape: f32[64,16,64], index: 0, kind: input, shape index: {}]   ;;  %s3355_s1 = inlined_call_operand.vmem [shape: f32[64,16,64], index: 1, kind: input, shape index: {}]   ;;  %s3356_s2 = inlined_call_operand.vmem [shape: f32[64,128], index: 2, kind: input, shape index: {}]   ;;  %s3357_s3 = inlined_call_operand.vmem [shape: f32[64,128], index: 3, kind: input, shape index: {}]   ;;  %s3358_s4 = inlined_call_operand.vmem [shape: f32[1,128], index: 4, kind: input, shape index: {}]   ;;  %s3359_s5 = inlined_call_operand.vmem [shape: f32[128,128], index: 5, kind: input, shape index: {}]   ;;  %s3360_s6 = inlined_call_operand.vmem [shape: f32[1,128], index: 6, kind: input, shape index: {}]   ;;  %s3361_s7 = inlined_call_operand.vmem [shape: f32[64,16,128], index: 7, kind: output, shape index: {0}]   ;;  %s3362_s8 = inlined_call_operand.hbm [shape: f32[64,128], index: 8, kind: output, shape index: {1}]  }
   0x1   :  { %16 = vsyncpa [#allocation3 + $0x1], 0  ;;  %s2695_s27 = smov 0   ;;  %s2697_s28 = smov 0  }
   0x2   :  { %s2699_s29 = smov 0   ;;  %s2701_s30 = smov 0  }
   0x3 LB: > { %s2716_s9 = sadd.s32 4294967295, %s2645_s30   ;;  %s2142_s10 = sadd.s32 4294967294, %s2645_s30   ;;  %s2645_s30 = sphi %s2701_s30, %s3368_s30   ;;  %s2641_s29 = sphi %s2699_s29, %s3367_s29   ;;  %s2637_s28 = sphi %s2697_s28, %s3366_s28   ;;  %s2633_s27 = sphi %s2695_s27, %s3365_s27  }
   0x4   : > { %s2720_s11 = sadd.s32 1, %s2645_s30   ;;  %s212_s12 = sadd.s32 1, %s2641_s29 }
   0x5   : > { %s209_s13 = ssub.s32 %s2645_s30, %s2720_s11  ;;  %p222_p0 = scmp.ne.s32.totalorder %s2641_s29, %s2637_s28 }
   0x6   : > { %p210_p1 = scmp.eq.s32.totalorder %s209_s13, 0  ;;  %p223_p2 = scmp.eq.s32.totalorder %s2716_s9, 1 }
   0x7   : > { %p228_p3 = scmp.ne.s32.totalorder %s2637_s28, %s2633_s27  ;;  %p229_p4 = scmp.eq.s32.totalorder %s2142_s10, 1 }
   0x8   : > { %s2731_s14 = scalar_select %p210_p1, %s2641_s29, %s212_s12  }
   0x9   : > { %p2733_p5 = por %p223_p2, %p222_p0  ;;  %p2737_p6 = por %p229_p4, %p228_p3 }
   0xa   : > { %p2145_p7 = scmp.ge.s32.totalorder %s2645_s30, 1  ;;  %p282_p8 = scmp.lt.s32.totalorder %s2645_s30, 3 }
   0xc   : > { %p283_p9 = pnand %p2145_p7, %p282_p8 }
   0xd   : > { %v556_v0 = vld [vmem:[%s3357_s3] sm:$0xff] (!%p283_p9)  ;;  %v557_v1 = vld [vmem:[%s3357_s3 + $0x8] sm:$0xff] (!%p283_p9)  ;;  %s2147_s23 = sshll.u32 (!%p283_p9), %s2716_s9, 5  ;;  %v558_v5 = vld [vmem:[%s3357_s3 + $0x10] sm:$0xff] (!%p283_p9)  ;;  %vm568_vm0 = vcmask (!%p283_p9), 523264   ;;  %vm1922_vm1 = vcmask (!%p283_p9), 1041409  }
   0xe   : > { %286 = sbr.rel (%p283_p9) target bundleno = 640 (0x280), region = 48  ;;  %v544_v2 = vld [vmem:[%s3356_s2] sm:$0xff] (!%p283_p9)  ;;  %v564_v3 = vpack.c.bf16 (!%p283_p9), %v557_v1, %v556_v0  ;;  %v545_v4 = vld [vmem:[%s3356_s2 + $0x8] sm:$0xff] (!%p283_p9)  ;;  %v559_v6 = vld [vmem:[%s3357_s3 + $0x18] sm:$0xff] (!%p283_p9)  ;;  %p330_p10 = scmp.lt.s32.totalorder (!%p283_p9), %s2147_s23, 63  ;;  %vm1924_vm2 = vcmask (!%p283_p9), 1042434  }
   0xf   : > { %v552_v7 = vpack.c.bf16 (!%p283_p9), %v545_v4, %v544_v2  ;;  %v565_v8 = vpack.c.bf16 (!%p283_p9), %v559_v6, %v558_v5  ;;  %v546_v9 = vld [vmem:[%s3356_s2 + $0x10] sm:$0xff] (!%p283_p9)  ;;  %v547_v10 = vld [vmem:[%s3356_s2 + $0x18] sm:$0xff] (!%p283_p9)  ;;  %v560_v11 = vld [vmem:[%s3357_s3 + $0x20] sm:$0xff] (!%p283_p9)  ;;  %vm1926_vm3 = vcmask (!%p283_p9), 1043459   ;;  %vm1928_vm4 = vcmask (!%p283_p9), 1044484   ;;  %s2230_s12 = sshll.u32 (!%p283_p9), %s2716_s9, 9 }
  0x10   : > { %2313 = vmatprep.subr.bf16.mxu1 (!%p283_p9), %v564_v3  ;;  %v553_v12 = vpack.c.bf16 (!%p283_p9), %v547_v10, %v546_v9  ;;  %v561_v13 = vld [vmem:[%s3357_s3 + $0x28] sm:$0xff] (!%p283_p9)  ;;  %v548_v14 = vld [vmem:[%s3356_s2 + $0x20] sm:$0xff] (!%p283_p9)  ;;  %v562_v17 = vld [vmem:[%s3357_s3 + $0x30] sm:$0xff] (!%p283_p9)  ;;  %vm1930_vm5 = vcmask (!%p283_p9), 1045509   ;;  %vm1932_vm6 = vcmask (!%p283_p9), 1046534   ;;  %vm1934_vm7 = vcmask (!%p283_p9), 1047559   ;;  %s3311_s17 = scalar_lea.hbm (!%p283_p9), %s3362_s8, %s2230_s12 }
  0x11   : > { %v549_v15 = vld [vmem:[%s3356_s2 + $0x28] sm:$0xff] (!%p283_p9)  ;;  %2385 = vmatprep.subr.bf16.mxu0 (!%p283_p9), %v552_v7  ;;  %2314 = vmatpush3.bf16.msra.mxu1 (!%p283_p9), %v564_v3  ;;  %v566_v16 = vpack.c.bf16 (!%p283_p9), %v561_v13, %v560_v11  ;;  %v563_v19 = vld [vmem:[%s3357_s3 + $0x38] sm:$0xff] (!%p283_p9)  ;;  %v550_v20 = vld [vmem:[%s3356_s2 + $0x30] sm:$0xff] (!%p283_p9)  ;;  %s2647_s21 = smov (!%p283_p9), [#allocation2]  }
  0x12   : > { %2386 = vmatpush3.bf16.msra.mxu0 (!%p283_p9), %v552_v7  ;;  %2315 = vmatprep.subr.bf16.mxu1 (!%p283_p9), %v565_v8  ;;  %v554_v18 = vpack.c.bf16 (!%p283_p9), %v549_v15, %v548_v14  ;;  %v551_v21 = vld [vmem:[%s3356_s2 + $0x38] sm:$0xff] (!%p283_p9)  ;;  %v567_v27 = vpack.c.bf16 (!%p283_p9), %v563_v19, %v562_v17  ;;  %s2587_s22 = sshll.u32 (!%p283_p9), %s2647_s21, 4  ;;  %s2588_s22 = int_to_ptr.vmem [resolvable:$false] %s2587_s22 }
  0x13   : > { %2387 = vmatprep.subr.bf16.mxu0 (!%p283_p9), %v553_v12  ;;  %v555_v29 = vpack.c.bf16 (!%p283_p9), %v551_v21, %v550_v20 }
  0x15   : > { %s3370_s23 = smov (!%p330_p10, %s2147_s23), 63  ;;  %2316 = vmatpush3.bf16.msra.mxu1 %v565_v8 }
  0x16   : > { %s2783_s19 = sshll.u32 %s3370_s23, 4  ;;  %2388 = vmatpush3.bf16.msra.mxu0 %v553_v12  ;;  %2317 = vmatprep.subr.bf16.mxu1 %v566_v16 }
  0x17   : > { %s2798_s23 = scalar_lea.vmem %s3355_s1, %s2783_s19  ;;  %s2804_s18 = scalar_lea.vmem %s3354_s0, %s2783_s19  ;;  %2389 = vmatprep.subr.bf16.mxu0 %v554_v18 }
  0x18   : > { %v448_v22 = vld [vmem:[%s2798_s23] sm:$0xff]  ;;  %v449_v23 = vld [vmem:[%s2798_s23 + $0x8] sm:$0xff]  ;;  %v450_v30 = vld [vmem:[%s2798_s23 + $0x10] sm:$0xff]  ;;  %s3038_s20 = scalar_lea.vmem %s3361_s7, %s2783_s19 }
  0x19   : > { %v352_v24 = vld [vmem:[%s2804_s18] sm:$0xff]  ;;  %v512_v25 = vpack.c.bf16 %v449_v23, %v448_v22  ;;  %v353_v26 = vld [vmem:[%s2804_s18 + $0x8] sm:$0xff]  ;;  %2318 = vmatpush3.bf16.msra.mxu1 %v566_v16  ;;  %v451_v31 = vld [vmem:[%s2798_s23 + $0x18] sm:$0xff] }
  0x1a   : > { %v416_v28 = vpack.c.bf16 %v353_v26, %v352_v24  ;;  %v354_v32 = vld [vmem:[%s2804_s18 + $0x10] sm:$0xff]  ;;  %2390 = vmatpush3.bf16.msra.mxu0 %v554_v18  ;;  %2319 = vmatprep.subr.bf16.mxu1 %v567_v27  ;;  %v355_v33 = vld [vmem:[%s2804_s18 + $0x18] sm:$0xff]  ;;  %v452_v34 = vld [vmem:[%s2798_s23 + $0x20] sm:$0xff]  ;;  %v513_v38 = vpack.c.bf16 %v451_v31, %v450_v30 }
  0x1b   : > { %2321 = vmatprep.mubr.msk.bf16.mxu1 %vm568_vm0, %v512_v25  ;;  %v453_v35 = vld [vmem:[%s2798_s23 + $0x28] sm:$0xff]  ;;  %2391 = vmatprep.subr.bf16.mxu0 %v555_v29  ;;  %v356_v36 = vld [vmem:[%s2804_s18 + $0x20] sm:$0xff]  ;;  %v417_v39 = vpack.c.bf16 %v355_v33, %v354_v32  ;;  %v454_v42 = vld [vmem:[%s2798_s23 + $0x30] sm:$0xff] }
  0x1c   : > { %2393 = vmatprep.mubr.msk.bf16.mxu0 %vm568_vm0, %v416_v28  ;;  %v357_v37 = vld [vmem:[%s2804_s18 + $0x28] sm:$0xff]  ;;  %v514_v40 = vpack.c.bf16 %v453_v35, %v452_v34  ;;  %v455_v43 = vld [vmem:[%s2798_s23 + $0x38] sm:$0xff]  ;;  %v358_v44 = vld [vmem:[%s2804_s18 + $0x30] sm:$0xff] }
  0x1d   : > { %2320 = vmatpush3.bf16.msra.mxu1 %v567_v27  ;;  %v418_v41 = vpack.c.bf16 %v357_v37, %v356_v36  ;;  %v359_v45 = vld [vmem:[%s2804_s18 + $0x38] sm:$0xff]  ;;  %v456_v46 = vld [vmem:[%s2798_s23 + $0x40] sm:$0xff]  ;;  %v457_v47 = vld [vmem:[%s2798_s23 + $0x48] sm:$0xff]  ;;  %v515_v50 = vpack.c.bf16 %v455_v43, %v454_v42 }
  0x1e   : > { %2392 = vmatpush3.bf16.msra.mxu0 %v555_v29  ;;  %v360_v48 = vld [vmem:[%s2804_s18 + $0x40] sm:$0xff]  ;;  %v361_v49 = vld [vmem:[%s2804_s18 + $0x48] sm:$0xff]  ;;  %v419_v51 = vpack.c.bf16 %v359_v45, %v358_v44  ;;  %v516_v52 = vpack.c.bf16 %v457_v47, %v456_v46  ;;  %v458_v54 = vld [vmem:[%s2798_s23 + $0x50] sm:$0xff] }
  0x1f   : > { %v420_v53 = vpack.c.bf16 %v361_v49, %v360_v48  ;;  %v459_v55 = vld [vmem:[%s2798_s23 + $0x58] sm:$0xff]  ;;  %v362_v56 = vld [vmem:[%s2804_s18 + $0x50] sm:$0xff]  ;;  %v460_v58 = vld [vmem:[%s2798_s23 + $0x60] sm:$0xff] }
  0x20   : > { %2322 = vmatmul.mubr.msk.bf16.vlgmr.msra.gmra.mrb[0].mxu1 %vm568_vm0, %v513_v38  ;;  %v363_v57 = vld [vmem:[%s2804_s18 + $0x58] sm:$0xff]  ;;  %v461_v59 = vld [vmem:[%s2798_s23 + $0x68] sm:$0xff]  ;;  %v364_v60 = vld [vmem:[%s2804_s18 + $0x60] sm:$0xff]  ;;  %v517_v62 = vpack.c.bf16 %v459_v55, %v458_v54 }
  0x21   : > { %2394 = vmatmul.mubr.msk.bf16.vlgmr.msra.gmra.mrb[0].mxu0 %vm568_vm0, %v417_v39  ;;  %2325 = vmatprep.mubr.msk.bf16.mxu1 %vm568_vm0, %v514_v40  ;;  %v365_v61 = vld [vmem:[%s2804_s18 + $0x68] sm:$0xff]  ;;  %v421_v63 = vpack.c.bf16 %v363_v57, %v362_v56  ;;  %v518_v0 = vpack.c.bf16 %v461_v59, %v460_v58  ;;  %v462_v2 = vld [vmem:[%s2798_s23 + $0x70] sm:$0xff]  ;;  %v463_v3 = vld [vmem:[%s2798_s23 + $0x78] sm:$0xff] }
  0x22   : > { %2397 = vmatprep.mubr.msk.bf16.mxu0 %vm568_vm0, %v418_v41  ;;  %v422_v1 = vpack.c.bf16 %v365_v61, %v364_v60  ;;  %v366_v4 = vld [vmem:[%s2804_s18 + $0x70] sm:$0xff]  ;;  %v367_v5 = vld [vmem:[%s2804_s18 + $0x78] sm:$0xff]  ;;  %v464_v6 = vld [vmem:[%s2798_s23 + $0x80] sm:$0xff]  ;;  %v519_v10 = vpack.c.bf16 %v463_v3, %v462_v2 }
  0x23   : > { %v465_v7 = vld [vmem:[%s2798_s23 + $0x88] sm:$0xff]  ;;  %v368_v8 = vld [vmem:[%s2804_s18 + $0x80] sm:$0xff]  ;;  %v423_v11 = vpack.c.bf16 %v367_v5, %v366_v4  ;;  %v466_v14 = vld [vmem:[%s2798_s23 + $0x90] sm:$0xff] }
  0x24   : > { %v369_v9 = vld [vmem:[%s2804_s18 + $0x88] sm:$0xff]  ;;  %v520_v12 = vpack.c.bf16 %v465_v7, %v464_v6  ;;  %v467_v15 = vld [vmem:[%s2798_s23 + $0x98] sm:$0xff]  ;;  %v370_v16 = vld [vmem:[%s2804_s18 + $0x90] sm:$0xff] }
  0x25   : > { %v424_v13 = vpack.c.bf16 %v369_v9, %v368_v8  ;;  %v371_v17 = vld [vmem:[%s2804_s18 + $0x98] sm:$0xff]  ;;  %v468_v18 = vld [vmem:[%s2798_s23 + $0xa0] sm:$0xff]  ;;  %v469_v19 = vld [vmem:[%s2798_s23 + $0xa8] sm:$0xff]  ;;  %v521_v22 = vpack.c.bf16 %v467_v15, %v466_v14 }
  0x26   : > { %v372_v20 = vld [vmem:[%s2804_s18 + $0xa0] sm:$0xff]  ;;  %v373_v21 = vld [vmem:[%s2804_s18 + $0xa8] sm:$0xff]  ;;  %v425_v23 = vpack.c.bf16 %v371_v17, %v370_v16  ;;  %v522_v24 = vpack.c.bf16 %v469_v19, %v468_v18  ;;  %v470_v26 = vld [vmem:[%s2798_s23 + $0xb0] sm:$0xff] }
  0x27   : > { %v426_v25 = vpack.c.bf16 %v373_v21, %v372_v20  ;;  %v471_v27 = vld [vmem:[%s2798_s23 + $0xb8] sm:$0xff]  ;;  %v374_v28 = vld [vmem:[%s2804_s18 + $0xb0] sm:$0xff]  ;;  %v472_v30 = vld [vmem:[%s2798_s23 + $0xc0] sm:$0xff] }
  0x28   : > { %2326 = vmatmul.mubr.msk.bf16.gmra.mrb[4].mxu1 %vm568_vm0, %v515_v50  ;;  %v375_v29 = vld [vmem:[%s2804_s18 + $0xb8] sm:$0xff]  ;;  %v473_v31 = vld [vmem:[%s2798_s23 + $0xc8] sm:$0xff]  ;;  %v376_v32 = vld [vmem:[%s2804_s18 + $0xc0] sm:$0xff]  ;;  %v523_v34 = vpack.c.bf16 %v471_v27, %v470_v26 }
  0x29   : > { %2398 = vmatmul.mubr.msk.bf16.gmra.mrb[4].mxu0 %vm568_vm0, %v419_v51  ;;  %2329 = vmatprep.mubr.msk.bf16.mxu1 %vm568_vm0, %v516_v52  ;;  %v377_v33 = vld [vmem:[%s2804_s18 + $0xc8] sm:$0xff]  ;;  %v427_v35 = vpack.c.bf16 %v375_v29, %v374_v28  ;;  %v524_v36 = vpack.c.bf16 %v473_v31, %v472_v30  ;;  %v474_v38 = vld [vmem:[%s2798_s23 + $0xd0] sm:$0xff]  ;;  %v475_v39 = vld [vmem:[%s2798_s23 + $0xd8] sm:$0xff] }
  0x2a   : > { %2401 = vmatprep.mubr.msk.bf16.mxu0 %vm568_vm0, %v420_v53  ;;  %v428_v37 = vpack.c.bf16 %v377_v33, %v376_v32  ;;  %v378_v40 = vld [vmem:[%s2804_s18 + $0xd0] sm:$0xff]  ;;  %v379_v41 = vld [vmem:[%s2804_s18 + $0xd8] sm:$0xff]  ;;  %v476_v42 = vld [vmem:[%s2798_s23 + $0xe0] sm:$0xff]  ;;  %v525_v46 = vpack.c.bf16 %v475_v39, %v474_v38 }
  0x2b   : > { %v477_v43 = vld [vmem:[%s2798_s23 + $0xe8] sm:$0xff]  ;;  %v380_v44 = vld [vmem:[%s2804_s18 + $0xe0] sm:$0xff]  ;;  %v429_v47 = vpack.c.bf16 %v379_v41, %v378_v40  ;;  %v478_v50 = vld [vmem:[%s2798_s23 + $0xf0] sm:$0xff] }
  0x2c   : > { %v381_v45 = vld [vmem:[%s2804_s18 + $0xe8] sm:$0xff]  ;;  %v526_v48 = vpack.c.bf16 %v477_v43, %v476_v42  ;;  %v479_v51 = vld [vmem:[%s2798_s23 + $0xf8] sm:$0xff]  ;;  %v382_v52 = vld [vmem:[%s2804_s18 + $0xf0] sm:$0xff] }
  0x2d   : > { %v430_v49 = vpack.c.bf16 %v381_v45, %v380_v44  ;;  %v383_v53 = vld [vmem:[%s2804_s18 + $0xf8] sm:$0xff]  ;;  %v480_v54 = vld [vmem:[%s2798_s23 + $0x100] sm:$0xff]  ;;  %v481_v55 = vld [vmem:[%s2798_s23 + $0x108] sm:$0xff]  ;;  %v527_v58 = vpack.c.bf16 %v479_v51, %v478_v50 }
  0x2e   : > { %v384_v56 = vld [vmem:[%s2804_s18 + $0x100] sm:$0xff]  ;;  %v385_v57 = vld [vmem:[%s2804_s18 + $0x108] sm:$0xff]  ;;  %v431_v59 = vpack.c.bf16 %v383_v53, %v382_v52  ;;  %v528_v60 = vpack.c.bf16 %v481_v55, %v480_v54 }
  0x2f   : > { %v432_v61 = vpack.c.bf16 %v385_v57, %v384_v56  ;;  %v484_v2 = vld [vmem:[%s2798_s23 + $0x120] sm:$0xff]  ;;  %v485_v3 = vld [vmem:[%s2798_s23 + $0x128] sm:$0xff] }
  0x30   : > { %2330 = vmatmul.mubr.msk.bf16.gmra.mrb[8].mxu1 %vm568_vm0, %v517_v62  ;;  %v482_v62 = vld [vmem:[%s2798_s23 + $0x110] sm:$0xff]  ;;  %v388_v4 = vld [vmem:[%s2804_s18 + $0x120] sm:$0xff]  ;;  %v389_v5 = vld [vmem:[%s2804_s18 + $0x128] sm:$0xff]  ;;  %v530_v8 = vpack.c.bf16 %v485_v3, %v484_v2 }
  0x31   : > { %2402 = vmatmul.mubr.msk.bf16.gmra.mrb[8].mxu0 %vm568_vm0, %v421_v63  ;;  %2333 = vmatprep.mubr.msk.bf16.mxu1 %vm568_vm0, %v518_v0  ;;  %v483_v63 = vld [vmem:[%s2798_s23 + $0x118] sm:$0xff]  ;;  %v386_v0 = vld [vmem:[%s2804_s18 + $0x110] sm:$0xff]  ;;  %v434_v9 = vpack.c.bf16 %v389_v5, %v388_v4  ;;  %v488_v14 = vld [vmem:[%s2798_s23 + $0x140] sm:$0xff] }
  0x32   : > { %2405 = vmatprep.mubr.msk.bf16.mxu0 %vm568_vm0, %v422_v1  ;;  %v387_v1 = vld [vmem:[%s2804_s18 + $0x118] sm:$0xff]  ;;  %v529_v6 = vpack.c.bf16 %v483_v63, %v482_v62  ;;  %v489_v15 = vld [vmem:[%s2798_s23 + $0x148] sm:$0xff]  ;;  %v392_v16 = vld [vmem:[%s2804_s18 + $0x140] sm:$0xff] }
  0x33   : > { %v433_v7 = vpack.c.bf16 %v387_v1, %v386_v0  ;;  %v393_v17 = vld [vmem:[%s2804_s18 + $0x148] sm:$0xff]  ;;  %v532_v20 = vpack.c.bf16 %v489_v15, %v488_v14  ;;  %v492_v26 = vld [vmem:[%s2798_s23 + $0x160] sm:$0xff] }
  0x34   : > { %v436_v21 = vpack.c.bf16 %v393_v17, %v392_v16  ;;  %v493_v27 = vld [vmem:[%s2798_s23 + $0x168] sm:$0xff]  ;;  %v396_v28 = vld [vmem:[%s2804_s18 + $0x160] sm:$0xff] }
  0x35   : > { %v397_v29 = vld [vmem:[%s2804_s18 + $0x168] sm:$0xff]  ;;  %v534_v32 = vpack.c.bf16 %v493_v27, %v492_v26  ;;  %v496_v38 = vld [vmem:[%s2798_s23 + $0x180] sm:$0xff]  ;;  %v1829_v27 = vld [vmem:[%s3359_s5 + $0x10] sm:$0xff] }
  0x36   : > { %v438_v33 = vpack.c.bf16 %v397_v29, %v396_v28  ;;  %v497_v39 = vld [vmem:[%s2798_s23 + $0x188] sm:$0xff]  ;;  %v400_v40 = vld [vmem:[%s2804_s18 + $0x180] sm:$0xff]  ;;  %v1830_v28 = vld [vmem:[%s3359_s5 + $0x18] sm:$0xff] }
  0x37   : > { %v401_v41 = vld [vmem:[%s2804_s18 + $0x188] sm:$0xff]  ;;  %v536_v44 = vpack.c.bf16 %v497_v39, %v496_v38  ;;  %v500_v50 = vld [vmem:[%s2798_s23 + $0x1a0] sm:$0xff]  ;;  %v1844_v29 = vpack.c.bf16 %v1830_v28, %v1829_v27 }
  0x38   : > { %2334 = vmatmul.mubr.msk.bf16.gmra.mrb[12].mxu1 %vm568_vm0, %v519_v10  ;;  %v486_v10 = vld [vmem:[%s2798_s23 + $0x130] sm:$0xff]  ;;  %v440_v45 = vpack.c.bf16 %v401_v41, %v400_v40  ;;  %v501_v51 = vld [vmem:[%s2798_s23 + $0x1a8] sm:$0xff]  ;;  %v404_v52 = vld [vmem:[%s2804_s18 + $0x1a0] sm:$0xff] }
  0x39   : > { %2406 = vmatmul.mubr.msk.bf16.gmra.mrb[12].mxu0 %vm568_vm0, %v423_v11  ;;  %2337 = vmatprep.mubr.msk.bf16.mxu1 %vm568_vm0, %v520_v12  ;;  %v487_v11 = vld [vmem:[%s2798_s23 + $0x138] sm:$0xff]  ;;  %v390_v12 = vld [vmem:[%s2804_s18 + $0x130] sm:$0xff]  ;;  %v405_v53 = vld [vmem:[%s2804_s18 + $0x1a8] sm:$0xff]  ;;  %v538_v56 = vpack.c.bf16 %v501_v51, %v500_v50 }
  0x3a   : > { %2409 = vmatprep.mubr.msk.bf16.mxu0 %vm568_vm0, %v424_v13  ;;  %v391_v13 = vld [vmem:[%s2804_s18 + $0x138] sm:$0xff]  ;;  %v531_v18 = vpack.c.bf16 %v487_v11, %v486_v10  ;;  %v442_v57 = vpack.c.bf16 %v405_v53, %v404_v52  ;;  %v504_v62 = vld [vmem:[%s2798_s23 + $0x1c0] sm:$0xff]  ;;  %v505_v63 = vld [vmem:[%s2798_s23 + $0x1c8] sm:$0xff] }
  0x3b   : > { %v435_v19 = vpack.c.bf16 %v391_v13, %v390_v12  ;;  %v408_v0 = vld [vmem:[%s2804_s18 + $0x1c0] sm:$0xff]  ;;  %v409_v1 = vld [vmem:[%s2804_s18 + $0x1c8] sm:$0xff]  ;;  %v540_v4 = vpack.c.bf16 %v505_v63, %v504_v62 }
  0x3c   : > { %v444_v5 = vpack.c.bf16 %v409_v1, %v408_v0  ;;  %v508_v10 = vld [vmem:[%s2798_s23 + $0x1e0] sm:$0xff]  ;;  %v509_v11 = vld [vmem:[%s2798_s23 + $0x1e8] sm:$0xff] }
  0x3d   : > { %v412_v12 = vld [vmem:[%s2804_s18 + $0x1e0] sm:$0xff]  ;;  %v413_v13 = vld [vmem:[%s2804_s18 + $0x1e8] sm:$0xff]  ;;  %v542_v16 = vpack.c.bf16 %v509_v11, %v508_v10 }
  0x3e   : > { %v446_v17 = vpack.c.bf16 %v413_v13, %v412_v12  ;;  %v3031_v41 = vld [vmem:[%s3358_s4] ss:$0 sm:$0xff] }
  0x40   : > { %2338 = vmatmul.mubr.msk.bf16.gmra.mrb[16].mxu1 %vm568_vm0, %v521_v22  ;;  %v490_v22 = vld [vmem:[%s2798_s23 + $0x150] sm:$0xff] }
  0x41   : > { %2410 = vmatmul.mubr.msk.bf16.gmra.mrb[16].mxu0 %vm568_vm0, %v425_v23  ;;  %2341 = vmatprep.mubr.msk.bf16.mxu1 %vm568_vm0, %v522_v24  ;;  %v491_v23 = vld [vmem:[%s2798_s23 + $0x158] sm:$0xff]  ;;  %v394_v24 = vld [vmem:[%s2804_s18 + $0x150] sm:$0xff] }
  0x42   : > { %2413 = vmatprep.mubr.msk.bf16.mxu0 %vm568_vm0, %v426_v25  ;;  %v395_v25 = vld [vmem:[%s2804_s18 + $0x158] sm:$0xff]  ;;  %v533_v30 = vpack.c.bf16 %v491_v23, %v490_v22 }
  0x43   : > { %v437_v31 = vpack.c.bf16 %v395_v25, %v394_v24  ;;  %v1827_v24 = vld [vmem:[%s3359_s5] sm:$0xff]  ;;  %v1828_v25 = vld [vmem:[%s3359_s5 + $0x8] sm:$0xff] }
  0x44   : > { %v1843_v26 = vpack.c.bf16 %v1828_v25, %v1827_v24 }
  0x46   : > { %2457 = vmatprep.subr.bf16.mxu1 %v1843_v26 }
  0x47   : > { %2458 = vmatpush3.bf16.msra.mxu1 %v1843_v26 }
  0x48   : > { %2342 = vmatmul.mubr.msk.bf16.gmra.mrb[20].mxu1 %vm568_vm0, %v523_v34  ;;  %v494_v34 = vld [vmem:[%s2798_s23 + $0x170] sm:$0xff]  ;;  %2459 = vmatprep.subr.bf16.mxu1 %v1844_v29 }
  0x49   : > { %2414 = vmatmul.mubr.msk.bf16.gmra.mrb[20].mxu0 %vm568_vm0, %v427_v35  ;;  %2345 = vmatprep.mubr.msk.bf16.mxu1 %vm568_vm0, %v524_v36  ;;  %v495_v35 = vld [vmem:[%s2798_s23 + $0x178] sm:$0xff]  ;;  %v398_v36 = vld [vmem:[%s2804_s18 + $0x170] sm:$0xff] }
  0x4a   : > { %2417 = vmatprep.mubr.msk.bf16.mxu0 %vm568_vm0, %v428_v37  ;;  %v399_v37 = vld [vmem:[%s2804_s18 + $0x178] sm:$0xff]  ;;  %v535_v42 = vpack.c.bf16 %v495_v35, %v494_v34 }
  0x4b   : > { %v439_v43 = vpack.c.bf16 %v399_v37, %v398_v36  ;;  %2460 = vmatpush3.bf16.msra.mxu1 %v1844_v29  ;;  %v1834_v34 = vld [vmem:[%s3359_s5 + $0x38] sm:$0xff]  ;;  %v1835_v36 = vld [vmem:[%s3359_s5 + $0x40] sm:$0xff]  ;;  %v1836_v37 = vld [vmem:[%s3359_s5 + $0x48] sm:$0xff] }
  0x4c   : > { %v1847_v38 = vpack.c.bf16 %v1836_v37, %v1835_v36 }
  0x50   : > { %2346 = vmatmul.mubr.msk.bf16.gmra.mrb[24].mxu1 %vm568_vm0, %v525_v46  ;;  %v498_v46 = vld [vmem:[%s2798_s23 + $0x190] sm:$0xff] }
  0x51   : > { %2418 = vmatmul.mubr.msk.bf16.gmra.mrb[24].mxu0 %vm568_vm0, %v429_v47  ;;  %2349 = vmatprep.mubr.msk.bf16.mxu1 %vm568_vm0, %v526_v48  ;;  %v499_v47 = vld [vmem:[%s2798_s23 + $0x198] sm:$0xff]  ;;  %v402_v48 = vld [vmem:[%s2804_s18 + $0x190] sm:$0xff] }
  0x52   : > { %2421 = vmatprep.mubr.msk.bf16.mxu0 %vm568_vm0, %v430_v49  ;;  %v403_v49 = vld [vmem:[%s2804_s18 + $0x198] sm:$0xff]  ;;  %v537_v54 = vpack.c.bf16 %v499_v47, %v498_v46 }
  0x53   : > { %v441_v55 = vpack.c.bf16 %v403_v49, %v402_v48 }
  0x58   : > { %2350 = vmatmul.mubr.msk.bf16.gmra.mrb[28].mxu1 %vm568_vm0, %v527_v58  ;;  %v502_v58 = vld [vmem:[%s2798_s23 + $0x1b0] sm:$0xff] }
  0x59   : > { %2422 = vmatmul.mubr.msk.bf16.gmra.mrb[28].mxu0 %vm568_vm0, %v431_v59  ;;  %2353 = vmatprep.mubr.msk.bf16.mxu1 %vm568_vm0, %v528_v60  ;;  %v503_v59 = vld [vmem:[%s2798_s23 + $0x1b8] sm:$0xff]  ;;  %v406_v60 = vld [vmem:[%s2804_s18 + $0x1b0] sm:$0xff] }
  0x5a   : > { %2425 = vmatprep.mubr.msk.bf16.mxu0 %vm568_vm0, %v432_v61  ;;  %v407_v61 = vld [vmem:[%s2804_s18 + $0x1b8] sm:$0xff]  ;;  %v539_v2 = vpack.c.bf16 %v503_v59, %v502_v58  ;;  %v1837_v58 = vld [vmem:[%s3359_s5 + $0x50] sm:$0xff] }
  0x5b   : > { %v443_v3 = vpack.c.bf16 %v407_v61, %v406_v60  ;;  %v1838_v59 = vld [vmem:[%s3359_s5 + $0x58] sm:$0xff] }
  0x5c   : > { %v1848_v62 = vpack.c.bf16 %v1838_v59, %v1837_v58 }
  0x60   : > { %2354 = vmatmul.mubr.msk.bf16.gmra.mrb[32].mxu1 %vm568_vm0, %v529_v6  ;;  %v506_v6 = vld [vmem:[%s2798_s23 + $0x1d0] sm:$0xff] }
  0x61   : > { %2426 = vmatmul.mubr.msk.bf16.gmra.mrb[32].mxu0 %vm568_vm0, %v433_v7  ;;  %2357 = vmatprep.mubr.msk.bf16.mxu1 %vm568_vm0, %v530_v8  ;;  %v507_v7 = vld [vmem:[%s2798_s23 + $0x1d8] sm:$0xff]  ;;  %v410_v8 = vld [vmem:[%s2804_s18 + $0x1d0] sm:$0xff] }
  0x62   : > { %2429 = vmatprep.mubr.msk.bf16.mxu0 %vm568_vm0, %v434_v9  ;;  %v411_v9 = vld [vmem:[%s2804_s18 + $0x1d8] sm:$0xff]  ;;  %v541_v14 = vpack.c.bf16 %v507_v7, %v506_v6 }
  0x63   : > { %v445_v15 = vpack.c.bf16 %v411_v9, %v410_v8 }
  0x68   : > { %2358 = vmatmul.mubr.msk.bf16.gmra.mrb[36].mxu1 %vm568_vm0, %v531_v18  ;;  %v510_v18 = vld [vmem:[%s2798_s23 + $0x1f0] sm:$0xff] }
  0x69   : > { %2430 = vmatmul.mubr.msk.bf16.gmra.mrb[36].mxu0 %vm568_vm0, %v435_v19  ;;  %2361 = vmatprep.mubr.msk.bf16.mxu1 %vm568_vm0, %v532_v20  ;;  %v511_v19 = vld [vmem:[%s2798_s23 + $0x1f8] sm:$0xff]  ;;  %v414_v20 = vld [vmem:[%s2804_s18 + $0x1f0] sm:$0xff] }
  0x6a   : > { %2433 = vmatprep.mubr.msk.bf16.mxu0 %vm568_vm0, %v436_v21  ;;  %v415_v21 = vld [vmem:[%s2804_s18 + $0x1f8] sm:$0xff]  ;;  %v543_v22 = vpack.c.bf16 %v511_v19, %v510_v18 }
  0x6b   : > { %v447_v23 = vpack.c.bf16 %v415_v21, %v414_v20 }
  0x70   : > { %2362 = vmatmul.mubr.msk.bf16.gmra.mrb[40].mxu1 %vm568_vm0, %v533_v30  ;;  %v1831_v30 = vld [vmem:[%s3359_s5 + $0x20] sm:$0xff] }
  0x71   : > { %2434 = vmatmul.mubr.msk.bf16.gmra.mrb[40].mxu0 %vm568_vm0, %v437_v31  ;;  %2365 = vmatprep.mubr.msk.bf16.mxu1 %vm568_vm0, %v534_v32  ;;  %v1832_v31 = vld [vmem:[%s3359_s5 + $0x28] sm:$0xff] }
  0x72   : > { %2437 = vmatprep.mubr.msk.bf16.mxu0 %vm568_vm0, %v438_v33  ;;  %v1845_v32 = vpack.c.bf16 %v1832_v31, %v1831_v30  ;;  %v1833_v33 = vld [vmem:[%s3359_s5 + $0x30] sm:$0xff] }
  0x73   : > { %v1846_v35 = vpack.c.bf16 %v1834_v34, %v1833_v33 }
  0x74   : > { %2461 = vmatprep.subr.bf16.mxu1 %v1845_v32 }
  0x75   : > { %2462 = vmatpush3.bf16.msra.mxu1 %v1845_v32 }
  0x76   : > { %2463 = vmatprep.subr.bf16.mxu1 %v1846_v35 }
  0x78   : > { %2366 = vmatmul.mubr.msk.bf16.gmra.mrb[44].mxu1 %vm568_vm0, %v535_v42 }
  0x79   : > { %2438 = vmatmul.mubr.msk.bf16.gmra.mrb[44].mxu0 %vm568_vm0, %v439_v43  ;;  %2369 = vmatprep.mubr.msk.bf16.mxu1 %vm568_vm0, %v536_v44 }
  0x7a   : > { %2441 = vmatprep.mubr.msk.bf16.mxu0 %vm568_vm0, %v440_v45  ;;  %2464 = vmatpush3.bf16.msra.mxu1 %v1846_v35 }
  0x7b   : > { %2465 = vmatprep.subr.bf16.mxu1 %v1847_v38 }
  0x7e   : > { %2466 = vmatpush3.bf16.msra.mxu1 %v1847_v38 }
  0x7f   : > { %2467 = vmatprep.subr.bf16.mxu1 %v1848_v62 }
  0x80   : > { %2370 = vmatmul.mubr.msk.bf16.gmra.mrb[48].mxu1 %vm568_vm0, %v537_v54 }
  0x81   : > { %2442 = vmatmul.mubr.msk.bf16.gmra.mrb[48].mxu0 %vm568_vm0, %v441_v55  ;;  %2373 = vmatprep.mubr.msk.bf16.mxu1 %vm568_vm0, %v538_v56 }
  0x82   : > { %2445 = vmatprep.mubr.msk.bf16.mxu0 %vm568_vm0, %v442_v57  ;;  %2468 = vmatpush3.bf16.msra.mxu1 %v1848_v62 }
  0x88   : > { %2374 = vmatmul.mubr.msk.bf16.gmra.mrb[52].mxu1 %vm568_vm0, %v539_v2 }
  0x89   : > { %2446 = vmatmul.mubr.msk.bf16.gmra.mrb[52].mxu0 %vm568_vm0, %v443_v3  ;;  %2377 = vmatprep.mubr.msk.bf16.mxu1 %vm568_vm0, %v540_v4 }
  0x8a   : > { %2449 = vmatprep.mubr.msk.bf16.mxu0 %vm568_vm0, %v444_v5 }
  0x90   : > { %2378 = vmatmul.mubr.msk.bf16.gmra.mrb[56].mxu1 %vm568_vm0, %v541_v14 }
  0x91   : > { %2450 = vmatmul.mubr.msk.bf16.gmra.mrb[56].mxu0 %vm568_vm0, %v445_v15  ;;  %2381 = vmatprep.mubr.msk.bf16.mxu1 %vm568_vm0, %v542_v16 }
  0x92   : > { %2453 = vmatprep.mubr.msk.bf16.mxu0 %vm568_vm0, %v446_v17 }
  0x98   : > { %2382 = vmatmul.mubr.msk.bf16.gmra.mrb[60].mxu1 %vm568_vm0, %v543_v22 }
  0x99   : > { %2454 = vmatmul.mubr.msk.bf16.gmra.mrb[60].mxu0 %vm568_vm0, %v447_v23 }
  0xf3   : > { %v2323_v39 = vpop.f32.mrb[0].mxu1 }
  0xf4   : > { %v2395_v40 = vpop.f32.mrb[0].mxu0  ;;  %v699_v42 = vpop.f32.mrb[1].mxu1 }
  0xf5   : > { %v1093_v43 = vadd.f32 %v2395_v40, %v2323_v39  ;;  %v1084_v44 = vpop.f32.mrb[1].mxu0  ;;  %v2324_v45 = vpop.f32.mrb[2].mxu1 }
  0xf6   : > { %v1085_v46 = vadd.f32 %v1084_v44, %v699_v42  ;;  %v2396_v47 = vpop.f32.mrb[2].mxu0  ;;  %v702_v48 = vpop.f32.mrb[3].mxu1 }
  0xf7   : > { %v1348_v49 = vadd.f32 %v3031_v41, %v1093_v43  ;;  %v1096_v50 = vadd.f32 %v2396_v47, %v2324_v45  ;;  %v1087_v51 = vpop.f32.mrb[3].mxu0 }
  0xf8   : > { %v1346_v52 = vadd.f32 %v3031_v41, %v1085_v46  ;;  %v1088_v53 = vadd.f32 %v1087_v51, %v702_v48  ;;  %v1840_v51 = vld [vmem:[%s3359_s5 + $0x68] sm:$0xff] }
  0xf9   : > { %v1412_v54 = vmax.f32 %v1348_v49, 0.0  ;;  %v1349_v55 = vadd.f32 %v3031_v41, %v1096_v50  ;;  %v1839_v50 = vld [vmem:[%s3359_s5 + $0x60] sm:$0xff] }
  0xfa   : > { %v1410_v56 = vmax.f32 %v1346_v52, 0.0  ;;  %v1347_v57 = vadd.f32 %v3031_v41, %v1088_v53 }
  0xfb   : > { %1476 = vst [vmem:[%s3038_s20 + $0x10] sm:$0xff] %v1412_v54  ;;  %v1413_v60 = vmax.f32 %v1349_v55, 0.0  ;;  %v2327_v61 = vpop.f32.mrb[4].mxu1 }
  0xfc   : > { %1474 = vst [vmem:[%s3038_s20] sm:$0xff] %v1410_v56  ;;  %v1411_v63 = vmax.f32 %v1347_v57, 0.0  ;;  %v2399_v0 = vpop.f32.mrb[4].mxu0  ;;  %v715_v1 = vpop.f32.mrb[5].mxu1 }
  0xfd   : > { %1477 = vst [vmem:[%s3038_s20 + $0x18] sm:$0xff] %v1413_v60  ;;  %v1545_v2 = vadd.f32 %v1413_v60, %v1412_v54  ;;  %v1109_v3 = vadd.f32 %v2399_v0, %v2327_v61  ;;  %v1100_v4 = vpop.f32.mrb[5].mxu0  ;;  %v2328_v5 = vpop.f32.mrb[6].mxu1  ;;  %v1849_v0 = vpack.c.bf16 %v1840_v51, %v1839_v50 }
  0xfe   : > { %1475 = vst [vmem:[%s3038_s20 + $0x8] sm:$0xff] %v1411_v63  ;;  %v1538_v6 = vadd.f32 %v1411_v63, %v1410_v56  ;;  %v1101_v7 = vadd.f32 %v1100_v4, %v715_v1  ;;  %v2400_v8 = vpop.f32.mrb[6].mxu0  ;;  %v718_v9 = vpop.f32.mrb[7].mxu1 }
  0xff   : > { %v1546_v10 = vrot.slane %v1545_v2, 4  ;;  %v1352_v11 = vadd.f32 %v3031_v41, %v1109_v3  ;;  %v1112_v12 = vadd.f32 %v2400_v8, %v2328_v5  ;;  %v1103_v13 = vpop.f32.mrb[7].mxu0  ;;  %2469 = vmatprep.subr.bf16.mxu1 %v1849_v0 }
 0x100   : > { %v1539_v14 = vrot.slane %v1538_v6, 4  ;;  %v1350_v15 = vadd.f32 %v3031_v41, %v1101_v7  ;;  %v1104_v16 = vadd.f32 %v1103_v13, %v718_v9  ;;  %2470 = vmatpush3.bf16.msra.mxu1 %v1849_v0 }
 0x101   : > { %v1547_v17 = vadd.f32 %v1546_v10, %v1545_v2  ;;  %v1416_v18 = vmax.f32 %v1352_v11, 0.0  ;;  %v1353_v19 = vadd.f32 %v3031_v41, %v1112_v12 }
 0x102   : > { %v1540_v20 = vadd.f32 %v1539_v14, %v1538_v6  ;;  %v1414_v21 = vmax.f32 %v1350_v15, 0.0  ;;  %v1351_v22 = vadd.f32 %v3031_v41, %v1104_v16 }
 0x103   : > { %v1548_v23 = vrot.slane %v1547_v17, 2  ;;  %1480 = vst [vmem:[%s3038_s20 + $0x30] sm:$0xff] %v1416_v18  ;;  %v1417_v24 = vmax.f32 %v1353_v19, 0.0  ;;  %v2331_v25 = vpop.f32.mrb[8].mxu1 }
 0x104   : > { %v1541_v26 = vrot.slane %v1540_v20, 2  ;;  %1478 = vst [vmem:[%s3038_s20 + $0x20] sm:$0xff] %v1414_v21  ;;  %v1415_v27 = vmax.f32 %v1351_v22, 0.0  ;;  %v2403_v28 = vpop.f32.mrb[8].mxu0  ;;  %v731_v29 = vpop.f32.mrb[9].mxu1 }
 0x105   : > { %v1549_v30 = vadd.f32 %v1548_v23, %v1547_v17  ;;  %1481 = vst [vmem:[%s3038_s20 + $0x38] sm:$0xff] %v1417_v24  ;;  %v1559_v31 = vadd.f32 %v1417_v24, %v1416_v18  ;;  %v1125_v32 = vadd.f32 %v2403_v28, %v2331_v25  ;;  %v1116_v33 = vpop.f32.mrb[9].mxu0  ;;  %v2332_v34 = vpop.f32.mrb[10].mxu1 }
 0x106   : > { %v1542_v35 = vadd.f32 %v1541_v26, %v1540_v20  ;;  %1479 = vst [vmem:[%s3038_s20 + $0x28] sm:$0xff] %v1415_v27  ;;  %v1552_v36 = vadd.f32 %v1415_v27, %v1414_v21  ;;  %v1117_v37 = vadd.f32 %v1116_v33, %v731_v29  ;;  %v2404_v38 = vpop.f32.mrb[10].mxu0  ;;  %v734_v39 = vpop.f32.mrb[11].mxu1 }
 0x107   : > { %v1550_v40 = vrot.slane %v1549_v30, 1  ;;  %v1560_v42 = vrot.slane %v1559_v31, 4  ;;  %v1356_v43 = vadd.f32 %v3031_v41, %v1125_v32  ;;  %v1128_v44 = vadd.f32 %v2404_v38, %v2332_v34  ;;  %v1119_v45 = vpop.f32.mrb[11].mxu0  ;;  %v1842_v32 = vld [vmem:[%s3359_s5 + $0x78] sm:$0xff] }
 0x108   : > { %v1543_v46 = vrot.slane %v1542_v35, 1  ;;  %v1553_v47 = vrot.slane %v1552_v36, 4  ;;  %v1354_v48 = vadd.f32 %v3031_v41, %v1117_v37  ;;  %v1120_v49 = vadd.f32 %v1119_v45, %v734_v39 }
 0x109   : > { %v1551_v52 = vadd.f32 %v1550_v40, %v1549_v30  ;;  %v1561_v53 = vadd.f32 %v1560_v42, %v1559_v31  ;;  %v1420_v54 = vmax.f32 %v1356_v43, 0.0  ;;  %v1357_v55 = vadd.f32 %v3031_v41, %v1128_v44  ;;  %v1841_v31 = vld [vmem:[%s3359_s5 + $0x70] sm:$0xff] }
 0x10a   : > { %v1544_v56 = vadd.f32 %v1543_v46, %v1542_v35  ;;  %v1554_v57 = vadd.f32 %v1553_v47, %v1552_v36  ;;  %v1418_v58 = vmax.f32 %v1354_v48, 0.0  ;;  %v1355_v59 = vadd.f32 %v3031_v41, %v1120_v49 }
 0x10b   : > { %v1764_v60 = vmul.f32 0.0625, %v1551_v52  ;;  %v1562_v61 = vrot.slane %v1561_v53, 2  ;;  %1484 = vst [vmem:[%s3038_s20 + $0x50] sm:$0xff] %v1420_v54  ;;  %v1421_v62 = vmax.f32 %v1357_v55, 0.0  ;;  %v2335_v63 = vpop.f32.mrb[12].mxu1  ;;  %v1850_v47 = vpack.c.bf16 %v1842_v32, %v1841_v31 }
 0x10c   : > { %v1763_v1 = vmul.f32 0.0625, %v1544_v56  ;;  %v1555_v2 = vrot.slane %v1554_v57, 2  ;;  %1482 = vst [vmem:[%s3038_s20 + $0x40] sm:$0xff] %v1418_v58  ;;  %v1419_v3 = vmax.f32 %v1355_v59, 0.0  ;;  %v2407_v4 = vpop.f32.mrb[12].mxu0  ;;  %v747_v5 = vpop.f32.mrb[13].mxu1 }
 0x10d   : > { %v1796_v6 = vpack.c.bf16 %v1764_v60, %v1764_v60  ;;  %v1563_v7 = vadd.f32 %v1562_v61, %v1561_v53  ;;  %1485 = vst [vmem:[%s3038_s20 + $0x58] sm:$0xff] %v1421_v62  ;;  %v1573_v8 = vadd.f32 %v1421_v62, %v1420_v54  ;;  %v1141_v9 = vadd.f32 %v2407_v4, %v2335_v63  ;;  %v1132_v10 = vpop.f32.mrb[13].mxu0  ;;  %v2336_v11 = vpop.f32.mrb[14].mxu1 }
 0x10e   : > { %v1795_v12 = vpack.c.bf16 %v1763_v1, %v1763_v1  ;;  %v1556_v13 = vadd.f32 %v1555_v2, %v1554_v57  ;;  %1483 = vst [vmem:[%s3038_s20 + $0x48] sm:$0xff] %v1419_v3  ;;  %v1566_v14 = vadd.f32 %v1419_v3, %v1418_v58  ;;  %v1133_v15 = vadd.f32 %v1132_v10, %v747_v5  ;;  %v2408_v16 = vpop.f32.mrb[14].mxu0  ;;  %v750_v17 = vpop.f32.mrb[15].mxu1 }
 0x10f   : > { %v1891_v18 = vunpack.c.l.b16 %v1796_v6  ;;  %v1564_v19 = vrot.slane %v1563_v7, 1  ;;  %v1574_v20 = vrot.slane %v1573_v8, 4  ;;  %v1360_v21 = vadd.f32 %v3031_v41, %v1141_v9  ;;  %v1135_v22 = vpop.f32.mrb[15].mxu0  ;;  %2471 = vmatprep.subr.bf16.mxu1 %v1850_v47 }
 0x110   : > { %v1890_v23 = vunpack.c.l.b16 %v1795_v12  ;;  %v1557_v24 = vrot.slane %v1556_v13, 1  ;;  %v1567_v25 = vrot.slane %v1566_v14, 4  ;;  %v1358_v26 = vadd.f32 %v3031_v41, %v1133_v15  ;;  %2472 = vmatpush3.bf16.msra.mxu1 %v1850_v47 }
 0x111   : > { %v1565_v27 = vadd.f32 %v1564_v19, %v1563_v7  ;;  %v1575_v28 = vadd.f32 %v1574_v20, %v1573_v8  ;;  %v1424_v29 = vmax.f32 %v1360_v21, 0.0  ;;  %v1144_v30 = vadd.f32 %v2408_v16, %v2336_v11 }
 0x112   : > { %v1923_v33 = vsel %vm1922_vm1, %v1891_v18, %v1890_v23  ;;  %v1558_v34 = vadd.f32 %v1557_v24, %v1556_v13  ;;  %v1568_v35 = vadd.f32 %v1567_v25, %v1566_v14  ;;  %v1422_v36 = vmax.f32 %v1358_v26, 0.0 }
 0x113   : > { %v3084_v37 = vmul.f32 0.0625, %v1565_v27  ;;  %v1576_v38 = vrot.slane %v1575_v28, 2  ;;  %1488 = vst [vmem:[%s3038_s20 + $0x70] sm:$0xff] %v1424_v29  ;;  %v1361_v39 = vadd.f32 %v3031_v41, %v1144_v30  ;;  %v1136_v40 = vadd.f32 %v1135_v22, %v750_v17  ;;  %v2339_v42 = vpop.f32.mrb[16].mxu1 }
 0x114   : > { %v1765_v43 = vmul.f32 0.0625, %v1558_v34  ;;  %v1569_v44 = vrot.slane %v1568_v35, 2  ;;  %1486 = vst [vmem:[%s3038_s20 + $0x60] sm:$0xff] %v1422_v36  ;;  %v2411_v45 = vpop.f32.mrb[16].mxu0  ;;  %v763_v46 = vpop.f32.mrb[17].mxu1 }
 0x115   : > { %v1577_v48 = vadd.f32 %v1576_v38, %v1575_v28  ;;  %v1425_v49 = vmax.f32 %v1361_v39, 0.0  ;;  %v1359_v50 = vadd.f32 %v3031_v41, %v1136_v40  ;;  %v1148_v51 = vpop.f32.mrb[17].mxu0  ;;  %v2340_v52 = vpop.f32.mrb[18].mxu1  ;;  %v1157_v55 = vadd.f32 %v2411_v45, %v2339_v42 }
 0x116   : > { %v1797_v53 = vpack.c.bf16 %v1765_v43, %v1765_v43  ;;  %v1570_v54 = vadd.f32 %v1569_v44, %v1568_v35  ;;  %v1149_v56 = vadd.f32 %v1148_v51, %v763_v46  ;;  %v2412_v57 = vpop.f32.mrb[18].mxu0  ;;  %v766_v58 = vpop.f32.mrb[19].mxu1  ;;  %v1798_v59 = vpack.c.bf16 %v3084_v37, %v3084_v37 }
 0x117   : > { %v1578_v60 = vrot.slane %v1577_v48, 1  ;;  %1489 = vst [vmem:[%s3038_s20 + $0x78] sm:$0xff] %v1425_v49  ;;  %v1587_v61 = vadd.f32 %v1425_v49, %v1424_v29  ;;  %v1423_v62 = vmax.f32 %v1359_v50, 0.0  ;;  %v1151_v63 = vpop.f32.mrb[19].mxu0  ;;  %v1364_v2 = vadd.f32 %v3031_v41, %v1157_v55 }
 0x118   : > { %v1892_v0 = vunpack.c.l.b16 %v1797_v53  ;;  %v1571_v1 = vrot.slane %v1570_v54, 1  ;;  %v1362_v3 = vadd.f32 %v3031_v41, %v1149_v56  ;;  %v1160_v7 = vadd.f32 %v2412_v57, %v2340_v52 }
 0x119   : > { %v1579_v4 = vadd.f32 %v1578_v60, %v1577_v48  ;;  %v1588_v5 = vrot.slane %v1587_v61, 4  ;;  %1487 = vst [vmem:[%s3038_s20 + $0x68] sm:$0xff] %v1423_v62  ;;  %v1580_v6 = vadd.f32 %v1423_v62, %v1422_v36  ;;  %v1428_v9 = vmax.f32 %v1364_v2, 0.0 }
 0x11a   : > { %v1572_v8 = vadd.f32 %v1571_v1, %v1570_v54  ;;  %v1426_v10 = vmax.f32 %v1362_v3, 0.0  ;;  %v1152_v11 = vadd.f32 %v1151_v63, %v766_v58  ;;  %v1365_v15 = vadd.f32 %v3031_v41, %v1160_v7 }
 0x11b   : > { %v1768_v12 = vmul.f32 0.0625, %v1579_v4  ;;  %v1589_v13 = vadd.f32 %v1588_v5, %v1587_v61  ;;  %v1581_v14 = vrot.slane %v1580_v6, 4  ;;  %v2343_v16 = vpop.f32.mrb[20].mxu1  ;;  %1492 = vst [vmem:[%s3038_s20 + $0x90] sm:$0xff] %v1428_v9  ;;  %v1925_v21 = vsel %vm1924_vm2, %v1892_v0, %v1923_v33 }
 0x11c   : > { %v3097_v17 = vmul.f32 0.0625, %v1572_v8  ;;  %1490 = vst [vmem:[%s3038_s20 + $0x80] sm:$0xff] %v1426_v10  ;;  %v1363_v18 = vadd.f32 %v3031_v41, %v1152_v11  ;;  %v2415_v19 = vpop.f32.mrb[20].mxu0  ;;  %v779_v20 = vpop.f32.mrb[21].mxu1  ;;  %v1429_v24 = vmax.f32 %v1365_v15, 0.0  ;;  %v1893_v27 = vunpack.c.l.b16 %v1798_v59 }
 0x11d   : > { %v1590_v22 = vrot.slane %v1589_v13, 2  ;;  %v1582_v23 = vadd.f32 %v1581_v14, %v1580_v6  ;;  %v1164_v25 = vpop.f32.mrb[21].mxu0  ;;  %v2344_v26 = vpop.f32.mrb[22].mxu1  ;;  %v1173_v29 = vadd.f32 %v2415_v19, %v2343_v16  ;;  %v1800_v34 = vpack.c.bf16 %v1768_v12, %v1768_v12 }
 0x11e   : > { %v1427_v28 = vmax.f32 %v1363_v18, 0.0  ;;  %v1165_v30 = vadd.f32 %v1164_v25, %v779_v20  ;;  %v2416_v31 = vpop.f32.mrb[22].mxu0  ;;  %v782_v32 = vpop.f32.mrb[23].mxu1  ;;  %1493 = vst [vmem:[%s3038_s20 + $0x98] sm:$0xff] %v1429_v24  ;;  %v1601_v37 = vadd.f32 %v1429_v24, %v1428_v9  ;;  %v1799_v38 = vpack.c.bf16 %v3097_v17, %v3097_v17 }
 0x11f   : > { %v1591_v35 = vadd.f32 %v1590_v22, %v1589_v13  ;;  %v1583_v36 = vrot.slane %v1582_v23, 2  ;;  %v1167_v33 = vpop.f32.mrb[23].mxu0  ;;  %v1368_v40 = vadd.f32 %v3031_v41, %v1173_v29  ;;  %v1176_v46 = vadd.f32 %v2416_v31, %v2344_v26 }
 0x120   : > { %1491 = vst [vmem:[%s3038_s20 + $0x88] sm:$0xff] %v1427_v28  ;;  %v1594_v39 = vadd.f32 %v1427_v28, %v1426_v10  ;;  %v1366_v42 = vadd.f32 %v3031_v41, %v1165_v30  ;;  %v1602_v45 = vrot.slane %v1601_v37, 4  ;;  %v1168_v50 = vadd.f32 %v1167_v33, %v782_v32 }
 0x121   : > { %v1592_v43 = vrot.slane %v1591_v35, 1  ;;  %v1584_v44 = vadd.f32 %v1583_v36, %v1582_v23  ;;  %v1432_v48 = vmax.f32 %v1368_v40, 0.0  ;;  %v1369_v53 = vadd.f32 %v3031_v41, %v1176_v46 }
 0x122   : > { %v1595_v47 = vrot.slane %v1594_v39, 4  ;;  %v1430_v49 = vmax.f32 %v1366_v42, 0.0  ;;  %v1603_v52 = vadd.f32 %v1602_v45, %v1601_v37  ;;  %v3110_v56 = vunpack.c.l.b16 %v1800_v34 }
 0x123   : > { %v1585_v51 = vrot.slane %v1584_v44, 1  ;;  %v2347_v54 = vpop.f32.mrb[24].mxu1  ;;  %v1593_v55 = vadd.f32 %v1592_v43, %v1591_v35  ;;  %1496 = vst [vmem:[%s3038_s20 + $0xb0] sm:$0xff] %v1432_v48  ;;  %v1367_v58 = vadd.f32 %v3031_v41, %v1168_v50  ;;  %v3116_v61 = vsel %vm1926_vm3, %v1893_v27, %v1925_v21 }
 0x124   : > { %v1596_v57 = vadd.f32 %v1595_v47, %v1594_v39  ;;  %1494 = vst [vmem:[%s3038_s20 + $0xa0] sm:$0xff] %v1430_v49  ;;  %v2419_v59 = vpop.f32.mrb[24].mxu0  ;;  %v795_v60 = vpop.f32.mrb[25].mxu1  ;;  %v1604_v63 = vrot.slane %v1603_v52, 2  ;;  %v1433_v0 = vmax.f32 %v1369_v53, 0.0  ;;  %v3126_v19 = vunpack.c.l.b16 %v1799_v38 }
 0x125   : > { %v1586_v62 = vadd.f32 %v1585_v51, %v1584_v44  ;;  %v1189_v1 = vadd.f32 %v2419_v59, %v2347_v54  ;;  %v1180_v2 = vpop.f32.mrb[25].mxu0  ;;  %v2348_v3 = vpop.f32.mrb[26].mxu1  ;;  %v1431_v5 = vmax.f32 %v1367_v58, 0.0  ;;  %v3118_v9 = vmul.f32 0.0625, %v1593_v55 }
 0x126   : > { %v1597_v4 = vrot.slane %v1596_v57, 2  ;;  %v1181_v6 = vadd.f32 %v1180_v2, %v795_v60  ;;  %v2420_v7 = vpop.f32.mrb[26].mxu0  ;;  %v798_v8 = vpop.f32.mrb[27].mxu1  ;;  %v1605_v11 = vadd.f32 %v1604_v63, %v1603_v52  ;;  %1497 = vst [vmem:[%s3038_s20 + $0xb8] sm:$0xff] %v1433_v0  ;;  %v1615_v12 = vadd.f32 %v1433_v0, %v1432_v48 }
 0x127   : > { %v3120_v10 = vmul.f32 0.0625, %v1586_v62  ;;  %v1372_v13 = vadd.f32 %v3031_v41, %v1189_v1  ;;  %v1183_v14 = vpop.f32.mrb[27].mxu0  ;;  %1495 = vst [vmem:[%s3038_s20 + $0xa8] sm:$0xff] %v1431_v5  ;;  %v1608_v16 = vadd.f32 %v1431_v5, %v1430_v49  ;;  %v1192_v18 = vadd.f32 %v2420_v7, %v2348_v3 }
 0x128   : > { %v1598_v15 = vadd.f32 %v1597_v4, %v1596_v57  ;;  %v1370_v17 = vadd.f32 %v3031_v41, %v1181_v6  ;;  %v1606_v20 = vrot.slane %v1605_v11, 1  ;;  %v1616_v21 = vrot.slane %v1615_v12, 4 }
 0x129   : > { %v1436_v22 = vmax.f32 %v1372_v13, 0.0  ;;  %v1609_v24 = vrot.slane %v1608_v16, 4  ;;  %v1373_v26 = vadd.f32 %v3031_v41, %v1192_v18  ;;  %v1801_v27 = vpack.c.bf16 %v3120_v10, %v3120_v10 }
 0x12a   : > { %v1599_v23 = vrot.slane %v1598_v15, 1  ;;  %v1434_v25 = vmax.f32 %v1370_v17, 0.0  ;;  %v1607_v28 = vadd.f32 %v1606_v20, %v1605_v11  ;;  %v1617_v29 = vadd.f32 %v1616_v21, %v1615_v12 }
 0x12b   : > { %1500 = vst [vmem:[%s3038_s20 + $0xd0] sm:$0xff] %v1436_v22  ;;  %v1184_v30 = vadd.f32 %v1183_v14, %v798_v8  ;;  %v2351_v31 = vpop.f32.mrb[28].mxu1  ;;  %v1610_v34 = vadd.f32 %v1609_v24, %v1608_v16  ;;  %v1437_v35 = vmax.f32 %v1373_v26, 0.0  ;;  %v1802_v33 = vpack.c.bf16 %v3118_v9, %v3118_v9 }
 0x12c   : > { %v1600_v32 = vadd.f32 %v1599_v23, %v1598_v15  ;;  %1498 = vst [vmem:[%s3038_s20 + $0xc0] sm:$0xff] %v1434_v25  ;;  %v2423_v36 = vpop.f32.mrb[28].mxu0  ;;  %v811_v37 = vpop.f32.mrb[29].mxu1  ;;  %v1772_v38 = vmul.f32 0.0625, %v1607_v28  ;;  %v1618_v39 = vrot.slane %v1617_v29, 2  ;;  %v3143_v16 = vunpack.c.l.b16 %v1801_v27 }
 0x12d   : > { %v1371_v40 = vadd.f32 %v3031_v41, %v1184_v30  ;;  %v1205_v42 = vadd.f32 %v2423_v36, %v2351_v31  ;;  %v1196_v43 = vpop.f32.mrb[29].mxu0  ;;  %v2352_v44 = vpop.f32.mrb[30].mxu1  ;;  %v1611_v46 = vrot.slane %v1610_v34, 2  ;;  %1501 = vst [vmem:[%s3038_s20 + $0xd8] sm:$0xff] %v1437_v35  ;;  %v1629_v47 = vadd.f32 %v1437_v35, %v1436_v22 }
 0x12e   : > { %v1771_v45 = vmul.f32 0.0625, %v1600_v32  ;;  %v1197_v48 = vadd.f32 %v1196_v43, %v811_v37  ;;  %v2424_v49 = vpop.f32.mrb[30].mxu0  ;;  %v814_v50 = vpop.f32.mrb[31].mxu1  ;;  %v1804_v51 = vpack.c.bf16 %v1772_v38, %v1772_v38  ;;  %v1619_v52 = vadd.f32 %v1618_v39, %v1617_v29 }
 0x12f   : > { %v1435_v53 = vmax.f32 %v1371_v40, 0.0  ;;  %v1376_v54 = vadd.f32 %v3031_v41, %v1205_v42  ;;  %v1199_v55 = vpop.f32.mrb[31].mxu0  ;;  %v1612_v58 = vadd.f32 %v1611_v46, %v1610_v34  ;;  %v1630_v59 = vrot.slane %v1629_v47, 4 }
 0x130   : > { %v1803_v57 = vpack.c.bf16 %v1771_v45, %v1771_v45  ;;  %v1374_v60 = vadd.f32 %v3031_v41, %v1197_v48  ;;  %v1899_v62 = vunpack.c.l.b16 %v1804_v51  ;;  %v1620_v63 = vrot.slane %v1619_v52, 1 }
 0x131   : > { %1499 = vst [vmem:[%s3038_s20 + $0xc8] sm:$0xff] %v1435_v53  ;;  %v1622_v0 = vadd.f32 %v1435_v53, %v1434_v25  ;;  %v1440_v1 = vmax.f32 %v1376_v54, 0.0  ;;  %v1613_v3 = vrot.slane %v1612_v58, 1  ;;  %v1631_v4 = vadd.f32 %v1630_v59, %v1629_v47 }
 0x132   : > { %v1898_v2 = vunpack.c.l.b16 %v1803_v57  ;;  %v1438_v5 = vmax.f32 %v1374_v60, 0.0  ;;  %v1621_v6 = vadd.f32 %v1620_v63, %v1619_v52  ;;  %v1208_v8 = vadd.f32 %v2424_v49, %v2352_v44 }
 0x133   : > { %v1623_v7 = vrot.slane %v1622_v0, 4  ;;  %1504 = vst [vmem:[%s3038_s20 + $0xf0] sm:$0xff] %v1440_v1  ;;  %v1200_v9 = vadd.f32 %v1199_v55, %v814_v50  ;;  %v2355_v10 = vpop.f32.mrb[32].mxu1  ;;  %v1614_v12 = vadd.f32 %v1613_v3, %v1612_v58  ;;  %v1632_v13 = vrot.slane %v1631_v4, 2 }
 0x134   : > { %v1936_v11 = vsel %vm1922_vm1, %v1899_v62, %v1898_v2  ;;  %1502 = vst [vmem:[%s3038_s20 + $0xe0] sm:$0xff] %v1438_v5  ;;  %v2427_v14 = vpop.f32.mrb[32].mxu0  ;;  %v827_v15 = vpop.f32.mrb[33].mxu1  ;;  %v1774_v17 = vmul.f32 0.0625, %v1621_v6  ;;  %v1377_v20 = vadd.f32 %v3031_v41, %v1208_v8  ;;  %v3147_v35 = vunpack.c.l.b16 %v1802_v33 }
 0x135   : > { %v1624_v18 = vadd.f32 %v1623_v7, %v1622_v0  ;;  %v1375_v21 = vadd.f32 %v3031_v41, %v1200_v9  ;;  %v1212_v22 = vpop.f32.mrb[33].mxu0  ;;  %v2356_v23 = vpop.f32.mrb[34].mxu1  ;;  %v1773_v24 = vmul.f32 0.0625, %v1614_v12  ;;  %v1633_v25 = vadd.f32 %v1632_v13, %v1631_v4 }
 0x136   : > { %v1221_v26 = vadd.f32 %v2427_v14, %v2355_v10  ;;  %v1213_v28 = vadd.f32 %v1212_v22, %v827_v15  ;;  %v2428_v29 = vpop.f32.mrb[34].mxu0  ;;  %v830_v30 = vpop.f32.mrb[35].mxu1  ;;  %v1441_v32 = vmax.f32 %v1377_v20, 0.0  ;;  %v1806_v40 = vpack.c.bf16 %v1774_v17, %v1774_v17 }
 0x137   : > { %v1625_v31 = vrot.slane %v1624_v18, 2  ;;  %v1439_v27 = vmax.f32 %v1375_v21, 0.0  ;;  %v1215_v34 = vpop.f32.mrb[35].mxu0  ;;  %v1805_v36 = vpack.c.bf16 %v1773_v24, %v1773_v24  ;;  %v1634_v37 = vrot.slane %v1633_v25, 1 }
 0x138   : > { %v1380_v38 = vadd.f32 %v3031_v41, %v1221_v26  ;;  %v1378_v39 = vadd.f32 %v3031_v41, %v1213_v28  ;;  %1505 = vst [vmem:[%s3038_s20 + $0xf8] sm:$0xff] %v1441_v32  ;;  %v1643_v43 = vadd.f32 %v1441_v32, %v1440_v1  ;;  %v1224_v51 = vadd.f32 %v2428_v29, %v2356_v23 }
 0x139   : > { %v1626_v42 = vadd.f32 %v1625_v31, %v1624_v18  ;;  %1503 = vst [vmem:[%s3038_s20 + $0xe8] sm:$0xff] %v1439_v27  ;;  %v1636_v44 = vadd.f32 %v1439_v27, %v1438_v5  ;;  %v1900_v45 = vunpack.c.l.b16 %v1805_v36  ;;  %v1635_v46 = vadd.f32 %v1634_v37, %v1633_v25 }
 0x13a   : > { %v1444_v47 = vmax.f32 %v1380_v38, 0.0  ;;  %v1442_v33 = vmax.f32 %v1378_v39, 0.0  ;;  %v1644_v49 = vrot.slane %v1643_v43, 4  ;;  %v1216_v54 = vadd.f32 %v1215_v34, %v830_v30 }
 0x13b   : > { %v1627_v48 = vrot.slane %v1626_v42, 1  ;;  %v1637_v50 = vrot.slane %v1636_v44, 4  ;;  %v2359_v52 = vpop.f32.mrb[36].mxu1  ;;  %v1776_v53 = vmul.f32 0.0625, %v1635_v46  ;;  %v1929_v58 = vsel %vm1928_vm4, %v3126_v19, %v3116_v61 }
 0x13c   : > { %1508 = vst [vmem:[%s3038_s20 + $0x110] sm:$0xff] %v1444_v47  ;;  %1506 = vst [vmem:[%s3038_s20 + $0x100] sm:$0xff] %v1442_v33  ;;  %v2431_v55 = vpop.f32.mrb[36].mxu0  ;;  %v843_v57 = vpop.f32.mrb[37].mxu1  ;;  %v3159_v59 = vsel %vm1924_vm2, %v1900_v45, %v1936_v11  ;;  %v1645_v62 = vadd.f32 %v1644_v49, %v1643_v43  ;;  %v1381_v0 = vadd.f32 %v3031_v41, %v1224_v51  ;;  %v3163_v12 = vunpack.c.l.b16 %v1806_v40 }
 0x13d   : > { %v1628_v60 = vadd.f32 %v1627_v48, %v1626_v42  ;;  %v1638_v63 = vadd.f32 %v1637_v50, %v1636_v44  ;;  %v1228_v1 = vpop.f32.mrb[37].mxu0  ;;  %v2360_v2 = vpop.f32.mrb[38].mxu1  ;;  %v1808_v3 = vpack.c.bf16 %v1776_v53, %v1776_v53  ;;  %v1379_v4 = vadd.f32 %v3031_v41, %v1216_v54 }
 0x13e   : > { %v1237_v5 = vadd.f32 %v2431_v55, %v2359_v52  ;;  %v1229_v6 = vadd.f32 %v1228_v1, %v843_v57  ;;  %v2432_v7 = vpop.f32.mrb[38].mxu0  ;;  %v846_v8 = vpop.f32.mrb[39].mxu1  ;;  %v1646_v19 = vrot.slane %v1645_v62, 2  ;;  %v1445_v10 = vmax.f32 %v1381_v0, 0.0 }
 0x13f   : > { %v1775_v61 = vmul.f32 0.0625, %v1628_v60  ;;  %v1639_v9 = vrot.slane %v1638_v63, 2  ;;  %v1231_v11 = vpop.f32.mrb[39].mxu0  ;;  %v1443_v13 = vmax.f32 %v1379_v4, 0.0  ;;  %v3167_v17 = vunpack.c.l.b16 %v1808_v3 }
 0x140   : > { %v1384_v14 = vadd.f32 %v3031_v41, %v1237_v5  ;;  %v1382_v15 = vadd.f32 %v3031_v41, %v1229_v6  ;;  %v1647_v18 = vadd.f32 %v1646_v19, %v1645_v62  ;;  %1509 = vst [vmem:[%s3038_s20 + $0x118] sm:$0xff] %v1445_v10  ;;  %v1657_v21 = vadd.f32 %v1445_v10, %v1444_v47 }
 0x141   : > { %v1640_v20 = vadd.f32 %v1639_v9, %v1638_v63  ;;  %1507 = vst [vmem:[%s3038_s20 + $0x108] sm:$0xff] %v1443_v13  ;;  %v1650_v22 = vadd.f32 %v1443_v13, %v1442_v33  ;;  %v1240_v25 = vadd.f32 %v2432_v7, %v2360_v2  ;;  %v1807_v26 = vpack.c.bf16 %v1775_v61, %v1775_v61 }
 0x142   : > { %v1448_v23 = vmax.f32 %v1384_v14, 0.0  ;;  %v1446_v24 = vmax.f32 %v1382_v15, 0.0  ;;  %v1648_v28 = vrot.slane %v1647_v18, 1  ;;  %v1658_v30 = vrot.slane %v1657_v21, 4 }
 0x143   : > { %v1641_v29 = vrot.slane %v1640_v20, 1  ;;  %v2363_v31 = vpop.f32.mrb[40].mxu1  ;;  %v1651_v32 = vrot.slane %v1650_v22, 4  ;;  %v1385_v27 = vadd.f32 %v3031_v41, %v1240_v25  ;;  %v1232_v34 = vadd.f32 %v1231_v11, %v846_v8 }
 0x144   : > { %1512 = vst [vmem:[%s3038_s20 + $0x130] sm:$0xff] %v1448_v23  ;;  %1510 = vst [vmem:[%s3038_s20 + $0x120] sm:$0xff] %v1446_v24  ;;  %v2435_v36 = vpop.f32.mrb[40].mxu0  ;;  %v859_v37 = vpop.f32.mrb[41].mxu1  ;;  %v3176_v38 = vsel %vm1930_vm5, %v3110_v56, %v1929_v58  ;;  %v1659_v40 = vadd.f32 %v1658_v30, %v1657_v21  ;;  %v1649_v45 = vadd.f32 %v1648_v28, %v1647_v18  ;;  %v3184_v62 = vunpack.c.l.b16 %v1807_v26 }
 0x145   : > { %v1642_v39 = vadd.f32 %v1641_v29, %v1640_v20  ;;  %v1253_v42 = vadd.f32 %v2435_v36, %v2363_v31  ;;  %v1244_v43 = vpop.f32.mrb[41].mxu0  ;;  %v2364_v44 = vpop.f32.mrb[42].mxu1  ;;  %v1652_v46 = vadd.f32 %v1651_v32, %v1650_v22  ;;  %v1449_v47 = vmax.f32 %v1385_v27, 0.0 }
 0x146   : > { %v1383_v33 = vadd.f32 %v3031_v41, %v1232_v34  ;;  %v1245_v48 = vadd.f32 %v1244_v43, %v859_v37  ;;  %v2436_v49 = vpop.f32.mrb[42].mxu0  ;;  %v862_v50 = vpop.f32.mrb[43].mxu1  ;;  %v1660_v52 = vrot.slane %v1659_v40, 2  ;;  %v3192_v15 = vmul.f32 0.0625, %v1649_v45 }
 0x147   : > { %v3179_v51 = vmul.f32 0.0625, %v1642_v39  ;;  %v1388_v56 = vadd.f32 %v3031_v41, %v1253_v42  ;;  %v1256_v53 = vadd.f32 %v2436_v49, %v2364_v44  ;;  %v1247_v54 = vpop.f32.mrb[43].mxu0  ;;  %v1653_v55 = vrot.slane %v1652_v46, 2  ;;  %1513 = vst [vmem:[%s3038_s20 + $0x138] sm:$0xff] %v1449_v47 }
 0x148   : > { %v1671_v57 = vadd.f32 %v1449_v47, %v1448_v23  ;;  %v1447_v58 = vmax.f32 %v1383_v33, 0.0  ;;  %v1386_v60 = vadd.f32 %v3031_v41, %v1245_v48  ;;  %v1661_v63 = vadd.f32 %v1660_v52, %v1659_v40 }
 0x149   : > { %v1452_v0 = vmax.f32 %v1388_v56, 0.0  ;;  %v1389_v1 = vadd.f32 %v3031_v41, %v1256_v53  ;;  %v1654_v2 = vadd.f32 %v1653_v55, %v1652_v46  ;;  %v1809_v6 = vpack.c.bf16 %v3179_v51, %v3179_v51 }
 0x14a   : > { %v1672_v3 = vrot.slane %v1671_v57, 4  ;;  %1511 = vst [vmem:[%s3038_s20 + $0x128] sm:$0xff] %v1447_v58  ;;  %v1664_v4 = vadd.f32 %v1447_v58, %v1446_v24  ;;  %v1450_v5 = vmax.f32 %v1386_v60, 0.0  ;;  %v1662_v7 = vrot.slane %v1661_v63, 1 }
 0x14b   : > { %1516 = vst [vmem:[%s3038_s20 + $0x150] sm:$0xff] %v1452_v0  ;;  %v1453_v8 = vmax.f32 %v1389_v1, 0.0  ;;  %v1248_v61 = vadd.f32 %v1247_v54, %v862_v50  ;;  %v2367_v19 = vpop.f32.mrb[44].mxu1  ;;  %v1655_v9 = vrot.slane %v1654_v2, 1  ;;  %v1810_v60 = vpack.c.bf16 %v3192_v15, %v3192_v15 }
 0x14c   : > { %v1673_v10 = vadd.f32 %v1672_v3, %v1671_v57  ;;  %v1665_v11 = vrot.slane %v1664_v4, 4  ;;  %1514 = vst [vmem:[%s3038_s20 + $0x140] sm:$0xff] %v1450_v5  ;;  %v2439_v13 = vpop.f32.mrb[44].mxu0  ;;  %v875_v14 = vpop.f32.mrb[45].mxu1  ;;  %v1663_v18 = vadd.f32 %v1662_v7, %v1661_v63  ;;  %v3211_v3 = vld [vmem:[%s3358_s4] ss:$0 sm:$0xff] }
 0x14d   : > { %1517 = vst [vmem:[%s3038_s20 + $0x158] sm:$0xff] %v1453_v8  ;;  %v1685_v20 = vadd.f32 %v1453_v8, %v1452_v0  ;;  %v1387_v21 = vadd.f32 %v3031_v41, %v1248_v61  ;;  %v1269_v22 = vadd.f32 %v2439_v13, %v2367_v19  ;;  %v1260_v23 = vpop.f32.mrb[45].mxu0  ;;  %v2368_v24 = vpop.f32.mrb[46].mxu1  ;;  %v1656_v25 = vadd.f32 %v1655_v9, %v1654_v2 }
 0x14e   : > { %v1674_v26 = vrot.slane %v1673_v10, 2  ;;  %v1666_v28 = vadd.f32 %v1665_v11, %v1664_v4  ;;  %v1261_v29 = vadd.f32 %v1260_v23, %v875_v14  ;;  %v2440_v30 = vpop.f32.mrb[46].mxu0  ;;  %v878_v31 = vpop.f32.mrb[47].mxu1  ;;  %v1780_v32 = vmul.f32 0.0625, %v1663_v18 }
 0x14f   : > { %v1686_v27 = vrot.slane %v1685_v20, 4  ;;  %v1451_v34 = vmax.f32 %v1387_v21, 0.0  ;;  %v1392_v36 = vadd.f32 %v3031_v41, %v1269_v22  ;;  %v1263_v37 = vpop.f32.mrb[47].mxu0  ;;  %v1779_v39 = vmul.f32 0.0625, %v1656_v25 }
 0x150   : > { %v1675_v40 = vadd.f32 %v1674_v26, %v1673_v10  ;;  %v1667_v42 = vrot.slane %v1666_v28, 2  ;;  %v3198_v43 = vadd.f32 %v3031_v41, %v1261_v29  ;;  %v1812_v44 = vpack.c.bf16 %v1780_v32, %v1780_v32 }
 0x151   : > { %v1687_v45 = vadd.f32 %v1686_v27, %v1685_v20  ;;  %1515 = vst [vmem:[%s3038_s20 + $0x148] sm:$0xff] %v1451_v34  ;;  %v1678_v46 = vadd.f32 %v1451_v34, %v1450_v5  ;;  %v1456_v47 = vmax.f32 %v1392_v36, 0.0  ;;  %v1811_v33 = vpack.c.bf16 %v1779_v39, %v1779_v39 }
 0x152   : > { %v1676_v48 = vrot.slane %v1675_v40, 1  ;;  %v1668_v49 = vadd.f32 %v1667_v42, %v1666_v28  ;;  %v1454_v50 = vmax.f32 %v3198_v43, 0.0  ;;  %v1907_v52 = vunpack.c.l.b16 %v1812_v44 }
 0x153   : > { %v1688_v56 = vrot.slane %v1687_v45, 2  ;;  %v1679_v53 = vrot.slane %v1678_v46, 4  ;;  %1520 = vst [vmem:[%s3038_s20 + $0x170] sm:$0xff] %v1456_v47  ;;  %v1272_v54 = vadd.f32 %v2440_v30, %v2368_v24  ;;  %v2371_v55 = vpop.f32.mrb[48].mxu1  ;;  %v1906_v57 = vunpack.c.l.b16 %v1811_v33 }
 0x154   : > { %v1677_v41 = vadd.f32 %v1676_v48, %v1675_v40  ;;  %v1669_v58 = vrot.slane %v1668_v49, 1  ;;  %1518 = vst [vmem:[%s3038_s20 + $0x160] sm:$0xff] %v1454_v50  ;;  %v2443_v63 = vpop.f32.mrb[48].mxu0  ;;  %v891_v0 = vpop.f32.mrb[49].mxu1  ;;  %v1933_v5 = vsel %vm1932_vm6, %v3143_v16, %v3176_v38  ;;  %v1904_v10 = vunpack.c.l.b16 %v1809_v6 }
 0x155   : > { %v1689_v1 = vadd.f32 %v1688_v56, %v1687_v45  ;;  %v1680_v2 = vadd.f32 %v1679_v53, %v1678_v46  ;;  %v1393_v4 = vadd.f32 %v3211_v3, %v1272_v54  ;;  %v1276_v7 = vpop.f32.mrb[49].mxu0  ;;  %v2372_v8 = vpop.f32.mrb[50].mxu1  ;;  %v1943_v61 = vsel %vm1922_vm1, %v1907_v52, %v1906_v57 }
 0x156   : > { %v1782_v19 = vmul.f32 0.0625, %v1677_v41  ;;  %v1670_v9 = vadd.f32 %v1669_v58, %v1668_v49  ;;  %v2444_v11 = vpop.f32.mrb[50].mxu0  ;;  %v894_v13 = vpop.f32.mrb[51].mxu1  ;;  %v1935_v20 = vsel %vm1934_vm7, %v3147_v35, %v1933_v5  ;;  %v1905_v21 = vunpack.c.l.b16 %v1810_v60 }
 0x157   : > { %v1690_v14 = vrot.slane %v1689_v1, 1  ;;  %v1681_v15 = vrot.slane %v1680_v2, 2  ;;  %v1457_v18 = vmax.f32 %v1393_v4, 0.0  ;;  %v1279_v16 = vpop.f32.mrb[51].mxu0  ;;  %v1938_v22 = vsel %vm1926_vm3, %v3163_v12, %v3159_v59 }
 0x158   : > { %v1781_v38 = vmul.f32 0.0625, %v1670_v9  ;;  %v1264_v23 = vadd.f32 %v1263_v37, %v878_v31  ;;  %v1939_v6 = vsel %vm1928_vm4, %v3184_v62, %v1938_v22  ;;  %v1814_v26 = vpack.c.bf16 %v1782_v19, %v1782_v19 }
 0x159   : > { %v1691_v24 = vadd.f32 %v1690_v14, %v1689_v1  ;;  %v1682_v25 = vadd.f32 %v1681_v15, %v1680_v2  ;;  %1521 = vst [vmem:[%s3038_s20 + $0x178] sm:$0xff] %v1457_v18  ;;  %v1699_v51 = vadd.f32 %v1457_v18, %v1456_v47  ;;  %v1940_v35 = vsel %vm1930_vm5, %v3167_v17, %v1939_v6 }
 0x15a   : > { %v1813_v28 = vpack.c.bf16 %v1781_v38, %v1781_v38  ;;  %v1391_v29 = vadd.f32 %v3211_v3, %v1264_v23  ;;  %v1941_v59 = vsel %vm1932_vm6, %v1904_v10, %v1940_v35  ;;  %v1285_v37 = vadd.f32 %v2443_v63, %v2371_v55 }
 0x15b   : > { %v1784_v30 = vmul.f32 0.0625, %v1691_v24  ;;  %v1683_v32 = vrot.slane %v1682_v25, 1  ;;  %v1700_v27 = vrot.slane %v1699_v51, 4  ;;  %v2375_v12 = vpop.f32.mrb[52].mxu1  ;;  %v1942_v34 = vsel %vm1934_vm7, %v1905_v21, %v1941_v59 }
 0x15c   : > { %v1908_v31 = vunpack.c.l.b16 %v1813_v28  ;;  %v1455_v36 = vmax.f32 %v1391_v29, 0.0  ;;  %v2447_v62 = vpop.f32.mrb[52].mxu0  ;;  %v907_v39 = vpop.f32.mrb[53].mxu1  ;;  %v1957_v17 = vpack.c.b16 %v1942_v34, %v1935_v20  ;;  %v1396_v48 = vadd.f32 %v3211_v3, %v1285_v37 }
 0x15d   : > { %v1816_v40 = vpack.c.bf16 %v1784_v30, %v1784_v30  ;;  %v1684_v42 = vadd.f32 %v1683_v32, %v1682_v25  ;;  %v1701_v44 = vadd.f32 %v1700_v27, %v1699_v51  ;;  %v1292_v45 = vpop.f32.mrb[53].mxu0  ;;  %v2376_v46 = vpop.f32.mrb[54].mxu1  ;;  %v1277_v49 = vadd.f32 %v1276_v7, %v891_v0 }
 0x15e   : > { %v3235_v47 = vsel %vm1924_vm2, %v1908_v31, %v1943_v61  ;;  %1519 = vst [vmem:[%s3038_s20 + $0x168] sm:$0xff] %v1455_v36  ;;  %v1692_v33 = vadd.f32 %v1455_v36, %v1454_v50  ;;  %v2448_v52 = vpop.f32.mrb[54].mxu0  ;;  %v910_v56 = vpop.f32.mrb[55].mxu1  ;;  %v3241_v53 = vunpack.c.l.b16 %v1814_v26  ;;  %2473 = vmatprep.mubr.bf16.mxu1 %v1957_v17  ;;  %v1288_v57 = vadd.f32 %v2444_v11, %v2372_v8 }
 0x15f   : > { %v1783_v54 = vmul.f32 0.0625, %v1684_v42  ;;  %v1702_v55 = vrot.slane %v1701_v44, 2  ;;  %v1295_v41 = vpop.f32.mrb[55].mxu0  ;;  %v1460_v60 = vmax.f32 %v1396_v48, 0.0  ;;  %v1394_v63 = vadd.f32 %v3211_v3, %v1277_v49 }
 0x160   : > { %v1693_v58 = vrot.slane %v1692_v33, 4  ;;  %v1280_v1 = vadd.f32 %v1279_v16, %v894_v13  ;;  %v3244_v43 = vunpack.c.l.b16 %v1816_v40  ;;  %v1397_v0 = vadd.f32 %v3211_v3, %v1288_v57 }
 0x161   : > { %v1703_v50 = vadd.f32 %v1702_v55, %v1701_v44  ;;  %v1301_v2 = vadd.f32 %v2447_v62, %v2375_v12  ;;  %1524 = vst [vmem:[%s3038_s20 + $0x190] sm:$0xff] %v1460_v60  ;;  %v1458_v5 = vmax.f32 %v1394_v63, 0.0  ;;  %v1293_v8 = vadd.f32 %v1292_v45, %v907_v39 }
 0x162   : > { %v1694_v4 = vadd.f32 %v1693_v58, %v1692_v33  ;;  %v1395_v7 = vadd.f32 %v3211_v3, %v1280_v1  ;;  %v1815_v61 = vpack.c.bf16 %v1783_v54, %v1783_v54  ;;  %v1461_v9 = vmax.f32 %v1397_v0, 0.0 }
 0x163   : > { %v1704_v19 = vrot.slane %v1703_v50, 1  ;;  %v1400_v10 = vadd.f32 %v3211_v3, %v1301_v2  ;;  %v2379_v11 = vpop.f32.mrb[56].mxu1  ;;  %1522 = vst [vmem:[%s3038_s20 + $0x180] sm:$0xff] %v1458_v5  ;;  %v1398_v15 = vadd.f32 %v3211_v3, %v1293_v8  ;;  %v1304_v18 = vadd.f32 %v2448_v52, %v2376_v46 }
 0x164   : > { %v1695_v13 = vrot.slane %v1694_v4, 2  ;;  %v1459_v14 = vmax.f32 %v1395_v7, 0.0  ;;  %v2451_v20 = vpop.f32.mrb[56].mxu0  ;;  %v923_v16 = vpop.f32.mrb[57].mxu1  ;;  %1525 = vst [vmem:[%s3038_s20 + $0x198] sm:$0xff] %v1461_v9  ;;  %v1713_v21 = vadd.f32 %v1461_v9, %v1460_v60  ;;  %v1296_v23 = vadd.f32 %v1295_v41, %v910_v56 }
 0x165   : > { %v1705_v38 = vadd.f32 %v1704_v19, %v1703_v50  ;;  %v1464_v22 = vmax.f32 %v1400_v10, 0.0  ;;  %v1308_v24 = vpop.f32.mrb[57].mxu0  ;;  %v2380_v25 = vpop.f32.mrb[58].mxu1  ;;  %v1462_v26 = vmax.f32 %v1398_v15, 0.0  ;;  %v1401_v28 = vadd.f32 %v3211_v3, %v1304_v18 }
 0x166   : > { %v1696_v51 = vadd.f32 %v1695_v13, %v1694_v4  ;;  %1523 = vst [vmem:[%s3038_s20 + $0x188] sm:$0xff] %v1459_v14  ;;  %v1706_v6 = vadd.f32 %v1459_v14, %v1458_v5  ;;  %v2452_v35 = vpop.f32.mrb[58].mxu0  ;;  %v926_v29 = vpop.f32.mrb[59].mxu1  ;;  %v1714_v32 = vrot.slane %v1713_v21, 4  ;;  %v1399_v27 = vadd.f32 %v3211_v3, %v1296_v23 }
 0x167   : > { %v3255_v30 = vmul.f32 0.0625, %v1705_v38  ;;  %1528 = vst [vmem:[%s3038_s20 + $0x1b0] sm:$0xff] %v1464_v22  ;;  %v1317_v59 = vadd.f32 %v2451_v20, %v2379_v11  ;;  %v1311_v12 = vpop.f32.mrb[59].mxu0  ;;  %1526 = vst [vmem:[%s3038_s20 + $0x1a0] sm:$0xff] %v1462_v26  ;;  %v1465_v36 = vmax.f32 %v1401_v28, 0.0  ;;  %v1309_v37 = vadd.f32 %v1308_v24, %v923_v16 }
 0x168   : > { %v1697_v31 = vrot.slane %v1696_v51, 1  ;;  %v1707_v34 = vrot.slane %v1706_v6, 4  ;;  %v3260_v62 = vunpack.c.l.b16 %v1815_v61  ;;  %v1715_v39 = vadd.f32 %v1714_v32, %v1713_v21 }
 0x169   : > { %v1463_v40 = vmax.f32 %v1399_v27, 0.0  ;;  %v1404_v42 = vadd.f32 %v3211_v3, %v1317_v59  ;;  %1529 = vst [vmem:[%s3038_s20 + $0x1b8] sm:$0xff] %v1465_v36  ;;  %v1727_v45 = vadd.f32 %v1465_v36, %v1464_v22  ;;  %v1402_v46 = vadd.f32 %v3211_v3, %v1309_v37 }
 0x16a   : > { %v1698_v44 = vadd.f32 %v1697_v31, %v1696_v51  ;;  %v1708_v17 = vadd.f32 %v1707_v34, %v1706_v6  ;;  %v1818_v33 = vpack.c.bf16 %v3255_v30, %v3255_v30  ;;  %v1716_v48 = vrot.slane %v1715_v39, 2 }
 0x16b   : > { %1527 = vst [vmem:[%s3038_s20 + $0x1a8] sm:$0xff] %v1463_v40  ;;  %v1720_v49 = vadd.f32 %v1463_v40, %v1462_v26  ;;  %v1468_v52 = vmax.f32 %v1404_v42, 0.0  ;;  %v2383_v56 = vpop.f32.mrb[60].mxu1  ;;  %v1728_v57 = vrot.slane %v1727_v45, 4  ;;  %v1466_v41 = vmax.f32 %v1402_v46, 0.0 }
 0x16c   : > { %v1785_v54 = vmul.f32 0.0625, %v1698_v44  ;;  %v1709_v55 = vrot.slane %v1708_v17, 2  ;;  %v2455_v58 = vpop.f32.mrb[60].mxu0  ;;  %v939_v60 = vpop.f32.mrb[61].mxu1  ;;  %v1717_v63 = vadd.f32 %v1716_v48, %v1715_v39  ;;  %v1320_v50 = vadd.f32 %v2452_v35, %v2380_v25 }
 0x16d   : > { %v1721_v1 = vrot.slane %v1720_v49, 4  ;;  %1532 = vst [vmem:[%s3038_s20 + $0x1d0] sm:$0xff] %v1468_v52  ;;  %v1312_v0 = vadd.f32 %v1311_v12, %v926_v29  ;;  %v1324_v2 = vpop.f32.mrb[61].mxu0  ;;  %v2384_v4 = vpop.f32.mrb[62].mxu1  ;;  %v1729_v8 = vadd.f32 %v1728_v57, %v1727_v45  ;;  %1530 = vst [vmem:[%s3038_s20 + $0x1c0] sm:$0xff] %v1466_v41  ;;  %v1333_v61 = vadd.f32 %v2455_v58, %v2383_v56 }
 0x16e   : > { %v1817_v5 = vpack.c.bf16 %v1785_v54, %v1785_v54  ;;  %v1710_v7 = vadd.f32 %v1709_v55, %v1708_v17  ;;  %v2456_v19 = vpop.f32.mrb[62].mxu0  ;;  %v942_v9 = vpop.f32.mrb[63].mxu1  ;;  %v1718_v10 = vrot.slane %v1717_v63, 1  ;;  %v1405_v13 = vadd.f32 %v3211_v3, %v1320_v50 }
 0x16f   : > { %v1722_v11 = vadd.f32 %v1721_v1, %v1720_v49  ;;  %v1403_v14 = vadd.f32 %v3211_v3, %v1312_v0  ;;  %v1327_v15 = vpop.f32.mrb[63].mxu0  ;;  %v1730_v16 = vrot.slane %v1729_v8, 2  ;;  %v1408_v38 = vadd.f32 %v3211_v3, %v1333_v61 }
 0x170   : > { %v1912_v18 = vunpack.c.l.b16 %v1817_v5  ;;  %v1711_v20 = vrot.slane %v1710_v7, 1  ;;  %v1719_v21 = vadd.f32 %v1718_v10, %v1717_v63  ;;  %v1469_v23 = vmax.f32 %v1405_v13, 0.0 }
 0x171   : > { %v1723_v22 = vrot.slane %v1722_v11, 2  ;;  %v1467_v24 = vmax.f32 %v1403_v14, 0.0  ;;  %v1731_v51 = vadd.f32 %v1730_v16, %v1729_v8  ;;  %v1472_v6 = vmax.f32 %v1408_v38, 0.0 }
 0x172   : > { %v1712_v25 = vadd.f32 %v1711_v20, %v1710_v7  ;;  %v1325_v26 = vadd.f32 %v1324_v2, %v939_v60  ;;  %v1788_v28 = vmul.f32 0.0625, %v1719_v21  ;;  %1533 = vst [vmem:[%s3038_s20 + $0x1d8] sm:$0xff] %v1469_v23  ;;  %v1741_v29 = vadd.f32 %v1469_v23, %v1468_v52 }
 0x173   : > { %v1724_v35 = vadd.f32 %v1723_v22, %v1722_v11  ;;  %1531 = vst [vmem:[%s3038_s20 + $0x1c8] sm:$0xff] %v1467_v24  ;;  %v1734_v32 = vadd.f32 %v1467_v24, %v1466_v41  ;;  %v1732_v59 = vrot.slane %v1731_v51, 1  ;;  %1536 = vst [vmem:[%s3038_s20 + $0x1f0] sm:$0xff] %v1472_v6  ;;  %v1336_v31 = vadd.f32 %v2456_v19, %v2384_v4 }
 0x174   : > { %v1787_v27 = vmul.f32 0.0625, %v1712_v25  ;;  %v1406_v12 = vadd.f32 %v3211_v3, %v1325_v26  ;;  %v1820_v34 = vpack.c.bf16 %v1788_v28, %v1788_v28  ;;  %v1742_v37 = vrot.slane %v1741_v29, 4 }
 0x175   : > { %v1725_v36 = vrot.slane %v1724_v35, 1  ;;  %v1735_v39 = vrot.slane %v1734_v32, 4  ;;  %v1733_v42 = vadd.f32 %v1732_v59, %v1731_v51  ;;  %v1409_v17 = vadd.f32 %v3211_v3, %v1336_v31 }
 0x176   : > { %v1819_v40 = vpack.c.bf16 %v1787_v27, %v1787_v27  ;;  %v1470_v44 = vmax.f32 %v1406_v12, 0.0  ;;  %v1915_v45 = vunpack.c.l.b16 %v1820_v34  ;;  %v1743_v48 = vadd.f32 %v1742_v37, %v1741_v29 }
 0x177   : > { %v1726_v46 = vadd.f32 %v1725_v36, %v1724_v35  ;;  %v1736_v49 = vadd.f32 %v1735_v39, %v1734_v32  ;;  %v1790_v56 = vmul.f32 0.0625, %v1733_v42  ;;  %v1473_v54 = vmax.f32 %v1409_v17, 0.0  ;;  %v2221_v17 = vld [vmem:[%s3360_s6] ss:$0 sm:$0xff] }
 0x178   : > { %v1914_v52 = vunpack.c.l.b16 %v1819_v40  ;;  %1534 = vst [vmem:[%s3038_s20 + $0x1e0] sm:$0xff] %v1470_v44  ;;  %v1328_v55 = vadd.f32 %v1327_v15, %v942_v9  ;;  %v1744_v41 = vrot.slane %v1743_v48, 2  ;;  %v1945_v60 = vsel %vm1926_vm3, %v3241_v53, %v3235_v47 }
 0x179   : > { %v1789_v57 = vmul.f32 0.0625, %v1726_v46  ;;  %v1737_v58 = vrot.slane %v1736_v49, 2  ;;  %v1822_v1 = vpack.c.bf16 %v1790_v56, %v1790_v56  ;;  %1537 = vst [vmem:[%s3038_s20 + $0x1f8] sm:$0xff] %v1473_v54  ;;  %v1755_v50 = vadd.f32 %v1473_v54, %v1472_v6 }
 0x17a   : > { %v1950_v63 = vsel %vm1922_vm1, %v1915_v45, %v1914_v52  ;;  %v1407_v0 = vadd.f32 %v3211_v3, %v1328_v55  ;;  %v1745_v4 = vadd.f32 %v1744_v41, %v1743_v48  ;;  %v1946_v7 = vsel %vm1928_vm4, %v3260_v62, %v1945_v60 }
 0x17b   : > { %v1821_v2 = vpack.c.bf16 %v1789_v57, %v1789_v57  ;;  %v1738_v5 = vadd.f32 %v1737_v58, %v1736_v49  ;;  %v1913_v8 = vunpack.c.l.b16 %v1818_v33  ;;  %v1756_v61 = vrot.slane %v1755_v50, 4 }
 0x17c   : > { %v1471_v47 = vmax.f32 %v1407_v0, 0.0  ;;  %v1947_v53 = vsel %vm1930_vm5, %v3244_v43, %v1946_v7  ;;  %v1746_v9 = vrot.slane %v1745_v4, 1  ;;  %v1917_v11 = vunpack.c.l.b16 %v1822_v1 }
 0x17d   : > { %v1916_v19 = vunpack.c.l.b16 %v1821_v2  ;;  %v1739_v10 = vrot.slane %v1738_v5, 1  ;;  %v1948_v3 = vsel %vm1932_vm6, %v1912_v18, %v1947_v53  ;;  %v1757_v13 = vadd.f32 %v1756_v61, %v1755_v50 }
 0x17e   : > { %1535 = vst [vmem:[%s3038_s20 + $0x1e8] sm:$0xff] %v1471_v47  ;;  %v1748_v14 = vadd.f32 %v1471_v47, %v1470_v44  ;;  %v1949_v62 = vsel %vm1934_vm7, %v1913_v8, %v1948_v3  ;;  %v1747_v30 = vadd.f32 %v1746_v9, %v1745_v4  ;;  %s326_s20 = sand.u32 1, %s2637_s28  }
 0x17f   : > { %v1951_v15 = vsel %vm1924_vm2, %v1916_v19, %v1950_v63  ;;  %v1740_v33 = vadd.f32 %v1739_v10, %v1738_v5  ;;  %v1758_v16 = vrot.slane %v1757_v13, 2  ;;  %s2146_s24 = sshll.u32 %s326_s20, 5  ;;  %s3313_s18 = scalar_lea.sflag [#allocation3], %s326_s20 }
 0x180   : > { %v1952_v20 = vsel %vm1926_vm3, %v1917_v11, %v1951_v15  ;;  %v1749_v38 = vrot.slane %v1748_v14, 4  ;;  %v1792_v43 = vmul.f32 0.0625, %v1747_v30  ;;  %s328_s26 = scalar_lea.vmem [#allocation2], %s2146_s24  ;;  %s2589_s24 = scalar_lea.vmem %s2588_s22, 1024 }
 0x181   : > { %v1791_v21 = vmul.f32 0.0625, %v1740_v33  ;;  %v1759_v22 = vadd.f32 %v1758_v16, %v1757_v13  ;;  %s2042_s10 = sshll.u32 %s328_s26, 4  ;;  %s3306_s10 = int_to_ptr.vmem [resolvable:$true] %s2042_s10 }
 0x182   : > { %v1750_v23 = vadd.f32 %v1749_v38, %v1748_v14  ;;  %v1824_v24 = vpack.c.bf16 %v1792_v43, %v1792_v43  ;;  %s2583_s9 = scalar_lea.vmem %s3306_s10, 512  ;;  %p2590_p0 = scmp.lt.s32.totalorder %s3306_s10, %s2588_s22 }
 0x183   : > { %v1823_v18 = vpack.c.bf16 %v1791_v21, %v1791_v21  ;;  %v1760_v25 = vrot.slane %v1759_v22, 1  ;;  %p2584_p11 = scmp.ne.s32.totalorder %s3306_s10, %s2583_s9  ;;  %p2591_p1 = scmp.lt.s32.totalorder %s2589_s24, %s2583_s9 }
 0x184   : > { %v1751_v51 = vrot.slane %v1750_v23, 2  ;;  %v1919_v26 = vunpack.c.l.b16 %v1824_v24 }
 0x185   : > { %v1918_v6 = vunpack.c.l.b16 %v1823_v18  ;;  %v1761_v28 = vadd.f32 %v1760_v25, %v1759_v22  ;;  %p2585_p12 = pnand %p2584_p11, %p2733_p5  ;;  %p2592_p2 = por %p2591_p1, %p2590_p0 }
 0x186   : > { %v1752_v35 = vadd.f32 %v1751_v51, %v1750_v23 }
 0x187   : > { %v1953_v29 = vsel %vm1928_vm4, %v1918_v6, %v1952_v20  ;;  %v1794_v59 = vmul.f32 0.0625, %v1761_v28  ;;  %p2586_p13 = pneg %p2585_p12 }
 0x188   : > { %v1753_v32 = vrot.slane %v1752_v35, 1  ;;  %v1954_v27 = vsel %vm1930_vm5, %v1919_v26, %v1953_v29 }
 0x189   : > { %v1826_v34 = vpack.c.bf16 %v1794_v59, %v1794_v59  ;;  %p2593_p3 = pnand %p2592_p2, %p2586_p13 }
 0x18a   : > { %v1754_v12 = vadd.f32 %v1753_v32, %v1752_v35 }
 0x18b   : > { %v1921_v39 = vunpack.c.l.b16 %v1826_v34 }
 0x18c   : > { %v1793_v31 = vmul.f32 0.0625, %v1754_v12 }
 0x18e   : > { %v1825_v36 = vpack.c.bf16 %v1793_v31, %v1793_v31 }
 0x190   : > { %v1920_v37 = vunpack.c.l.b16 %v1825_v36 }
 0x192   : > { %v1955_v40 = vsel %vm1932_vm6, %v1920_v37, %v1954_v27 }
 0x193   : > { %v1956_v42 = vsel %vm1934_vm7, %v1921_v39, %v1955_v40 }
 0x194   : > { %v1958_v44 = vpack.c.b16 %v1956_v42, %v1949_v62 }
 0x196   : > { %2474 = vmatmul.mubr.bf16.vlgmr.msra.gmra.mrb[64].mxu1 %v1958_v44 }
 0x269   : > { %v2475_v45 = vpop.f32.mrb[64].mxu1 }
 0x26a   : > { %v2004_v46 = vadd.f32 %v2475_v45, %v2221_v17  ;;  %v1995_v48 = vpop.f32.mrb[65].mxu1 }
 0x26b   : > { %v1996_v49 = vadd.f32 %v2221_v17, %v1995_v48  ;;  %v2476_v52 = vpop.f32.mrb[66].mxu1 }
 0x26c   : > { %v2012_v56 = vmax.f32 %v2004_v46, 0.0  ;;  %v2007_v54 = vadd.f32 %v2476_v52, %v2221_v17  ;;  %v1998_v55 = vpop.f32.mrb[67].mxu1 }
 0x26d   : > { %v2010_v57 = vmax.f32 %v1996_v49, 0.0  ;;  %v1999_v41 = vadd.f32 %v2221_v17, %v1998_v55 }
 0x26e   : > { %2016 = vst [vmem:[%s328_s26 + $0x10] sm:$0xff] %v2012_v56  ;;  %v2013_v58 = vmax.f32 %v2007_v54, 0.0 }
 0x26f   : > { %2014 = vst [vmem:[%s328_s26] sm:$0xff] %v2010_v57  ;;  %v2011_v60 = vmax.f32 %v1999_v41, 0.0 }
 0x270   : > { %2017 = vst [vmem:[%s328_s26 + $0x18] sm:$0xff] %v2013_v58 }
 0x271   : > { %2015 = vst [vmem:[%s328_s26 + $0x8] sm:$0xff] %v2011_v60 }
 0x272   : > { %2596 = shalt.err (!%p2593_p3)
}
 0x273   : > { %s2597_s20 = scalar_lea.hbm %s3311_s17, 512  ;;  %s2601_s26 = scalar_lea.hbm %s3362_s8, 1024 }
 0x274   : > { %p2598_p4 = scmp.ne.s32.totalorder %s3311_s17, %s2597_s20  ;;  %p2602_p9 = scmp.lt.u32.totalorder %s3311_s17, %s3362_s8 }
 0x275   : > { %p2603_p10 = scmp.lt.u32.totalorder %s2601_s26, %s2597_s20  ;;  %p2605_p12 = scmp.lt.u32.totalorder %s2597_s20, %s3311_s17 }
 0x276   : > { %p2599_p7 = pnand %p2598_p4, %p2733_p5 }
 0x277   : > { %p2604_p11 = por %p2603_p10, %p2602_p9 }
 0x278   : > { %p2600_p8 = pneg %p2599_p7 }
 0x279   : > { %p2606_p13 = por %p2605_p12, %p2604_p11 }
 0x27b   : > { %p2607_p0 = pnand %p2606_p13, %p2600_p8 }
 0x27d   : > { %2610 = shalt.err (!%p2607_p0)
}
 0x27e   : > { %s2648_s13 = smov 128   ;;  %s2649_s9 = smov 8  }
 0x27f   : > { %2541 = dma.vmem_to_hbm [thread:$0]  (%p2733_p5), %s3306_s10, 512, %s3311_s17, %s3313_s18, %s2648_s13, %s2648_s13, %s2649_s9  }
 0x280 PF: > { %p2547_p1 = scmp.ge.s32.totalorder %s2645_s30, 2  ;;  %s2066_s21 = sand.u32 1, %s2633_s27  }
 0x281   : > { %s2067_s22 = scalar_lea.sflag [#allocation3], %s2066_s21 }
 0x282   : > { %p2544_p2 = pnand %p2547_p1, %p2737_p6 }
 0x284   : > { %2628 = dma.done.wait (!%p2544_p2), %s2067_s22, 512  }
 0x285   : > { %2630 = vsyncadd (!%p2544_p2), %s2067_s22, 4294966784  ;;  %p19_p3 = scmp.ge.s32.totalorder %s2720_s11, 4   ;;  %s3365_s27 = smov %s2637_s28 }
 0x286   : > { %s3366_s28 = smov %s2641_s29  ;;  %s3367_s29 = smov %s2731_s14 }
 0x287   : > { %s3368_s30 = smov %s2720_s11  ;;  %21 = sbr.rel (!%p19_p3) target bundleno = 3 (0x3), region = 98 }
 0x28e   :  { %2072 = vsyncpa [#allocation3], 1 }
 0x28f   :  { %2074 = vsyncpa [#allocation3 + $0x1], 1 }

// kernel: hierarchic_micro_macro_forward.12
= control target key start
LH: loop header
LB: loop body
LE: loop exit
PB: predicated region body
PF: predicated region fallthrough
CT: control target
= control target key end

     0   :  { %s1669_s18 = smov 0   ;;  %s2235_s0 = inlined_call_operand.vmem [shape: f32[64,16,128], index: 0, kind: input, shape index: {}]   ;;  %s2236_s1 = inlined_call_operand.vmem [shape: f32[64,128], index: 1, kind: input, shape index: {}]   ;;  %s2237_s2 = inlined_call_operand.vmem [shape: f32[128,128], index: 2, kind: input, shape index: {}]   ;;  %s2238_s3 = inlined_call_operand.vmem [shape: f32[128,128], index: 3, kind: input, shape index: {}]   ;;  %s2239_s4 = inlined_call_operand.vmem [shape: f32[1,128], index: 4, kind: input, shape index: {}]   ;;  %s2240_s5 = inlined_call_operand.vmem [shape: f32[64,16,128], index: 5, kind: output, shape index: {}]  }
   0x1 LB: > { %s1437_s19 = sadd.s32 4294967295, %s1636_s18   ;;  %p1441_p0 = scmp.ge.s32.totalorder %s1636_s18, 1  ;;  %s1636_s18 = sphi %s1669_s18, %s15_s18  }
   0x2   : > { %p200_p1 = scmp.lt.s32.totalorder %s1636_s18, 3 }
   0x4   : > { %p201_p2 = pnand %p1441_p0, %p200_p1 }
   0x5   : > { %v262_v0 = vld [vmem:[%s2238_s3] sm:$0xff] (!%p201_p2)  ;;  %v263_v1 = vld [vmem:[%s2238_s3 + $0x8] sm:$0xff] (!%p201_p2)  ;;  %s1445_s26 = sshll.u32 (!%p201_p2), %s1437_s19, 2  ;;  %s1442_s27 = sshll.u32 (!%p201_p2), %s1437_s19, 5  ;;  %v264_v5 = vld [vmem:[%s2238_s3 + $0x10] sm:$0xff] (!%p201_p2) }
   0x6   : > { %204 = sbr.rel (%p201_p2) target bundleno = 335 (0x14f), region = 40  ;;  %v431_v2 = vld [vmem:[%s2237_s2] sm:$0xff] (!%p201_p2)  ;;  %v278_v3 = vpack.c.bf16 (!%p201_p2), %v263_v1, %v262_v0  ;;  %v432_v4 = vld [vmem:[%s2237_s2 + $0x8] sm:$0xff] (!%p201_p2)  ;;  %v265_v6 = vld [vmem:[%s2238_s3 + $0x18] sm:$0xff] (!%p201_p2)  ;;  %p243_p3 = scmp.lt.s32.totalorder (!%p201_p2), %s1445_s26, 7 }
   0x7   : > { %p236_p4 = scmp.lt.s32.totalorder (!%p201_p2), %s1442_s27, 63  ;;  %v1695_v7 = vpack.c.bf16 (!%p201_p2), %v432_v4, %v431_v2  ;;  %v279_v8 = vpack.c.bf16 (!%p201_p2), %v265_v6, %v264_v5  ;;  %v433_v9 = vld [vmem:[%s2237_s2 + $0x10] sm:$0xff] (!%p201_p2)  ;;  %v434_v10 = vld [vmem:[%s2237_s2 + $0x18] sm:$0xff] (!%p201_p2)  ;;  %v266_v11 = vld [vmem:[%s2238_s3 + $0x20] sm:$0xff] (!%p201_p2) }
   0x8   : > { %1505 = vmatprep.subr.bf16.mxu0 (!%p201_p2), %v278_v3  ;;  %v1706_v12 = vpack.c.bf16 (!%p201_p2), %v434_v10, %v433_v9  ;;  %v267_v13 = vld [vmem:[%s2238_s3 + $0x28] sm:$0xff] (!%p201_p2)  ;;  %v435_v14 = vld [vmem:[%s2237_s2 + $0x20] sm:$0xff] (!%p201_p2)  ;;  %v268_v18 = vld [vmem:[%s2238_s3 + $0x30] sm:$0xff] (!%p201_p2) }
   0x9   : > { %v436_v15 = vld [vmem:[%s2237_s2 + $0x28] sm:$0xff] (!%p201_p2)  ;;  %1605 = vmatprep.subr.bf16.mxu1 (!%p201_p2), %v1695_v7  ;;  %1506 = vmatpush3.bf16.msra.mxu0 (!%p201_p2), %v278_v3  ;;  %v280_v16 = vpack.c.bf16 (!%p201_p2), %v267_v13, %v266_v11  ;;  %v269_v19 = vld [vmem:[%s2238_s3 + $0x38] sm:$0xff] (!%p201_p2)  ;;  %v437_v20 = vld [vmem:[%s2237_s2 + $0x30] sm:$0xff] (!%p201_p2) }
   0xa   : > { %1613 = vmatpush3.bf16.msra.mxu1 (!%p201_p2), %v1695_v7  ;;  %1507 = vmatprep.subr.bf16.mxu0 (!%p201_p2), %v279_v8  ;;  %v1723_v17 = vpack.c.bf16 (!%p201_p2), %v436_v15, %v435_v14  ;;  %v438_v21 = vld [vmem:[%s2237_s2 + $0x38] sm:$0xff] (!%p201_p2)  ;;  %v281_v22 = vpack.c.bf16 (!%p201_p2), %v269_v19, %v268_v18  ;;  %v270_v23 = vld [vmem:[%s2238_s3 + $0x40] sm:$0xff] (!%p201_p2)  ;;  %v271_v24 = vld [vmem:[%s2238_s3 + $0x48] sm:$0xff] (!%p201_p2) }
   0xb   : > { %1606 = vmatprep.subr.bf16.mxu1 (!%p201_p2), %v1706_v12  ;;  %v1758_v25 = vpack.c.bf16 (!%p201_p2), %v438_v21, %v437_v20  ;;  %v439_v26 = vld [vmem:[%s2237_s2 + $0x40] sm:$0xff] (!%p201_p2)  ;;  %v440_v27 = vld [vmem:[%s2237_s2 + $0x48] sm:$0xff] (!%p201_p2)  ;;  %v282_v34 = vpack.c.bf16 (!%p201_p2), %v271_v24, %v270_v23  ;;  %v272_v36 = vld [vmem:[%s2238_s3 + $0x50] sm:$0xff] (!%p201_p2) }
   0xc   : > { %v1772_v35 = vpack.c.bf16 (!%p201_p2), %v440_v27, %v439_v26  ;;  %v273_v37 = vld [vmem:[%s2238_s3 + $0x58] sm:$0xff] (!%p201_p2)  ;;  %v441_v38 = vld [vmem:[%s2237_s2 + $0x50] sm:$0xff] (!%p201_p2)  ;;  %v274_v42 = vld [vmem:[%s2238_s3 + $0x60] sm:$0xff] (!%p201_p2) }
   0xd   : > { %s2242_s26 = smov (!%p243_p3, %s1445_s26), 7  ;;  %s2244_s27 = smov (!%p236_p4, %s1442_s27), 63  ;;  %1508 = vmatpush3.bf16.msra.mxu0 %v279_v8  ;;  %v442_v39 = vld [vmem:[%s2237_s2 + $0x58] sm:$0xff]  ;;  %v283_v40 = vpack.c.bf16 %v273_v37, %v272_v36  ;;  %v275_v43 = vld [vmem:[%s2238_s3 + $0x68] sm:$0xff]  ;;  %v443_v44 = vld [vmem:[%s2237_s2 + $0x60] sm:$0xff] }
   0xe   : > { %s1446_s22 = sshll.u32 %s2242_s26, 3  ;;  %s1453_s29 = sshll.u32 %s2244_s27, 4  ;;  %1614 = vmatpush3.bf16.msra.mxu1 %v1706_v12  ;;  %1509 = vmatprep.subr.bf16.mxu0 %v280_v16  ;;  %v1788_v41 = vpack.c.bf16 %v442_v39, %v441_v38  ;;  %v444_v45 = vld [vmem:[%s2237_s2 + $0x68] sm:$0xff]  ;;  %v284_v46 = vpack.c.bf16 %v275_v43, %v274_v42  ;;  %v276_v48 = vld [vmem:[%s2238_s3 + $0x70] sm:$0xff]  ;;  %v277_v49 = vld [vmem:[%s2238_s3 + $0x78] sm:$0xff] }
   0xf   : > { %s1741_s10 = scalar_lea.vmem %s2236_s1, %s1446_s22  ;;  %s1748_s13 = scalar_lea.vmem %s2235_s0, %s1453_s29  ;;  %1607 = vmatprep.subr.bf16.mxu1 %v1723_v17  ;;  %v1804_v47 = vpack.c.bf16 %v444_v45, %v443_v44  ;;  %v445_v50 = vld [vmem:[%s2237_s2 + $0x70] sm:$0xff]  ;;  %v446_v51 = vld [vmem:[%s2237_s2 + $0x78] sm:$0xff]  ;;  %v285_v52 = vpack.c.bf16 %v277_v49, %v276_v48 }
  0x10   : > { %v256_v28 = vld [vmem:[%s1741_s10] sm:$0xff]  ;;  %v257_v29 = vld [vmem:[%s1741_s10 + $0x8] sm:$0xff]  ;;  %v1820_v53 = vpack.c.bf16 %v446_v51, %v445_v50  ;;  %v258_v54 = vld [vmem:[%s1741_s10 + $0x10] sm:$0xff]  ;;  %s1956_s7 = scalar_lea.vmem %s2240_s5, %s1453_s29 }
  0x11   : > { %v359_v30 = vld [vmem:[%s1748_s13 + $0xc0] sm:$0xff]  ;;  %v360_v31 = vld [vmem:[%s1748_s13 + $0xc8] sm:$0xff]  ;;  %1510 = vmatpush3.bf16.msra.mxu0 %v280_v16  ;;  %v260_v32 = vpack.c.bf16 %v257_v29, %v256_v28  ;;  %v259_v55 = vld [vmem:[%s1741_s10 + $0x18] sm:$0xff] }
  0x12   : > { %v411_v33 = vpack.c.bf16 %v360_v31, %v359_v30  ;;  %1615 = vmatpush3.bf16.msra.mxu1 %v1723_v17  ;;  %1511 = vmatprep.subr.bf16.mxu0 %v281_v22  ;;  %v361_v56 = vld [vmem:[%s1748_s13 + $0xd0] sm:$0xff]  ;;  %v362_v57 = vld [vmem:[%s1748_s13 + $0xd8] sm:$0xff]  ;;  %v363_v58 = vld [vmem:[%s1748_s13 + $0xe0] sm:$0xff]  ;;  %v261_v60 = vpack.c.bf16 %v259_v55, %v258_v54 }
  0x13   : > { %1608 = vmatprep.subr.bf16.mxu1 %v1758_v25  ;;  %1521 = vmatprep.mubr.bf16.mxu0 %v260_v32  ;;  %v364_v59 = vld [vmem:[%s1748_s13 + $0xe8] sm:$0xff]  ;;  %v335_v61 = vld [vmem:[%s1748_s13] sm:$0xff]  ;;  %v412_v63 = vpack.c.bf16 %v362_v57, %v361_v56  ;;  %v365_v2 = vld [vmem:[%s1748_s13 + $0xf0] sm:$0xff] }
  0x14   : > { %1565 = vmatprep.mubr.bf16.mxu1 %v411_v33  ;;  %v336_v62 = vld [vmem:[%s1748_s13 + $0x8] sm:$0xff]  ;;  %v413_v0 = vpack.c.bf16 %v364_v59, %v363_v58  ;;  %v366_v3 = vld [vmem:[%s1748_s13 + $0xf8] sm:$0xff]  ;;  %v367_v4 = vld [vmem:[%s1748_s13 + $0x100] sm:$0xff] }
  0x15   : > { %1512 = vmatpush3.bf16.msra.mxu0 %v281_v22  ;;  %v399_v1 = vpack.c.bf16 %v336_v62, %v335_v61  ;;  %v368_v5 = vld [vmem:[%s1748_s13 + $0x108] sm:$0xff]  ;;  %v414_v6 = vpack.c.bf16 %v366_v3, %v365_v2  ;;  %v370_v9 = vld [vmem:[%s1748_s13 + $0x118] sm:$0xff]  ;;  %v371_v10 = vld [vmem:[%s1748_s13 + $0x120] sm:$0xff] }
  0x16   : > { %1616 = vmatpush3.bf16.msra.mxu1 %v1758_v25  ;;  %1513 = vmatprep.subr.bf16.mxu0 %v282_v34  ;;  %v415_v8 = vpack.c.bf16 %v368_v5, %v367_v4  ;;  %v372_v11 = vld [vmem:[%s1748_s13 + $0x128] sm:$0xff]  ;;  %v373_v14 = vld [vmem:[%s1748_s13 + $0x130] sm:$0xff]  ;;  %v374_v15 = vld [vmem:[%s1748_s13 + $0x138] sm:$0xff] }
  0x17   : > { %1609 = vmatprep.subr.bf16.mxu1 %v1772_v35  ;;  %v417_v13 = vpack.c.bf16 %v372_v11, %v371_v10  ;;  %v375_v16 = vld [vmem:[%s1748_s13 + $0x140] sm:$0xff]  ;;  %v418_v18 = vpack.c.bf16 %v374_v15, %v373_v14  ;;  %v337_v20 = vld [vmem:[%s1748_s13 + $0x10] sm:$0xff]  ;;  %v338_v21 = vld [vmem:[%s1748_s13 + $0x18] sm:$0xff] }
  0x18   : > { %v377_v22 = vld [vmem:[%s1748_s13 + $0x150] sm:$0xff]  ;;  %v378_v23 = vld [vmem:[%s1748_s13 + $0x158] sm:$0xff]  ;;  %v339_v24 = vld [vmem:[%s1748_s13 + $0x20] sm:$0xff]  ;;  %v400_v28 = vpack.c.bf16 %v338_v21, %v337_v20 }
  0x19   : > { %1514 = vmatpush3.bf16.msra.mxu0 %v282_v34  ;;  %v379_v26 = vld [vmem:[%s1748_s13 + $0x160] sm:$0xff]  ;;  %v380_v27 = vld [vmem:[%s1748_s13 + $0x168] sm:$0xff]  ;;  %v420_v29 = vpack.c.bf16 %v378_v23, %v377_v22  ;;  %v341_v32 = vld [vmem:[%s1748_s13 + $0x30] sm:$0xff]  ;;  %v1638_v22 = vmov 1966171168  }
  0x1a   : > { %1617 = vmatpush3.bf16.msra.mxu1 %v1772_v35  ;;  %1515 = vmatprep.subr.bf16.mxu0 %v283_v40  ;;  %v421_v31 = vpack.c.bf16 %v380_v27, %v379_v26  ;;  %v342_v33 = vld [vmem:[%s1748_s13 + $0x38] sm:$0xff]  ;;  %v381_v34 = vld [vmem:[%s1748_s13 + $0x170] sm:$0xff]  ;;  %v343_v36 = vld [vmem:[%s1748_s13 + $0x40] sm:$0xff]  ;;  %v750_v23 = vunpack.c.l.s4 %v1638_v22 }
  0x1b   : > { %1610 = vmatprep.subr.bf16.mxu1 %v1788_v41  ;;  %v344_v37 = vld [vmem:[%s1748_s13 + $0x48] sm:$0xff]  ;;  %v383_v38 = vld [vmem:[%s1748_s13 + $0x180] sm:$0xff]  ;;  %v345_v44 = vld [vmem:[%s1748_s13 + $0x50] sm:$0xff] }
  0x1c   : > { %v384_v39 = vld [vmem:[%s1748_s13 + $0x188] sm:$0xff]  ;;  %v403_v42 = vpack.c.bf16 %v344_v37, %v343_v36  ;;  %v346_v45 = vld [vmem:[%s1748_s13 + $0x58] sm:$0xff]  ;;  %v347_v48 = vld [vmem:[%s1748_s13 + $0x60] sm:$0xff] }
  0x1d   : > { %1516 = vmatpush3.bf16.msra.mxu0 %v283_v40  ;;  %v402_v40 = vpack.c.bf16 %v342_v33, %v341_v32  ;;  %v423_v43 = vpack.c.bf16 %v384_v39, %v383_v38  ;;  %v348_v49 = vld [vmem:[%s1748_s13 + $0x68] sm:$0xff]  ;;  %v387_v50 = vld [vmem:[%s1748_s13 + $0x1a0] sm:$0xff]  ;;  %v349_v56 = vld [vmem:[%s1748_s13 + $0x70] sm:$0xff] }
  0x1e   : > { %1618 = vmatpush3.bf16.msra.mxu1 %v1788_v41  ;;  %1517 = vmatprep.subr.bf16.mxu0 %v284_v46  ;;  %v388_v51 = vld [vmem:[%s1748_s13 + $0x1a8] sm:$0xff]  ;;  %v405_v54 = vpack.c.bf16 %v348_v49, %v347_v48  ;;  %v350_v57 = vld [vmem:[%s1748_s13 + $0x78] sm:$0xff]  ;;  %v389_v58 = vld [vmem:[%s1748_s13 + $0x1b0] sm:$0xff] }
  0x1f   : > { %1611 = vmatprep.subr.bf16.mxu1 %v1804_v47  ;;  %v425_v55 = vpack.c.bf16 %v388_v51, %v387_v50  ;;  %v390_v59 = vld [vmem:[%s1748_s13 + $0x1b8] sm:$0xff]  ;;  %v352_v61 = vld [vmem:[%s1748_s13 + $0x88] sm:$0xff]  ;;  %v391_v62 = vld [vmem:[%s1748_s13 + $0x1c0] sm:$0xff] }
  0x20   : > { %v353_v4 = vld [vmem:[%s1748_s13 + $0x90] sm:$0xff]  ;;  %v354_v5 = vld [vmem:[%s1748_s13 + $0x98] sm:$0xff]  ;;  %v395_v10 = vld [vmem:[%s1748_s13 + $0x1e0] sm:$0xff] }
  0x21   : > { %1518 = vmatpush3.bf16.msra.mxu0 %v284_v46  ;;  %v385_v46 = vld [vmem:[%s1748_s13 + $0x190] sm:$0xff]  ;;  %v396_v11 = vld [vmem:[%s1748_s13 + $0x1e8] sm:$0xff] }
  0x22   : > { %1619 = vmatpush3.bf16.msra.mxu1 %v1804_v47  ;;  %1519 = vmatprep.subr.bf16.mxu0 %v285_v52  ;;  %v429_v15 = vpack.c.bf16 %v396_v11, %v395_v10 }
  0x23   : > { %1612 = vmatprep.subr.bf16.mxu1 %v1820_v53 }
  0x25   : > { %1520 = vmatpush3.bf16.msra.mxu0 %v285_v52  ;;  %v404_v52 = vpack.c.bf16 %v346_v45, %v345_v44 }
  0x26   : > { %1620 = vmatpush3.bf16.msra.mxu1 %v1820_v53  ;;  %1525 = vmatprep.subr.bf16.mxu0 %v1695_v7 }
  0x28   : > { %1522 = vmatmul.mubr.bf16.vlgmr.msra.gmra.mrb[0].mxu0 %v261_v60  ;;  %v351_v60 = vld [vmem:[%s1748_s13 + $0x80] sm:$0xff] }
  0x29   : > { %1566 = vmatmul.mubr.bf16.vlgmr.msra.gmra.mrb[0].mxu1 %v412_v63  ;;  %1526 = vmatpush3.bf16.msra.mxu0 %v1695_v7  ;;  %v369_v7 = vld [vmem:[%s1748_s13 + $0x110] sm:$0xff]  ;;  %v392_v63 = vld [vmem:[%s1748_s13 + $0x1c8] sm:$0xff]  ;;  %v407_v2 = vpack.c.bf16 %v352_v61, %v351_v60 }
  0x2a   : > { %1527 = vmatprep.subr.bf16.mxu0 %v1706_v12  ;;  %1569 = vmatprep.mubr.bf16.mxu1 %v413_v0  ;;  %v406_v0 = vpack.c.bf16 %v350_v57, %v349_v56  ;;  %v427_v3 = vpack.c.bf16 %v392_v63, %v391_v62 }
  0x2b   : > { %1541 = vmatprep.mubr.bf16.mxu0 %v399_v1  ;;  %v426_v1 = vpack.c.bf16 %v390_v59, %v389_v58 }
  0x2d   : > { %1528 = vmatpush3.bf16.msra.mxu0 %v1706_v12  ;;  %v416_v12 = vpack.c.bf16 %v370_v9, %v369_v7  ;;  %v355_v7 = vld [vmem:[%s1748_s13 + $0xa0] sm:$0xff]  ;;  %v356_v9 = vld [vmem:[%s1748_s13 + $0xa8] sm:$0xff] }
  0x2e   : > { %1529 = vmatprep.subr.bf16.mxu0 %v1723_v17  ;;  %v409_v14 = vpack.c.bf16 %v356_v9, %v355_v7 }
  0x31   : > { %1570 = vmatmul.mubr.bf16.gmra.mrb[4].mxu1 %v414_v6  ;;  %1530 = vmatpush3.bf16.msra.mxu0 %v1723_v17  ;;  %v376_v17 = vld [vmem:[%s1748_s13 + $0x148] sm:$0xff]  ;;  %v393_v6 = vld [vmem:[%s1748_s13 + $0x1d0] sm:$0xff] }
  0x32   : > { %1531 = vmatprep.subr.bf16.mxu0 %v1758_v25  ;;  %1573 = vmatprep.mubr.bf16.mxu1 %v415_v8  ;;  %v419_v19 = vpack.c.bf16 %v376_v17, %v375_v16  ;;  %v394_v8 = vld [vmem:[%s1748_s13 + $0x1d8] sm:$0xff]  ;;  %v357_v16 = vld [vmem:[%s1748_s13 + $0xb0] sm:$0xff] }
  0x33   : > { %v358_v17 = vld [vmem:[%s1748_s13 + $0xb8] sm:$0xff] }
  0x34   : > { %v410_v20 = vpack.c.bf16 %v358_v17, %v357_v16 }
  0x35   : > { %1532 = vmatpush3.bf16.msra.mxu0 %v1758_v25  ;;  %v340_v25 = vld [vmem:[%s1748_s13 + $0x28] sm:$0xff] }
  0x36   : > { %1533 = vmatprep.subr.bf16.mxu0 %v1772_v35  ;;  %v401_v30 = vpack.c.bf16 %v340_v25, %v339_v24  ;;  %v752_v24 = vlaneseq  ;;  %v751_v25 = vunpack.c.0.s8 %v750_v23 }
  0x38   : > { %v753_v26 = vshrl.u32 %v752_v24, 7 }
  0x39   : > { %1574 = vmatmul.mubr.bf16.gmra.mrb[8].mxu1 %v416_v12  ;;  %1534 = vmatpush3.bf16.msra.mxu0 %v1772_v35  ;;  %v382_v35 = vld [vmem:[%s1748_s13 + $0x178] sm:$0xff]  ;;  %v408_v12 = vpack.c.bf16 %v354_v5, %v353_v4 }
  0x3a   : > { %1535 = vmatprep.subr.bf16.mxu0 %v1788_v41  ;;  %1577 = vmatprep.mubr.bf16.mxu1 %v417_v13  ;;  %v428_v13 = vpack.c.bf16 %v394_v8, %v393_v6  ;;  %v1905_v27 = vsub.s32 %v751_v25, %v753_v26 }
  0x3d   : > { %1536 = vmatpush3.bf16.msra.mxu0 %v1788_v41  ;;  %v422_v41 = vpack.c.bf16 %v382_v35, %v381_v34 }
  0x3e   : > { %1537 = vmatprep.subr.bf16.mxu0 %v1804_v47 }
  0x41   : > { %1578 = vmatmul.mubr.bf16.gmra.mrb[12].mxu1 %v418_v18  ;;  %1538 = vmatpush3.bf16.msra.mxu0 %v1804_v47  ;;  %v386_v47 = vld [vmem:[%s1748_s13 + $0x198] sm:$0xff]  ;;  %v397_v18 = vld [vmem:[%s1748_s13 + $0x1f0] sm:$0xff] }
  0x42   : > { %1539 = vmatprep.subr.bf16.mxu0 %v1820_v53  ;;  %1581 = vmatprep.mubr.bf16.mxu1 %v419_v19  ;;  %v398_v19 = vld [vmem:[%s1748_s13 + $0x1f8] sm:$0xff] }
  0x43   : > { %v430_v21 = vpack.c.bf16 %v398_v19, %v397_v18 }
  0x45   : > { %1540 = vmatpush3.bf16.msra.mxu0 %v1820_v53  ;;  %v424_v53 = vpack.c.bf16 %v386_v47, %v385_v46 }
  0x48   : > { %1542 = vmatmul.mubr.bf16.vlgmr.msra.gmra.mrb[4].mxu0 %v400_v28 }
  0x49   : > { %1582 = vmatmul.mubr.bf16.gmra.mrb[16].mxu1 %v420_v29  ;;  %1545 = vmatprep.mubr.bf16.mxu0 %v401_v30 }
  0x4a   : > { %1585 = vmatprep.mubr.bf16.mxu1 %v421_v31 }
  0x50   : > { %1546 = vmatmul.mubr.bf16.gmra.mrb[8].mxu0 %v402_v40 }
  0x51   : > { %1586 = vmatmul.mubr.bf16.gmra.mrb[20].mxu1 %v422_v41  ;;  %1549 = vmatprep.mubr.bf16.mxu0 %v403_v42 }
  0x52   : > { %1589 = vmatprep.mubr.bf16.mxu1 %v423_v43  ;;  %v1918_v43 = vsub.s32 0, %v753_v26 }
  0x58   : > { %1550 = vmatmul.mubr.bf16.gmra.mrb[12].mxu0 %v404_v52 }
  0x59   : > { %1590 = vmatmul.mubr.bf16.gmra.mrb[24].mxu1 %v424_v53  ;;  %1553 = vmatprep.mubr.bf16.mxu0 %v405_v54  ;;  %v1938_v54 = vld [vmem:[%s2239_s4] ss:$0 sm:$0xff] }
  0x5a   : > { %1593 = vmatprep.mubr.bf16.mxu1 %v425_v55 }
  0x60   : > { %1554 = vmatmul.mubr.bf16.gmra.mrb[16].mxu0 %v406_v0 }
  0x61   : > { %1594 = vmatmul.mubr.bf16.gmra.mrb[28].mxu1 %v426_v1  ;;  %1557 = vmatprep.mubr.bf16.mxu0 %v407_v2 }
  0x62   : > { %1597 = vmatprep.mubr.bf16.mxu1 %v427_v3 }
  0x68   : > { %1558 = vmatmul.mubr.bf16.gmra.mrb[20].mxu0 %v408_v12 }
  0x69   : > { %1598 = vmatmul.mubr.bf16.gmra.mrb[32].mxu1 %v428_v13  ;;  %1561 = vmatprep.mubr.bf16.mxu0 %v409_v14 }
  0x6a   : > { %1601 = vmatprep.mubr.bf16.mxu1 %v429_v15 }
  0x70   : > { %1562 = vmatmul.mubr.bf16.gmra.mrb[24].mxu0 %v410_v20 }
  0x71   : > { %1602 = vmatmul.mubr.bf16.gmra.mrb[36].mxu1 %v430_v21 }
  0xfb   : > { %v1523_v28 = vpop.f32.mrb[0].mxu0 }
  0xfc   : > { %v1567_v29 = vpop.f32.mrb[0].mxu1  ;;  %v1907_v30 = vpop.f32.mrb[1].mxu0  ;;  %v853_v31 = vrot.slane %v1523_v28, %v1905_v27  ;;  %v846_v40 = vcombine.high %v1523_v28, %v1523_v28 }
  0xfd   : > { %v585_v32 = vpop.f32.mrb[1].mxu1  ;;  %v1910_v33 = vpop.f32.mrb[2].mxu0  ;;  %v1933_v53 = vrot.slane %v1907_v30, %v1905_v27 }
  0xfe   : > { %v1568_v34 = vpop.f32.mrb[2].mxu1  ;;  %v1912_v35 = vpop.f32.mrb[3].mxu0  ;;  %v861_v38 = vcombine.high %v853_v31, %v853_v31  ;;  %v1921_v45 = vrot.slane %v853_v31, %v1905_v27  ;;  %v1929_v52 = vrot.slane %v846_v40, %v1905_v27 }
  0xff   : > { %v588_v36 = vpop.f32.mrb[3].mxu1  ;;  %v797_v37 = vcombine.high %v1912_v35, %v1912_v35 }
 0x100   : > { %v1924_v47 = vrot.slane %v861_v38, %v1905_v27  ;;  %v1011_v62 = vrot.slane %v1921_v45, %v1918_v43  ;;  %v891_v8 = vcombine.high %v1921_v45, %v1921_v45 }
 0x101   : > { %v811_v39 = vrot.slane %v797_v37, %v1905_v27 }
 0x102   : > { %v1015_v61 = vrot.slane %v1924_v47, %v1918_v43  ;;  %v893_v63 = vcombine.high %v1924_v47, %v1924_v47 }
 0x103   : > { %v813_v41 = vcombine.high %v811_v39, %v811_v39  ;;  %v827_v42 = vrot.slane %v811_v39, %v1905_v27  ;;  %v763_v39 = vcombine.high %v1933_v53, %v1933_v53 }
 0x104   : > { %v1571_v44 = vpop.f32.mrb[4].mxu1 }
 0x105   : > { %v601_v46 = vpop.f32.mrb[5].mxu1  ;;  %v995_v48 = vrot.slane %v827_v42, %v1918_v43  ;;  %v841_v49 = vrot.slane %v813_v41, %v1905_v27  ;;  %v843_v50 = vcombine.high %v827_v42, %v827_v42 }
 0x106   : > { %v1572_v51 = vpop.f32.mrb[6].mxu1 }
 0x107   : > { %v604_v55 = vpop.f32.mrb[7].mxu1  ;;  %v1128_v56 = vadd.f32 %v995_v48, %v585_v32  ;;  %v1129_v57 = vadd.f32 %v995_v48, %v588_v36  ;;  %v845_v58 = vcombine.high %v841_v49, %v841_v49  ;;  %v999_v59 = vrot.slane %v841_v49, %v1918_v43 }
 0x108   : > { %v1003_v60 = vrot.slane %v843_v50, %v1918_v43  ;;  %v748_v36 = vcombine.high %v1907_v30, %v1907_v30  ;;  %v895_v30 = vcombine.high %v1910_v33, %v1910_v33  ;;  %v1019_v49 = vrot.slane %v891_v8, %v1918_v43 }
 0x109   : > { %v1199_v0 = vadd.f32 %v1938_v54, %v1128_v56  ;;  %v1200_v1 = vadd.f32 %v1938_v54, %v1129_v57  ;;  %v1007_v2 = vrot.slane %v845_v58, %v1918_v43  ;;  %v1130_v3 = vadd.f32 %v1567_v29, %v999_v59 }
 0x10a   : > { %v1131_v4 = vadd.f32 %v1568_v34, %v999_v59  ;;  %v1132_v5 = vadd.f32 %v1003_v60, %v601_v46  ;;  %v1133_v6 = vadd.f32 %v1003_v60, %v604_v55  ;;  %v1023_v46 = vrot.slane %v893_v63, %v1918_v43 }
 0x10b   : > { %v1263_v7 = vmax.f32 %v1199_v0, 0.0  ;;  %v1264_v9 = vmax.f32 %v1200_v1, 0.0  ;;  %v1134_v10 = vadd.f32 %v1571_v44, %v1007_v2  ;;  %v1201_v11 = vadd.f32 %v1938_v54, %v1130_v3 }
 0x10c   : > { %v1575_v12 = vpop.f32.mrb[8].mxu1  ;;  %v1202_v13 = vadd.f32 %v1938_v54, %v1131_v4  ;;  %v1203_v14 = vadd.f32 %v1938_v54, %v1132_v5  ;;  %v1135_v15 = vadd.f32 %v1572_v51, %v1007_v2  ;;  %v1204_v16 = vadd.f32 %v1938_v54, %v1133_v6 }
 0x10d   : > { %v617_v17 = vpop.f32.mrb[9].mxu1  ;;  %1327 = vst [vmem:[%s1956_s7 + $0xc0] sm:$0xff] %v1263_v7  ;;  %1328 = vst [vmem:[%s1956_s7 + $0xc8] sm:$0xff] %v1264_v9  ;;  %v1205_v18 = vadd.f32 %v1938_v54, %v1134_v10  ;;  %v1265_v19 = vmax.f32 %v1201_v11, 0.0  ;;  %v1138_v20 = vadd.f32 %v1575_v12, %v1015_v61  ;;  %v862_v44 = vcombine.high %v1929_v52, %v1929_v52 }
 0x10e   : > { %v1136_v21 = vadd.f32 %v1011_v62, %v617_v17  ;;  %v1576_v22 = vpop.f32.mrb[10].mxu1  ;;  %v1266_v23 = vmax.f32 %v1202_v13, 0.0  ;;  %v1267_v24 = vmax.f32 %v1203_v14, 0.0  ;;  %v1206_v25 = vadd.f32 %v1938_v54, %v1135_v15 }
 0x10f   : > { %v1268_v26 = vmax.f32 %v1204_v16, 0.0  ;;  %v620_v28 = vpop.f32.mrb[11].mxu1  ;;  %v1269_v29 = vmax.f32 %v1205_v18, 0.0  ;;  %1329 = vst [vmem:[%s1956_s7 + $0xd0] sm:$0xff] %v1265_v19  ;;  %v1209_v31 = vadd.f32 %v1938_v54, %v1138_v20  ;;  %v1139_v34 = vadd.f32 %v1576_v22, %v1015_v61 }
 0x110   : > { %v1207_v32 = vadd.f32 %v1938_v54, %v1136_v21  ;;  %1330 = vst [vmem:[%s1956_s7 + $0xd8] sm:$0xff] %v1266_v23  ;;  %1331 = vst [vmem:[%s1956_s7 + $0xe0] sm:$0xff] %v1267_v24  ;;  %v1270_v37 = vmax.f32 %v1206_v25, 0.0  ;;  %v1137_v38 = vadd.f32 %v1011_v62, %v620_v28  ;;  %v1991_v50 = vrot.slane %v748_v36, %v1905_v27 }
 0x111   : > { %1332 = vst [vmem:[%s1956_s7 + $0xe8] sm:$0xff] %v1268_v26  ;;  %1333 = vst [vmem:[%s1956_s7 + $0xf0] sm:$0xff] %v1269_v29  ;;  %v1273_v40 = vmax.f32 %v1209_v31, 0.0  ;;  %v1210_v42 = vadd.f32 %v1938_v54, %v1139_v34  ;;  %v1995_v51 = vrot.slane %v1910_v33, %v1905_v27  ;;  %v1999_v58 = vrot.slane %v1933_v53, %v1905_v27 }
 0x112   : > { %v1271_v41 = vmax.f32 %v1207_v32, 0.0  ;;  %1334 = vst [vmem:[%s1956_s7 + $0xf8] sm:$0xff] %v1270_v37  ;;  %v1208_v45 = vadd.f32 %v1938_v54, %v1137_v38  ;;  %v2003_v61 = vrot.slane %v763_v39, %v1905_v27  ;;  %v2006_v62 = vrot.slane %v895_v30, %v1905_v27 }
 0x113   : > { %1337 = vst [vmem:[%s1956_s7 + $0x110] sm:$0xff] %v1273_v40  ;;  %v1274_v47 = vmax.f32 %v1210_v42, 0.0  ;;  %v2011_v1 = vrot.slane %v862_v44, %v1905_v27  ;;  %v2015_v53 = vrot.slane %v1912_v35, %v1905_v27  ;;  %v2020_v4 = vrot.slane %v1929_v52, %v1905_v27 }
 0x114   : > { %1335 = vst [vmem:[%s1956_s7 + $0x100] sm:$0xff] %v1271_v41  ;;  %v1579_v48 = vpop.f32.mrb[12].mxu1  ;;  %v1272_v55 = vmax.f32 %v1208_v45, 0.0  ;;  %v764_v5 = vcombine.high %v1991_v50, %v1991_v50  ;;  %v910_v6 = vcombine.high %v1995_v51, %v1995_v51  ;;  %v2029_v35 = vrot.slane %v1995_v51, %v1905_v27 }
 0x115   : > { %v1142_v56 = vadd.f32 %v1579_v48, %v1023_v46  ;;  %v633_v57 = vpop.f32.mrb[13].mxu1  ;;  %1338 = vst [vmem:[%s1956_s7 + $0x118] sm:$0xff] %v1274_v47  ;;  %v951_v52 = vrot.slane %v2003_v61, %v1918_v43  ;;  %v911_v11 = vcombine.high %v2006_v62, %v2006_v62  ;;  %v1031_v14 = vrot.slane %v2011_v1, %v1918_v43 }
 0x116   : > { %v1140_v59 = vadd.f32 %v1019_v49, %v633_v57  ;;  %v1580_v60 = vpop.f32.mrb[14].mxu1  ;;  %1336 = vst [vmem:[%s1956_s7 + $0x108] sm:$0xff] %v1272_v55  ;;  %v947_v15 = vrot.slane %v1999_v58, %v1918_v43  ;;  %v1027_v20 = vrot.slane %v2020_v4, %v1918_v43  ;;  %v795_v21 = vcombine.high %v2003_v61, %v2003_v61 }
 0x117   : > { %v1213_v33 = vadd.f32 %v1938_v54, %v1142_v56  ;;  %v1143_v63 = vadd.f32 %v1580_v60, %v1023_v46  ;;  %v636_v0 = vpop.f32.mrb[15].mxu1  ;;  %v894_v26 = vcombine.high %v2011_v1, %v2011_v1  ;;  %v793_v28 = vcombine.high %v1999_v58, %v1999_v58 }
 0x118   : > { %v1211_v2 = vadd.f32 %v1938_v54, %v1140_v59  ;;  %v1141_v3 = vadd.f32 %v1019_v49, %v636_v0  ;;  %v892_v37 = vcombine.high %v2020_v4, %v2020_v4  ;;  %v959_v59 = vrot.slane %v795_v21, %v1918_v43 }
 0x119   : > { %v1277_v8 = vmax.f32 %v1213_v33, 0.0  ;;  %v1214_v7 = vadd.f32 %v1938_v54, %v1143_v63  ;;  %v1039_v63 = vrot.slane %v894_v26, %v1918_v43  ;;  %v955_v0 = vrot.slane %v793_v28, %v1918_v43 }
 0x11a   : > { %v1275_v9 = vmax.f32 %v1211_v2, 0.0  ;;  %v1212_v10 = vadd.f32 %v1938_v54, %v1141_v3  ;;  %v812_v1 = vcombine.high %v2015_v53, %v2015_v53 }
 0x11b   : > { %1341 = vst [vmem:[%s1956_s7 + $0x130] sm:$0xff] %v1277_v8  ;;  %v1278_v12 = vmax.f32 %v1214_v7, 0.0  ;;  %v1543_v13 = vpop.f32.mrb[4].mxu0  ;;  %v1035_v7 = vrot.slane %v892_v37, %v1918_v43 }
 0x11c   : > { %1339 = vst [vmem:[%s1956_s7 + $0x120] sm:$0xff] %v1275_v9  ;;  %v1276_v16 = vmax.f32 %v1212_v10, 0.0  ;;  %v1106_v17 = vadd.f32 %v1543_v13, %v951_v52  ;;  %v1583_v18 = vpop.f32.mrb[16].mxu1  ;;  %v489_v19 = vpop.f32.mrb[5].mxu0  ;;  %v2079_v13 = vrot.slane %v764_v5, %v1905_v27 }
 0x11d   : > { %1342 = vst [vmem:[%s1956_s7 + $0x138] sm:$0xff] %v1278_v12  ;;  %v1146_v22 = vadd.f32 %v1583_v18, %v1031_v14  ;;  %v1104_v23 = vadd.f32 %v947_v15, %v489_v19  ;;  %v649_v24 = vpop.f32.mrb[17].mxu1  ;;  %v1544_v25 = vpop.f32.mrb[6].mxu0 }
 0x11e   : > { %1340 = vst [vmem:[%s1956_s7 + $0x128] sm:$0xff] %v1276_v16  ;;  %v1177_v29 = vadd.f32 %v1938_v54, %v1106_v17  ;;  %v1144_v31 = vadd.f32 %v1027_v20, %v649_v24  ;;  %v1107_v32 = vadd.f32 %v1544_v25, %v951_v52  ;;  %v1584_v34 = vpop.f32.mrb[18].mxu1  ;;  %v492_v36 = vpop.f32.mrb[7].mxu0  ;;  %v967_v37 = vrot.slane %v2079_v13, %v1918_v43 }
 0x11f   : > { %v1217_v38 = vadd.f32 %v1938_v54, %v1146_v22  ;;  %v1175_v39 = vadd.f32 %v1938_v54, %v1104_v23  ;;  %v1147_v40 = vadd.f32 %v1584_v34, %v1031_v14  ;;  %v1105_v41 = vadd.f32 %v947_v15, %v492_v36  ;;  %v652_v42 = vpop.f32.mrb[19].mxu1 }
 0x120   : > { %v1241_v44 = vmax.f32 %v1177_v29, 0.0  ;;  %v1215_v30 = vadd.f32 %v1938_v54, %v1144_v31  ;;  %v1178_v45 = vadd.f32 %v1938_v54, %v1107_v32  ;;  %v1145_v46 = vadd.f32 %v1027_v20, %v652_v42 }
 0x121   : > { %v1281_v47 = vmax.f32 %v1217_v38, 0.0  ;;  %v1239_v48 = vmax.f32 %v1175_v39, 0.0  ;;  %v1218_v49 = vadd.f32 %v1938_v54, %v1147_v40  ;;  %v1176_v55 = vadd.f32 %v1938_v54, %v1105_v41 }
 0x122   : > { %1305 = vst [vmem:[%s1956_s7 + $0x10] sm:$0xff] %v1241_v44  ;;  %v1279_v56 = vmax.f32 %v1215_v30, 0.0  ;;  %v1242_v57 = vmax.f32 %v1178_v45, 0.0  ;;  %v1216_v58 = vadd.f32 %v1938_v54, %v1145_v46  ;;  %v2085_v14 = vrot.slane %v910_v6, %v1905_v27 }
 0x123   : > { %1345 = vst [vmem:[%s1956_s7 + $0x150] sm:$0xff] %v1281_v47  ;;  %1303 = vst [vmem:[%s1956_s7] sm:$0xff] %v1239_v48  ;;  %v1282_v60 = vmax.f32 %v1218_v49, 0.0  ;;  %v1240_v61 = vmax.f32 %v1176_v55, 0.0  ;;  %v1547_v33 = vpop.f32.mrb[8].mxu0  ;;  %v2091_v20 = vrot.slane %v1991_v50, %v1905_v27  ;;  %v1043_v47 = vrot.slane %v2029_v35, %v1918_v43 }
 0x124   : > { %1343 = vst [vmem:[%s1956_s7 + $0x140] sm:$0xff] %v1279_v56  ;;  %1306 = vst [vmem:[%s1956_s7 + $0x18] sm:$0xff] %v1242_v57  ;;  %v1280_v2 = vmax.f32 %v1216_v58, 0.0  ;;  %v1110_v3 = vadd.f32 %v1547_v33, %v959_v59  ;;  %v1587_v4 = vpop.f32.mrb[20].mxu1  ;;  %v505_v8 = vpop.f32.mrb[9].mxu0  ;;  %v1047_v41 = vrot.slane %v2085_v14, %v1918_v43  ;;  %v796_v48 = vcombine.high %v2079_v13, %v2079_v13 }
 0x125   : > { %1346 = vst [vmem:[%s1956_s7 + $0x158] sm:$0xff] %v1282_v60  ;;  %1304 = vst [vmem:[%s1956_s7 + $0x8] sm:$0xff] %v1240_v61  ;;  %v1150_v9 = vadd.f32 %v1587_v4, %v1039_v63  ;;  %v1108_v10 = vadd.f32 %v955_v0, %v505_v8  ;;  %v665_v52 = vpop.f32.mrb[21].mxu1  ;;  %v1548_v12 = vpop.f32.mrb[10].mxu0  ;;  %v963_v42 = vrot.slane %v2091_v20, %v1918_v43 }
 0x126   : > { %1344 = vst [vmem:[%s1956_s7 + $0x148] sm:$0xff] %v1280_v2  ;;  %v1181_v15 = vadd.f32 %v1938_v54, %v1110_v3  ;;  %v1148_v16 = vadd.f32 %v1035_v7, %v665_v52  ;;  %v1111_v17 = vadd.f32 %v1548_v12, %v959_v59  ;;  %v1588_v18 = vpop.f32.mrb[22].mxu1  ;;  %v508_v19 = vpop.f32.mrb[11].mxu0  ;;  %v942_v58 = vcombine.high %v2085_v14, %v2085_v14 }
 0x127   : > { %v1221_v5 = vadd.f32 %v1938_v54, %v1150_v9  ;;  %v1179_v21 = vadd.f32 %v1938_v54, %v1108_v10  ;;  %v1151_v22 = vadd.f32 %v1588_v18, %v1039_v63  ;;  %v1109_v51 = vadd.f32 %v955_v0, %v508_v19  ;;  %v668_v6 = vpop.f32.mrb[23].mxu1 }
 0x128   : > { %v1245_v23 = vmax.f32 %v1181_v15, 0.0  ;;  %v1219_v24 = vadd.f32 %v1938_v54, %v1148_v16  ;;  %v1182_v25 = vadd.f32 %v1938_v54, %v1111_v17  ;;  %v1149_v26 = vadd.f32 %v1035_v7, %v668_v6 }
 0x129   : > { %v1285_v28 = vmax.f32 %v1221_v5, 0.0  ;;  %v1243_v29 = vmax.f32 %v1179_v21, 0.0  ;;  %v1222_v50 = vadd.f32 %v1938_v54, %v1151_v22  ;;  %v1180_v31 = vadd.f32 %v1938_v54, %v1109_v51 }
 0x12a   : > { %1309 = vst [vmem:[%s1956_s7 + $0x30] sm:$0xff] %v1245_v23  ;;  %v1283_v32 = vmax.f32 %v1219_v24, 0.0  ;;  %v1246_v34 = vmax.f32 %v1182_v25, 0.0  ;;  %v1220_v36 = vadd.f32 %v1938_v54, %v1149_v26  ;;  %v794_v59 = vcombine.high %v2091_v20, %v2091_v20 }
 0x12b   : > { %1349 = vst [vmem:[%s1956_s7 + $0x170] sm:$0xff] %v1285_v28  ;;  %1307 = vst [vmem:[%s1956_s7 + $0x20] sm:$0xff] %v1243_v29  ;;  %v1286_v38 = vmax.f32 %v1222_v50, 0.0  ;;  %v1244_v39 = vmax.f32 %v1180_v31, 0.0  ;;  %v1551_v40 = vpop.f32.mrb[12].mxu0  ;;  %v940_v2 = vcombine.high %v2029_v35, %v2029_v35  ;;  %v975_v20 = vrot.slane %v796_v48, %v1918_v43 }
 0x12c   : > { %1347 = vst [vmem:[%s1956_s7 + $0x160] sm:$0xff] %v1283_v32  ;;  %1310 = vst [vmem:[%s1956_s7 + $0x38] sm:$0xff] %v1246_v34  ;;  %v1284_v44 = vmax.f32 %v1220_v36, 0.0  ;;  %v1114_v30 = vadd.f32 %v1551_v40, %v967_v37  ;;  %v1591_v45 = vpop.f32.mrb[24].mxu1  ;;  %v521_v46 = vpop.f32.mrb[13].mxu0  ;;  %v1055_v51 = vrot.slane %v942_v58, %v1918_v43  ;;  %v971_v6 = vrot.slane %v794_v59, %v1918_v43 }
 0x12d   : > { %1350 = vst [vmem:[%s1956_s7 + $0x178] sm:$0xff] %v1286_v38  ;;  %1308 = vst [vmem:[%s1956_s7 + $0x28] sm:$0xff] %v1244_v39  ;;  %v1154_v49 = vadd.f32 %v1591_v45, %v1047_v41  ;;  %v1112_v55 = vadd.f32 %v963_v42, %v521_v46  ;;  %v681_v56 = vpop.f32.mrb[25].mxu1  ;;  %v1552_v57 = vpop.f32.mrb[14].mxu0  ;;  %v2140_v23 = vrot.slane %v2015_v53, %v1905_v27 }
 0x12e   : > { %1348 = vst [vmem:[%s1956_s7 + $0x168] sm:$0xff] %v1284_v44  ;;  %v1185_v60 = vadd.f32 %v1938_v54, %v1114_v30  ;;  %v1152_v61 = vadd.f32 %v1043_v47, %v681_v56  ;;  %v1115_v33 = vadd.f32 %v1552_v57, %v967_v37  ;;  %v1592_v63 = vpop.f32.mrb[26].mxu1  ;;  %v524_v0 = vpop.f32.mrb[15].mxu0  ;;  %v1051_v29 = vrot.slane %v940_v2, %v1918_v43 }
 0x12f   : > { %v1225_v3 = vadd.f32 %v1938_v54, %v1154_v49  ;;  %v1183_v4 = vadd.f32 %v1938_v54, %v1112_v55  ;;  %v1155_v8 = vadd.f32 %v1592_v63, %v1047_v41  ;;  %v1113_v7 = vadd.f32 %v963_v42, %v524_v0  ;;  %v684_v9 = vpop.f32.mrb[27].mxu1 }
 0x130   : > { %v1249_v10 = vmax.f32 %v1185_v60, 0.0  ;;  %v1223_v52 = vadd.f32 %v1938_v54, %v1152_v61  ;;  %v1186_v12 = vadd.f32 %v1938_v54, %v1115_v33  ;;  %v1153_v13 = vadd.f32 %v1043_v47, %v684_v9 }
 0x131   : > { %v1289_v14 = vmax.f32 %v1225_v3, 0.0  ;;  %v1247_v15 = vmax.f32 %v1183_v4, 0.0  ;;  %v1226_v35 = vadd.f32 %v1938_v54, %v1155_v8  ;;  %v1184_v16 = vadd.f32 %v1938_v54, %v1113_v7 }
 0x132   : > { %1313 = vst [vmem:[%s1956_s7 + $0x50] sm:$0xff] %v1249_v10  ;;  %v1287_v17 = vmax.f32 %v1223_v52, 0.0  ;;  %v1250_v18 = vmax.f32 %v1186_v12, 0.0  ;;  %v1224_v19 = vadd.f32 %v1938_v54, %v1153_v13  ;;  %v2151_v36 = vrot.slane %v812_v1, %v1905_v27 }
 0x133   : > { %1353 = vst [vmem:[%s1956_s7 + $0x190] sm:$0xff] %v1289_v14  ;;  %1311 = vst [vmem:[%s1956_s7 + $0x40] sm:$0xff] %v1247_v15  ;;  %v1290_v5 = vmax.f32 %v1226_v35, 0.0  ;;  %v1248_v21 = vmax.f32 %v1184_v16, 0.0  ;;  %v1555_v22 = vpop.f32.mrb[16].mxu0  ;;  %v2157_v37 = vrot.slane %v911_v11, %v1905_v27  ;;  %v2163_v44 = vrot.slane %v2006_v62, %v1905_v27 }
 0x134   : > { %1351 = vst [vmem:[%s1956_s7 + $0x180] sm:$0xff] %v1287_v17  ;;  %1314 = vst [vmem:[%s1956_s7 + $0x58] sm:$0xff] %v1250_v18  ;;  %v1288_v24 = vmax.f32 %v1224_v19, 0.0  ;;  %v1118_v25 = vadd.f32 %v1555_v22, %v975_v20  ;;  %v1595_v26 = vpop.f32.mrb[28].mxu1  ;;  %v537_v28 = vpop.f32.mrb[17].mxu0  ;;  %v983_v60 = vrot.slane %v2151_v36, %v1918_v43  ;;  %v979_v2 = vrot.slane %v2140_v23, %v1918_v43 }
 0x135   : > { %1354 = vst [vmem:[%s1956_s7 + $0x198] sm:$0xff] %v1290_v5  ;;  %1312 = vst [vmem:[%s1956_s7 + $0x48] sm:$0xff] %v1248_v21  ;;  %v1158_v50 = vadd.f32 %v1595_v26, %v1055_v51  ;;  %v1116_v31 = vadd.f32 %v971_v6, %v537_v28  ;;  %v697_v32 = vpop.f32.mrb[29].mxu1  ;;  %v1556_v34 = vpop.f32.mrb[18].mxu0  ;;  %v1063_v0 = vrot.slane %v2157_v37, %v1918_v43 }
 0x136   : > { %1352 = vst [vmem:[%s1956_s7 + $0x188] sm:$0xff] %v1288_v24  ;;  %v1189_v38 = vadd.f32 %v1938_v54, %v1118_v25  ;;  %v1156_v39 = vadd.f32 %v1051_v29, %v697_v32  ;;  %v1119_v40 = vadd.f32 %v1556_v34, %v975_v20  ;;  %v1596_v41 = vpop.f32.mrb[30].mxu1  ;;  %v540_v42 = vpop.f32.mrb[19].mxu0  ;;  %v1059_v9 = vrot.slane %v2163_v44, %v1918_v43 }
 0x137   : > { %v1229_v53 = vadd.f32 %v1938_v54, %v1158_v50  ;;  %v1187_v1 = vadd.f32 %v1938_v54, %v1116_v31  ;;  %v1159_v30 = vadd.f32 %v1596_v41, %v1055_v51  ;;  %v1117_v11 = vadd.f32 %v971_v6, %v540_v42  ;;  %v700_v45 = vpop.f32.mrb[31].mxu1 }
 0x138   : > { %v1253_v46 = vmax.f32 %v1189_v38, 0.0  ;;  %v1227_v47 = vadd.f32 %v1938_v54, %v1156_v39  ;;  %v1190_v48 = vadd.f32 %v1938_v54, %v1119_v40  ;;  %v1157_v49 = vadd.f32 %v1051_v29, %v700_v45 }
 0x139   : > { %v1293_v55 = vmax.f32 %v1229_v53, 0.0  ;;  %v1251_v56 = vmax.f32 %v1187_v1, 0.0  ;;  %v1230_v27 = vadd.f32 %v1938_v54, %v1159_v30  ;;  %v1188_v62 = vadd.f32 %v1938_v54, %v1117_v11 }
 0x13a   : > { %1317 = vst [vmem:[%s1956_s7 + $0x70] sm:$0xff] %v1253_v46  ;;  %v1291_v57 = vmax.f32 %v1227_v47, 0.0  ;;  %v1254_v58 = vmax.f32 %v1190_v48, 0.0  ;;  %v1228_v59 = vadd.f32 %v1938_v54, %v1157_v49  ;;  %v844_v10 = vcombine.high %v2151_v36, %v2151_v36 }
 0x13b   : > { %1357 = vst [vmem:[%s1956_s7 + $0x1b0] sm:$0xff] %v1293_v55  ;;  %1315 = vst [vmem:[%s1956_s7 + $0x60] sm:$0xff] %v1251_v56  ;;  %v1294_v61 = vmax.f32 %v1230_v27, 0.0  ;;  %v1252_v33 = vmax.f32 %v1188_v62, 0.0  ;;  %v1559_v63 = vpop.f32.mrb[20].mxu0  ;;  %v943_v15 = vcombine.high %v2157_v37, %v2157_v37  ;;  %v842_v35 = vcombine.high %v2140_v23, %v2140_v23 }
 0x13c   : > { %1355 = vst [vmem:[%s1956_s7 + $0x1a0] sm:$0xff] %v1291_v57  ;;  %1318 = vst [vmem:[%s1956_s7 + $0x78] sm:$0xff] %v1254_v58  ;;  %v1292_v3 = vmax.f32 %v1228_v59, 0.0  ;;  %v1122_v4 = vadd.f32 %v1559_v63, %v983_v60  ;;  %v1599_v8 = vpop.f32.mrb[32].mxu1  ;;  %v553_v7 = vpop.f32.mrb[21].mxu0  ;;  %v941_v5 = vcombine.high %v2163_v44, %v2163_v44  ;;  %v991_v38 = vrot.slane %v844_v10, %v1918_v43 }
 0x13d   : > { %1358 = vst [vmem:[%s1956_s7 + $0x1b8] sm:$0xff] %v1294_v61  ;;  %1316 = vst [vmem:[%s1956_s7 + $0x68] sm:$0xff] %v1252_v33  ;;  %v1162_v52 = vadd.f32 %v1599_v8, %v1063_v0  ;;  %v1120_v12 = vadd.f32 %v979_v2, %v553_v7  ;;  %v713_v13 = vpop.f32.mrb[33].mxu1  ;;  %v1560_v14 = vpop.f32.mrb[22].mxu0  ;;  %v1071_v42 = vrot.slane %v943_v15, %v1918_v43 }
 0x13e   : > { %1356 = vst [vmem:[%s1956_s7 + $0x1a8] sm:$0xff] %v1292_v3  ;;  %v1193_v16 = vadd.f32 %v1938_v54, %v1122_v4  ;;  %v1160_v17 = vadd.f32 %v1059_v9, %v713_v13  ;;  %v1123_v18 = vadd.f32 %v1560_v14, %v983_v60  ;;  %v1600_v19 = vpop.f32.mrb[34].mxu1  ;;  %v556_v20 = vpop.f32.mrb[23].mxu0  ;;  %v987_v44 = vrot.slane %v842_v35, %v1918_v43 }
 0x13f   : > { %v1233_v21 = vadd.f32 %v1938_v54, %v1162_v52  ;;  %v1191_v22 = vadd.f32 %v1938_v54, %v1120_v12  ;;  %v1163_v51 = vadd.f32 %v1600_v19, %v1063_v0  ;;  %v1121_v6 = vadd.f32 %v979_v2, %v556_v20  ;;  %v716_v23 = vpop.f32.mrb[35].mxu1 }
 0x140   : > { %v1257_v24 = vmax.f32 %v1193_v16, 0.0  ;;  %v1231_v25 = vadd.f32 %v1938_v54, %v1160_v17  ;;  %v1194_v26 = vadd.f32 %v1938_v54, %v1123_v18  ;;  %v1161_v28 = vadd.f32 %v1059_v9, %v716_v23 }
 0x141   : > { %v1297_v29 = vmax.f32 %v1233_v21, 0.0  ;;  %v1255_v50 = vmax.f32 %v1191_v22, 0.0  ;;  %v1234_v31 = vadd.f32 %v1938_v54, %v1163_v51  ;;  %v1192_v32 = vadd.f32 %v1938_v54, %v1121_v6 }
 0x142   : > { %1321 = vst [vmem:[%s1956_s7 + $0x90] sm:$0xff] %v1257_v24  ;;  %v1295_v34 = vmax.f32 %v1231_v25, 0.0  ;;  %v1258_v36 = vmax.f32 %v1194_v26, 0.0  ;;  %v1232_v37 = vadd.f32 %v1938_v54, %v1161_v28  ;;  %v1067_v45 = vrot.slane %v941_v5, %v1918_v43 }
 0x143   : > { %1361 = vst [vmem:[%s1956_s7 + $0x1d0] sm:$0xff] %v1297_v29  ;;  %1319 = vst [vmem:[%s1956_s7 + $0x80] sm:$0xff] %v1255_v50  ;;  %v1298_v39 = vmax.f32 %v1234_v31, 0.0  ;;  %v1256_v40 = vmax.f32 %v1192_v32, 0.0  ;;  %v1563_v41 = vpop.f32.mrb[24].mxu0 }
 0x144   : > { %1359 = vst [vmem:[%s1956_s7 + $0x1c0] sm:$0xff] %v1295_v34  ;;  %1322 = vst [vmem:[%s1956_s7 + $0x98] sm:$0xff] %v1258_v36  ;;  %v1296_v53 = vmax.f32 %v1232_v37, 0.0  ;;  %v1126_v1 = vadd.f32 %v1563_v41, %v991_v38  ;;  %v1603_v30 = vpop.f32.mrb[36].mxu1  ;;  %v569_v11 = vpop.f32.mrb[25].mxu0 }
 0x145   : > { %1362 = vst [vmem:[%s1956_s7 + $0x1d8] sm:$0xff] %v1298_v39  ;;  %1320 = vst [vmem:[%s1956_s7 + $0x88] sm:$0xff] %v1256_v40  ;;  %v1166_v46 = vadd.f32 %v1603_v30, %v1071_v42  ;;  %v1124_v47 = vadd.f32 %v987_v44, %v569_v11  ;;  %v729_v48 = vpop.f32.mrb[37].mxu1  ;;  %v1564_v49 = vpop.f32.mrb[26].mxu0 }
 0x146   : > { %1360 = vst [vmem:[%s1956_s7 + $0x1c8] sm:$0xff] %v1296_v53  ;;  %v1197_v55 = vadd.f32 %v1938_v54, %v1126_v1  ;;  %v1164_v56 = vadd.f32 %v1067_v45, %v729_v48  ;;  %v1127_v27 = vadd.f32 %v1564_v49, %v991_v38  ;;  %v1604_v62 = vpop.f32.mrb[38].mxu1  ;;  %v572_v57 = vpop.f32.mrb[27].mxu0 }
 0x147   : > { %v1237_v58 = vadd.f32 %v1938_v54, %v1166_v46  ;;  %v1195_v59 = vadd.f32 %v1938_v54, %v1124_v47  ;;  %v1167_v43 = vadd.f32 %v1604_v62, %v1071_v42  ;;  %v1125_v60 = vadd.f32 %v987_v44, %v572_v57  ;;  %v732_v61 = vpop.f32.mrb[39].mxu1 }
 0x148   : > { %v1261_v33 = vmax.f32 %v1197_v55, 0.0  ;;  %v1235_v63 = vadd.f32 %v1938_v54, %v1164_v56  ;;  %v1198_v0 = vadd.f32 %v1938_v54, %v1127_v27  ;;  %v1165_v2 = vadd.f32 %v1067_v45, %v732_v61 }
 0x149   : > { %v1301_v3 = vmax.f32 %v1237_v58, 0.0  ;;  %v1259_v4 = vmax.f32 %v1195_v59, 0.0  ;;  %v1238_v8 = vadd.f32 %v1938_v54, %v1167_v43  ;;  %v1196_v7 = vadd.f32 %v1938_v54, %v1125_v60 }
 0x14a   : > { %1325 = vst [vmem:[%s1956_s7 + $0xb0] sm:$0xff] %v1261_v33  ;;  %v1299_v9 = vmax.f32 %v1235_v63, 0.0  ;;  %v1262_v10 = vmax.f32 %v1198_v0, 0.0  ;;  %v1236_v52 = vadd.f32 %v1938_v54, %v1165_v2 }
 0x14b   : > { %1365 = vst [vmem:[%s1956_s7 + $0x1f0] sm:$0xff] %v1301_v3  ;;  %1323 = vst [vmem:[%s1956_s7 + $0xa0] sm:$0xff] %v1259_v4  ;;  %v1302_v12 = vmax.f32 %v1238_v8, 0.0  ;;  %v1260_v13 = vmax.f32 %v1196_v7, 0.0 }
 0x14c   : > { %1363 = vst [vmem:[%s1956_s7 + $0x1e0] sm:$0xff] %v1299_v9  ;;  %1326 = vst [vmem:[%s1956_s7 + $0xb8] sm:$0xff] %v1262_v10  ;;  %v1300_v14 = vmax.f32 %v1236_v52, 0.0 }
 0x14d   : > { %1366 = vst [vmem:[%s1956_s7 + $0x1f8] sm:$0xff] %v1302_v12  ;;  %1324 = vst [vmem:[%s1956_s7 + $0xa8] sm:$0xff] %v1260_v13 }
 0x14e   : > { %1364 = vst [vmem:[%s1956_s7 + $0x1e8] sm:$0xff] %v1300_v14 }
 0x14f PF: > { %s15_s18 = sadd.s32 1, %s1636_s18  }
 0x150   : > { %p12_p5 = scmp.ge.s32.totalorder %s15_s18, 4  }
 0x152   :  { %14 = sbr.rel (!%p12_p5) target bundleno = 1 (0x1), region = 73 }

// kernel: hierarchic_micro_macro_forward.16
= control target key start
LH: loop header
LB: loop body
LE: loop exit
PB: predicated region body
PF: predicated region fallthrough
CT: control target
= control target key end

     0   :  { %s1987_s15 = smov 0   ;;  %s2887_s0 = inlined_call_operand.vmem [shape: f32[64,16,128], index: 0, kind: input, shape index: {}]   ;;  %s2888_s1 = inlined_call_operand.vmem [shape: f32[128,128], index: 1, kind: input, shape index: {}]   ;;  %s2889_s2 = inlined_call_operand.vmem [shape: f32[128,128], index: 2, kind: input, shape index: {}]   ;;  %s2890_s3 = inlined_call_operand.vmem [shape: f32[1,128], index: 3, kind: input, shape index: {}]   ;;  %s2891_s4 = inlined_call_operand.vmem [shape: f32[64,16,128], index: 4, kind: output, shape index: {}]  }
   0x1 LB: > { %s1762_s16 = sadd.s32 4294967295, %s1959_s15   ;;  %p1766_p0 = scmp.ge.s32.totalorder %s1959_s15, 1  ;;  %s1959_s15 = sphi %s1987_s15, %s14_s15  }
   0x2   : > { %p164_p1 = scmp.lt.s32.totalorder %s1959_s15, 3 }
   0x4   : > { %p165_p2 = pnand %p1766_p0, %p164_p1 }
   0x6   : > { %168 = sbr.rel (%p165_p2) target bundleno = 414 (0x19e), region = 36 }
   0xd   : > { %v768_v0 = vld [vmem:[%s2888_s1] sm:$0xff]  ;;  %v769_v1 = vld [vmem:[%s2888_s1 + $0x8] sm:$0xff]  ;;  %s1767_s23 = sshll.u32 %s1762_s16, 5  ;;  %v770_v5 = vld [vmem:[%s2888_s1 + $0x10] sm:$0xff]  ;;  %vm648_vm0 = vcmask 1041409   ;;  %vm650_vm1 = vcmask 1042434  }
   0xe   : > { %v560_v2 = vld [vmem:[%s2889_s2] sm:$0xff]  ;;  %v2004_v3 = vpack.c.bf16 %v769_v1, %v768_v0  ;;  %v561_v4 = vld [vmem:[%s2889_s2 + $0x8] sm:$0xff]  ;;  %v771_v6 = vld [vmem:[%s2888_s1 + $0x18] sm:$0xff]  ;;  %p193_p3 = scmp.lt.s32.totalorder %s1767_s23, 63  ;;  %vm652_vm2 = vcmask 1043459   ;;  %vm654_vm3 = vcmask 1044484  }
   0xf   : > { %v576_v7 = vpack.c.bf16 %v561_v4, %v560_v2  ;;  %v2015_v8 = vpack.c.bf16 %v771_v6, %v770_v5  ;;  %v562_v9 = vld [vmem:[%s2889_s2 + $0x10] sm:$0xff]  ;;  %v563_v10 = vld [vmem:[%s2889_s2 + $0x18] sm:$0xff]  ;;  %v772_v11 = vld [vmem:[%s2888_s1 + $0x20] sm:$0xff]  ;;  %vm656_vm4 = vcmask 1045509   ;;  %vm658_vm5 = vcmask 1046534  }
  0x10   : > { %1928 = vmatprep.subr.bf16.mxu1 %v2004_v3  ;;  %v577_v12 = vpack.c.bf16 %v563_v10, %v562_v9  ;;  %v773_v13 = vld [vmem:[%s2888_s1 + $0x28] sm:$0xff]  ;;  %v564_v14 = vld [vmem:[%s2889_s2 + $0x20] sm:$0xff]  ;;  %s3035_s23 = smov (!%p193_p3, %s1767_s23), 63  ;;  %v774_v16 = vld [vmem:[%s2888_s1 + $0x30] sm:$0xff]  ;;  %vm660_vm6 = vcmask 1047559  }
  0x11   : > { %v565_v15 = vld [vmem:[%s2889_s2 + $0x28] sm:$0xff]  ;;  %1936 = vmatpush3.bf16.msra.mxu1 %v2004_v3  ;;  %1828 = vmatprep.subr.bf16.mxu0 %v576_v7  ;;  %v775_v17 = vld [vmem:[%s2888_s1 + $0x38] sm:$0xff]  ;;  %v2046_v18 = vpack.c.bf16 %v773_v13, %v772_v11  ;;  %v566_v19 = vld [vmem:[%s2889_s2 + $0x30] sm:$0xff]  ;;  %s1776_s10 = sshll.u32 %s3035_s23, 4 }
  0x12   : > { %1829 = vmatpush3.bf16.msra.mxu0 %v576_v7  ;;  %1929 = vmatprep.subr.bf16.mxu1 %v2015_v8  ;;  %v567_v20 = vld [vmem:[%s2889_s2 + $0x38] sm:$0xff]  ;;  %v776_v21 = vld [vmem:[%s2888_s1 + $0x40] sm:$0xff]  ;;  %v777_v22 = vld [vmem:[%s2888_s1 + $0x48] sm:$0xff]  ;;  %v578_v23 = vpack.c.bf16 %v565_v15, %v564_v14  ;;  %v2090_v33 = vpack.c.bf16 %v775_v17, %v774_v16  ;;  %s2106_s7 = scalar_lea.vmem %s2887_s0, %s1776_s10  ;;  %s2634_s18 = scalar_lea.vmem %s2891_s4, %s1776_s10 }
  0x13   : > { %2942 = vst [vmem:[#allocation2_spill] sm:$0xff] %v2046_v18  ;;  %1830 = vmatprep.subr.bf16.mxu0 %v577_v12  ;;  %v568_v24 = vld [vmem:[%s2889_s2 + $0x40] sm:$0xff]  ;;  %v569_v25 = vld [vmem:[%s2889_s2 + $0x48] sm:$0xff]  ;;  %v778_v26 = vld [vmem:[%s2888_s1 + $0x50] sm:$0xff]  ;;  %v579_v37 = vpack.c.bf16 %v567_v20, %v566_v19  ;;  %v2108_v38 = vpack.c.bf16 %v777_v22, %v776_v21 }
  0x14   : > { %v779_v27 = vld [vmem:[%s2888_s1 + $0x58] sm:$0xff]  ;;  %v570_v28 = vld [vmem:[%s2889_s2 + $0x50] sm:$0xff]  ;;  %v780_v30 = vld [vmem:[%s2888_s1 + $0x60] sm:$0xff]  ;;  %2943 = vst [vmem:[#allocation3_spill] sm:$0xff] %v2090_v33  ;;  %v2110_v39 = vpack.c.bf16 %v569_v25, %v568_v24 }
  0x15   : > { %v571_v29 = vld [vmem:[%s2889_s2 + $0x58] sm:$0xff]  ;;  %1937 = vmatpush3.bf16.msra.mxu1 %v2015_v8  ;;  %v781_v31 = vld [vmem:[%s2888_s1 + $0x68] sm:$0xff]  ;;  %v572_v32 = vld [vmem:[%s2889_s2 + $0x60] sm:$0xff]  ;;  %2944 = vst [vmem:[#allocation4_spill] sm:$0xff] %v2108_v38  ;;  %v2112_v40 = vpack.c.bf16 %v779_v27, %v778_v26 }
  0x16   : > { %1831 = vmatpush3.bf16.msra.mxu0 %v577_v12  ;;  %1930 = vmatprep.subr.bf16.mxu1 %v2046_v18  ;;  %v573_v34 = vld [vmem:[%s2889_s2 + $0x68] sm:$0xff]  ;;  %v782_v35 = vld [vmem:[%s2888_s1 + $0x70] sm:$0xff]  ;;  %v783_v36 = vld [vmem:[%s2888_s1 + $0x78] sm:$0xff]  ;;  %v2121_v44 = vpack.c.bf16 %v571_v29, %v570_v28  ;;  %v2123_v45 = vpack.c.bf16 %v781_v31, %v780_v30 }
  0x17   : > { %1832 = vmatprep.subr.bf16.mxu0 %v578_v23  ;;  %2945 = vst [vmem:[#allocation5_spill] sm:$0xff] %v2112_v40  ;;  %v574_v41 = vld [vmem:[%s2889_s2 + $0x70] sm:$0xff]  ;;  %v575_v42 = vld [vmem:[%s2889_s2 + $0x78] sm:$0xff]  ;;  %v231_v43 = vld [vmem:[%s2106_s7 + $0xc0] sm:$0xff]  ;;  %v2125_v46 = vpack.c.bf16 %v573_v34, %v572_v32  ;;  %v2127_v47 = vpack.c.bf16 %v783_v36, %v782_v35 }
  0x18   : > { %2946 = vst [vmem:[#allocation6_spill] sm:$0xff] %v2123_v45  ;;  %v232_v48 = vld [vmem:[%s2106_s7 + $0xc8] sm:$0xff]  ;;  %v2131_v49 = vld [vmem:[%s2106_s7 + $0xd0] sm:$0xff]  ;;  %v2134_v50 = vld [vmem:[%s2106_s7 + $0xd8] sm:$0xff]  ;;  %v2137_v51 = vpack.c.bf16 %v575_v42, %v574_v41 }
  0x19   : > { %2947 = vst [vmem:[#allocation7_spill] sm:$0xff] %v2127_v47  ;;  %1938 = vmatpush3.bf16.msra.mxu1 %v2046_v18  ;;  %v355_v52 = vadd.f32 %v232_v48, %v231_v43  ;;  %v748_v53 = vpack.c.bf16 %v232_v48, %v231_v43  ;;  %v362_v54 = vadd.f32 %v2134_v50, %v2131_v49  ;;  %v2142_v55 = vld [vmem:[%s2106_s7] sm:$0xff]  ;;  %v2145_v56 = vld [vmem:[%s2106_s7 + $0x8] sm:$0xff]  ;;  %v2148_v57 = vld [vmem:[%s2106_s7 + $0x10] sm:$0xff] }
  0x1a   : > { %2948 = vst [vmem:[#allocation8_spill] sm:$0xff] %v2148_v57  ;;  %1833 = vmatpush3.bf16.msra.mxu0 %v578_v23  ;;  %1931 = vmatprep.subr.bf16.mxu1 %v2090_v33  ;;  %v2154_v59 = vld [vmem:[%s2106_s7 + $0x18] sm:$0xff]  ;;  %v2157_v60 = vld [vmem:[%s2106_s7 + $0x20] sm:$0xff]  ;;  %v2160_v61 = vld [vmem:[%s2106_s7 + $0x28] sm:$0xff]  ;;  %v271_v62 = vadd.f32 %v2145_v56, %v2142_v55 }
  0x1b   : > { %2949 = vst [vmem:[#allocation9_spill] sm:$0xff] %v2154_v59  ;;  %2950 = vst [vmem:[#allocation10_spill] sm:$0xff] %v2157_v60  ;;  %1834 = vmatprep.subr.bf16.mxu0 %v579_v37  ;;  %v356_v0 = vrot.slane %v355_v52, 4  ;;  %1888 = vmatprep.mubr.bf16.mxu1 %v748_v53  ;;  %v363_v1 = vrot.slane %v362_v54, 4  ;;  %v2167_v2 = vld [vmem:[%s2106_s7 + $0x30] sm:$0xff]  ;;  %v2170_v4 = vld [vmem:[%s2106_s7 + $0x38] sm:$0xff]  ;;  %v278_v6 = vadd.f32 %v2154_v59, %v2148_v57 }
  0x1c   : > { %2951 = vst [vmem:[#allocation11_spill] sm:$0xff] %v2160_v61  ;;  %2952 = vst [vmem:[#allocation12_spill] sm:$0xff] %v2167_v2  ;;  %v2173_v5 = vld [vmem:[%s2106_s7 + $0x40] sm:$0xff]  ;;  %v285_v7 = vadd.f32 %v2160_v61, %v2157_v60  ;;  %v2180_v9 = vld [vmem:[%s2106_s7 + $0x48] sm:$0xff]  ;;  %v272_v12 = vrot.slane %v271_v62, 4  ;;  %v292_v13 = vadd.f32 %v2170_v4, %v2167_v2 }
  0x1d   : > { %2953 = vst [vmem:[#allocation13_spill] sm:$0xff] %v2170_v4  ;;  %2954 = vst [vmem:[#allocation14_spill] sm:$0xff] %v2173_v5  ;;  %v2183_v10 = vld [vmem:[%s2106_s7 + $0x50] sm:$0xff]  ;;  %v2186_v11 = vld [vmem:[%s2106_s7 + $0x58] sm:$0xff]  ;;  %1939 = vmatpush3.bf16.msra.mxu1 %v2090_v33  ;;  %v357_v16 = vadd.f32 %v356_v0, %v355_v52  ;;  %v364_v17 = vadd.f32 %v363_v1, %v362_v54  ;;  %v279_v19 = vrot.slane %v278_v6, 4 }
  0x1e   : > { %2955 = vst [vmem:[#allocation15_spill] sm:$0xff] %v2180_v9  ;;  %2956 = vst [vmem:[#allocation16_spill] sm:$0xff] %v2183_v10  ;;  %v286_v20 = vrot.slane %v285_v7, 4  ;;  %1835 = vmatpush3.bf16.msra.mxu0 %v579_v37  ;;  %1932 = vmatprep.subr.bf16.mxu1 %v2108_v38  ;;  %v273_v21 = vadd.f32 %v272_v12, %v271_v62  ;;  %v293_v22 = vrot.slane %v292_v13, 4  ;;  %v2207_v41 = vld [vmem:[%s2106_s7 + $0x60] sm:$0xff]  ;;  %v2210_v42 = vld [vmem:[%s2106_s7 + $0x68] sm:$0xff] }
  0x1f   : > { %2957 = vst [vmem:[#allocation17_spill] sm:$0xff] %v2186_v11  ;;  %v299_v23 = vadd.f32 %v2180_v9, %v2173_v5  ;;  %v306_v24 = vadd.f32 %v2186_v11, %v2183_v10  ;;  %1836 = vmatprep.subr.bf16.mxu0 %v2110_v39  ;;  %v358_v25 = vrot.slane %v357_v16, 2  ;;  %v365_v26 = vrot.slane %v364_v17, 2  ;;  %2958 = vst [vmem:[#allocation18_spill] sm:$0xff] %v2207_v41 }
  0x20   : > { %v280_v27 = vadd.f32 %v279_v19, %v278_v6  ;;  %v287_v28 = vadd.f32 %v286_v20, %v285_v7  ;;  %v274_v29 = vrot.slane %v273_v21, 2  ;;  %v294_v30 = vadd.f32 %v293_v22, %v292_v13  ;;  %2959 = vst [vmem:[#allocation19_spill] sm:$0xff] %v2210_v42  ;;  %v2222_v19 = vld [vmem:[%s2106_s7 + $0x80] sm:$0xff] }
  0x21   : > { %v300_v31 = vrot.slane %v299_v23, 4  ;;  %v307_v32 = vrot.slane %v306_v24, 4  ;;  %1940 = vmatpush3.bf16.msra.mxu1 %v2108_v38  ;;  %v359_v34 = vadd.f32 %v358_v25, %v357_v16  ;;  %v2202_v35 = vadd.f32 %v365_v26, %v364_v17  ;;  %v2216_v16 = vld [vmem:[%s2106_s7 + $0x70] sm:$0xff]  ;;  %v2219_v17 = vld [vmem:[%s2106_s7 + $0x78] sm:$0xff]  ;;  %2962 = vst [vmem:[#allocation22_spill] sm:$0xff] %v2222_v19 }
  0x22   : > { %v281_v36 = vrot.slane %v280_v27, 2  ;;  %v288_v37 = vrot.slane %v287_v28, 2  ;;  %1837 = vmatpush3.bf16.msra.mxu0 %v2110_v39  ;;  %1933 = vmatprep.subr.bf16.mxu1 %v2112_v40  ;;  %v275_v43 = vadd.f32 %v274_v29, %v273_v21  ;;  %v295_v48 = vrot.slane %v294_v30, 2  ;;  %2960 = vst [vmem:[#allocation20_spill] sm:$0xff] %v2216_v16  ;;  %2961 = vst [vmem:[#allocation21_spill] sm:$0xff] %v2219_v17  ;;  %v2235_v25 = vld [vmem:[%s2106_s7 + $0x98] sm:$0xff] }
  0x23   : > { %v301_v52 = vadd.f32 %v300_v31, %v299_v23  ;;  %v308_v53 = vadd.f32 %v307_v32, %v306_v24  ;;  %1838 = vmatprep.subr.bf16.mxu0 %v2121_v44  ;;  %v360_v54 = vrot.slane %v359_v34, 1  ;;  %v367_v62 = vrot.slane %v2202_v35, 1  ;;  %v2229_v23 = vld [vmem:[%s2106_s7 + $0x88] sm:$0xff]  ;;  %v2232_v24 = vld [vmem:[%s2106_s7 + $0x90] sm:$0xff]  ;;  %2965 = vst [vmem:[#allocation25_spill] sm:$0xff] %v2235_v25  ;;  %v2241_v31 = vld [vmem:[%s2106_s7 + $0xa0] sm:$0xff] }
  0x24   : > { %v282_v0 = vadd.f32 %v281_v36, %v280_v27  ;;  %v289_v39 = vadd.f32 %v288_v37, %v287_v28  ;;  %v276_v1 = vrot.slane %v275_v43, 1  ;;  %v296_v6 = vadd.f32 %v295_v48, %v294_v30  ;;  %2963 = vst [vmem:[#allocation23_spill] sm:$0xff] %v2229_v23  ;;  %2964 = vst [vmem:[#allocation24_spill] sm:$0xff] %v2232_v24 }
  0x25   : > { %v302_v7 = vrot.slane %v301_v52, 2  ;;  %v309_v12 = vrot.slane %v308_v53, 2  ;;  %1941 = vmatpush3.bf16.msra.mxu1 %v2112_v40  ;;  %v361_v13 = vadd.f32 %v360_v54, %v359_v34  ;;  %v313_v22 = vadd.f32 %v2210_v42, %v2207_v41  ;;  %2966 = vst [vmem:[#allocation26_spill] sm:$0xff] %v2241_v31  ;;  %v2256_v54 = vld [vmem:[%s2106_s7 + $0xb0] sm:$0xff] }
  0x26   : > { %v283_v20 = vrot.slane %v282_v0, 1  ;;  %v290_v21 = vrot.slane %v289_v39, 1  ;;  %1839 = vmatpush3.bf16.msra.mxu0 %v2121_v44  ;;  %1934 = vmatprep.subr.bf16.mxu1 %v2123_v45  ;;  %v2237_v26 = vadd.f32 %v276_v1, %v275_v43  ;;  %v297_v27 = vrot.slane %v296_v6, 1  ;;  %v2244_v44 = vld [vmem:[%s2106_s7 + $0xa8] sm:$0xff]  ;;  %2968 = vst [vmem:[#allocation28_spill] sm:$0xff] %v2256_v54 }
  0x27   : > { %v303_v28 = vadd.f32 %v302_v7, %v301_v52  ;;  %v310_v29 = vadd.f32 %v309_v12, %v308_v53  ;;  %1840 = vmatprep.subr.bf16.mxu0 %v2125_v46  ;;  %v508_v30 = vmul.f32 0.0625, %v361_v13  ;;  %2967 = vst [vmem:[#allocation27_spill] sm:$0xff] %v2244_v44  ;;  %v314_v36 = vrot.slane %v313_v22, 4  ;;  %v2268_v7 = vld [vmem:[%s2106_s7 + $0xe0] sm:$0xff]  ;;  %v2271_v12 = vld [vmem:[%s2106_s7 + $0xe8] sm:$0xff] }
  0x28   : > { %v2246_v32 = vadd.f32 %v283_v20, %v282_v0  ;;  %v2248_v34 = vadd.f32 %v290_v21, %v289_v39  ;;  %v2250_v37 = vadd.f32 %v297_v27, %v296_v6  ;;  %v320_v52 = vadd.f32 %v2219_v17, %v2216_v16  ;;  %v2259_v0 = vld [vmem:[%s2106_s7 + $0xb8] sm:$0xff] }
  0x29   : > { %v304_v43 = vrot.slane %v303_v28, 1  ;;  %v311_v48 = vrot.slane %v310_v29, 1  ;;  %1942 = vmatpush3.bf16.msra.mxu1 %v2123_v45  ;;  %v540_v53 = vpack.c.bf16 %v508_v30, %v508_v30  ;;  %2969 = vst [vmem:[#allocation29_spill] sm:$0xff] %v2259_v0  ;;  %v315_v39 = vadd.f32 %v314_v36, %v313_v22  ;;  %v2279_v30 = vld [vmem:[%s2106_s7 + $0xf0] sm:$0xff]  ;;  %v2282_v36 = vld [vmem:[%s2106_s7 + $0xf8] sm:$0xff] }
  0x2a   : > { %v327_v1 = vadd.f32 %v2229_v23, %v2222_v19  ;;  %v334_v6 = vadd.f32 %v2235_v25, %v2232_v24  ;;  %1841 = vmatpush3.bf16.msra.mxu0 %v2125_v46  ;;  %1935 = vmatprep.subr.bf16.mxu1 %v2127_v47  ;;  %v321_v21 = vrot.slane %v320_v52, 4  ;;  %v341_v22 = vadd.f32 %v2244_v44, %v2241_v31 }
  0x2b   : > { %v305_v13 = vadd.f32 %v304_v43, %v303_v28  ;;  %v312_v20 = vadd.f32 %v311_v48, %v310_v29  ;;  %1842 = vmatprep.subr.bf16.mxu0 %v2137_v51  ;;  %v2276_v27 = vunpack.c.l.b16 %v540_v53  ;;  %v316_v46 = vrot.slane %v315_v39, 2 }
  0x2c   : > { %v328_v15 = vrot.slane %v327_v1, 4  ;;  %v335_v14 = vrot.slane %v334_v6, 4  ;;  %v322_v63 = vadd.f32 %v321_v21, %v320_v52  ;;  %v342_v58 = vrot.slane %v341_v22, 4 }
  0x2d   : > { %v348_v28 = vadd.f32 %v2259_v0, %v2256_v54  ;;  %v368_v29 = vadd.f32 %v367_v62, %v2202_v35  ;;  %1943 = vmatpush3.bf16.msra.mxu1 %v2127_v47  ;;  %v317_v43 = vadd.f32 %v316_v46, %v315_v39  ;;  %v369_v44 = vadd.f32 %v2271_v12, %v2268_v7  ;;  %v2434_v47 = vld [vmem:[%s2106_s7 + $0x1e8] sm:$0xff] }
  0x2e   : > { %v329_v48 = vadd.f32 %v328_v15, %v327_v1  ;;  %v336_v53 = vadd.f32 %v335_v14, %v334_v6  ;;  %1843 = vmatpush3.bf16.msra.mxu0 %v2137_v51  ;;  %v323_v31 = vrot.slane %v322_v63, 2  ;;  %v343_v25 = vadd.f32 %v342_v58, %v341_v22 }
  0x2f   : > { %v349_v24 = vrot.slane %v348_v28, 4  ;;  %v376_v52 = vadd.f32 %v2282_v36, %v2279_v30  ;;  %v318_v21 = vrot.slane %v317_v43, 1  ;;  %v370_v35 = vrot.slane %v369_v44, 4  ;;  %1848 = vmatprep.subr.bf16.mxu0 %v2004_v3 }
  0x30   : > { %v330_v0 = vrot.slane %v329_v48, 2  ;;  %v337_v54 = vrot.slane %v336_v53, 2  ;;  %v2970_v14 = vpack.c.bf16 %v2134_v50, %v2131_v49  ;;  %v324_v15 = vadd.f32 %v323_v31, %v322_v63 }
  0x31   : > { %v344_v62 = vrot.slane %v343_v25, 2  ;;  %v350_v39 = vadd.f32 %v349_v24, %v348_v28  ;;  %v377_v51 = vrot.slane %v376_v52, 4  ;;  %v319_v1 = vadd.f32 %v318_v21, %v317_v43 }
  0x32   : > { %1889 = vmatmul.mubr.bf16.vlgmr.msra.gmra.mrb[0].mxu1 %v2970_v14  ;;  %v331_v58 = vadd.f32 %v330_v0, %v329_v48  ;;  %v338_v6 = vadd.f32 %v337_v54, %v336_v53  ;;  %v371_v22 = vadd.f32 %v370_v35, %v369_v44  ;;  %v325_v46 = vrot.slane %v324_v15, 1 }
  0x33   : > { %v345_v23 = vadd.f32 %v344_v62, %v343_v25  ;;  %v351_v19 = vrot.slane %v350_v39, 2  ;;  %v378_v17 = vadd.f32 %v377_v51, %v376_v52  ;;  %v496_v11 = vmul.f32 0.0625, %v2237_v26 }
  0x34   : > { %v332_v16 = vrot.slane %v331_v58, 1  ;;  %v339_v42 = vrot.slane %v338_v6, 1  ;;  %v372_v41 = vrot.slane %v371_v22, 2  ;;  %v326_v10 = vadd.f32 %v325_v46, %v324_v15 }
  0x35   : > { %v346_v49 = vrot.slane %v345_v23, 1  ;;  %v352_v50 = vadd.f32 %v351_v19, %v350_v39  ;;  %v379_v63 = vrot.slane %v378_v17, 2  ;;  %v497_v0 = vmul.f32 0.0625, %v2246_v32 }
  0x36   : > { %v333_v31 = vadd.f32 %v332_v16, %v331_v58  ;;  %v340_v24 = vadd.f32 %v339_v42, %v338_v6  ;;  %v373_v28 = vadd.f32 %v372_v41, %v371_v22  ;;  %v498_v25 = vmul.f32 0.0625, %v2248_v34 }
  0x37   : > { %v347_v54 = vadd.f32 %v346_v49, %v345_v23  ;;  %v353_v44 = vrot.slane %v352_v50, 1  ;;  %v380_v43 = vadd.f32 %v379_v63, %v378_v17  ;;  %v499_v53 = vmul.f32 0.0625, %v2250_v37 }
  0x38   : > { %v374_v48 = vrot.slane %v373_v28, 1  ;;  %v500_v52 = vmul.f32 0.0625, %v305_v13  ;;  %v501_v21 = vmul.f32 0.0625, %v312_v20  ;;  %v502_v19 = vmul.f32 0.0625, %v319_v1 }
  0x39   : > { %v354_v26 = vadd.f32 %v353_v44, %v352_v50  ;;  %v381_v35 = vrot.slane %v380_v43, 1  ;;  %v503_v14 = vmul.f32 0.0625, %v326_v10  ;;  %v504_v41 = vmul.f32 0.0625, %v333_v31 }
  0x3a   : > { %v375_v42 = vadd.f32 %v374_v48, %v373_v28  ;;  %v505_v16 = vmul.f32 0.0625, %v340_v24  ;;  %v506_v32 = vmul.f32 0.0625, %v347_v54  ;;  %v509_v15 = vmul.f32 0.0625, %v368_v29  ;;  %v2305_v54 = vld [vmem:[%s2106_s7 + $0x108] sm:$0xff] }
  0x3b   : > { %v382_v23 = vadd.f32 %v381_v35, %v380_v43  ;;  %v507_v17 = vmul.f32 0.0625, %v354_v26  ;;  %v528_v34 = vpack.c.bf16 %v496_v11, %v496_v11  ;;  %v529_v37 = vpack.c.bf16 %v497_v0, %v497_v0  ;;  %v2302_v0 = vld [vmem:[%s2106_s7 + $0x100] sm:$0xff] }
  0x3c   : > { %v510_v62 = vmul.f32 0.0625, %v375_v42  ;;  %v530_v13 = vpack.c.bf16 %v498_v25, %v498_v25  ;;  %v531_v20 = vpack.c.bf16 %v499_v53, %v499_v53  ;;  %v532_v51 = vpack.c.bf16 %v500_v52, %v500_v52  ;;  %v2308_v53 = vld [vmem:[%s2106_s7 + $0x110] sm:$0xff]  ;;  %v2311_v52 = vld [vmem:[%s2106_s7 + $0x118] sm:$0xff]  ;;  %v2317_v42 = vld [vmem:[%s2106_s7 + $0x128] sm:$0xff] }
  0x3d   : > { %v511_v39 = vmul.f32 0.0625, %v382_v23  ;;  %v533_v1 = vpack.c.bf16 %v501_v21, %v501_v21  ;;  %v534_v10 = vpack.c.bf16 %v502_v19, %v502_v19  ;;  %v535_v58 = vpack.c.bf16 %v503_v14, %v503_v14  ;;  %v2314_v21 = vld [vmem:[%s2106_s7 + $0x120] sm:$0xff] }
  0x3e   : > { %v536_v6 = vpack.c.bf16 %v504_v41, %v504_v41  ;;  %v537_v22 = vpack.c.bf16 %v505_v16, %v505_v16  ;;  %v538_v46 = vpack.c.bf16 %v506_v32, %v506_v32  ;;  %v539_v11 = vpack.c.bf16 %v507_v17, %v507_v17  ;;  %v2320_v41 = vld [vmem:[%s2106_s7 + $0x130] sm:$0xff]  ;;  %v2323_v16 = vld [vmem:[%s2106_s7 + $0x138] sm:$0xff] }
  0x3f   : > { %v541_v29 = vpack.c.bf16 %v509_v15, %v509_v15  ;;  %v542_v49 = vpack.c.bf16 %v510_v62, %v510_v62  ;;  %v543_v50 = vpack.c.bf16 %v511_v39, %v511_v39  ;;  %v616_v63 = vunpack.c.l.b16 %v528_v34  ;;  %2971 = vst [vmem:[#allocation30_spill] sm:$0xff] %v2320_v41  ;;  %2972 = vst [vmem:[#allocation31_spill] sm:$0xff] %v2323_v16 }
  0x40   : > { %v617_v31 = vunpack.c.l.b16 %v529_v37  ;;  %v618_v24 = vunpack.c.l.b16 %v530_v13  ;;  %v619_v28 = vunpack.c.l.b16 %v531_v20  ;;  %v620_v44 = vunpack.c.l.b16 %v532_v51 }
  0x41   : > { %v621_v43 = vunpack.c.l.b16 %v533_v1  ;;  %v622_v25 = vunpack.c.l.b16 %v534_v10  ;;  %v623_v48 = vunpack.c.l.b16 %v535_v58  ;;  %v624_v26 = vunpack.c.l.b16 %v536_v6 }
  0x42   : > { %v625_v35 = vunpack.c.l.b16 %v537_v22  ;;  %v626_v19 = vunpack.c.l.b16 %v538_v46  ;;  %v627_v14 = vunpack.c.l.b16 %v539_v11  ;;  %v629_v32 = vunpack.c.l.b16 %v541_v29  ;;  %v2344_v29 = vld [vmem:[%s2106_s7 + $0x140] sm:$0xff] }
  0x43   : > { %v630_v23 = vunpack.c.l.b16 %v542_v49  ;;  %v631_v17 = vunpack.c.l.b16 %v543_v50  ;;  %v649_v15 = vsel %vm648_vm0, %v617_v31, %v616_v63  ;;  %v383_v37 = vadd.f32 %v2305_v54, %v2302_v0  ;;  %2973 = vst [vmem:[#allocation32_spill] sm:$0xff] %v2344_v29  ;;  %v2347_v49 = vld [vmem:[%s2106_s7 + $0x148] sm:$0xff] }
  0x44   : > { %v651_v34 = vsel %vm650_vm1, %v618_v24, %v649_v15  ;;  %v662_v62 = vsel %vm648_vm0, %v625_v35, %v624_v26  ;;  %v390_v13 = vadd.f32 %v2311_v52, %v2308_v53  ;;  %v397_v51 = vadd.f32 %v2317_v42, %v2314_v21  ;;  %2974 = vst [vmem:[#allocation33_spill] sm:$0xff] %v2347_v49 }
  0x45   : > { %v653_v20 = vsel %vm652_vm2, %v619_v28, %v651_v34  ;;  %v663_v39 = vsel %vm650_vm1, %v626_v19, %v662_v62  ;;  %v404_v1 = vadd.f32 %v2323_v16, %v2320_v41  ;;  %v384_v6 = vrot.slane %v383_v37, 4  ;;  %v2352_v28 = vld [vmem:[%s2106_s7 + $0x150] sm:$0xff]  ;;  %v2360_v19 = vld [vmem:[%s2106_s7 + $0x160] sm:$0xff] }
  0x46   : > { %v655_v10 = vsel %vm654_vm3, %v620_v44, %v653_v20  ;;  %v664_v58 = vsel %vm652_vm2, %v627_v14, %v663_v39  ;;  %v391_v22 = vrot.slane %v390_v13, 4  ;;  %v398_v50 = vrot.slane %v397_v51, 4  ;;  %2975 = vst [vmem:[#allocation34_spill] sm:$0xff] %v2352_v28  ;;  %v2355_v44 = vld [vmem:[%s2106_s7 + $0x158] sm:$0xff]  ;;  %2977 = vst [vmem:[#allocation36_spill] sm:$0xff] %v2360_v19  ;;  %v2363_v14 = vld [vmem:[%s2106_s7 + $0x168] sm:$0xff] }
  0x47   : > { %v657_v46 = vsel %vm656_vm4, %v621_v43, %v655_v10  ;;  %v665_v11 = vsel %vm654_vm3, %v2276_v27, %v664_v58  ;;  %v405_v63 = vrot.slane %v404_v1, 4  ;;  %2976 = vst [vmem:[#allocation35_spill] sm:$0xff] %v2355_v44  ;;  %v385_v43 = vadd.f32 %v384_v6, %v383_v37  ;;  %2978 = vst [vmem:[#allocation37_spill] sm:$0xff] %v2363_v14  ;;  %v2367_v62 = vld [vmem:[%s2106_s7 + $0x170] sm:$0xff] }
  0x48   : > { %v659_v31 = vsel %vm658_vm5, %v622_v25, %v657_v46  ;;  %v666_v24 = vsel %vm656_vm4, %v629_v32, %v665_v11  ;;  %v392_v26 = vadd.f32 %v391_v22, %v390_v13  ;;  %v399_v15 = vadd.f32 %v398_v50, %v397_v51  ;;  %2979 = vst [vmem:[#allocation38_spill] sm:$0xff] %v2367_v62  ;;  %v2370_v32 = vld [vmem:[%s2106_s7 + $0x178] sm:$0xff]  ;;  %v2381_v50 = vld [vmem:[%s2106_s7 + $0x180] sm:$0xff] }
  0x49   : > { %v661_v27 = vsel %vm660_vm6, %v623_v48, %v659_v31  ;;  %v667_v35 = vsel %vm658_vm5, %v630_v23, %v666_v24  ;;  %v406_v34 = vadd.f32 %v405_v63, %v404_v1  ;;  %2980 = vst [vmem:[#allocation39_spill] sm:$0xff] %v2370_v32  ;;  %v386_v20 = vrot.slane %v385_v43, 2  ;;  %2981 = vst [vmem:[#allocation40_spill] sm:$0xff] %v2381_v50  ;;  %v2384_v63 = vld [vmem:[%s2106_s7 + $0x188] sm:$0xff] }
  0x4a   : > { %v668_v25 = vsel %vm660_vm6, %v631_v17, %v667_v35  ;;  %v393_v37 = vrot.slane %v392_v26, 2  ;;  %v411_v48 = vadd.f32 %v2347_v49, %v2344_v29  ;;  %v400_v13 = vrot.slane %v399_v15, 2  ;;  %2982 = vst [vmem:[#allocation41_spill] sm:$0xff] %v2384_v63  ;;  %v2390_v35 = vld [vmem:[%s2106_s7 + $0x198] sm:$0xff] }
  0x4b   : > { %v683_v23 = vpack.c.b16 %v668_v25, %v661_v27  ;;  %v407_v39 = vrot.slane %v406_v34, 2  ;;  %v418_v51 = vadd.f32 %v2355_v44, %v2352_v28  ;;  %v387_v1 = vadd.f32 %v386_v20, %v385_v43  ;;  %v2387_v27 = vld [vmem:[%s2106_s7 + $0x190] sm:$0xff]  ;;  %2984 = vst [vmem:[#allocation43_spill] sm:$0xff] %v2390_v35 }
  0x4c   : > { %v394_v17 = vadd.f32 %v393_v37, %v392_v26  ;;  %v412_v10 = vrot.slane %v411_v48, 4  ;;  %v425_v58 = vadd.f32 %v2363_v14, %v2360_v19  ;;  %v401_v6 = vadd.f32 %v400_v13, %v399_v15  ;;  %2983 = vst [vmem:[#allocation42_spill] sm:$0xff] %v2387_v27  ;;  %v2393_v15 = vld [vmem:[%s2106_s7 + $0x1a0] sm:$0xff]  ;;  %v2396_v37 = vld [vmem:[%s2106_s7 + $0x1a8] sm:$0xff]  ;;  %v2402_v13 = vld [vmem:[%s2106_s7 + $0x1b8] sm:$0xff] }
  0x4d   : > { %1844 = vmatprep.mubr.bf16.mxu0 %v683_v23  ;;  %v408_v22 = vadd.f32 %v407_v39, %v406_v34  ;;  %v419_v46 = vrot.slane %v418_v51, 4  ;;  %v432_v11 = vadd.f32 %v2370_v32, %v2367_v62  ;;  %v388_v31 = vrot.slane %v387_v1, 1  ;;  %2985 = vst [vmem:[#allocation44_spill] sm:$0xff] %v2393_v15  ;;  %2986 = vst [vmem:[#allocation45_spill] sm:$0xff] %v2396_v37  ;;  %v2399_v23 = vld [vmem:[%s2106_s7 + $0x1b0] sm:$0xff] }
  0x4e   : > { %v395_v24 = vrot.slane %v394_v17, 1  ;;  %v413_v43 = vadd.f32 %v412_v10, %v411_v48  ;;  %v426_v26 = vrot.slane %v425_v58, 4  ;;  %v402_v34 = vrot.slane %v401_v6, 1 }
  0x4f   : > { %v420_v25 = vadd.f32 %v419_v46, %v418_v51  ;;  %v433_v20 = vrot.slane %v432_v11, 4  ;;  %v2404_v39 = vadd.f32 %v388_v31, %v387_v1  ;;  %v409_v9 = vrot.slane %v408_v22, 1 }
  0x50   : > { %v414_v48 = vrot.slane %v413_v43, 2  ;;  %v427_v10 = vadd.f32 %v426_v26, %v425_v58  ;;  %v2406_v5 = vadd.f32 %v395_v24, %v394_v17  ;;  %v2408_v4 = vadd.f32 %v402_v34, %v401_v6  ;;  %v2419_v34 = vld [vmem:[%s2106_s7 + $0x1c0] sm:$0xff] }
  0x51   : > { %v421_v2 = vrot.slane %v420_v25, 2  ;;  %v434_v51 = vadd.f32 %v433_v20, %v432_v11  ;;  %v439_v61 = vadd.f32 %v2384_v63, %v2381_v50  ;;  %v446_v1 = vadd.f32 %v2390_v35, %v2387_v27  ;;  %v2422_v20 = vld [vmem:[%s2106_s7 + $0x1c8] sm:$0xff]  ;;  %v2431_v27 = vld [vmem:[%s2106_s7 + $0x1e0] sm:$0xff] }
  0x52   : > { %v415_v46 = vadd.f32 %v414_v48, %v413_v43  ;;  %v428_v60 = vrot.slane %v427_v10, 2  ;;  %v453_v17 = vadd.f32 %v2396_v37, %v2393_v15  ;;  %v460_v6 = vadd.f32 %v2402_v13, %v2399_v23  ;;  %v2425_v37 = vld [vmem:[%s2106_s7 + $0x1d0] sm:$0xff]  ;;  %v2428_v15 = vld [vmem:[%s2106_s7 + $0x1d8] sm:$0xff] }
  0x53   : > { %v422_v31 = vadd.f32 %v421_v2, %v420_v25  ;;  %v435_v58 = vrot.slane %v434_v51, 2  ;;  %v440_v43 = vrot.slane %v439_v61, 4  ;;  %v447_v26 = vrot.slane %v446_v1, 4 }
  0x54   : > { %v416_v24 = vrot.slane %v415_v46, 1  ;;  %v429_v11 = vadd.f32 %v428_v60, %v427_v10  ;;  %v454_v25 = vrot.slane %v453_v17, 4  ;;  %v461_v57 = vrot.slane %v460_v6, 4 }
  0x55   : > { %v423_v48 = vrot.slane %v422_v31, 1  ;;  %v436_v2 = vadd.f32 %v435_v58, %v434_v51  ;;  %v410_v59 = vadd.f32 %v409_v9, %v408_v22  ;;  %v441_v60 = vadd.f32 %v440_v43, %v439_v61  ;;  %v2437_v51 = vld [vmem:[%s2106_s7 + $0x1f0] sm:$0xff]  ;;  %v2440_v58 = vld [vmem:[%s2106_s7 + $0x1f8] sm:$0xff] }
  0x56   : > { %v430_v35 = vrot.slane %v429_v11, 1  ;;  %v448_v10 = vadd.f32 %v447_v26, %v446_v1  ;;  %v417_v63 = vadd.f32 %v416_v24, %v415_v46  ;;  %v455_v32 = vadd.f32 %v454_v25, %v453_v17 }
  0x57   : > { %v424_v50 = vadd.f32 %v423_v48, %v422_v31  ;;  %v462_v62 = vadd.f32 %v461_v57, %v460_v6  ;;  %v437_v45 = vrot.slane %v436_v2, 1  ;;  %v442_v40 = vrot.slane %v441_v60, 2 }
  0x58   : > { %v449_v14 = vrot.slane %v448_v10, 2  ;;  %v467_v9 = vadd.f32 %v2422_v20, %v2419_v34  ;;  %v431_v61 = vadd.f32 %v430_v35, %v429_v11  ;;  %v456_v22 = vrot.slane %v455_v32, 2 }
  0x59   : > { %v463_v1 = vrot.slane %v462_v62, 2  ;;  %v474_v43 = vadd.f32 %v2428_v15, %v2425_v37  ;;  %v443_v46 = vadd.f32 %v442_v40, %v441_v60  ;;  %v481_v57 = vadd.f32 %v2434_v47, %v2431_v27 }
  0x5a   : > { %v450_v31 = vadd.f32 %v449_v14, %v448_v10  ;;  %v468_v17 = vrot.slane %v467_v9, 4  ;;  %v457_v6 = vadd.f32 %v456_v22, %v455_v32  ;;  %v488_v48 = vadd.f32 %v2440_v58, %v2437_v51 }
  0x5b   : > { %v464_v24 = vadd.f32 %v463_v1, %v462_v62  ;;  %v475_v26 = vrot.slane %v474_v43, 4  ;;  %v444_v25 = vrot.slane %v443_v46, 1  ;;  %v482_v11 = vrot.slane %v481_v57, 4 }
  0x5c   : > { %v451_v19 = vrot.slane %v450_v31, 1  ;;  %v469_v35 = vadd.f32 %v468_v17, %v467_v9  ;;  %v458_v44 = vrot.slane %v457_v6, 1  ;;  %v489_v33 = vrot.slane %v488_v48, 4 }
  0x5d   : > { %v465_v28 = vrot.slane %v464_v24, 1  ;;  %v476_v38 = vadd.f32 %v475_v26, %v474_v43  ;;  %v438_v40 = vadd.f32 %v437_v45, %v436_v2  ;;  %v445_v14 = vadd.f32 %v444_v25, %v443_v46 }
  0x5e   : > { %v470_v60 = vrot.slane %v469_v35, 2  ;;  %v483_v10 = vadd.f32 %v482_v11, %v481_v57  ;;  %v452_v49 = vadd.f32 %v451_v19, %v450_v31  ;;  %v459_v29 = vadd.f32 %v458_v44, %v457_v6 }
  0x5f   : > { %v477_v32 = vrot.slane %v476_v38, 2  ;;  %v490_v62 = vadd.f32 %v489_v33, %v488_v48  ;;  %v466_v22 = vadd.f32 %v465_v28, %v464_v24  ;;  %v512_v41 = vmul.f32 0.0625, %v2404_v39 }
  0x60   : > { %v471_v1 = vadd.f32 %v470_v60, %v469_v35  ;;  %v484_v16 = vrot.slane %v483_v10, 2  ;;  %v513_v17 = vmul.f32 0.0625, %v2406_v5  ;;  %v514_v43 = vmul.f32 0.0625, %v2408_v4 }
  0x61   : > { %v478_v18 = vadd.f32 %v477_v32, %v476_v38  ;;  %v491_v9 = vrot.slane %v490_v62, 2  ;;  %v515_v2 = vmul.f32 0.0625, %v410_v59  ;;  %v516_v46 = vmul.f32 0.0625, %v417_v63 }
  0x62   : > { %v472_v26 = vrot.slane %v471_v1, 1  ;;  %v485_v45 = vadd.f32 %v484_v16, %v483_v10  ;;  %v517_v44 = vmul.f32 0.0625, %v424_v50  ;;  %v518_v31 = vmul.f32 0.0625, %v431_v61 }
  0x63   : > { %v479_v57 = vrot.slane %v478_v18, 1  ;;  %v492_v19 = vadd.f32 %v491_v9, %v490_v62  ;;  %v519_v6 = vmul.f32 0.0625, %v438_v40  ;;  %v520_v24 = vmul.f32 0.0625, %v445_v14 }
  0x64   : > { %v473_v33 = vadd.f32 %v472_v26, %v471_v1  ;;  %v486_v28 = vrot.slane %v485_v45, 1  ;;  %v521_v38 = vmul.f32 0.0625, %v452_v49  ;;  %v522_v25 = vmul.f32 0.0625, %v459_v29 }
  0x65   : > { %v480_v48 = vadd.f32 %v479_v57, %v478_v18  ;;  %v493_v39 = vrot.slane %v492_v19, 1  ;;  %v523_v5 = vmul.f32 0.0625, %v466_v22  ;;  %v544_v4 = vpack.c.bf16 %v512_v41, %v512_v41 }
  0x66   : > { %v487_v35 = vadd.f32 %v486_v28, %v485_v45  ;;  %v524_v11 = vmul.f32 0.0625, %v473_v33  ;;  %v545_v59 = vpack.c.bf16 %v513_v17, %v513_v17  ;;  %v546_v63 = vpack.c.bf16 %v514_v43, %v514_v43 }
  0x67   : > { %v494_v60 = vadd.f32 %v493_v39, %v492_v19  ;;  %v525_v16 = vmul.f32 0.0625, %v480_v48  ;;  %v547_v32 = vpack.c.bf16 %v515_v2, %v515_v2  ;;  %v548_v50 = vpack.c.bf16 %v516_v46, %v516_v46 }
  0x68   : > { %v526_v10 = vmul.f32 0.0625, %v487_v35  ;;  %v549_v61 = vpack.c.bf16 %v517_v44, %v517_v44  ;;  %v550_v1 = vpack.c.bf16 %v518_v31, %v518_v31  ;;  %v552_v40 = vpack.c.bf16 %v520_v24, %v520_v24 }
  0x69   : > { %v527_v62 = vmul.f32 0.0625, %v494_v60  ;;  %v553_v14 = vpack.c.bf16 %v521_v38, %v521_v38  ;;  %v551_v18 = vpack.c.bf16 %v519_v6, %v519_v6  ;;  %v554_v9 = vpack.c.bf16 %v522_v25, %v522_v25 }
  0x6a   : > { %v555_v49 = vpack.c.bf16 %v523_v5, %v523_v5  ;;  %v556_v29 = vpack.c.bf16 %v524_v11, %v524_v11  ;;  %v557_v26 = vpack.c.bf16 %v525_v16, %v525_v16  ;;  %v558_v22 = vpack.c.bf16 %v526_v10, %v526_v10 }
  0x6b   : > { %v632_v45 = vunpack.c.l.b16 %v544_v4  ;;  %v633_v41 = vunpack.c.l.b16 %v545_v59  ;;  %v559_v57 = vpack.c.bf16 %v527_v62, %v527_v62  ;;  %v634_v19 = vunpack.c.l.b16 %v546_v63 }
  0x6c   : > { %v635_v17 = vunpack.c.l.b16 %v547_v32  ;;  %v636_v43 = vunpack.c.l.b16 %v548_v50  ;;  %v637_v33 = vunpack.c.l.b16 %v549_v61  ;;  %v638_v2 = vunpack.c.l.b16 %v550_v1 }
  0x6d   : > { %v640_v46 = vunpack.c.l.b16 %v552_v40  ;;  %v641_v44 = vunpack.c.l.b16 %v553_v14  ;;  %v639_v28 = vunpack.c.l.b16 %v551_v18  ;;  %v642_v31 = vunpack.c.l.b16 %v554_v9  ;;  %v3000_v9 = vld [vmem:[#allocation6_spill] sm:$0xff] }
  0x6e   : > { %v643_v24 = vunpack.c.l.b16 %v555_v49  ;;  %v644_v48 = vunpack.c.l.b16 %v556_v29  ;;  %v645_v6 = vunpack.c.l.b16 %v557_v26  ;;  %v646_v39 = vunpack.c.l.b16 %v558_v22  ;;  %v3001_v49 = vld [vmem:[#allocation38_spill] sm:$0xff]  ;;  %v3002_v29 = vld [vmem:[#allocation39_spill] sm:$0xff]  ;;  %v3003_v22 = vld [vmem:[#allocation40_spill] sm:$0xff] }
  0x6f   : > { %v669_v38 = vsel %vm648_vm0, %v633_v41, %v632_v45  ;;  %v676_v25 = vsel %vm648_vm0, %v641_v44, %v640_v46  ;;  %v750_v11 = vpack.c.bf16 %v2271_v12, %v2268_v7  ;;  %v751_v4 = vpack.c.bf16 %v2282_v36, %v2279_v30  ;;  %v3004_v45 = vld [vmem:[#allocation41_spill] sm:$0xff]  ;;  %v3011_v44 = vld [vmem:[#allocation44_spill] sm:$0xff] }
  0x70   : > { %v670_v35 = vsel %vm650_vm1, %v634_v19, %v669_v38  ;;  %v677_v5 = vsel %vm650_vm1, %v642_v31, %v676_v25  ;;  %v647_v60 = vunpack.c.l.b16 %v559_v57  ;;  %v752_v63 = vpack.c.bf16 %v2305_v54, %v2302_v0  ;;  %v3005_v57 = vld [vmem:[#allocation7_spill] sm:$0xff]  ;;  %v3006_v19 = vld [vmem:[#allocation42_spill] sm:$0xff]  ;;  %v3017_v38 = vld [vmem:[#allocation13_spill] sm:$0xff] }
  0x71   : > { %v671_v16 = vsel %vm652_vm2, %v635_v17, %v670_v35  ;;  %v678_v59 = vsel %vm652_vm2, %v643_v24, %v677_v5  ;;  %1892 = vmatprep.mubr.bf16.mxu1 %v750_v11  ;;  %v753_v54 = vpack.c.bf16 %v2311_v52, %v2308_v53  ;;  %v763_v62 = vpack.c.bf16 %v2402_v13, %v2399_v23  ;;  %v2995_v23 = vld [vmem:[#allocation34_spill] sm:$0xff]  ;;  %v3007_v17 = vld [vmem:[#allocation43_spill] sm:$0xff] }
  0x72   : > { %v672_v10 = vsel %vm654_vm3, %v636_v43, %v671_v16  ;;  %v679_v32 = vsel %vm654_vm3, %v644_v48, %v678_v59  ;;  %1893 = vmatmul.mubr.bf16.gmra.mrb[4].mxu1 %v751_v4  ;;  %v754_v1 = vpack.c.bf16 %v2317_v42, %v2314_v21  ;;  %v764_v40 = vpack.c.bf16 %v2422_v20, %v2419_v34  ;;  %v2988_v21 = vld [vmem:[#allocation2_spill] sm:$0xff]  ;;  %v2997_v34 = vld [vmem:[#allocation36_spill] sm:$0xff]  ;;  %v2998_v20 = vld [vmem:[#allocation37_spill] sm:$0xff] }
  0x73   : > { %v673_v50 = vsel %vm656_vm4, %v637_v33, %v672_v10  ;;  %v680_v7 = vsel %vm656_vm4, %v645_v6, %v679_v32  ;;  %1896 = vmatprep.mubr.bf16.mxu1 %v752_v63  ;;  %v765_v14 = vpack.c.bf16 %v2428_v15, %v2425_v37  ;;  %v2987_v18 = vpack.c.bf16 %v2145_v56, %v2142_v55  ;;  %v2989_v42 = vld [vmem:[#allocation30_spill] sm:$0xff]  ;;  %v2991_v37 = vld [vmem:[#allocation32_spill] sm:$0xff]  ;;  %v2992_v55 = vld [vmem:[#allocation33_spill] sm:$0xff] }
  0x74   : > { %v674_v12 = vsel %vm658_vm5, %v638_v2, %v673_v50  ;;  %v681_v30 = vsel %vm658_vm5, %v646_v39, %v680_v7  ;;  %v766_v53 = vpack.c.bf16 %v2434_v47, %v2431_v27  ;;  %v767_v52 = vpack.c.bf16 %v2440_v58, %v2437_v51  ;;  %v2993_v47 = vld [vmem:[#allocation3_spill] sm:$0xff]  ;;  %v2994_v27 = vld [vmem:[#allocation4_spill] sm:$0xff]  ;;  %v2999_v58 = vld [vmem:[#allocation5_spill] sm:$0xff] }
  0x75   : > { %v675_v36 = vsel %vm660_vm6, %v639_v28, %v674_v12  ;;  %v682_v61 = vsel %vm660_vm6, %v647_v60, %v681_v30  ;;  %v756_v56 = vpack.c.bf16 %v2992_v55, %v2991_v37  ;;  %v758_v51 = vpack.c.bf16 %v2998_v20, %v2997_v34  ;;  %v3008_v33 = vld [vmem:[#allocation9_spill] sm:$0xff]  ;;  %v3009_v2 = vld [vmem:[#allocation8_spill] sm:$0xff]  ;;  %v3013_v24 = vld [vmem:[#allocation11_spill] sm:$0xff] }
  0x76   : > { %v684_v0 = vpack.c.b16 %v682_v61, %v675_v36  ;;  %v759_v26 = vpack.c.bf16 %v3002_v29, %v3001_v49  ;;  %v760_v41 = vpack.c.bf16 %v3004_v45, %v3003_v22  ;;  %v761_v43 = vpack.c.bf16 %v3007_v17, %v3006_v19  ;;  %v3012_v28 = vld [vmem:[#allocation45_spill] sm:$0xff]  ;;  %v3014_v48 = vld [vmem:[#allocation10_spill] sm:$0xff]  ;;  %v3016_v39 = vld [vmem:[#allocation12_spill] sm:$0xff] }
  0x77   : > { %v3010_v46 = vpack.c.bf16 %v3008_v33, %v3009_v2  ;;  %v762_v31 = vpack.c.bf16 %v3012_v28, %v3011_v44  ;;  %v3015_v6 = vpack.c.bf16 %v3013_v24, %v3014_v48  ;;  %v739_v25 = vpack.c.bf16 %v3017_v38, %v3016_v39  ;;  %v3018_v35 = vld [vmem:[#allocation14_spill] sm:$0xff]  ;;  %v3019_v5 = vld [vmem:[#allocation15_spill] sm:$0xff]  ;;  %v3020_v4 = vld [vmem:[#allocation16_spill] sm:$0xff] }
  0x78   : > { %1845 = vmatmul.mubr.bf16.vlgmr.msra.gmra.mrb[0].mxu0 %v684_v0  ;;  %v740_v11 = vpack.c.bf16 %v3019_v5, %v3018_v35  ;;  %v3021_v60 = vld [vmem:[#allocation17_spill] sm:$0xff]  ;;  %v3022_v59 = vld [vmem:[#allocation18_spill] sm:$0xff]  ;;  %v3023_v63 = vld [vmem:[#allocation19_spill] sm:$0xff]  ;;  %v1089_v55 = vlaneseq }
  0x79   : > { %1849 = vmatpush3.bf16.msra.mxu0 %v2004_v3  ;;  %1864 = vmatprep.mubr.bf16.mxu0 %v2987_v18  ;;  %v2990_v3 = vld [vmem:[#allocation31_spill] sm:$0xff]  ;;  %v741_v16 = vpack.c.bf16 %v3021_v60, %v3020_v4  ;;  %v742_v10 = vpack.c.bf16 %v3023_v63, %v3022_v59  ;;  %v3024_v32 = vld [vmem:[#allocation20_spill] sm:$0xff]  ;;  %v3025_v50 = vld [vmem:[#allocation21_spill] sm:$0xff] }
  0x7a   : > { %1850 = vmatprep.subr.bf16.mxu0 %v2015_v8  ;;  %1897 = vmatmul.mubr.bf16.gmra.mrb[8].mxu1 %v753_v54  ;;  %v755_v15 = vpack.c.bf16 %v2990_v3, %v2989_v42  ;;  %v743_v7 = vpack.c.bf16 %v3025_v50, %v3024_v32  ;;  %v3026_v12 = vld [vmem:[#allocation22_spill] sm:$0xff]  ;;  %v3027_v30 = vld [vmem:[#allocation23_spill] sm:$0xff]  ;;  %v3028_v61 = vld [vmem:[#allocation24_spill] sm:$0xff] }
  0x7b   : > { %1900 = vmatprep.mubr.bf16.mxu1 %v754_v1  ;;  %v744_v36 = vpack.c.bf16 %v3027_v30, %v3026_v12  ;;  %v3029_v0 = vld [vmem:[#allocation25_spill] sm:$0xff]  ;;  %v3031_v1 = vld [vmem:[#allocation27_spill] sm:$0xff]  ;;  %v3032_v18 = vld [vmem:[#allocation28_spill] sm:$0xff] }
  0x7c   : > { %v745_v54 = vpack.c.bf16 %v3029_v0, %v3028_v61 }
  0x7d   : > { %1851 = vmatpush3.bf16.msra.mxu0 %v2015_v8  ;;  %v2996_v8 = vld [vmem:[#allocation35_spill] sm:$0xff] }
  0x7e   : > { %1852 = vmatprep.subr.bf16.mxu0 %v2988_v21  ;;  %v757_v13 = vpack.c.bf16 %v2996_v8, %v2995_v23 }
  0x81   : > { %1853 = vmatpush3.bf16.msra.mxu0 %v2988_v21 }
  0x82   : > { %1854 = vmatprep.subr.bf16.mxu0 %v2993_v47  ;;  %1901 = vmatmul.mubr.bf16.gmra.mrb[12].mxu1 %v755_v15 }
  0x83   : > { %1904 = vmatprep.mubr.bf16.mxu1 %v756_v56 }
  0x85   : > { %1855 = vmatpush3.bf16.msra.mxu0 %v2993_v47  ;;  %v1090_v47 = vshrl.u32 %v1089_v55, 7 }
  0x86   : > { %1856 = vmatprep.subr.bf16.mxu0 %v2994_v27 }
  0x87   : > { %v2577_v2 = vsub.s32 0, %v1090_v47 }
  0x89   : > { %1857 = vmatpush3.bf16.msra.mxu0 %v2994_v27 }
  0x8a   : > { %1858 = vmatprep.subr.bf16.mxu0 %v2999_v58  ;;  %1905 = vmatmul.mubr.bf16.gmra.mrb[16].mxu1 %v757_v13 }
  0x8b   : > { %1908 = vmatprep.mubr.bf16.mxu1 %v758_v51 }
  0x8d   : > { %1859 = vmatpush3.bf16.msra.mxu0 %v2999_v58 }
  0x8e   : > { %1860 = vmatprep.subr.bf16.mxu0 %v3000_v9 }
  0x91   : > { %1861 = vmatpush3.bf16.msra.mxu0 %v3000_v9 }
  0x92   : > { %1862 = vmatprep.subr.bf16.mxu0 %v3005_v57  ;;  %1909 = vmatmul.mubr.bf16.gmra.mrb[20].mxu1 %v759_v26 }
  0x93   : > { %1912 = vmatprep.mubr.bf16.mxu1 %v760_v41 }
  0x95   : > { %1863 = vmatpush3.bf16.msra.mxu0 %v3005_v57 }
  0x98   : > { %1865 = vmatmul.mubr.bf16.vlgmr.msra.gmra.mrb[4].mxu0 %v3010_v46 }
  0x99   : > { %1868 = vmatprep.mubr.bf16.mxu0 %v3015_v6 }
  0x9a   : > { %1913 = vmatmul.mubr.bf16.gmra.mrb[24].mxu1 %v761_v43 }
  0x9b   : > { %1916 = vmatprep.mubr.bf16.mxu1 %v762_v31 }
  0xa0   : > { %1869 = vmatmul.mubr.bf16.gmra.mrb[8].mxu0 %v739_v25 }
  0xa1   : > { %1872 = vmatprep.mubr.bf16.mxu0 %v740_v11 }
  0xa2   : > { %1917 = vmatmul.mubr.bf16.gmra.mrb[28].mxu1 %v763_v62  ;;  %v3030_v62 = vld [vmem:[#allocation26_spill] sm:$0xff] }
  0xa3   : > { %1920 = vmatprep.mubr.bf16.mxu1 %v764_v40  ;;  %v746_v40 = vpack.c.bf16 %v3031_v1, %v3030_v62 }
  0xa8   : > { %1873 = vmatmul.mubr.bf16.gmra.mrb[12].mxu0 %v741_v16 }
  0xa9   : > { %1876 = vmatprep.mubr.bf16.mxu0 %v742_v10 }
  0xaa   : > { %1921 = vmatmul.mubr.bf16.gmra.mrb[32].mxu1 %v765_v14  ;;  %v3033_v14 = vld [vmem:[#allocation29_spill] sm:$0xff] }
  0xab   : > { %1924 = vmatprep.mubr.bf16.mxu1 %v766_v53  ;;  %v747_v21 = vpack.c.bf16 %v3033_v14, %v3032_v18 }
  0xb0   : > { %1877 = vmatmul.mubr.bf16.gmra.mrb[16].mxu0 %v743_v7 }
  0xb1   : > { %1880 = vmatprep.mubr.bf16.mxu0 %v744_v36 }
  0xb2   : > { %1925 = vmatmul.mubr.bf16.gmra.mrb[36].mxu1 %v767_v52  ;;  %v1961_v52 = vmov 1966171168  }
  0xb3   : > { %v1087_v37 = vunpack.c.l.s4 %v1961_v52 }
  0xb5   : > { %v1088_v56 = vunpack.c.0.s8 %v1087_v37 }
  0xb7   : > { %v2557_v8 = vsub.s32 %v1088_v56, %v1090_v47 }
  0xb8   : > { %1881 = vmatmul.mubr.bf16.gmra.mrb[20].mxu0 %v745_v54  ;;  %v2617_v54 = vld [vmem:[%s2890_s3] ss:$0 sm:$0xff] }
  0xb9   : > { %1884 = vmatprep.mubr.bf16.mxu0 %v746_v40 }
  0xc0   : > { %1885 = vmatmul.mubr.bf16.gmra.mrb[24].mxu0 %v747_v21 }
 0x105   : > { %v2545_v42 = vpop.f32.mrb[0].mxu1 }
 0x106   : > { %v2547_v53 = vpop.f32.mrb[1].mxu1 }
 0x107   : > { %v2549_v3 = vpop.f32.mrb[2].mxu1 }
 0x108   : > { %v2551_v15 = vpop.f32.mrb[3].mxu1 }
 0x145   : > { %v2553_v27 = vpop.f32.mrb[4].mxu1 }
 0x146   : > { %v2555_v23 = vpop.f32.mrb[5].mxu1 }
 0x147   : > { %v2559_v13 = vpop.f32.mrb[6].mxu1 }
 0x148   : > { %v2561_v34 = vpop.f32.mrb[7].mxu1 }
 0x14b   : > { %v1846_v20 = vpop.f32.mrb[0].mxu0 }
 0x14c   : > { %v1183_v51 = vcombine.high %v1846_v20, %v1846_v20  ;;  %v1190_v58 = vrot.slane %v1846_v20, %v2557_v8  ;;  %v721_v9 = vpop.f32.mrb[1].mxu0 }
 0x14d   : > { %v1085_v49 = vcombine.high %v721_v9, %v721_v9  ;;  %v2565_v29 = vrot.slane %v721_v9, %v2557_v8  ;;  %v1847_v26 = vpop.f32.mrb[2].mxu0  ;;  %v1898_v19 = vpop.f32.mrb[8].mxu1 }
 0x14e   : > { %v1197_v22 = vrot.slane %v1183_v51, %v2557_v8  ;;  %v1198_v45 = vcombine.high %v1190_v58, %v1190_v58  ;;  %v1232_v41 = vcombine.high %v1847_v26, %v1847_v26  ;;  %v724_v57 = vpop.f32.mrb[3].mxu0  ;;  %v2569_v17 = vrot.slane %v1190_v58, %v2557_v8  ;;  %v954_v46 = vpop.f32.mrb[9].mxu1 }
 0x14f   : > { %v2572_v43 = vrot.slane %v1085_v49, %v2557_v8  ;;  %v2575_v33 = vrot.slane %v1847_v26, %v2557_v8  ;;  %v1100_v28 = vcombine.high %v2565_v29, %v2565_v29  ;;  %v1134_v31 = vcombine.high %v724_v57, %v724_v57  ;;  %v1899_v24 = vpop.f32.mrb[10].mxu1 }
 0x150   : > { %v1199_v44 = vcombine.high %v1197_v22, %v1197_v22  ;;  %v2583_v48 = vrot.slane %v2565_v29, %v2557_v8  ;;  %v2586_v6 = vrot.slane %v1232_v41, %v2557_v8  ;;  %v2589_v39 = vrot.slane %v724_v57, %v2557_v8  ;;  %v957_v25 = vpop.f32.mrb[11].mxu1 }
 0x151   : > { %v1220_v38 = vrot.slane %v1198_v45, %v2557_v8  ;;  %v1101_v35 = vcombine.high %v2572_v43, %v2572_v43  ;;  %v1247_v5 = vcombine.high %v2575_v33, %v2575_v33  ;;  %v2598_v11 = vrot.slane %v2575_v33, %v2557_v8 }
 0x152   : > { %v1148_v4 = vrot.slane %v1134_v31, %v2557_v8  ;;  %v1348_v16 = vrot.slane %v2569_v17, %v2577_v2  ;;  %v1228_v63 = vcombine.high %v2569_v17, %v2569_v17  ;;  %v2608_v50 = vrot.slane %v1199_v44, %v2557_v8 }
 0x153   : > { %v1352_v60 = vrot.slane %v1220_v38, %v2577_v2  ;;  %v1230_v59 = vcombine.high %v1220_v38, %v1220_v38  ;;  %v2611_v7 = vrot.slane %v1197_v22, %v2557_v8 }
 0x154   : > { %v1150_v10 = vcombine.high %v1148_v4, %v1148_v4  ;;  %v1164_v32 = vrot.slane %v1148_v4, %v2557_v8  ;;  %v1473_v30 = vadd.f32 %v1348_v16, %v954_v46  ;;  %v1474_v61 = vadd.f32 %v1348_v16, %v957_v25 }
 0x155   : > { %v1475_v12 = vadd.f32 %v1898_v19, %v1352_v60  ;;  %v1476_v36 = vadd.f32 %v1899_v24, %v1352_v60  ;;  %v1902_v40 = vpop.f32.mrb[12].mxu1  ;;  %v1360_v18 = vrot.slane %v1230_v59, %v2577_v2  ;;  %v1356_v16 = vrot.slane %v1228_v63, %v2577_v2 }
 0x156   : > { %v1332_v0 = vrot.slane %v1164_v32, %v2577_v2  ;;  %v1178_v62 = vrot.slane %v1150_v10, %v2557_v8  ;;  %v1180_v1 = vcombine.high %v1164_v32, %v1164_v32  ;;  %v1544_v21 = vadd.f32 %v2617_v54, %v1473_v30  ;;  %v970_v55 = vpop.f32.mrb[13].mxu1 }
 0x157   : > { %v1546_v14 = vadd.f32 %v2617_v54, %v1475_v12  ;;  %v1547_v52 = vadd.f32 %v2617_v54, %v1476_v36  ;;  %v1545_v37 = vadd.f32 %v2617_v54, %v1474_v61  ;;  %v1903_v58 = vpop.f32.mrb[14].mxu1 }
 0x158   : > { %v1465_v56 = vadd.f32 %v1332_v0, %v2547_v53  ;;  %v1466_v47 = vadd.f32 %v1332_v0, %v2551_v15  ;;  %v1182_v20 = vcombine.high %v1178_v62, %v1178_v62  ;;  %v1336_v51 = vrot.slane %v1178_v62, %v2577_v2  ;;  %v973_v45 = vpop.f32.mrb[15].mxu1 }
 0x159   : > { %v1340_v9 = vrot.slane %v1180_v1, %v2577_v2  ;;  %v1610_v49 = vmax.f32 %v1546_v14, 0.0  ;;  %v1608_v26 = vmax.f32 %v1544_v21, 0.0  ;;  %v1611_v22 = vmax.f32 %v1547_v52, 0.0 }
 0x15a   : > { %v1536_v53 = vadd.f32 %v2617_v54, %v1465_v56  ;;  %v1537_v15 = vadd.f32 %v2617_v54, %v1466_v47  ;;  %v1344_v41 = vrot.slane %v1182_v20, %v2577_v2  ;;  %v1467_v57 = vadd.f32 %v2545_v42, %v1336_v51 }
 0x15b   : > { %v1468_v19 = vadd.f32 %v2549_v3, %v1336_v51  ;;  %v1469_v17 = vadd.f32 %v1340_v9, %v2555_v23  ;;  %v1470_v46 = vadd.f32 %v1340_v9, %v2561_v34  ;;  %1674 = vst [vmem:[%s2634_s18 + $0x110] sm:$0xff] %v1610_v49  ;;  %1672 = vst [vmem:[%s2634_s18 + $0x100] sm:$0xff] %v1608_v26  ;;  %v1609_v44 = vmax.f32 %v1545_v37, 0.0 }
 0x15c   : > { %1675 = vst [vmem:[%s2634_s18 + $0x118] sm:$0xff] %v1611_v22  ;;  %v1600_v31 = vmax.f32 %v1536_v53, 0.0  ;;  %v1601_v24 = vmax.f32 %v1537_v15, 0.0  ;;  %v1471_v38 = vadd.f32 %v2553_v27, %v1344_v41  ;;  %v1538_v25 = vadd.f32 %v2617_v54, %v1467_v57 }
 0x15d   : > { %v1539_v42 = vadd.f32 %v2617_v54, %v1468_v19  ;;  %v1540_v3 = vadd.f32 %v2617_v54, %v1469_v17  ;;  %v1472_v4 = vadd.f32 %v2559_v13, %v1344_v41  ;;  %v1541_v23 = vadd.f32 %v2617_v54, %v1470_v46  ;;  %1673 = vst [vmem:[%s2634_s18 + $0x108] sm:$0xff] %v1609_v44  ;;  %v1906_v59 = vpop.f32.mrb[16].mxu1 }
 0x15e   : > { %1664 = vst [vmem:[%s2634_s18 + $0xc0] sm:$0xff] %v1600_v31  ;;  %1665 = vst [vmem:[%s2634_s18 + $0xc8] sm:$0xff] %v1601_v24  ;;  %v1542_v34 = vadd.f32 %v2617_v54, %v1471_v38  ;;  %v1602_v60 = vmax.f32 %v1538_v25, 0.0  ;;  %v1479_v27 = vadd.f32 %v1902_v40, %v1360_v18  ;;  %v986_v30 = vpop.f32.mrb[17].mxu1  ;;  %v1477_v0 = vadd.f32 %v1356_v16, %v970_v55 }
 0x15f   : > { %v1603_v10 = vmax.f32 %v1539_v42, 0.0  ;;  %v1604_v32 = vmax.f32 %v1540_v3, 0.0  ;;  %v1543_v13 = vadd.f32 %v2617_v54, %v1472_v4  ;;  %v1605_v12 = vmax.f32 %v1541_v23, 0.0  ;;  %v1907_v1 = vpop.f32.mrb[18].mxu1 }
 0x160   : > { %v1606_v36 = vmax.f32 %v1542_v34, 0.0  ;;  %1666 = vst [vmem:[%s2634_s18 + $0xd0] sm:$0xff] %v1602_v60  ;;  %v1550_v61 = vadd.f32 %v2617_v54, %v1479_v27  ;;  %v1480_v62 = vadd.f32 %v1903_v58, %v1360_v18  ;;  %v1478_v40 = vadd.f32 %v1356_v16, %v973_v45  ;;  %v989_v52 = vpop.f32.mrb[19].mxu1 }
 0x161   : > { %1667 = vst [vmem:[%s2634_s18 + $0xd8] sm:$0xff] %v1603_v10  ;;  %1668 = vst [vmem:[%s2634_s18 + $0xe0] sm:$0xff] %v1604_v32  ;;  %v1607_v63 = vmax.f32 %v1543_v13, 0.0  ;;  %v1368_v14 = vrot.slane %v2608_v50, %v2577_v2  ;;  %v1364_v21 = vrot.slane %v2611_v7, %v2577_v2  ;;  %v1548_v55 = vadd.f32 %v2617_v54, %v1477_v0 }
 0x162   : > { %1669 = vst [vmem:[%s2634_s18 + $0xe8] sm:$0xff] %v1605_v12  ;;  %1670 = vst [vmem:[%s2634_s18 + $0xf0] sm:$0xff] %v1606_v36  ;;  %v1614_v37 = vmax.f32 %v1550_v61, 0.0  ;;  %v1551_v18 = vadd.f32 %v2617_v54, %v1480_v62  ;;  %v1122_v56 = vrot.slane %v1100_v28, %v2557_v8  ;;  %v1549_v47 = vadd.f32 %v2617_v54, %v1478_v40 }
 0x163   : > { %1671 = vst [vmem:[%s2634_s18 + $0xf8] sm:$0xff] %v1607_v63  ;;  %v1483_v20 = vadd.f32 %v1906_v59, %v1368_v14  ;;  %v1481_v51 = vadd.f32 %v1364_v21, %v986_v30  ;;  %v1484_v58 = vadd.f32 %v1907_v1, %v1368_v14  ;;  %v1248_v9 = vcombine.high %v2586_v6, %v2586_v6 }
 0x164   : > { %v1149_v49 = vcombine.high %v2589_v39, %v2589_v39  ;;  %1678 = vst [vmem:[%s2634_s18 + $0x130] sm:$0xff] %v1614_v37  ;;  %v1612_v26 = vmax.f32 %v1548_v55, 0.0  ;;  %v1615_v22 = vmax.f32 %v1551_v18, 0.0  ;;  %v1613_v29 = vmax.f32 %v1549_v47, 0.0 }
 0x165   : > { %v1554_v28 = vadd.f32 %v2617_v54, %v1483_v20  ;;  %v1552_v45 = vadd.f32 %v2617_v54, %v1481_v51  ;;  %v1555_v53 = vadd.f32 %v2617_v54, %v1484_v58  ;;  %v1482_v15 = vadd.f32 %v1364_v21, %v989_v52  ;;  %v1910_v41 = vpop.f32.mrb[20].mxu1 }
 0x166   : > { %1676 = vst [vmem:[%s2634_s18 + $0x120] sm:$0xff] %v1612_v26  ;;  %1679 = vst [vmem:[%s2634_s18 + $0x138] sm:$0xff] %v1615_v22  ;;  %v1231_v57 = vcombine.high %v2608_v50, %v2608_v50  ;;  %v1229_v19 = vcombine.high %v2611_v7, %v2611_v7  ;;  %v1132_v17 = vcombine.high %v1122_v56, %v1122_v56  ;;  %v1002_v24 = vpop.f32.mrb[21].mxu1 }
 0x167   : > { %1677 = vst [vmem:[%s2634_s18 + $0x128] sm:$0xff] %v1613_v29  ;;  %v1618_v46 = vmax.f32 %v1554_v28, 0.0  ;;  %v1616_v44 = vmax.f32 %v1552_v45, 0.0  ;;  %v1619_v31 = vmax.f32 %v1555_v53, 0.0  ;;  %v1130_v38 = vcombine.high %v2583_v48, %v2583_v48  ;;  %v1911_v3 = vpop.f32.mrb[22].mxu1 }
 0x168   : > { %v2695_v25 = vrot.slane %v2589_v39, %v2557_v8  ;;  %v1553_v42 = vadd.f32 %v2617_v54, %v1482_v15  ;;  %v1376_v50 = vrot.slane %v1231_v57, %v2577_v2  ;;  %v1372_v7 = vrot.slane %v1229_v19, %v2577_v2  ;;  %v1005_v34 = vpop.f32.mrb[23].mxu1 }
 0x169   : > { %1682 = vst [vmem:[%s2634_s18 + $0x150] sm:$0xff] %v1618_v46  ;;  %1680 = vst [vmem:[%s2634_s18 + $0x140] sm:$0xff] %v1616_v44  ;;  %v1288_v4 = vrot.slane %v1122_v56, %v2577_v2  ;;  %v1284_v23 = vrot.slane %v2583_v48, %v2577_v2  ;;  %v2710_v60 = vrot.slane %v1247_v5, %v2557_v8 }
 0x16a   : > { %1683 = vst [vmem:[%s2634_s18 + $0x158] sm:$0xff] %v1619_v31  ;;  %v2716_v27 = vrot.slane %v1101_v35, %v2557_v8  ;;  %v1617_v16 = vmax.f32 %v1553_v42, 0.0  ;;  %v1487_v59 = vadd.f32 %v1910_v41, %v1376_v50  ;;  %v1485_v10 = vadd.f32 %v1372_v7, %v1002_v24 }
 0x16b   : > { %v1488_v32 = vadd.f32 %v1911_v3, %v1376_v50  ;;  %v1866_v13 = vpop.f32.mrb[4].mxu0  ;;  %v2719_v48 = vrot.slane %v1132_v17, %v2577_v2  ;;  %v2722_v12 = vrot.slane %v1130_v38, %v2577_v2  ;;  %v1486_v33 = vadd.f32 %v1372_v7, %v1005_v34 }
 0x16c   : > { %v1380_v5 = vrot.slane %v2598_v11, %v2577_v2  ;;  %v1443_v30 = vadd.f32 %v1866_v13, %v1288_v4  ;;  %v826_v36 = vpop.f32.mrb[5].mxu0  ;;  %1681 = vst [vmem:[%s2634_s18 + $0x148] sm:$0xff] %v1617_v16  ;;  %v1558_v35 = vadd.f32 %v2617_v54, %v1487_v59  ;;  %v1556_v61 = vadd.f32 %v2617_v54, %v1485_v10 }
 0x16d   : > { %v1559_v0 = vadd.f32 %v2617_v54, %v1488_v32  ;;  %v1441_v62 = vadd.f32 %v1284_v23, %v826_v36  ;;  %v1867_v1 = vpop.f32.mrb[6].mxu0  ;;  %v1557_v63 = vadd.f32 %v2617_v54, %v1486_v33  ;;  %v1384_v40 = vrot.slane %v2710_v60, %v2577_v2  ;;  %v1914_v56 = vpop.f32.mrb[24].mxu1 }
 0x16e   : > { %v2735_v14 = vrot.slane %v2716_v27, %v2577_v2  ;;  %v1514_v21 = vadd.f32 %v2617_v54, %v1443_v30  ;;  %v1444_v52 = vadd.f32 %v1867_v1, %v1288_v4  ;;  %v829_v37 = vpop.f32.mrb[7].mxu0  ;;  %v1622_v55 = vmax.f32 %v1558_v35, 0.0  ;;  %v1018_v26 = vpop.f32.mrb[25].mxu1 }
 0x16f   : > { %v1620_v18 = vmax.f32 %v1556_v61, 0.0  ;;  %v1512_v47 = vadd.f32 %v2617_v54, %v1441_v62  ;;  %v1442_v20 = vadd.f32 %v1284_v23, %v829_v37  ;;  %v1623_v51 = vmax.f32 %v1559_v0, 0.0  ;;  %v1915_v53 = vpop.f32.mrb[26].mxu1 }
 0x170   : > { %v1621_v58 = vmax.f32 %v1557_v63, 0.0  ;;  %v1578_v22 = vmax.f32 %v1514_v21, 0.0  ;;  %v1515_v29 = vadd.f32 %v2617_v54, %v1444_v52  ;;  %1686 = vst [vmem:[%s2634_s18 + $0x170] sm:$0xff] %v1622_v55  ;;  %v1491_v28 = vadd.f32 %v1914_v56, %v1384_v40  ;;  %v1021_v19 = vpop.f32.mrb[27].mxu1 }
 0x171   : > { %1684 = vst [vmem:[%s2634_s18 + $0x160] sm:$0xff] %v1620_v18  ;;  %v1489_v45 = vadd.f32 %v1380_v5, %v1018_v26  ;;  %v1576_v15 = vmax.f32 %v1512_v47, 0.0  ;;  %v1513_v41 = vadd.f32 %v2617_v54, %v1442_v20  ;;  %1687 = vst [vmem:[%s2634_s18 + $0x178] sm:$0xff] %v1623_v51  ;;  %v1492_v57 = vadd.f32 %v1915_v53, %v1384_v40 }
 0x172   : > { %1685 = vst [vmem:[%s2634_s18 + $0x168] sm:$0xff] %v1621_v58  ;;  %v1279_v17 = vcombine.high %v2710_v60, %v2710_v60  ;;  %1642 = vst [vmem:[%s2634_s18 + $0x10] sm:$0xff] %v1578_v22  ;;  %v1579_v46 = vmax.f32 %v1515_v29, 0.0  ;;  %v1562_v44 = vadd.f32 %v2617_v54, %v1491_v28  ;;  %v1490_v24 = vadd.f32 %v1380_v5, %v1021_v19 }
 0x173   : > { %v1560_v31 = vadd.f32 %v2617_v54, %v1489_v45  ;;  %1640 = vst [vmem:[%s2634_s18] sm:$0xff] %v1576_v15  ;;  %v1577_v38 = vmax.f32 %v1513_v41, 0.0  ;;  %v1870_v42 = vpop.f32.mrb[8].mxu0  ;;  %v1563_v50 = vadd.f32 %v2617_v54, %v1492_v57  ;;  %v2754_v7 = vrot.slane %v2572_v43, %v2557_v8 }
 0x174   : > { %v1277_v3 = vcombine.high %v2598_v11, %v2598_v11  ;;  %1643 = vst [vmem:[%s2634_s18 + $0x18] sm:$0xff] %v1579_v46  ;;  %v1447_v4 = vadd.f32 %v1870_v42, %v2719_v48  ;;  %v842_v23 = vpop.f32.mrb[9].mxu0  ;;  %v1626_v34 = vmax.f32 %v1562_v44, 0.0  ;;  %v1561_v16 = vadd.f32 %v2617_v54, %v1490_v24 }
 0x175   : > { %v1624_v60 = vmax.f32 %v1560_v31, 0.0  ;;  %1641 = vst [vmem:[%s2634_s18 + $0x8] sm:$0xff] %v1577_v38  ;;  %v1445_v59 = vadd.f32 %v2722_v12, %v842_v23  ;;  %v1871_v10 = vpop.f32.mrb[10].mxu0  ;;  %v1627_v43 = vmax.f32 %v1563_v50, 0.0  ;;  %v1392_v32 = vrot.slane %v1279_v17, %v2577_v2  ;;  %v1918_v36 = vpop.f32.mrb[28].mxu1 }
 0x176   : > { %v1133_v11 = vcombine.high %v2716_v27, %v2716_v27  ;;  %v1518_v13 = vadd.f32 %v2617_v54, %v1447_v4  ;;  %v1448_v33 = vadd.f32 %v1871_v10, %v2719_v48  ;;  %v845_v5 = vpop.f32.mrb[11].mxu0  ;;  %1690 = vst [vmem:[%s2634_s18 + $0x190] sm:$0xff] %v1626_v34  ;;  %v1625_v30 = vmax.f32 %v1561_v16, 0.0  ;;  %v1034_v1 = vpop.f32.mrb[29].mxu1 }
 0x177   : > { %1688 = vst [vmem:[%s2634_s18 + $0x180] sm:$0xff] %v1624_v60  ;;  %v1388_v35 = vrot.slane %v1277_v3, %v2577_v2  ;;  %v1516_v61 = vadd.f32 %v2617_v54, %v1445_v59  ;;  %v1446_v0 = vadd.f32 %v2722_v12, %v845_v5  ;;  %1691 = vst [vmem:[%s2634_s18 + $0x198] sm:$0xff] %v1627_v43  ;;  %v1919_v21 = vpop.f32.mrb[30].mxu1 }
 0x178   : > { %v1300_v27 = vrot.slane %v2754_v7, %v2577_v2  ;;  %v1495_v62 = vadd.f32 %v1918_v36, %v1392_v32  ;;  %v1582_v63 = vmax.f32 %v1518_v13, 0.0  ;;  %v1519_v48 = vadd.f32 %v2617_v54, %v1448_v33  ;;  %1689 = vst [vmem:[%s2634_s18 + $0x188] sm:$0xff] %v1625_v30  ;;  %v1037_v56 = vpop.f32.mrb[31].mxu1 }
 0x179   : > { %v1493_v40 = vadd.f32 %v1388_v35, %v1034_v1  ;;  %v2782_v52 = vrot.slane %v1248_v9, %v2557_v8  ;;  %v1580_v12 = vmax.f32 %v1516_v61, 0.0  ;;  %v1517_v37 = vadd.f32 %v2617_v54, %v1446_v0 }
 0x17a   : > { %v1566_v55 = vadd.f32 %v2617_v54, %v1495_v62  ;;  %v1496_v18 = vadd.f32 %v1919_v21, %v1392_v32  ;;  %1646 = vst [vmem:[%s2634_s18 + $0x30] sm:$0xff] %v1582_v63  ;;  %v1583_v47 = vmax.f32 %v1519_v48, 0.0  ;;  %v2789_v51 = vrot.slane %v1133_v11, %v2577_v2 }
 0x17b   : > { %v1564_v20 = vadd.f32 %v2617_v54, %v1493_v40  ;;  %v1494_v58 = vadd.f32 %v1388_v35, %v1037_v56  ;;  %1644 = vst [vmem:[%s2634_s18 + $0x20] sm:$0xff] %v1580_v12  ;;  %v1581_v9 = vmax.f32 %v1517_v37, 0.0  ;;  %v1874_v26 = vpop.f32.mrb[12].mxu0  ;;  %v1262_v28 = vrot.slane %v2586_v6, %v2557_v8 }
 0x17c   : > { %v1630_v22 = vmax.f32 %v1566_v55, 0.0  ;;  %v1567_v29 = vadd.f32 %v2617_v54, %v1496_v18  ;;  %1647 = vst [vmem:[%s2634_s18 + $0x38] sm:$0xff] %v1583_v47  ;;  %v1451_v45 = vadd.f32 %v1874_v26, %v2735_v14  ;;  %v858_v53 = vpop.f32.mrb[13].mxu0  ;;  %v1131_v41 = vcombine.high %v2754_v7, %v2754_v7 }
 0x17d   : > { %v1628_v15 = vmax.f32 %v1564_v20, 0.0  ;;  %v1565_v57 = vadd.f32 %v2617_v54, %v1494_v58  ;;  %1645 = vst [vmem:[%s2634_s18 + $0x28] sm:$0xff] %v1581_v9  ;;  %v1449_v19 = vadd.f32 %v1300_v27, %v858_v53  ;;  %v1875_v17 = vpop.f32.mrb[14].mxu0  ;;  %v1400_v6 = vrot.slane %v2782_v52, %v2577_v2  ;;  %v1922_v50 = vpop.f32.mrb[32].mxu1 }
 0x17e   : > { %1694 = vst [vmem:[%s2634_s18 + $0x1b0] sm:$0xff] %v1630_v22  ;;  %v1631_v46 = vmax.f32 %v1567_v29, 0.0  ;;  %v2808_v44 = vrot.slane %v1149_v49, %v2557_v8  ;;  %v1522_v31 = vadd.f32 %v2617_v54, %v1451_v45  ;;  %v1452_v24 = vadd.f32 %v1875_v17, %v2735_v14  ;;  %v861_v38 = vpop.f32.mrb[15].mxu0  ;;  %v1050_v39 = vpop.f32.mrb[33].mxu1 }
 0x17f   : > { %1692 = vst [vmem:[%s2634_s18 + $0x1a0] sm:$0xff] %v1628_v15  ;;  %v1629_v42 = vmax.f32 %v1565_v57, 0.0  ;;  %v1396_v7 = vrot.slane %v1262_v28, %v2577_v2  ;;  %v1520_v3 = vadd.f32 %v2617_v54, %v1449_v19  ;;  %v1450_v4 = vadd.f32 %v1300_v27, %v861_v38  ;;  %v1923_v60 = vpop.f32.mrb[34].mxu1 }
 0x180   : > { %1695 = vst [vmem:[%s2634_s18 + $0x1b8] sm:$0xff] %v1631_v46  ;;  %v1499_v23 = vadd.f32 %v1922_v50, %v1400_v6  ;;  %v1280_v8 = vcombine.high %v2782_v52, %v2782_v52  ;;  %v1586_v49 = vmax.f32 %v1522_v31, 0.0  ;;  %v1523_v14 = vadd.f32 %v2617_v54, %v1452_v24  ;;  %v1053_v11 = vpop.f32.mrb[35].mxu1 }
 0x181   : > { %1693 = vst [vmem:[%s2634_s18 + $0x1a8] sm:$0xff] %v1629_v42  ;;  %v1497_v34 = vadd.f32 %v1396_v7, %v1050_v39  ;;  %v1278_v16 = vcombine.high %v1262_v28, %v1262_v28  ;;  %v1584_v59 = vmax.f32 %v1520_v3, 0.0  ;;  %v1521_v10 = vadd.f32 %v2617_v54, %v1450_v4 }
 0x182   : > { %v1570_v43 = vadd.f32 %v2617_v54, %v1499_v23  ;;  %v1500_v32 = vadd.f32 %v1923_v60, %v1400_v6  ;;  %1650 = vst [vmem:[%s2634_s18 + $0x50] sm:$0xff] %v1586_v49  ;;  %v1587_v13 = vmax.f32 %v1523_v14, 0.0  ;;  %v1308_v33 = vrot.slane %v1131_v41, %v2577_v2 }
 0x183   : > { %v1568_v5 = vadd.f32 %v2617_v54, %v1497_v34  ;;  %v1498_v30 = vadd.f32 %v1396_v7, %v1053_v11  ;;  %1648 = vst [vmem:[%s2634_s18 + $0x40] sm:$0xff] %v1584_v59  ;;  %v1585_v36 = vmax.f32 %v1521_v10, 0.0  ;;  %v1878_v35 = vpop.f32.mrb[16].mxu0  ;;  %v1408_v27 = vrot.slane %v1280_v8, %v2577_v2 }
 0x184   : > { %v1634_v61 = vmax.f32 %v1570_v43, 0.0  ;;  %v1571_v0 = vadd.f32 %v2617_v54, %v1500_v32  ;;  %1651 = vst [vmem:[%s2634_s18 + $0x58] sm:$0xff] %v1587_v13  ;;  %v1455_v62 = vadd.f32 %v1878_v35, %v2789_v51  ;;  %v874_v1 = vpop.f32.mrb[17].mxu0  ;;  %v1181_v40 = vcombine.high %v2808_v44, %v2808_v44 }
 0x185   : > { %v1632_v63 = vmax.f32 %v1568_v5, 0.0  ;;  %v1569_v48 = vadd.f32 %v2617_v54, %v1498_v30  ;;  %1649 = vst [vmem:[%s2634_s18 + $0x48] sm:$0xff] %v1585_v36  ;;  %v1453_v21 = vadd.f32 %v1308_v33, %v874_v1  ;;  %v1879_v52 = vpop.f32.mrb[18].mxu0  ;;  %v1404_v37 = vrot.slane %v1278_v16, %v2577_v2  ;;  %v1926_v58 = vpop.f32.mrb[36].mxu1 }
 0x186   : > { %1698 = vst [vmem:[%s2634_s18 + $0x1d0] sm:$0xff] %v1634_v61  ;;  %v1635_v12 = vmax.f32 %v1571_v0, 0.0  ;;  %v1179_v55 = vcombine.high %v2695_v25, %v2695_v25  ;;  %v1526_v18 = vadd.f32 %v2617_v54, %v1455_v62  ;;  %v1456_v56 = vadd.f32 %v1879_v52, %v2789_v51  ;;  %v877_v47 = vpop.f32.mrb[19].mxu0  ;;  %v1066_v28 = vpop.f32.mrb[37].mxu1 }
 0x187   : > { %1696 = vst [vmem:[%s2634_s18 + $0x1c0] sm:$0xff] %v1632_v63  ;;  %v1633_v20 = vmax.f32 %v1569_v48, 0.0  ;;  %v2842_v9 = vrot.slane %v1181_v40, %v2577_v2  ;;  %v1524_v26 = vadd.f32 %v2617_v54, %v1453_v21  ;;  %v1454_v22 = vadd.f32 %v1308_v33, %v877_v47  ;;  %v1927_v41 = vpop.f32.mrb[38].mxu1 }
 0x188   : > { %1699 = vst [vmem:[%s2634_s18 + $0x1d8] sm:$0xff] %v1635_v12  ;;  %v1503_v29 = vadd.f32 %v1926_v58, %v1408_v27  ;;  %v1324_v45 = vrot.slane %v1179_v55, %v2577_v2  ;;  %v1590_v53 = vmax.f32 %v1526_v18, 0.0  ;;  %v1527_v51 = vadd.f32 %v2617_v54, %v1456_v56  ;;  %v1069_v6 = vpop.f32.mrb[39].mxu1 }
 0x189   : > { %1697 = vst [vmem:[%s2634_s18 + $0x1c8] sm:$0xff] %v1633_v20  ;;  %v1501_v15 = vadd.f32 %v1404_v37, %v1066_v28  ;;  %v1588_v57 = vmax.f32 %v1524_v26, 0.0  ;;  %v1525_v19 = vadd.f32 %v2617_v54, %v1454_v22  ;;  %v1504_v46 = vadd.f32 %v1927_v41, %v1408_v27 }
 0x18a   : > { %v1574_v17 = vadd.f32 %v2617_v54, %v1503_v29  ;;  %1654 = vst [vmem:[%s2634_s18 + $0x70] sm:$0xff] %v1590_v53  ;;  %v1591_v31 = vmax.f32 %v1527_v51, 0.0  ;;  %v1320_v24 = vrot.slane %v2808_v44, %v2577_v2  ;;  %v1502_v42 = vadd.f32 %v1404_v37, %v1069_v6 }
 0x18b   : > { %v1572_v38 = vadd.f32 %v2617_v54, %v1501_v15  ;;  %1652 = vst [vmem:[%s2634_s18 + $0x60] sm:$0xff] %v1588_v57  ;;  %v1589_v50 = vmax.f32 %v1525_v19, 0.0  ;;  %v1882_v7 = vpop.f32.mrb[20].mxu0  ;;  %v1316_v3 = vrot.slane %v2695_v25, %v2577_v2  ;;  %v1575_v23 = vadd.f32 %v2617_v54, %v1504_v46 }
 0x18c   : > { %v1638_v4 = vmax.f32 %v1574_v17, 0.0  ;;  %1655 = vst [vmem:[%s2634_s18 + $0x78] sm:$0xff] %v1591_v31  ;;  %v1459_v39 = vadd.f32 %v1882_v7, %v1320_v24  ;;  %v890_v8 = vpop.f32.mrb[21].mxu0  ;;  %v1573_v44 = vadd.f32 %v2617_v54, %v1502_v42 }
 0x18d   : > { %v1636_v49 = vmax.f32 %v1572_v38, 0.0  ;;  %1653 = vst [vmem:[%s2634_s18 + $0x68] sm:$0xff] %v1589_v50  ;;  %v1457_v14 = vadd.f32 %v1316_v3, %v890_v8  ;;  %v1883_v34 = vpop.f32.mrb[22].mxu0  ;;  %v1639_v60 = vmax.f32 %v1575_v23, 0.0 }
 0x18e   : > { %1702 = vst [vmem:[%s2634_s18 + $0x1f0] sm:$0xff] %v1638_v4  ;;  %v1530_v2 = vadd.f32 %v2617_v54, %v1459_v39  ;;  %v1460_v25 = vadd.f32 %v1883_v34, %v1320_v24  ;;  %v893_v16 = vpop.f32.mrb[23].mxu0  ;;  %v1637_v59 = vmax.f32 %v1573_v44, 0.0 }
 0x18f   : > { %1700 = vst [vmem:[%s2634_s18 + $0x1e0] sm:$0xff] %v1636_v49  ;;  %v1528_v10 = vadd.f32 %v2617_v54, %v1457_v14  ;;  %v1458_v43 = vadd.f32 %v1316_v3, %v893_v16  ;;  %1703 = vst [vmem:[%s2634_s18 + $0x1f8] sm:$0xff] %v1639_v60 }
 0x190   : > { %v1594_v32 = vmax.f32 %v1530_v2, 0.0  ;;  %v1531_v11 = vadd.f32 %v2617_v54, %v1460_v25  ;;  %1701 = vst [vmem:[%s2634_s18 + $0x1e8] sm:$0xff] %v1637_v59 }
 0x191   : > { %v1592_v13 = vmax.f32 %v1528_v10, 0.0  ;;  %v1529_v33 = vadd.f32 %v2617_v54, %v1458_v43 }
 0x192   : > { %1658 = vst [vmem:[%s2634_s18 + $0x90] sm:$0xff] %v1594_v32  ;;  %v1595_v5 = vmax.f32 %v1531_v11, 0.0 }
 0x193   : > { %1656 = vst [vmem:[%s2634_s18 + $0x80] sm:$0xff] %v1592_v13  ;;  %v1593_v30 = vmax.f32 %v1529_v33, 0.0  ;;  %v1886_v36 = vpop.f32.mrb[24].mxu0 }
 0x194   : > { %1659 = vst [vmem:[%s2634_s18 + $0x98] sm:$0xff] %v1595_v5  ;;  %v1463_v35 = vadd.f32 %v1886_v36, %v2842_v9  ;;  %v906_v61 = vpop.f32.mrb[25].mxu0 }
 0x195   : > { %1657 = vst [vmem:[%s2634_s18 + $0x88] sm:$0xff] %v1593_v30  ;;  %v1461_v0 = vadd.f32 %v1324_v45, %v906_v61  ;;  %v1887_v27 = vpop.f32.mrb[26].mxu0 }
 0x196   : > { %v1534_v62 = vadd.f32 %v2617_v54, %v1463_v35  ;;  %v1464_v1 = vadd.f32 %v1887_v27, %v2842_v9  ;;  %v909_v63 = vpop.f32.mrb[27].mxu0 }
 0x197   : > { %v1532_v48 = vadd.f32 %v2617_v54, %v1461_v0  ;;  %v1462_v40 = vadd.f32 %v1324_v45, %v909_v63 }
 0x198   : > { %v1598_v21 = vmax.f32 %v1534_v62, 0.0  ;;  %v1535_v52 = vadd.f32 %v2617_v54, %v1464_v1 }
 0x199   : > { %v1596_v12 = vmax.f32 %v1532_v48, 0.0  ;;  %v1533_v37 = vadd.f32 %v2617_v54, %v1462_v40 }
 0x19a   : > { %1662 = vst [vmem:[%s2634_s18 + $0xb0] sm:$0xff] %v1598_v21  ;;  %v1599_v55 = vmax.f32 %v1535_v52, 0.0 }
 0x19b   : > { %1660 = vst [vmem:[%s2634_s18 + $0xa0] sm:$0xff] %v1596_v12  ;;  %v1597_v18 = vmax.f32 %v1533_v37, 0.0 }
 0x19c   : > { %1663 = vst [vmem:[%s2634_s18 + $0xb8] sm:$0xff] %v1599_v55 }
 0x19d   : > { %1661 = vst [vmem:[%s2634_s18 + $0xa8] sm:$0xff] %v1597_v18 }
 0x19e PF: > { %s14_s15 = sadd.s32 1, %s1959_s15  }
 0x19f   : > { %p11_p4 = scmp.ge.s32.totalorder %s14_s15, 4  }
 0x1a1   :  { %13 = sbr.rel (!%p11_p4) target bundleno = 1 (0x1), region = 66 }

// kernel: hierarchic_micro_macro_forward.17
= control target key start
LH: loop header
LB: loop body
LE: loop exit
PB: predicated region body
PF: predicated region fallthrough
CT: control target
= control target key end

     0   :  { %v256_v3 = vmov 0.0   ;;  %vm257_vm0 = vmmov 0   ;;  %s404_s0 = inlined_call_operand.vmem [shape: f32[16,64], index: 0, kind: input, shape index: {}]   ;;  %s405_s1 = inlined_call_operand.vmem [shape: f32[64,128], index: 1, kind: input, shape index: {}]   ;;  %s406_s2 = inlined_call_operand.vmem [shape: f32[16,128], index: 2, kind: input, shape index: {}]   ;;  %s407_s3 = inlined_call_operand.vmem [shape: f32[128,128], index: 3, kind: input, shape index: {}]   ;;  %s408_s4 = inlined_call_operand.vmem [shape: f32[1,128], index: 4, kind: input, shape index: {}]   ;;  %s409_s5 = inlined_call_operand.hbm [shape: f32[16,128], index: 5, kind: output, shape index: {}]  }
   0x1   :  { %v40_v0 = vld [vmem:[%s407_s3] sm:$0xff]  ;;  %v41_v1 = vld [vmem:[%s407_s3 + $0x8] sm:$0xff]  ;;  %v42_v2 = vld [vmem:[%s407_s3 + $0x10] sm:$0xff]  ;;  %195 = vmatprep.subr.bf16.mxu0 %v256_v3  ;;  %215 = vmatprep.subr.bf16.mxu1 %v256_v3 }
   0x2   :  { %v56_v4 = vpack.c.bf16 %v41_v1, %v40_v0  ;;  %v43_v5 = vld [vmem:[%s407_s3 + $0x18] sm:$0xff]  ;;  %v25_v6 = vld [vmem:[%s405_s1] sm:$0xff]  ;;  %223 = vmatprep.mubr.msk.bf16.mxu1 %vm257_vm0, %v256_v3  ;;  %211 = vmatprep.mubr.msk.bf16.mxu0 %vm257_vm0, %v256_v3  ;;  %v26_v9 = vld [vmem:[%s405_s1 + $0x8] sm:$0xff] }
   0x3   :  { %v57_v7 = vpack.c.bf16 %v43_v5, %v42_v2  ;;  %v44_v8 = vld [vmem:[%s407_s3 + $0x20] sm:$0xff]  ;;  %v45_v10 = vld [vmem:[%s407_s3 + $0x28] sm:$0xff]  ;;  %v33_v11 = vpack.c.bf16 %v26_v9, %v25_v6  ;;  %v27_v12 = vld [vmem:[%s405_s1 + $0x10] sm:$0xff] }
   0x4   :  { %196 = vmatpush3.bf16.msra.mxu0 %v56_v4  ;;  %v28_v13 = vld [vmem:[%s405_s1 + $0x18] sm:$0xff]  ;;  %v58_v15 = vpack.c.bf16 %v45_v10, %v44_v8  ;;  %v29_v16 = vld [vmem:[%s405_s1 + $0x20] sm:$0xff]  ;;  %v30_v17 = vld [vmem:[%s405_s1 + $0x28] sm:$0xff] }
   0x5   :  { %197 = vmatprep.subr.bf16.mxu0 %v256_v3  ;;  %216 = vmatpush3.bf16.msra.mxu1 %v33_v11  ;;  %v34_v14 = vpack.c.bf16 %v28_v13, %v27_v12  ;;  %v46_v18 = vld [vmem:[%s407_s3 + $0x30] sm:$0xff]  ;;  %v47_v19 = vld [vmem:[%s407_s3 + $0x38] sm:$0xff] }
   0x6   :  { %217 = vmatprep.subr.bf16.mxu1 %v256_v3 }
   0x8   :  { %198 = vmatpush3.bf16.msra.mxu0 %v57_v7 }
   0x9   :  { %199 = vmatprep.subr.bf16.mxu0 %v256_v3 }
   0xa   :  { %10 = vsyncpa [#allocation3], 0  ;;  %218 = vmatpush3.bf16.msra.mxu1 %v34_v14  ;;  %v35_v20 = vpack.c.bf16 %v30_v17, %v29_v16  ;;  %v59_v21 = vpack.c.bf16 %v47_v19, %v46_v18  ;;  %v31_v22 = vld [vmem:[%s405_s1 + $0x30] sm:$0xff]  ;;  %v32_v23 = vld [vmem:[%s405_s1 + $0x38] sm:$0xff]  ;;  %vm105_vm1 = vcmask 523264  }
   0xb   :  { %219 = vmatprep.subr.bf16.mxu1 %v256_v3  ;;  %v48_v24 = vld [vmem:[%s407_s3 + $0x40] sm:$0xff]  ;;  %v49_v25 = vld [vmem:[%s407_s3 + $0x48] sm:$0xff]  ;;  %v36_v26 = vpack.c.bf16 %v32_v23, %v31_v22  ;;  %v50_v30 = vld [vmem:[%s407_s3 + $0x50] sm:$0xff] }
   0xc   :  { %200 = vmatpush3.bf16.msra.mxu0 %v58_v15  ;;  %v22_v27 = vld [vmem:[%s404_s0] sm:$0xff]  ;;  %v23_v28 = vld [vmem:[%s404_s0 + $0x8] sm:$0xff]  ;;  %v60_v29 = vpack.c.bf16 %v49_v25, %v48_v24  ;;  %v51_v31 = vld [vmem:[%s407_s3 + $0x58] sm:$0xff] }
   0xd   :  { %201 = vmatprep.subr.bf16.mxu0 %v256_v3  ;;  %v24_v32 = vpack.c.bf16 %v23_v28, %v22_v27  ;;  %v61_v33 = vpack.c.bf16 %v51_v31, %v50_v30  ;;  %v52_v34 = vld [vmem:[%s407_s3 + $0x60] sm:$0xff]  ;;  %v53_v35 = vld [vmem:[%s407_s3 + $0x68] sm:$0xff]  ;;  %v54_v37 = vld [vmem:[%s407_s3 + $0x70] sm:$0xff] }
   0xe   :  { %220 = vmatpush3.bf16.msra.mxu1 %v35_v20  ;;  %v62_v36 = vpack.c.bf16 %v53_v35, %v52_v34  ;;  %v55_v38 = vld [vmem:[%s407_s3 + $0x78] sm:$0xff]  ;;  %v37_v40 = vld [vmem:[%s406_s2] sm:$0xff]  ;;  %v38_v41 = vld [vmem:[%s406_s2 + $0x8] sm:$0xff]  ;;  %s258_s2 = smov [#allocation2]  }
   0xf   :  { %221 = vmatprep.subr.bf16.mxu1 %v256_v3  ;;  %v63_v39 = vpack.c.bf16 %v55_v38, %v54_v37  ;;  %v39_v42 = vpack.c.bf16 %v38_v41, %v37_v40  ;;  %v180_v48 = vld [vmem:[%s408_s4] ss:$0 sm:$0xff]  ;;  %s168_s23 = sshll.u32 %s258_s2, 4  ;;  %s169_s23 = int_to_ptr.vmem [resolvable:$true] %s168_s23 }
  0x10   :  { %202 = vmatpush3.bf16.msra.mxu0 %v59_v21  ;;  %s232_s24 = scalar_lea.vmem %s169_s23, 256  ;;  %p237_p1 = scmp.lt.s32.totalorder %s169_s23, %s169_s23 }
  0x11   :  { %203 = vmatprep.subr.bf16.mxu0 %v256_v3  ;;  %p233_p0 = scmp.ne.s32.totalorder %s169_s23, %s232_s24  ;;  %p238_p2 = scmp.lt.s32.totalorder %s232_s24, %s232_s24 }
  0x12   :  { %222 = vmatpush3.bf16.msra.mxu1 %v36_v26 }
  0x13   :  { %p239_p3 = por %p238_p2, %p237_p1 }
  0x14   :  { %204 = vmatpush3.bf16.msra.mxu0 %v60_v29 }
  0x15   :  { %205 = vmatprep.subr.bf16.mxu0 %v256_v3  ;;  %224 = vmatmul.mubr.msk.bf16.vlgmr.msra.gmra.mrb[0].mxu1 %vm105_vm1, %v24_v32  ;;  %p240_p4 = pnand %p239_p3, %p233_p0 }
  0x18   :  { %206 = vmatpush3.bf16.msra.mxu0 %v61_v33 }
  0x19   :  { %207 = vmatprep.subr.bf16.mxu0 %v256_v3 }
  0x1c   :  { %208 = vmatpush3.bf16.msra.mxu0 %v62_v36 }
  0x1d   :  { %209 = vmatprep.subr.bf16.mxu0 %v256_v3 }
  0x20   :  { %210 = vmatpush3.bf16.msra.mxu0 %v63_v39 }
  0x23   :  { %212 = vmatmul.mubr.bf16.vlgmr.msra.gmra.mrb[0].mxu0 %v39_v42 }
  0xe8   :  { %v143_v43 = vpop.f32.mrb[0].mxu1 }
  0xe9   :  { %v225_v44 = vpop.f32.mrb[1].mxu1 }
  0xea   :  { %v146_v45 = vpop.f32.mrb[2].mxu1 }
  0xeb   :  { %v226_v46 = vpop.f32.mrb[3].mxu1 }
  0xf6   :  { %v98_v47 = vpop.f32.mrb[0].mxu0 }
  0xf7   :  { %v144_v49 = vadd.f32 %v143_v43, %v98_v47  ;;  %v213_v50 = vpop.f32.mrb[1].mxu0 }
  0xf8   :  { %v101_v51 = vpop.f32.mrb[2].mxu0 }
  0xf9   :  { %v157_v52 = vadd.f32 %v180_v48, %v144_v49  ;;  %v147_v53 = vadd.f32 %v146_v45, %v101_v51  ;;  %v214_v54 = vpop.f32.mrb[3].mxu0 }
  0xfb   :  { %v159_v55 = vmax.f32 %v157_v52, 0.0  ;;  %v158_v56 = vadd.f32 %v180_v48, %v147_v53 }
  0xfd   :  { %161 = vst [vmem:[#allocation2] sm:$0xff] %v159_v55  ;;  %v160_v57 = vmax.f32 %v158_v56, 0.0 }
  0xff   :  { %162 = vst [vmem:[#allocation2 + $0x8] sm:$0xff] %v160_v57 }
 0x100   :  { %243 = shalt.err (!%p240_p4)
}
 0x101   :  { %s244_s26 = scalar_lea.hbm %s409_s5, 256 }
 0x102   :  { %p245_p5 = scmp.ne.s32.totalorder %s409_s5, %s244_s26  ;;  %p248_p6 = scmp.lt.u32.totalorder %s244_s26, %s409_s5 }
 0x104   :  { %p250_p7 = pnand %p248_p6, %p245_p5 }
 0x106   :  { %253 = shalt.err (!%p250_p7)
}
 0x107   :  { %s259_s6 = smov 128   ;;  %s260_s7 = smov 8  }
 0x108   :  { %174 = dma.vmem_to_hbm [thread:$0]  %s169_s23, 256, %s409_s5, [#allocation3], %s259_s6, %s259_s6, %s260_s7  }
 0x109   :  { %254 = dma.done.wait [#allocation3], 256  }
 0x10a   :  { %255 = vsyncadd [#allocation3], 4294967040 }
 0x10b   :  { %178 = vsyncpa [#allocation3], 1 }

</bundles_post_ra>
